<compile_context>
chip_gen: v7x
topology: tpu7x:2x2x1
jax: 0.10.0
libtpu: 0.0.40
codegen_flags: <defaults>
</compile_context>

<pallas_src>
import functools

import jax
import jax.numpy as jnp
from jax import lax
from jax.experimental import pallas as pl
from jax.experimental.pallas import tpu as pltpu


def _round_up(x, m):
    return ((x + m - 1) // m) * m


# ----------------------------- tiled matmul kernel --------------------------

def _matmul_bias_act_kernel(x_ref, w_ref, b_ref, o_ref, acc_ref, *, relu):
    k = pl.program_id(2)

    @pl.when(k == 0)
    def _():
        acc_ref[...] = jnp.zeros_like(acc_ref)

    acc_ref[...] += jnp.dot(x_ref[...], w_ref[...],
                            preferred_element_type=jnp.float32)

    @pl.when(k == pl.num_programs(2) - 1)
    def _():
        r = acc_ref[...] + b_ref[...]
        if relu:
            r = jnp.maximum(r, 0.0)
        o_ref[...] = r.astype(o_ref.dtype)


def matmul_bias_act(x, w, b, *, relu):
    """(M,K) @ (K,N) + b (+ReLU).  bf16 operands, f32 accumulation, tiled."""
    M, K = x.shape
    K2, N = w.shape
    assert K == K2 and b.shape == (N,)

    tm = 128 if M >= 128 else _round_up(M, 16)
    tn = 256 if N >= 256 else _round_up(N, 128)
    tk = 512 if K >= 512 else _round_up(K, 128)
    Mp, Np, Kp = _round_up(M, tm), _round_up(N, tn), _round_up(K, tk)

    xp = jnp.pad(x, ((0, Mp - M), (0, Kp - K))).astype(jnp.bfloat16)
    wp = jnp.pad(w, ((0, Kp - K), (0, Np - N))).astype(jnp.bfloat16)
    bp = jnp.pad(b, (0, Np - N)).reshape(1, Np).astype(jnp.float32)

    grid = (Mp // tm, Np // tn, Kp // tk)
    out = pl.pallas_call(
        functools.partial(_matmul_bias_act_kernel, relu=relu),
        grid=grid,
        in_specs=[
            pl.BlockSpec((tm, tk), lambda i, j, k: (i, k)),
            pl.BlockSpec((tk, tn), lambda i, j, k: (k, j)),
            pl.BlockSpec((1, tn), lambda i, j, k: (0, j)),
        ],
        out_specs=pl.BlockSpec((tm, tn), lambda i, j, k: (i, j)),
        out_shape=jax.ShapeDtypeStruct((Mp, Np), jnp.float32),
        scratch_shapes=[pltpu.VMEM((tm, tn), jnp.float32)],
        compiler_params=pltpu.CompilerParams(
            dimension_semantics=("parallel", "parallel", "arbitrary"),
            vmem_limit_bytes=32 * 1024 * 1024),
        cost_estimate=pl.CostEstimate(
            flops=2 * Mp * Np * Kp, transcendentals=0,
            bytes_accessed=Mp * Kp * 2 + Kp * Np * 2 + Mp * Np * 4),
    )(xp, wp, bp)
    return out[:M, :N]


# ----------------- stride-1 conv: shifted-row matmul accumulation -----------

def _conv_s1_row_kernel(x_ref, w_ref, b_ref, o_ref, acc_ref, *,
                        kw, ow, cin, relu):
    i = pl.program_id(2)          # kernel tap row (reduction axis)

    @pl.when(i == 0)
    def _():
        acc_ref[...] = jnp.zeros_like(acc_ref)

    acc = acc_ref[...]
    for j in range(kw):                                   # static tap columns
        lhs = x_ref[0, 0, j:j + ow, :]                    # (OW, Cin)   bf16
        rhs = w_ref[0, j * cin:(j + 1) * cin, :]          # (Cin, Cout) bf16
        acc += jnp.dot(lhs, rhs, preferred_element_type=jnp.float32)
    acc_ref[...] = acc

    @pl.when(i == pl.num_programs(2) - 1)
    def _():
        r = acc_ref[...] + b_ref[...]
        if relu:
            r = jnp.maximum(r, 0.0)
        o_ref[0, 0] = r.astype(o_ref.dtype)


def conv2d_s1(x_nhwc, w_oihw, b, *, pad, relu=True):
    """stride-1 conv, 'same'-style explicit pad, no HBM im2col."""
    cout, cin_w, kh, kw = w_oihw.shape
    n, h, w_in, cin = x_nhwc.shape
    assert cin >= cin_w
    if cin > cin_w:                      # activation channels padded upstream
        w_oihw = jnp.pad(w_oihw, ((0, 0), (0, cin - cin_w), (0, 0), (0, 0)))
    cout_p = _round_up(cout, 128)        # lane-dense output channels
    if cout_p > cout:
        w_oihw = jnp.pad(w_oihw, ((0, cout_p - cout), (0, 0), (0, 0), (0, 0)))
        b = jnp.pad(b, (0, cout_p - cout))

    oh = h + 2 * pad - kh + 1
    ow = w_in + 2 * pad - kw + 1
    hpad, wpad = h + 2 * pad, w_in + 2 * pad

    xp = jnp.pad(x_nhwc, ((0, 0), (pad, pad), (pad, pad), (0, 0))
                 ).astype(jnp.bfloat16)
    w_mat = jnp.transpose(w_oihw, (2, 3, 1, 0)).reshape(
        kh, kw * cin, cout_p).astype(jnp.bfloat16)
    b2 = b.reshape(1, cout_p).astype(jnp.float32)

    return pl.pallas_call(
        functools.partial(_conv_s1_row_kernel, kw=kw, ow=ow, cin=cin,
                          relu=relu),
        grid=(n, oh, kh),
        in_specs=[
            pl.BlockSpec((1, 1, wpad, cin), lambda nn, r, i: (nn, r + i, 0, 0)),
            pl.BlockSpec((1, kw * cin, cout_p), lambda nn, r, i: (i, 0, 0)),
            pl.BlockSpec((1, cout_p), lambda nn, r, i: (0, 0)),
        ],
        out_specs=pl.BlockSpec((1, 1, ow, cout_p),
                               lambda nn, r, i: (nn, r, 0, 0)),
        out_shape=jax.ShapeDtypeStruct((n, oh, ow, cout_p), jnp.float32),
        scratch_shapes=[pltpu.VMEM((ow, cout_p), jnp.float32)],
        compiler_params=pltpu.CompilerParams(
            dimension_semantics=("parallel", "parallel", "arbitrary"),
            vmem_limit_bytes=32 * 1024 * 1024),
        cost_estimate=pl.CostEstimate(
            flops=2 * n * oh * ow * kh * kw * cin * cout_p,
            transcendentals=0,
            bytes_accessed=(n * oh * kh * wpad * cin * 2
                            + n * oh * kh * kw * cin * cout_p * 2
                            + n * oh * ow * cout_p * 4)),
    )(xp, w_mat, b2)


# ----------------------------- max pool kernel ------------------------------

def _maxpool_s1_kernel(x_ref, o_ref, *, k):
    oh1, ow1 = o_ref.shape[1], o_ref.shape[2]
    m = x_ref[0, 0:oh1, 0:ow1, :]
    for i in range(k):
        for j in range(k):
            if i == 0 and j == 0:
                continue
            m = jnp.maximum(m, x_ref[0, i:i + oh1, j:j + ow1, :])
    o_ref[0] = m


def maxpool2d(x_nhwc, k, stride):
    n, h, w, c = x_nhwc.shape
    oh1, ow1 = h - k + 1, w - k + 1
    y = pl.pallas_call(
        functools.partial(_maxpool_s1_kernel, k=k),
        grid=(n,),
        in_specs=[pl.BlockSpec((1, h, w, c), lambda b: (b, 0, 0, 0))],
        out_specs=pl.BlockSpec((1, oh1, ow1, c), lambda b: (b, 0, 0, 0)),
        out_shape=jax.ShapeDtypeStruct((n, oh1, ow1, c), x_nhwc.dtype),
        compiler_params=pltpu.CompilerParams(
            dimension_semantics=("parallel",)),
    )(x_nhwc)
    # TODO(synk): do the stride-2 subsample in-kernel with strided pl.ds loads.
    return y[:, ::stride, ::stride, :]


# ------------------------- fused GAP + Linear kernel -------------------------

def _gap_fc_kernel(x_ref, w_ref, b_ref, o_ref):
    xm = jnp.mean(x_ref[...], axis=1)                         # (nb, C) f32
    y = jnp.dot(xm.astype(jnp.bfloat16), w_ref[...],
                preferred_element_type=jnp.float32)
    o_ref[...] = (y + b_ref[...]).astype(o_ref.dtype)


def gap_fc(x_nhwc, fc_w, fc_b):
    n, h, w, c = x_nhwc.shape
    cin, nc = fc_w.shape
    assert cin == c
    ncp = _round_up(nc, 128)
    wq = jnp.pad(fc_w, ((0, 0), (0, ncp - nc))).astype(jnp.bfloat16)
    bq = jnp.pad(fc_b, (0, ncp - nc)).reshape(1, ncp).astype(jnp.float32)

    nb = n if n <= 8 else 8
    n_p = _round_up(n, nb)
    xr = x_nhwc.reshape(n, h * w, c)
    if n_p > n:
        xr = jnp.pad(xr, ((0, n_p - n), (0, 0), (0, 0)))

    out = pl.pallas_call(
        _gap_fc_kernel,
        grid=(n_p // nb,),
        in_specs=[
            pl.BlockSpec((nb, h * w, c), lambda b: (b, 0, 0)),
            pl.BlockSpec((c, ncp), lambda b: (0, 0)),
            pl.BlockSpec((1, ncp), lambda b: (0, 0)),
        ],
        out_specs=pl.BlockSpec((nb, ncp), lambda b: (b, 0)),
        out_shape=jax.ShapeDtypeStruct((n_p, ncp), jnp.float32),
        compiler_params=pltpu.CompilerParams(
            dimension_semantics=("parallel",)),
    )(xr, wq, bq)
    return out[:n, :nc]


# ------------------------------ JAX glue (conv0) -----------------------------

def _extract_patches(x_nhwc, kh, kw, stride, pad):
    if pad:
        x_nhwc = jnp.pad(x_nhwc, ((0, 0), (pad, pad), (pad, pad), (0, 0)))
    n, h, w, c = x_nhwc.shape
    oh = (h - kh) // stride + 1
    ow = (w - kw) // stride + 1
    slices = []
    for i in range(kh):
        for j in range(kw):
            slices.append(
                x_nhwc[:, i:i + stride * oh:stride, j:j + stride * ow:stride, :])
    p = jnp.stack(slices, axis=3)          # (n, oh, ow, kh*kw, c)
    return p, oh, ow


def conv2d_im2col(x_nhwc, w_oihw, b, *, stride, pad, relu=True):
    """Strided conv via im2col + tiled matmul (only used for conv0, Cin=1)."""
    cout, cin, kh, kw = w_oihw.shape
    n = x_nhwc.shape[0]
    cout_p = _round_up(cout, 128)
    p, oh, ow = _extract_patches(x_nhwc, kh, kw, stride, pad)
    patches = p.reshape(n * oh * ow, kh * kw * cin)
    w_mat = jnp.transpose(w_oihw, (2, 3, 1, 0)).reshape(kh * kw * cin, cout)
    w_mat = jnp.pad(w_mat, ((0, 0), (0, cout_p - cout)))
    b_p = jnp.pad(b, (0, cout_p - cout))
    out = matmul_bias_act(patches, w_mat, b_p, relu=relu)
    return out.reshape(n, oh, ow, cout_p)


# ------------------------- parameters & forward ------------------------------

_CONV_SHAPES = [                # (Cout, Cin, KH, KW), stride, pad
    ((64, 1, 11, 11), 4, 2),
    ((192, 64, 5, 5), 1, 2),
    ((384, 192, 3, 3), 1, 1),
    ((256, 384, 3, 3), 1, 1),
    ((256, 256, 3, 3), 1, 1),
    ((1024, 256, 3, 3), 1, 1),
]


def init_params(key, num_classes):
    params = {}
    keys = jax.random.split(key, len(_CONV_SHAPES) + 1)
    for idx, ((shape, _, _), k) in enumerate(zip(_CONV_SHAPES, keys[:-1])):
        kw_, kb_ = jax.random.split(k)
        fan_in = shape[1] * shape[2] * shape[3]
        scale = 1.0 / jnp.sqrt(fan_in)
        params[f"conv{idx}_w"] = jax.random.uniform(kw_, shape, jnp.float32,
                                                    -scale, scale)
        params[f"conv{idx}_b"] = jax.random.uniform(kb_, (shape[0],),
                                                    jnp.float32, -scale, scale)
    kw_, kb_ = jax.random.split(keys[-1])
    scale = 1.0 / jnp.sqrt(1024.0)
    params["fc_w"] = jax.random.uniform(kw_, (1024, num_classes), jnp.float32,
                                        -scale, scale)
    params["fc_b"] = jax.random.uniform(kb_, (num_classes,), jnp.float32,
                                        -scale, scale)
    return params


def alexnet_forward(params, x_nchw):
    x = jnp.transpose(x_nchw, (0, 2, 3, 1))   # NCHW -> NHWC
    # features (channel counts padded to multiples of 128 inside the wrappers;
    # padded channels carry exact zeros through pool/conv and never leak).
    x = conv2d_im2col(x, params["conv0_w"], params["conv0_b"], stride=4, pad=2)
    x = maxpool2d(x, 3, 2)
    x = conv2d_s1(x, params["conv1_w"], params["conv1_b"], pad=2)
    x = maxpool2d(x, 3, 2)
    x = conv2d_s1(x, params["conv2_w"], params["conv2_b"], pad=1)
    x = conv2d_s1(x, params["conv3_w"], params["conv3_b"], pad=1)
    x = conv2d_s1(x, params["conv4_w"], params["conv4_b"], pad=1)
    x = conv2d_s1(x, params["conv5_w"], params["conv5_b"], pad=1)
    # fused AdaptiveAvgPool2d((1,1)) + flatten + Linear.
    # Dropout(0.2) is identity at inference time.
    return gap_fc(x, params["fc_w"], params["fc_b"])


# ----------------------------- pure-JAX reference ----------------------------
# Reference evaluates in the same mixed precision (bf16 operands, f32 accum).

def alexnet_ref(params, x_nchw):
    x = jnp.transpose(x_nchw, (0, 2, 3, 1))

    def conv(x, w, b, stride, pad):
        y = lax.conv_general_dilated(
            x.astype(jnp.bfloat16),
            jnp.transpose(w, (2, 3, 1, 0)).astype(jnp.bfloat16),
            window_strides=(stride, stride),
            padding=[(pad, pad), (pad, pad)],
            dimension_numbers=("NHWC", "HWIO", "NHWC"),
            preferred_element_type=jnp.float32)
        return jnp.maximum(y + b, 0.0)

    def maxpool(x):
        return lax.reduce_window(x, -jnp.inf, lax.max,
                                 (1, 3, 3, 1), (1, 2, 2, 1), "VALID")

    x = conv(x, params["conv0_w"], params["conv0_b"], 4, 2); x = maxpool(x)
    x = conv(x, params["conv1_w"], params["conv1_b"], 1, 2); x = maxpool(x)
    x = conv(x, params["conv2_w"], params["conv2_b"], 1, 1)
    x = conv(x, params["conv3_w"], params["conv3_b"], 1, 1)
    x = conv(x, params["conv4_w"], params["conv4_b"], 1, 1)
    x = conv(x, params["conv5_w"], params["conv5_b"], 1, 1)
    g = jnp.mean(x, axis=(1, 2))
    y = jnp.dot(g.astype(jnp.bfloat16), params["fc_w"].astype(jnp.bfloat16),
                preferred_element_type=jnp.float32)
    return y + params["fc_b"]


if __name__ == "__main__":
    key = jax.random.PRNGKey(0)
    pkey, xkey = jax.random.split(key)
    num_classes = 10                       # small, stands in for default 1000
    params = init_params(pkey, num_classes)
    # smallest input that survives the two stride-2 maxpools: 32x32, 1 channel
    x = jax.random.normal(xkey, (2, 1, 32, 32), jnp.float32)

    fwd = jax.jit(alexnet_forward)
    out = jax.block_until_ready(fwd(params, x))
    ref = jax.block_until_ready(alexnet_ref(params, x))

    assert out.shape == (2, num_classes), out.shape
    assert bool(jnp.all(jnp.isfinite(out)))
    assert bool(jnp.allclose(out, ref, atol=5e-3, rtol=5e-3)), "mismatch vs reference"
    print("KERNEL_OK")
</pallas_src>

<mosaic_0001>
module attributes {stable_mosaic.version = 11 : i64} {
  func.func @_matmul_bias_act_kernel(%arg0: i32, %arg1: i32, %arg2: i32, %arg3: memref<112x128xbf16, #tpu.memory_space<vmem>>, %arg4: memref<128x128xbf16, #tpu.memory_space<vmem>>, %arg5: memref<1x128xf32, #tpu.memory_space<vmem>>, %arg6: memref<112x128xf32, #tpu.memory_space<vmem>>, %arg7: memref<112x128xf32, #tpu.memory_space<vmem>>) attributes {dimension_semantics = [#tpu.dimension_semantics<parallel>, #tpu.dimension_semantics<parallel>, #tpu.dimension_semantics<arbitrary>], iteration_bounds = array<i64: 1, 1, 1>, scalar_prefetch = 0 : i64, scratch_operands = 1 : i64, tpu.core_type = #tpu.core_type<tc>, window_params = [{transform_indices = @transform_0, window_bounds = array<i64: 112, 128>}, {transform_indices = @transform_1, window_bounds = array<i64: 128, 128>}, {transform_indices = @transform_2, window_bounds = array<i64: 1, 128>}, {transform_indices = @transform_3, window_bounds = array<i64: 112, 128>}]} {
    %c0_i32 = arith.constant 0 : i32
    %0 = arith.cmpi eq, %arg2, %c0_i32 : i32
    %1 = arith.extui %0 : i1 to i32
    %c0_i32_0 = arith.constant 0 : i32
    %2 = arith.cmpi ne, %1, %c0_i32_0 : i32
    scf.if %2 {
      %cst_10 = arith.constant 0.000000e+00 : f32
      %12 = vector.broadcast %cst_10 : f32 to vector<112x128xf32>
      %c0_11 = arith.constant 0 : index
      %c0_12 = arith.constant 0 : index
      %13 = vector.load %arg7[%c0_11, %c0_12] : memref<112x128xf32, #tpu.memory_space<vmem>>, vector<112x128xf32>
      tpu.vector_store %arg7[%c0_11, %c0_12], %12 {strides = array<i32>} : memref<112x128xf32, #tpu.memory_space<vmem>>, vector<112x128xf32>,
    } else {
    }
    %c0 = arith.constant 0 : index
    %c0_1 = arith.constant 0 : index
    %3 = vector.load %arg7[%c0, %c0_1] : memref<112x128xf32, #tpu.memory_space<vmem>>, vector<112x128xf32>
    %c0_2 = arith.constant 0 : index
    %c0_3 = arith.constant 0 : index
    %4 = vector.load %arg3[%c0_2, %c0_3] : memref<112x128xbf16, #tpu.memory_space<vmem>>, vector<112x128xbf16>
    %c0_4 = arith.constant 0 : index
    %c0_5 = arith.constant 0 : index
    %5 = vector.load %arg4[%c0_4, %c0_5] : memref<128x128xbf16, #tpu.memory_space<vmem>>, vector<128x128xbf16>
    %cst = arith.constant dense<0.000000e+00> : vector<112x128xf32>
    %6 = tpu.matmul %4, %5, %cst {dimension_numbers = #tpu.dot_dimension_numbers<[1], [0], [0], [1], [0, 0, 1, 1], [], []>} : vector<112x128xbf16>, vector<128x128xbf16>, vector<112x128xf32> -> vector<112x128xf32>
    %7 = arith.addf %3, %6 : vector<112x128xf32>
    %c0_6 = arith.constant 0 : index
    %c0_7 = arith.constant 0 : index
    %8 = vector.load %arg7[%c0_6, %c0_7] : memref<112x128xf32, #tpu.memory_space<vmem>>, vector<112x128xf32>
    tpu.vector_store %arg7[%c0_6, %c0_7], %7 {strides = array<i32>} : memref<112x128xf32, #tpu.memory_space<vmem>>, vector<112x128xf32>,
    %c0_i32_8 = arith.constant 0 : i32
    %9 = arith.cmpi eq, %arg2, %c0_i32_8 : i32
    %10 = arith.extui %9 : i1 to i32
    %c0_i32_9 = arith.constant 0 : i32
    %11 = arith.cmpi ne, %10, %c0_i32_9 : i32
    scf.if %11 {
      %c0_10 = arith.constant 0 : index
      %c0_11 = arith.constant 0 : index
      %12 = vector.load %arg7[%c0_10, %c0_11] : memref<112x128xf32, #tpu.memory_space<vmem>>, vector<112x128xf32>
      %c0_12 = arith.constant 0 : index
      %c0_13 = arith.constant 0 : index
      %13 = vector.load %arg5[%c0_12, %c0_13] : memref<1x128xf32, #tpu.memory_space<vmem>>, vector<1x128xf32>
      %14 = vector.broadcast %13 : vector<1x128xf32> to vector<112x128xf32>
      %15 = arith.addf %12, %14 : vector<112x128xf32>
      %cst_14 = arith.constant 0.000000e+00 : f32
      %16 = vector.broadcast %cst_14 : f32 to vector<112x128xf32>
      %17 = arith.maximumf %15, %16 : vector<112x128xf32>
      %c0_15 = arith.constant 0 : index
      %c0_16 = arith.constant 0 : index
      %18 = vector.load %arg6[%c0_15, %c0_16] : memref<112x128xf32, #tpu.memory_space<vmem>>, vector<112x128xf32>
      tpu.vector_store %arg6[%c0_15, %c0_16], %17 {strides = array<i32>} : memref<112x128xf32, #tpu.memory_space<vmem>>, vector<112x128xf32>,
    } else {
    }
    return
  }
  func.func @transform_0(%arg0: i32, %arg1: i32, %arg2: i32) -> (i32, i32) {
    %c0_i32 = arith.constant 0 : i32
    return %arg0, %arg2 : i32, i32
  }
  func.func @transform_1(%arg0: i32, %arg1: i32, %arg2: i32) -> (i32, i32) {
    %c0_i32 = arith.constant 0 : i32
    return %arg2, %arg1 : i32, i32
  }
  func.func @transform_2(%arg0: i32, %arg1: i32, %arg2: i32) -> (i32, i32) {
    %c0_i32 = arith.constant 0 : i32
    %c0_i32_0 = arith.constant 0 : i32
    return %c0_i32, %arg1 : i32, i32
  }
  func.func @transform_3(%arg0: i32, %arg1: i32, %arg2: i32) -> (i32, i32) {
    %c0_i32 = arith.constant 0 : i32
    return %arg0, %arg1 : i32, i32
  }
}

module attributes {stable_mosaic.version = 11 : i64} {
  func.func @_maxpool_s1_kernel(%arg0: i32, %arg1: memref<1x7x7x128xf32, #tpu.memory_space<vmem>>, %arg2: memref<1x5x5x128xf32, #tpu.memory_space<vmem>>) attributes {dimension_semantics = [#tpu.dimension_semantics<parallel>], iteration_bounds = array<i64: 2>, scalar_prefetch = 0 : i64, scratch_operands = 0 : i64, tpu.core_type = #tpu.core_type<tc>, window_params = [{transform_indices = @transform_0, window_bounds = array<i64: 1, 7, 7, 128>}, {transform_indices = @transform_1, window_bounds = array<i64: 1, 5, 5, 128>}]} {
    %c0 = arith.constant 0 : index
    %c0_0 = arith.constant 0 : index
    %c0_1 = arith.constant 0 : index
    %c0_2 = arith.constant 0 : index
    %0 = vector.load %arg1[%c0, %c0_0, %c0_1, %c0_2] : memref<1x7x7x128xf32, #tpu.memory_space<vmem>>, vector<1x5x5x128xf32>
    %1 = vector.shape_cast %0 : vector<1x5x5x128xf32> to vector<5x5x128xf32>
    %c0_3 = arith.constant 0 : index
    %c0_4 = arith.constant 0 : index
    %c1 = arith.constant 1 : index
    %c0_5 = arith.constant 0 : index
    %2 = vector.load %arg1[%c0_3, %c0_4, %c1, %c0_5] : memref<1x7x7x128xf32, #tpu.memory_space<vmem>>, vector<1x5x5x128xf32>
    %3 = vector.shape_cast %2 : vector<1x5x5x128xf32> to vector<5x5x128xf32>
    %4 = arith.maximumf %1, %3 : vector<5x5x128xf32>
    %c0_6 = arith.constant 0 : index
    %c0_7 = arith.constant 0 : index
    %c2 = arith.constant 2 : index
    %c0_8 = arith.constant 0 : index
    %5 = vector.load %arg1[%c0_6, %c0_7, %c2, %c0_8] : memref<1x7x7x128xf32, #tpu.memory_space<vmem>>, vector<1x5x5x128xf32>
    %6 = vector.shape_cast %5 : vector<1x5x5x128xf32> to vector<5x5x128xf32>
    %7 = arith.maximumf %4, %6 : vector<5x5x128xf32>
    %c0_9 = arith.constant 0 : index
    %c1_10 = arith.constant 1 : index
    %c0_11 = arith.constant 0 : index
    %c0_12 = arith.constant 0 : index
    %8 = vector.load %arg1[%c0_9, %c1_10, %c0_11, %c0_12] : memref<1x7x7x128xf32, #tpu.memory_space<vmem>>, vector<1x5x5x128xf32>
    %9 = vector.shape_cast %8 : vector<1x5x5x128xf32> to vector<5x5x128xf32>
    %10 = arith.maximumf %7, %9 : vector<5x5x128xf32>
    %c0_13 = arith.constant 0 : index
    %c1_14 = arith.constant 1 : index
    %c1_15 = arith.constant 1 : index
    %c0_16 = arith.constant 0 : index
    %11 = vector.load %arg1[%c0_13, %c1_14, %c1_15, %c0_16] : memref<1x7x7x128xf32, #tpu.memory_space<vmem>>, vector<1x5x5x128xf32>
    %12 = vector.shape_cast %11 : vector<1x5x5x128xf32> to vector<5x5x128xf32>
    %13 = arith.maximumf %10, %12 : vector<5x5x128xf32>
    %c0_17 = arith.constant 0 : index
    %c1_18 = arith.constant 1 : index
    %c2_19 = arith.constant 2 : index
    %c0_20 = arith.constant 0 : index
    %14 = vector.load %arg1[%c0_17, %c1_18, %c2_19, %c0_20] : memref<1x7x7x128xf32, #tpu.memory_space<vmem>>, vector<1x5x5x128xf32>
    %15 = vector.shape_cast %14 : vector<1x5x5x128xf32> to vector<5x5x128xf32>
    %16 = arith.maximumf %13, %15 : vector<5x5x128xf32>
    %c0_21 = arith.constant 0 : index
    %c2_22 = arith.constant 2 : index
    %c0_23 = arith.constant 0 : index
    %c0_24 = arith.constant 0 : index
    %17 = vector.load %arg1[%c0_21, %c2_22, %c0_23, %c0_24] : memref<1x7x7x128xf32, #tpu.memory_space<vmem>>, vector<1x5x5x128xf32>
    %18 = vector.shape_cast %17 : vector<1x5x5x128xf32> to vector<5x5x128xf32>
    %19 = arith.maximumf %16, %18 : vector<5x5x128xf32>
    %c0_25 = arith.constant 0 : index
    %c2_26 = arith.constant 2 : index
    %c1_27 = arith.constant 1 : index
    %c0_28 = arith.constant 0 : index
    %20 = vector.load %arg1[%c0_25, %c2_26, %c1_27, %c0_28] : memref<1x7x7x128xf32, #tpu.memory_space<vmem>>, vector<1x5x5x128xf32>
    %21 = vector.shape_cast %20 : vector<1x5x5x128xf32> to vector<5x5x128xf32>
    %22 = arith.maximumf %19, %21 : vector<5x5x128xf32>
    %c0_29 = arith.constant 0 : index
    %c2_30 = arith.constant 2 : index
    %c2_31 = arith.constant 2 : index
    %c0_32 = arith.constant 0 : index
    %23 = vector.load %arg1[%c0_29, %c2_30, %c2_31, %c0_32] : memref<1x7x7x128xf32, #tpu.memory_space<vmem>>, vector<1x5x5x128xf32>
    %24 = vector.shape_cast %23 : vector<1x5x5x128xf32> to vector<5x5x128xf32>
    %25 = arith.maximumf %22, %24 : vector<5x5x128xf32>
    %c0_33 = arith.constant 0 : index
    %c0_34 = arith.constant 0 : index
    %c0_35 = arith.constant 0 : index
    %c0_36 = arith.constant 0 : index
    %26 = vector.load %arg2[%c0_33, %c0_34, %c0_35, %c0_36] : memref<1x5x5x128xf32, #tpu.memory_space<vmem>>, vector<1x5x5x128xf32>
    %27 = vector.shape_cast %26 : vector<1x5x5x128xf32> to vector<5x5x128xf32>
    %28 = vector.shape_cast %25 : vector<5x5x128xf32> to vector<1x5x5x128xf32>
    tpu.vector_store %arg2[%c0_33, %c0_34, %c0_35, %c0_36], %28 {strides = array<i32>} : memref<1x5x5x128xf32, #tpu.memory_space<vmem>>, vector<1x5x5x128xf32>,
    return
  }
  func.func @transform_0(%arg0: i32) -> (i32, i32, i32, i32) {
    %c0_i32 = arith.constant 0 : i32
    %c0_i32_0 = arith.constant 0 : i32
    %c0_i32_1 = arith.constant 0 : i32
    %c0_i32_2 = arith.constant 0 : i32
    return %arg0, %c0_i32, %c0_i32_0, %c0_i32_1 : i32, i32, i32, i32
  }
  func.func @transform_1(%arg0: i32) -> (i32, i32, i32, i32) {
    %c0_i32 = arith.constant 0 : i32
    %c0_i32_0 = arith.constant 0 : i32
    %c0_i32_1 = arith.constant 0 : i32
    %c0_i32_2 = arith.constant 0 : i32
    return %arg0, %c0_i32, %c0_i32_0, %c0_i32_1 : i32, i32, i32, i32
  }
}

module attributes {stable_mosaic.version = 11 : i64} {
  func.func @_conv_s1_row_kernel(%arg0: i32, %arg1: i32, %arg2: i32, %arg3: memref<1x1x7x128xbf16, #tpu.memory_space<vmem>>, %arg4: memref<1x640x256xbf16, #tpu.memory_space<vmem>>, %arg5: memref<1x256xf32, #tpu.memory_space<vmem>>, %arg6: memref<1x1x3x256xf32, #tpu.memory_space<vmem>>, %arg7: memref<3x256xf32, #tpu.memory_space<vmem>>) attributes {dimension_semantics = [#tpu.dimension_semantics<parallel>, #tpu.dimension_semantics<parallel>, #tpu.dimension_semantics<arbitrary>], iteration_bounds = array<i64: 2, 3, 5>, scalar_prefetch = 0 : i64, scratch_operands = 1 : i64, tpu.core_type = #tpu.core_type<tc>, window_params = [{transform_indices = @transform_0, window_bounds = array<i64: 1, 1, 7, 128>}, {transform_indices = @transform_1, window_bounds = array<i64: 1, 640, 256>}, {pipeline_mode = #tpu.pipeline_mode<synchronous>, transform_indices = @transform_2, window_bounds = array<i64: 1, 256>}, {transform_indices = @transform_3, window_bounds = array<i64: 1, 1, 3, 256>}]} {
    %c0_i32 = arith.constant 0 : i32
    %0 = arith.cmpi eq, %arg2, %c0_i32 : i32
    %1 = arith.extui %0 : i1 to i32
    %c0_i32_0 = arith.constant 0 : i32
    %2 = arith.cmpi ne, %1, %c0_i32_0 : i32
    scf.if %2 {
      %cst_36 = arith.constant 0.000000e+00 : f32
      %38 = vector.broadcast %cst_36 : f32 to vector<3x256xf32>
      %c0_37 = arith.constant 0 : index
      %c0_38 = arith.constant 0 : index
      %39 = vector.load %arg7[%c0_37, %c0_38] : memref<3x256xf32, #tpu.memory_space<vmem>>, vector<3x256xf32>
      tpu.vector_store %arg7[%c0_37, %c0_38], %38 {strides = array<i32>} : memref<3x256xf32, #tpu.memory_space<vmem>>, vector<3x256xf32>,
    } else {
    }
    %c0 = arith.constant 0 : index
    %c0_1 = arith.constant 0 : index
    %3 = vector.load %arg7[%c0, %c0_1] : memref<3x256xf32, #tpu.memory_space<vmem>>, vector<3x256xf32>
    %c0_2 = arith.constant 0 : index
    %c0_3 = arith.constant 0 : index
    %c0_4 = arith.constant 0 : index
    %c0_5 = arith.constant 0 : index
    %4 = vector.load %arg3[%c0_2, %c0_3, %c0_4, %c0_5] : memref<1x1x7x128xbf16, #tpu.memory_space<vmem>>, vector<1x1x3x128xbf16>
    %5 = vector.shape_cast %4 : vector<1x1x3x128xbf16> to vector<3x128xbf16>
    %c0_6 = arith.constant 0 : index
    %c0_7 = arith.constant 0 : index
    %c0_8 = arith.constant 0 : index
    %6 = vector.load %arg4[%c0_6, %c0_7, %c0_8] : memref<1x640x256xbf16, #tpu.memory_space<vmem>>, vector<1x128x256xbf16>
    %7 = vector.shape_cast %6 : vector<1x128x256xbf16> to vector<128x256xbf16>
    %cst = arith.constant dense<0.000000e+00> : vector<3x256xf32>
    %8 = tpu.matmul %5, %7, %cst {dimension_numbers = #tpu.dot_dimension_numbers<[1], [0], [0], [1], [0, 0, 1, 1], [], []>} : vector<3x128xbf16>, vector<128x256xbf16>, vector<3x256xf32> -> vector<3x256xf32>
    %9 = arith.addf %3, %8 : vector<3x256xf32>
    %c0_9 = arith.constant 0 : index
    %c0_10 = arith.constant 0 : index
    %c1 = arith.constant 1 : index
    %c0_11 = arith.constant 0 : index
    %10 = vector.load %arg3[%c0_9, %c0_10, %c1, %c0_11] : memref<1x1x7x128xbf16, #tpu.memory_space<vmem>>, vector<1x1x3x128xbf16>
    %11 = vector.shape_cast %10 : vector<1x1x3x128xbf16> to vector<3x128xbf16>
    %c0_12 = arith.constant 0 : index
    %c128 = arith.constant 128 : index
    %c0_13 = arith.constant 0 : index
    %12 = vector.load %arg4[%c0_12, %c128, %c0_13] : memref<1x640x256xbf16, #tpu.memory_space<vmem>>, vector<1x128x256xbf16>
    %13 = vector.shape_cast %12 : vector<1x128x256xbf16> to vector<128x256xbf16>
    %cst_14 = arith.constant dense<0.000000e+00> : vector<3x256xf32>
    %14 = tpu.matmul %11, %13, %cst_14 {dimension_numbers = #tpu.dot_dimension_numbers<[1], [0], [0], [1], [0, 0, 1, 1], [], []>} : vector<3x128xbf16>, vector<128x256xbf16>, vector<3x256xf32> -> vector<3x256xf32>
    %15 = arith.addf %9, %14 : vector<3x256xf32>
    %c0_15 = arith.constant 0 : index
    %c0_16 = arith.constant 0 : index
    %c2 = arith.constant 2 : index
    %c0_17 = arith.constant 0 : index
    %16 = vector.load %arg3[%c0_15, %c0_16, %c2, %c0_17] : memref<1x1x7x128xbf16, #tpu.memory_space<vmem>>, vector<1x1x3x128xbf16>
    %17 = vector.shape_cast %16 : vector<1x1x3x128xbf16> to vector<3x128xbf16>
    %c0_18 = arith.constant 0 : index
    %c256 = arith.constant 256 : index
    %c0_19 = arith.constant 0 : index
    %18 = vector.load %arg4[%c0_18, %c256, %c0_19] : memref<1x640x256xbf16, #tpu.memory_space<vmem>>, vector<1x128x256xbf16>
    %19 = vector.shape_cast %18 : vector<1x128x256xbf16> to vector<128x256xbf16>
    %cst_20 = arith.constant dense<0.000000e+00> : vector<3x256xf32>
    %20 = tpu.matmul %17, %19, %cst_20 {dimension_numbers = #tpu.dot_dimension_numbers<[1], [0], [0], [1], [0, 0, 1, 1], [], []>} : vector<3x128xbf16>, vector<128x256xbf16>, vector<3x256xf32> -> vector<3x256xf32>
    %21 = arith.addf %15, %20 : vector<3x256xf32>
    %c0_21 = arith.constant 0 : index
    %c0_22 = arith.constant 0 : index
    %c3 = arith.constant 3 : index
    %c0_23 = arith.constant 0 : index
    %22 = vector.load %arg3[%c0_21, %c0_22, %c3, %c0_23] : memref<1x1x7x128xbf16, #tpu.memory_space<vmem>>, vector<1x1x3x128xbf16>
    %23 = vector.shape_cast %22 : vector<1x1x3x128xbf16> to vector<3x128xbf16>
    %c0_24 = arith.constant 0 : index
    %c384 = arith.constant 384 : index
    %c0_25 = arith.constant 0 : index
    %24 = vector.load %arg4[%c0_24, %c384, %c0_25] : memref<1x640x256xbf16, #tpu.memory_space<vmem>>, vector<1x128x256xbf16>
    %25 = vector.shape_cast %24 : vector<1x128x256xbf16> to vector<128x256xbf16>
    %cst_26 = arith.constant dense<0.000000e+00> : vector<3x256xf32>
    %26 = tpu.matmul %23, %25, %cst_26 {dimension_numbers = #tpu.dot_dimension_numbers<[1], [0], [0], [1], [0, 0, 1, 1], [], []>} : vector<3x128xbf16>, vector<128x256xbf16>, vector<3x256xf32> -> vector<3x256xf32>
    %27 = arith.addf %21, %26 : vector<3x256xf32>
    %c0_27 = arith.constant 0 : index
    %c0_28 = arith.constant 0 : index
    %c4 = arith.constant 4 : index
    %c0_29 = arith.constant 0 : index
    %28 = vector.load %arg3[%c0_27, %c0_28, %c4, %c0_29] : memref<1x1x7x128xbf16, #tpu.memory_space<vmem>>, vector<1x1x3x128xbf16>
    %29 = vector.shape_cast %28 : vector<1x1x3x128xbf16> to vector<3x128xbf16>
    %c0_30 = arith.constant 0 : index
    %c512 = arith.constant 512 : index
    %c0_31 = arith.constant 0 : index
    %30 = vector.load %arg4[%c0_30, %c512, %c0_31] : memref<1x640x256xbf16, #tpu.memory_space<vmem>>, vector<1x128x256xbf16>
    %31 = vector.shape_cast %30 : vector<1x128x256xbf16> to vector<128x256xbf16>
    %cst_32 = arith.constant dense<0.000000e+00> : vector<3x256xf32>
    %32 = tpu.matmul %29, %31, %cst_32 {dimension_numbers = #tpu.dot_dimension_numbers<[1], [0], [0], [1], [0, 0, 1, 1], [], []>} : vector<3x128xbf16>, vector<128x256xbf16>, vector<3x256xf32> -> vector<3x256xf32>
    %33 = arith.addf %27, %32 : vector<3x256xf32>
    %c0_33 = arith.constant 0 : index
    %c0_34 = arith.constant 0 : index
    %34 = vector.load %arg7[%c0_33, %c0_34] : memref<3x256xf32, #tpu.memory_space<vmem>>, vector<3x256xf32>
    tpu.vector_store %arg7[%c0_33, %c0_34], %33 {strides = array<i32>} : memref<3x256xf32, #tpu.memory_space<vmem>>, vector<3x256xf32>,
    %c4_i32 = arith.constant 4 : i32
    %35 = arith.cmpi eq, %arg2, %c4_i32 : i32
    %36 = arith.extui %35 : i1 to i32
    %c0_i32_35 = arith.constant 0 : i32
    %37 = arith.cmpi ne, %36, %c0_i32_35 : i32
    scf.if %37 {
      %c0_36 = arith.constant 0 : index
      %c0_37 = arith.constant 0 : index
      %38 = vector.load %arg7[%c0_36, %c0_37] : memref<3x256xf32, #tpu.memory_space<vmem>>, vector<3x256xf32>
      %c0_38 = arith.constant 0 : index
      %c0_39 = arith.constant 0 : index
      %39 = vector.load %arg5[%c0_38, %c0_39] : memref<1x256xf32, #tpu.memory_space<vmem>>, vector<1x256xf32>
      %40 = vector.broadcast %39 : vector<1x256xf32> to vector<3x256xf32>
      %41 = arith.addf %38, %40 : vector<3x256xf32>
      %cst_40 = arith.constant 0.000000e+00 : f32
      %42 = vector.broadcast %cst_40 : f32 to vector<3x256xf32>
      %43 = arith.maximumf %41, %42 : vector<3x256xf32>
      %c0_41 = arith.constant 0 : index
      %c0_42 = arith.constant 0 : index
      %c0_43 = arith.constant 0 : index
      %c0_44 = arith.constant 0 : index
      %44 = vector.load %arg6[%c0_41, %c0_42, %c0_43, %c0_44] : memref<1x1x3x256xf32, #tpu.memory_space<vmem>>, vector<1x1x3x256xf32>
      %45 = vector.shape_cast %44 : vector<1x1x3x256xf32> to vector<3x256xf32>
      %46 = vector.shape_cast %43 : vector<3x256xf32> to vector<1x1x3x256xf32>
      tpu.vector_store %arg6[%c0_41, %c0_42, %c0_43, %c0_44], %46 {strides = array<i32>} : memref<1x1x3x256xf32, #tpu.memory_space<vmem>>, vector<1x1x3x256xf32>,
    } else {
    }
    return
  }
  func.func @transform_0(%arg0: i32, %arg1: i32, %arg2: i32) -> (i32, i32, i32, i32) {
    %0 = arith.addi %arg1, %arg2 : i32
    %c0_i32 = arith.constant 0 : i32
    %c0_i32_0 = arith.constant 0 : i32
    %c0_i32_1 = arith.constant 0 : i32
    return %arg0, %0, %c0_i32, %c0_i32_0 : i32, i32, i32, i32
  }
  func.func @transform_1(%arg0: i32, %arg1: i32, %arg2: i32) -> (i32, i32, i32) {
    %c0_i32 = arith.constant 0 : i32
    %c0_i32_0 = arith.constant 0 : i32
    %c0_i32_1 = arith.constant 0 : i32
    return %arg2, %c0_i32, %c0_i32_0 : i32, i32, i32
  }
  func.func @transform_2(%arg0: i32, %arg1: i32, %arg2: i32) -> (i32, i32) {
    %c0_i32 = arith.constant 0 : i32
    %c0_i32_0 = arith.constant 0 : i32
    %c0_i32_1 = arith.constant 0 : i32
    return %c0_i32, %c0_i32_0 : i32, i32
  }
  func.func @transform_3(%arg0: i32, %arg1: i32, %arg2: i32) -> (i32, i32, i32, i32) {
    %c0_i32 = arith.constant 0 : i32
    %c0_i32_0 = arith.constant 0 : i32
    %c0_i32_1 = arith.constant 0 : i32
    return %arg0, %arg1, %c0_i32, %c0_i32_0 : i32, i32, i32, i32
  }
}

module attributes {stable_mosaic.version = 11 : i64} {
  func.func @_maxpool_s1_kernel(%arg0: i32, %arg1: memref<1x3x3x256xf32, #tpu.memory_space<vmem>>, %arg2: memref<1x1x1x256xf32, #tpu.memory_space<vmem>>) attributes {dimension_semantics = [#tpu.dimension_semantics<parallel>], iteration_bounds = array<i64: 2>, scalar_prefetch = 0 : i64, scratch_operands = 0 : i64, tpu.core_type = #tpu.core_type<tc>, window_params = [{transform_indices = @transform_0, window_bounds = array<i64: 1, 3, 3, 256>}, {transform_indices = @transform_1, window_bounds = array<i64: 1, 1, 1, 256>}]} {
    %c0 = arith.constant 0 : index
    %c0_0 = arith.constant 0 : index
    %c0_1 = arith.constant 0 : index
    %c0_2 = arith.constant 0 : index
    %0 = vector.load %arg1[%c0, %c0_0, %c0_1, %c0_2] : memref<1x3x3x256xf32, #tpu.memory_space<vmem>>, vector<1x1x1x256xf32>
    %1 = vector.shape_cast %0 : vector<1x1x1x256xf32> to vector<1x1x256xf32>
    %c0_3 = arith.constant 0 : index
    %c0_4 = arith.constant 0 : index
    %c1 = arith.constant 1 : index
    %c0_5 = arith.constant 0 : index
    %2 = vector.load %arg1[%c0_3, %c0_4, %c1, %c0_5] : memref<1x3x3x256xf32, #tpu.memory_space<vmem>>, vector<1x1x1x256xf32>
    %3 = vector.shape_cast %2 : vector<1x1x1x256xf32> to vector<1x1x256xf32>
    %4 = arith.maximumf %1, %3 : vector<1x1x256xf32>
    %c0_6 = arith.constant 0 : index
    %c0_7 = arith.constant 0 : index
    %c2 = arith.constant 2 : index
    %c0_8 = arith.constant 0 : index
    %5 = vector.load %arg1[%c0_6, %c0_7, %c2, %c0_8] : memref<1x3x3x256xf32, #tpu.memory_space<vmem>>, vector<1x1x1x256xf32>
    %6 = vector.shape_cast %5 : vector<1x1x1x256xf32> to vector<1x1x256xf32>
    %7 = arith.maximumf %4, %6 : vector<1x1x256xf32>
    %c0_9 = arith.constant 0 : index
    %c1_10 = arith.constant 1 : index
    %c0_11 = arith.constant 0 : index
    %c0_12 = arith.constant 0 : index
    %8 = vector.load %arg1[%c0_9, %c1_10, %c0_11, %c0_12] : memref<1x3x3x256xf32, #tpu.memory_space<vmem>>, vector<1x1x1x256xf32>
    %9 = vector.shape_cast %8 : vector<1x1x1x256xf32> to vector<1x1x256xf32>
    %10 = arith.maximumf %7, %9 : vector<1x1x256xf32>
    %c0_13 = arith.constant 0 : index
    %c1_14 = arith.constant 1 : index
    %c1_15 = arith.constant 1 : index
    %c0_16 = arith.constant 0 : index
    %11 = vector.load %arg1[%c0_13, %c1_14, %c1_15, %c0_16] : memref<1x3x3x256xf32, #tpu.memory_space<vmem>>, vector<1x1x1x256xf32>
    %12 = vector.shape_cast %11 : vector<1x1x1x256xf32> to vector<1x1x256xf32>
    %13 = arith.maximumf %10, %12 : vector<1x1x256xf32>
    %c0_17 = arith.constant 0 : index
    %c1_18 = arith.constant 1 : index
    %c2_19 = arith.constant 2 : index
    %c0_20 = arith.constant 0 : index
    %14 = vector.load %arg1[%c0_17, %c1_18, %c2_19, %c0_20] : memref<1x3x3x256xf32, #tpu.memory_space<vmem>>, vector<1x1x1x256xf32>
    %15 = vector.shape_cast %14 : vector<1x1x1x256xf32> to vector<1x1x256xf32>
    %16 = arith.maximumf %13, %15 : vector<1x1x256xf32>
    %c0_21 = arith.constant 0 : index
    %c2_22 = arith.constant 2 : index
    %c0_23 = arith.constant 0 : index
    %c0_24 = arith.constant 0 : index
    %17 = vector.load %arg1[%c0_21, %c2_22, %c0_23, %c0_24] : memref<1x3x3x256xf32, #tpu.memory_space<vmem>>, vector<1x1x1x256xf32>
    %18 = vector.shape_cast %17 : vector<1x1x1x256xf32> to vector<1x1x256xf32>
    %19 = arith.maximumf %16, %18 : vector<1x1x256xf32>
    %c0_25 = arith.constant 0 : index
    %c2_26 = arith.constant 2 : index
    %c1_27 = arith.constant 1 : index
    %c0_28 = arith.constant 0 : index
    %20 = vector.load %arg1[%c0_25, %c2_26, %c1_27, %c0_28] : memref<1x3x3x256xf32, #tpu.memory_space<vmem>>, vector<1x1x1x256xf32>
    %21 = vector.shape_cast %20 : vector<1x1x1x256xf32> to vector<1x1x256xf32>
    %22 = arith.maximumf %19, %21 : vector<1x1x256xf32>
    %c0_29 = arith.constant 0 : index
    %c2_30 = arith.constant 2 : index
    %c2_31 = arith.constant 2 : index
    %c0_32 = arith.constant 0 : index
    %23 = vector.load %arg1[%c0_29, %c2_30, %c2_31, %c0_32] : memref<1x3x3x256xf32, #tpu.memory_space<vmem>>, vector<1x1x1x256xf32>
    %24 = vector.shape_cast %23 : vector<1x1x1x256xf32> to vector<1x1x256xf32>
    %25 = arith.maximumf %22, %24 : vector<1x1x256xf32>
    %c0_33 = arith.constant 0 : index
    %c0_34 = arith.constant 0 : index
    %c0_35 = arith.constant 0 : index
    %c0_36 = arith.constant 0 : index
    %26 = vector.load %arg2[%c0_33, %c0_34, %c0_35, %c0_36] : memref<1x1x1x256xf32, #tpu.memory_space<vmem>>, vector<1x1x1x256xf32>
    %27 = vector.shape_cast %26 : vector<1x1x1x256xf32> to vector<1x1x256xf32>
    %28 = vector.shape_cast %25 : vector<1x1x256xf32> to vector<1x1x1x256xf32>
    tpu.vector_store %arg2[%c0_33, %c0_34, %c0_35, %c0_36], %28 {strides = array<i32>} : memref<1x1x1x256xf32, #tpu.memory_space<vmem>>, vector<1x1x1x256xf32>,
    return
  }
  func.func @transform_0(%arg0: i32) -> (i32, i32, i32, i32) {
    %c0_i32 = arith.constant 0 : i32
    %c0_i32_0 = arith.constant 0 : i32
    %c0_i32_1 = arith.constant 0 : i32
    %c0_i32_2 = arith.constant 0 : i32
    return %arg0, %c0_i32, %c0_i32_0, %c0_i32_1 : i32, i32, i32, i32
  }
  func.func @transform_1(%arg0: i32) -> (i32, i32, i32, i32) {
    %c0_i32 = arith.constant 0 : i32
    %c0_i32_0 = arith.constant 0 : i32
    %c0_i32_1 = arith.constant 0 : i32
    %c0_i32_2 = arith.constant 0 : i32
    return %arg0, %c0_i32, %c0_i32_0, %c0_i32_1 : i32, i32, i32, i32
  }
}

module attributes {stable_mosaic.version = 11 : i64} {
  func.func @_conv_s1_row_kernel(%arg0: i32, %arg1: i32, %arg2: i32, %arg3: memref<1x1x3x256xbf16, #tpu.memory_space<vmem>>, %arg4: memref<1x768x384xbf16, #tpu.memory_space<vmem>>, %arg5: memref<1x384xf32, #tpu.memory_space<vmem>>, %arg6: memref<1x1x1x384xf32, #tpu.memory_space<vmem>>, %arg7: memref<1x384xf32, #tpu.memory_space<vmem>>) attributes {dimension_semantics = [#tpu.dimension_semantics<parallel>, #tpu.dimension_semantics<parallel>, #tpu.dimension_semantics<arbitrary>], iteration_bounds = array<i64: 2, 1, 3>, scalar_prefetch = 0 : i64, scratch_operands = 1 : i64, tpu.core_type = #tpu.core_type<tc>, window_params = [{transform_indices = @transform_0, window_bounds = array<i64: 1, 1, 3, 256>}, {transform_indices = @transform_1, window_bounds = array<i64: 1, 768, 384>}, {pipeline_mode = #tpu.pipeline_mode<synchronous>, transform_indices = @transform_2, window_bounds = array<i64: 1, 384>}, {transform_indices = @transform_3, window_bounds = array<i64: 1, 1, 1, 384>}]} {
    %c0_i32 = arith.constant 0 : i32
    %0 = arith.cmpi eq, %arg2, %c0_i32 : i32
    %1 = arith.extui %0 : i1 to i32
    %c0_i32_0 = arith.constant 0 : i32
    %2 = arith.cmpi ne, %1, %c0_i32_0 : i32
    scf.if %2 {
      %cst_24 = arith.constant 0.000000e+00 : f32
      %26 = vector.broadcast %cst_24 : f32 to vector<1x384xf32>
      %c0_25 = arith.constant 0 : index
      %c0_26 = arith.constant 0 : index
      %27 = vector.load %arg7[%c0_25, %c0_26] : memref<1x384xf32, #tpu.memory_space<vmem>>, vector<1x384xf32>
      tpu.vector_store %arg7[%c0_25, %c0_26], %26 {strides = array<i32>} : memref<1x384xf32, #tpu.memory_space<vmem>>, vector<1x384xf32>,
    } else {
    }
    %c0 = arith.constant 0 : index
    %c0_1 = arith.constant 0 : index
    %3 = vector.load %arg7[%c0, %c0_1] : memref<1x384xf32, #tpu.memory_space<vmem>>, vector<1x384xf32>
    %c0_2 = arith.constant 0 : index
    %c0_3 = arith.constant 0 : index
    %c0_4 = arith.constant 0 : index
    %c0_5 = arith.constant 0 : index
    %4 = vector.load %arg3[%c0_2, %c0_3, %c0_4, %c0_5] : memref<1x1x3x256xbf16, #tpu.memory_space<vmem>>, vector<1x1x1x256xbf16>
    %5 = vector.shape_cast %4 : vector<1x1x1x256xbf16> to vector<1x256xbf16>
    %c0_6 = arith.constant 0 : index
    %c0_7 = arith.constant 0 : index
    %c0_8 = arith.constant 0 : index
    %6 = vector.load %arg4[%c0_6, %c0_7, %c0_8] : memref<1x768x384xbf16, #tpu.memory_space<vmem>>, vector<1x256x384xbf16>
    %7 = vector.shape_cast %6 : vector<1x256x384xbf16> to vector<256x384xbf16>
    %cst = arith.constant dense<0.000000e+00> : vector<1x384xf32>
    %8 = tpu.matmul %5, %7, %cst {dimension_numbers = #tpu.dot_dimension_numbers<[1], [0], [0], [1], [0, 0, 1, 1], [], []>} : vector<1x256xbf16>, vector<256x384xbf16>, vector<1x384xf32> -> vector<1x384xf32>
    %9 = arith.addf %3, %8 : vector<1x384xf32>
    %c0_9 = arith.constant 0 : index
    %c0_10 = arith.constant 0 : index
    %c1 = arith.constant 1 : index
    %c0_11 = arith.constant 0 : index
    %10 = vector.load %arg3[%c0_9, %c0_10, %c1, %c0_11] : memref<1x1x3x256xbf16, #tpu.memory_space<vmem>>, vector<1x1x1x256xbf16>
    %11 = vector.shape_cast %10 : vector<1x1x1x256xbf16> to vector<1x256xbf16>
    %c0_12 = arith.constant 0 : index
    %c256 = arith.constant 256 : index
    %c0_13 = arith.constant 0 : index
    %12 = vector.load %arg4[%c0_12, %c256, %c0_13] : memref<1x768x384xbf16, #tpu.memory_space<vmem>>, vector<1x256x384xbf16>
    %13 = vector.shape_cast %12 : vector<1x256x384xbf16> to vector<256x384xbf16>
    %cst_14 = arith.constant dense<0.000000e+00> : vector<1x384xf32>
    %14 = tpu.matmul %11, %13, %cst_14 {dimension_numbers = #tpu.dot_dimension_numbers<[1], [0], [0], [1], [0, 0, 1, 1], [], []>} : vector<1x256xbf16>, vector<256x384xbf16>, vector<1x384xf32> -> vector<1x384xf32>
    %15 = arith.addf %9, %14 : vector<1x384xf32>
    %c0_15 = arith.constant 0 : index
    %c0_16 = arith.constant 0 : index
    %c2 = arith.constant 2 : index
    %c0_17 = arith.constant 0 : index
    %16 = vector.load %arg3[%c0_15, %c0_16, %c2, %c0_17] : memref<1x1x3x256xbf16, #tpu.memory_space<vmem>>, vector<1x1x1x256xbf16>
    %17 = vector.shape_cast %16 : vector<1x1x1x256xbf16> to vector<1x256xbf16>
    %c0_18 = arith.constant 0 : index
    %c512 = arith.constant 512 : index
    %c0_19 = arith.constant 0 : index
    %18 = vector.load %arg4[%c0_18, %c512, %c0_19] : memref<1x768x384xbf16, #tpu.memory_space<vmem>>, vector<1x256x384xbf16>
    %19 = vector.shape_cast %18 : vector<1x256x384xbf16> to vector<256x384xbf16>
    %cst_20 = arith.constant dense<0.000000e+00> : vector<1x384xf32>
    %20 = tpu.matmul %17, %19, %cst_20 {dimension_numbers = #tpu.dot_dimension_numbers<[1], [0], [0], [1], [0, 0, 1, 1], [], []>} : vector<1x256xbf16>, vector<256x384xbf16>, vector<1x384xf32> -> vector<1x384xf32>
    %21 = arith.addf %15, %20 : vector<1x384xf32>
    %c0_21 = arith.constant 0 : index
    %c0_22 = arith.constant 0 : index
    %22 = vector.load %arg7[%c0_21, %c0_22] : memref<1x384xf32, #tpu.memory_space<vmem>>, vector<1x384xf32>
    tpu.vector_store %arg7[%c0_21, %c0_22], %21 {strides = array<i32>} : memref<1x384xf32, #tpu.memory_space<vmem>>, vector<1x384xf32>,
    %c2_i32 = arith.constant 2 : i32
    %23 = arith.cmpi eq, %arg2, %c2_i32 : i32
    %24 = arith.extui %23 : i1 to i32
    %c0_i32_23 = arith.constant 0 : i32
    %25 = arith.cmpi ne, %24, %c0_i32_23 : i32
    scf.if %25 {
      %c0_24 = arith.constant 0 : index
      %c0_25 = arith.constant 0 : index
      %26 = vector.load %arg7[%c0_24, %c0_25] : memref<1x384xf32, #tpu.memory_space<vmem>>, vector<1x384xf32>
      %c0_26 = arith.constant 0 : index
      %c0_27 = arith.constant 0 : index
      %27 = vector.load %arg5[%c0_26, %c0_27] : memref<1x384xf32, #tpu.memory_space<vmem>>, vector<1x384xf32>
      %28 = arith.addf %26, %27 : vector<1x384xf32>
      %cst_28 = arith.constant 0.000000e+00 : f32
      %29 = vector.broadcast %cst_28 : f32 to vector<1x384xf32>
      %30 = arith.maximumf %28, %29 : vector<1x384xf32>
      %c0_29 = arith.constant 0 : index
      %c0_30 = arith.constant 0 : index
      %c0_31 = arith.constant 0 : index
      %c0_32 = arith.constant 0 : index
      %31 = vector.load %arg6[%c0_29, %c0_30, %c0_31, %c0_32] : memref<1x1x1x384xf32, #tpu.memory_space<vmem>>, vector<1x1x1x384xf32>
      %32 = vector.shape_cast %31 : vector<1x1x1x384xf32> to vector<1x384xf32>
      %33 = vector.shape_cast %30 : vector<1x384xf32> to vector<1x1x1x384xf32>
      tpu.vector_store %arg6[%c0_29, %c0_30, %c0_31, %c0_32], %33 {strides = array<i32>} : memref<1x1x1x384xf32, #tpu.memory_space<vmem>>, vector<1x1x1x384xf32>,
    } else {
    }
    return
  }
  func.func @transform_0(%arg0: i32, %arg1: i32, %arg2: i32) -> (i32, i32, i32, i32) {
    %0 = arith.addi %arg1, %arg2 : i32
    %c0_i32 = arith.constant 0 : i32
    %c0_i32_0 = arith.constant 0 : i32
    %c0_i32_1 = arith.constant 0 : i32
    return %arg0, %0, %c0_i32, %c0_i32_0 : i32, i32, i32, i32
  }
  func.func @transform_1(%arg0: i32, %arg1: i32, %arg2: i32) -> (i32, i32, i32) {
    %c0_i32 = arith.constant 0 : i32
    %c0_i32_0 = arith.constant 0 : i32
    %c0_i32_1 = arith.constant 0 : i32
    return %arg2, %c0_i32, %c0_i32_0 : i32, i32, i32
  }
  func.func @transform_2(%arg0: i32, %arg1: i32, %arg2: i32) -> (i32, i32) {
    %c0_i32 = arith.constant 0 : i32
    %c0_i32_0 = arith.constant 0 : i32
    %c0_i32_1 = arith.constant 0 : i32
    return %c0_i32, %c0_i32_0 : i32, i32
  }
  func.func @transform_3(%arg0: i32, %arg1: i32, %arg2: i32) -> (i32, i32, i32, i32) {
    %c0_i32 = arith.constant 0 : i32
    %c0_i32_0 = arith.constant 0 : i32
    %c0_i32_1 = arith.constant 0 : i32
    return %arg0, %arg1, %c0_i32, %c0_i32_0 : i32, i32, i32, i32
  }
}

module attributes {stable_mosaic.version = 11 : i64} {
  func.func @_conv_s1_row_kernel(%arg0: i32, %arg1: i32, %arg2: i32, %arg3: memref<1x1x3x384xbf16, #tpu.memory_space<vmem>>, %arg4: memref<1x1152x256xbf16, #tpu.memory_space<vmem>>, %arg5: memref<1x256xf32, #tpu.memory_space<vmem>>, %arg6: memref<1x1x1x256xf32, #tpu.memory_space<vmem>>, %arg7: memref<1x256xf32, #tpu.memory_space<vmem>>) attributes {dimension_semantics = [#tpu.dimension_semantics<parallel>, #tpu.dimension_semantics<parallel>, #tpu.dimension_semantics<arbitrary>], iteration_bounds = array<i64: 2, 1, 3>, scalar_prefetch = 0 : i64, scratch_operands = 1 : i64, tpu.core_type = #tpu.core_type<tc>, window_params = [{transform_indices = @transform_0, window_bounds = array<i64: 1, 1, 3, 384>}, {transform_indices = @transform_1, window_bounds = array<i64: 1, 1152, 256>}, {pipeline_mode = #tpu.pipeline_mode<synchronous>, transform_indices = @transform_2, window_bounds = array<i64: 1, 256>}, {transform_indices = @transform_3, window_bounds = array<i64: 1, 1, 1, 256>}]} {
    %c0_i32 = arith.constant 0 : i32
    %0 = arith.cmpi eq, %arg2, %c0_i32 : i32
    %1 = arith.extui %0 : i1 to i32
    %c0_i32_0 = arith.constant 0 : i32
    %2 = arith.cmpi ne, %1, %c0_i32_0 : i32
    scf.if %2 {
      %cst_24 = arith.constant 0.000000e+00 : f32
      %26 = vector.broadcast %cst_24 : f32 to vector<1x256xf32>
      %c0_25 = arith.constant 0 : index
      %c0_26 = arith.constant 0 : index
      %27 = vector.load %arg7[%c0_25, %c0_26] : memref<1x256xf32, #tpu.memory_space<vmem>>, vector<1x256xf32>
      tpu.vector_store %arg7[%c0_25, %c0_26], %26 {strides = array<i32>} : memref<1x256xf32, #tpu.memory_space<vmem>>, vector<1x256xf32>,
    } else {
    }
    %c0 = arith.constant 0 : index
    %c0_1 = arith.constant 0 : index
    %3 = vector.load %arg7[%c0, %c0_1] : memref<1x256xf32, #tpu.memory_space<vmem>>, vector<1x256xf32>
    %c0_2 = arith.constant 0 : index
    %c0_3 = arith.constant 0 : index
    %c0_4 = arith.constant 0 : index
    %c0_5 = arith.constant 0 : index
    %4 = vector.load %arg3[%c0_2, %c0_3, %c0_4, %c0_5] : memref<1x1x3x384xbf16, #tpu.memory_space<vmem>>, vector<1x1x1x384xbf16>
    %5 = vector.shape_cast %4 : vector<1x1x1x384xbf16> to vector<1x384xbf16>
    %c0_6 = arith.constant 0 : index
    %c0_7 = arith.constant 0 : index
    %c0_8 = arith.constant 0 : index
    %6 = vector.load %arg4[%c0_6, %c0_7, %c0_8] : memref<1x1152x256xbf16, #tpu.memory_space<vmem>>, vector<1x384x256xbf16>
    %7 = vector.shape_cast %6 : vector<1x384x256xbf16> to vector<384x256xbf16>
    %cst = arith.constant dense<0.000000e+00> : vector<1x256xf32>
    %8 = tpu.matmul %5, %7, %cst {dimension_numbers = #tpu.dot_dimension_numbers<[1], [0], [0], [1], [0, 0, 1, 1], [], []>} : vector<1x384xbf16>, vector<384x256xbf16>, vector<1x256xf32> -> vector<1x256xf32>
    %9 = arith.addf %3, %8 : vector<1x256xf32>
    %c0_9 = arith.constant 0 : index
    %c0_10 = arith.constant 0 : index
    %c1 = arith.constant 1 : index
    %c0_11 = arith.constant 0 : index
    %10 = vector.load %arg3[%c0_9, %c0_10, %c1, %c0_11] : memref<1x1x3x384xbf16, #tpu.memory_space<vmem>>, vector<1x1x1x384xbf16>
    %11 = vector.shape_cast %10 : vector<1x1x1x384xbf16> to vector<1x384xbf16>
    %c0_12 = arith.constant 0 : index
    %c384 = arith.constant 384 : index
    %c0_13 = arith.constant 0 : index
    %12 = vector.load %arg4[%c0_12, %c384, %c0_13] : memref<1x1152x256xbf16, #tpu.memory_space<vmem>>, vector<1x384x256xbf16>
    %13 = vector.shape_cast %12 : vector<1x384x256xbf16> to vector<384x256xbf16>
    %cst_14 = arith.constant dense<0.000000e+00> : vector<1x256xf32>
    %14 = tpu.matmul %11, %13, %cst_14 {dimension_numbers = #tpu.dot_dimension_numbers<[1], [0], [0], [1], [0, 0, 1, 1], [], []>} : vector<1x384xbf16>, vector<384x256xbf16>, vector<1x256xf32> -> vector<1x256xf32>
    %15 = arith.addf %9, %14 : vector<1x256xf32>
    %c0_15 = arith.constant 0 : index
    %c0_16 = arith.constant 0 : index
    %c2 = arith.constant 2 : index
    %c0_17 = arith.constant 0 : index
    %16 = vector.load %arg3[%c0_15, %c0_16, %c2, %c0_17] : memref<1x1x3x384xbf16, #tpu.memory_space<vmem>>, vector<1x1x1x384xbf16>
    %17 = vector.shape_cast %16 : vector<1x1x1x384xbf16> to vector<1x384xbf16>
    %c0_18 = arith.constant 0 : index
    %c768 = arith.constant 768 : index
    %c0_19 = arith.constant 0 : index
    %18 = vector.load %arg4[%c0_18, %c768, %c0_19] : memref<1x1152x256xbf16, #tpu.memory_space<vmem>>, vector<1x384x256xbf16>
    %19 = vector.shape_cast %18 : vector<1x384x256xbf16> to vector<384x256xbf16>
    %cst_20 = arith.constant dense<0.000000e+00> : vector<1x256xf32>
    %20 = tpu.matmul %17, %19, %cst_20 {dimension_numbers = #tpu.dot_dimension_numbers<[1], [0], [0], [1], [0, 0, 1, 1], [], []>} : vector<1x384xbf16>, vector<384x256xbf16>, vector<1x256xf32> -> vector<1x256xf32>
    %21 = arith.addf %15, %20 : vector<1x256xf32>
    %c0_21 = arith.constant 0 : index
    %c0_22 = arith.constant 0 : index
    %22 = vector.load %arg7[%c0_21, %c0_22] : memref<1x256xf32, #tpu.memory_space<vmem>>, vector<1x256xf32>
    tpu.vector_store %arg7[%c0_21, %c0_22], %21 {strides = array<i32>} : memref<1x256xf32, #tpu.memory_space<vmem>>, vector<1x256xf32>,
    %c2_i32 = arith.constant 2 : i32
    %23 = arith.cmpi eq, %arg2, %c2_i32 : i32
    %24 = arith.extui %23 : i1 to i32
    %c0_i32_23 = arith.constant 0 : i32
    %25 = arith.cmpi ne, %24, %c0_i32_23 : i32
    scf.if %25 {
      %c0_24 = arith.constant 0 : index
      %c0_25 = arith.constant 0 : index
      %26 = vector.load %arg7[%c0_24, %c0_25] : memref<1x256xf32, #tpu.memory_space<vmem>>, vector<1x256xf32>
      %c0_26 = arith.constant 0 : index
      %c0_27 = arith.constant 0 : index
      %27 = vector.load %arg5[%c0_26, %c0_27] : memref<1x256xf32, #tpu.memory_space<vmem>>, vector<1x256xf32>
      %28 = arith.addf %26, %27 : vector<1x256xf32>
      %cst_28 = arith.constant 0.000000e+00 : f32
      %29 = vector.broadcast %cst_28 : f32 to vector<1x256xf32>
      %30 = arith.maximumf %28, %29 : vector<1x256xf32>
      %c0_29 = arith.constant 0 : index
      %c0_30 = arith.constant 0 : index
      %c0_31 = arith.constant 0 : index
      %c0_32 = arith.constant 0 : index
      %31 = vector.load %arg6[%c0_29, %c0_30, %c0_31, %c0_32] : memref<1x1x1x256xf32, #tpu.memory_space<vmem>>, vector<1x1x1x256xf32>
      %32 = vector.shape_cast %31 : vector<1x1x1x256xf32> to vector<1x256xf32>
      %33 = vector.shape_cast %30 : vector<1x256xf32> to vector<1x1x1x256xf32>
      tpu.vector_store %arg6[%c0_29, %c0_30, %c0_31, %c0_32], %33 {strides = array<i32>} : memref<1x1x1x256xf32, #tpu.memory_space<vmem>>, vector<1x1x1x256xf32>,
    } else {
    }
    return
  }
  func.func @transform_0(%arg0: i32, %arg1: i32, %arg2: i32) -> (i32, i32, i32, i32) {
    %0 = arith.addi %arg1, %arg2 : i32
    %c0_i32 = arith.constant 0 : i32
    %c0_i32_0 = arith.constant 0 : i32
    %c0_i32_1 = arith.constant 0 : i32
    return %arg0, %0, %c0_i32, %c0_i32_0 : i32, i32, i32, i32
  }
  func.func @transform_1(%arg0: i32, %arg1: i32, %arg2: i32) -> (i32, i32, i32) {
    %c0_i32 = arith.constant 0 : i32
    %c0_i32_0 = arith.constant 0 : i32
    %c0_i32_1 = arith.constant 0 : i32
    return %arg2, %c0_i32, %c0_i32_0 : i32, i32, i32
  }
  func.func @transform_2(%arg0: i32, %arg1: i32, %arg2: i32) -> (i32, i32) {
    %c0_i32 = arith.constant 0 : i32
    %c0_i32_0 = arith.constant 0 : i32
    %c0_i32_1 = arith.constant 0 : i32
    return %c0_i32, %c0_i32_0 : i32, i32
  }
  func.func @transform_3(%arg0: i32, %arg1: i32, %arg2: i32) -> (i32, i32, i32, i32) {
    %c0_i32 = arith.constant 0 : i32
    %c0_i32_0 = arith.constant 0 : i32
    %c0_i32_1 = arith.constant 0 : i32
    return %arg0, %arg1, %c0_i32, %c0_i32_0 : i32, i32, i32, i32
  }
}

module attributes {stable_mosaic.version = 11 : i64} {
  func.func @_conv_s1_row_kernel(%arg0: i32, %arg1: i32, %arg2: i32, %arg3: memref<1x1x3x256xbf16, #tpu.memory_space<vmem>>, %arg4: memref<1x768x256xbf16, #tpu.memory_space<vmem>>, %arg5: memref<1x256xf32, #tpu.memory_space<vmem>>, %arg6: memref<1x1x1x256xf32, #tpu.memory_space<vmem>>, %arg7: memref<1x256xf32, #tpu.memory_space<vmem>>) attributes {dimension_semantics = [#tpu.dimension_semantics<parallel>, #tpu.dimension_semantics<parallel>, #tpu.dimension_semantics<arbitrary>], iteration_bounds = array<i64: 2, 1, 3>, scalar_prefetch = 0 : i64, scratch_operands = 1 : i64, tpu.core_type = #tpu.core_type<tc>, window_params = [{transform_indices = @transform_0, window_bounds = array<i64: 1, 1, 3, 256>}, {transform_indices = @transform_1, window_bounds = array<i64: 1, 768, 256>}, {pipeline_mode = #tpu.pipeline_mode<synchronous>, transform_indices = @transform_2, window_bounds = array<i64: 1, 256>}, {transform_indices = @transform_3, window_bounds = array<i64: 1, 1, 1, 256>}]} {
    %c0_i32 = arith.constant 0 : i32
    %0 = arith.cmpi eq, %arg2, %c0_i32 : i32
    %1 = arith.extui %0 : i1 to i32
    %c0_i32_0 = arith.constant 0 : i32
    %2 = arith.cmpi ne, %1, %c0_i32_0 : i32
    scf.if %2 {
      %cst_24 = arith.constant 0.000000e+00 : f32
      %26 = vector.broadcast %cst_24 : f32 to vector<1x256xf32>
      %c0_25 = arith.constant 0 : index
      %c0_26 = arith.constant 0 : index
      %27 = vector.load %arg7[%c0_25, %c0_26] : memref<1x256xf32, #tpu.memory_space<vmem>>, vector<1x256xf32>
      tpu.vector_store %arg7[%c0_25, %c0_26], %26 {strides = array<i32>} : memref<1x256xf32, #tpu.memory_space<vmem>>, vector<1x256xf32>,
    } else {
    }
    %c0 = arith.constant 0 : index
    %c0_1 = arith.constant 0 : index
    %3 = vector.load %arg7[%c0, %c0_1] : memref<1x256xf32, #tpu.memory_space<vmem>>, vector<1x256xf32>
    %c0_2 = arith.constant 0 : index
    %c0_3 = arith.constant 0 : index
    %c0_4 = arith.constant 0 : index
    %c0_5 = arith.constant 0 : index
    %4 = vector.load %arg3[%c0_2, %c0_3, %c0_4, %c0_5] : memref<1x1x3x256xbf16, #tpu.memory_space<vmem>>, vector<1x1x1x256xbf16>
    %5 = vector.shape_cast %4 : vector<1x1x1x256xbf16> to vector<1x256xbf16>
    %c0_6 = arith.constant 0 : index
    %c0_7 = arith.constant 0 : index
    %c0_8 = arith.constant 0 : index
    %6 = vector.load %arg4[%c0_6, %c0_7, %c0_8] : memref<1x768x256xbf16, #tpu.memory_space<vmem>>, vector<1x256x256xbf16>
    %7 = vector.shape_cast %6 : vector<1x256x256xbf16> to vector<256x256xbf16>
    %cst = arith.constant dense<0.000000e+00> : vector<1x256xf32>
    %8 = tpu.matmul %5, %7, %cst {dimension_numbers = #tpu.dot_dimension_numbers<[1], [0], [0], [1], [0, 0, 1, 1], [], []>} : vector<1x256xbf16>, vector<256x256xbf16>, vector<1x256xf32> -> vector<1x256xf32>
    %9 = arith.addf %3, %8 : vector<1x256xf32>
    %c0_9 = arith.constant 0 : index
    %c0_10 = arith.constant 0 : index
    %c1 = arith.constant 1 : index
    %c0_11 = arith.constant 0 : index
    %10 = vector.load %arg3[%c0_9, %c0_10, %c1, %c0_11] : memref<1x1x3x256xbf16, #tpu.memory_space<vmem>>, vector<1x1x1x256xbf16>
    %11 = vector.shape_cast %10 : vector<1x1x1x256xbf16> to vector<1x256xbf16>
    %c0_12 = arith.constant 0 : index
    %c256 = arith.constant 256 : index
    %c0_13 = arith.constant 0 : index
    %12 = vector.load %arg4[%c0_12, %c256, %c0_13] : memref<1x768x256xbf16, #tpu.memory_space<vmem>>, vector<1x256x256xbf16>
    %13 = vector.shape_cast %12 : vector<1x256x256xbf16> to vector<256x256xbf16>
    %cst_14 = arith.constant dense<0.000000e+00> : vector<1x256xf32>
    %14 = tpu.matmul %11, %13, %cst_14 {dimension_numbers = #tpu.dot_dimension_numbers<[1], [0], [0], [1], [0, 0, 1, 1], [], []>} : vector<1x256xbf16>, vector<256x256xbf16>, vector<1x256xf32> -> vector<1x256xf32>
    %15 = arith.addf %9, %14 : vector<1x256xf32>
    %c0_15 = arith.constant 0 : index
    %c0_16 = arith.constant 0 : index
    %c2 = arith.constant 2 : index
    %c0_17 = arith.constant 0 : index
    %16 = vector.load %arg3[%c0_15, %c0_16, %c2, %c0_17] : memref<1x1x3x256xbf16, #tpu.memory_space<vmem>>, vector<1x1x1x256xbf16>
    %17 = vector.shape_cast %16 : vector<1x1x1x256xbf16> to vector<1x256xbf16>
    %c0_18 = arith.constant 0 : index
    %c512 = arith.constant 512 : index
    %c0_19 = arith.constant 0 : index
    %18 = vector.load %arg4[%c0_18, %c512, %c0_19] : memref<1x768x256xbf16, #tpu.memory_space<vmem>>, vector<1x256x256xbf16>
    %19 = vector.shape_cast %18 : vector<1x256x256xbf16> to vector<256x256xbf16>
    %cst_20 = arith.constant dense<0.000000e+00> : vector<1x256xf32>
    %20 = tpu.matmul %17, %19, %cst_20 {dimension_numbers = #tpu.dot_dimension_numbers<[1], [0], [0], [1], [0, 0, 1, 1], [], []>} : vector<1x256xbf16>, vector<256x256xbf16>, vector<1x256xf32> -> vector<1x256xf32>
    %21 = arith.addf %15, %20 : vector<1x256xf32>
    %c0_21 = arith.constant 0 : index
    %c0_22 = arith.constant 0 : index
    %22 = vector.load %arg7[%c0_21, %c0_22] : memref<1x256xf32, #tpu.memory_space<vmem>>, vector<1x256xf32>
    tpu.vector_store %arg7[%c0_21, %c0_22], %21 {strides = array<i32>} : memref<1x256xf32, #tpu.memory_space<vmem>>, vector<1x256xf32>,
    %c2_i32 = arith.constant 2 : i32
    %23 = arith.cmpi eq, %arg2, %c2_i32 : i32
    %24 = arith.extui %23 : i1 to i32
    %c0_i32_23 = arith.constant 0 : i32
    %25 = arith.cmpi ne, %24, %c0_i32_23 : i32
    scf.if %25 {
      %c0_24 = arith.constant 0 : index
      %c0_25 = arith.constant 0 : index
      %26 = vector.load %arg7[%c0_24, %c0_25] : memref<1x256xf32, #tpu.memory_space<vmem>>, vector<1x256xf32>
      %c0_26 = arith.constant 0 : index
      %c0_27 = arith.constant 0 : index
      %27 = vector.load %arg5[%c0_26, %c0_27] : memref<1x256xf32, #tpu.memory_space<vmem>>, vector<1x256xf32>
      %28 = arith.addf %26, %27 : vector<1x256xf32>
      %cst_28 = arith.constant 0.000000e+00 : f32
      %29 = vector.broadcast %cst_28 : f32 to vector<1x256xf32>
      %30 = arith.maximumf %28, %29 : vector<1x256xf32>
      %c0_29 = arith.constant 0 : index
      %c0_30 = arith.constant 0 : index
      %c0_31 = arith.constant 0 : index
      %c0_32 = arith.constant 0 : index
      %31 = vector.load %arg6[%c0_29, %c0_30, %c0_31, %c0_32] : memref<1x1x1x256xf32, #tpu.memory_space<vmem>>, vector<1x1x1x256xf32>
      %32 = vector.shape_cast %31 : vector<1x1x1x256xf32> to vector<1x256xf32>
      %33 = vector.shape_cast %30 : vector<1x256xf32> to vector<1x1x1x256xf32>
      tpu.vector_store %arg6[%c0_29, %c0_30, %c0_31, %c0_32], %33 {strides = array<i32>} : memref<1x1x1x256xf32, #tpu.memory_space<vmem>>, vector<1x1x1x256xf32>,
    } else {
    }
    return
  }
  func.func @transform_0(%arg0: i32, %arg1: i32, %arg2: i32) -> (i32, i32, i32, i32) {
    %0 = arith.addi %arg1, %arg2 : i32
    %c0_i32 = arith.constant 0 : i32
    %c0_i32_0 = arith.constant 0 : i32
    %c0_i32_1 = arith.constant 0 : i32
    return %arg0, %0, %c0_i32, %c0_i32_0 : i32, i32, i32, i32
  }
  func.func @transform_1(%arg0: i32, %arg1: i32, %arg2: i32) -> (i32, i32, i32) {
    %c0_i32 = arith.constant 0 : i32
    %c0_i32_0 = arith.constant 0 : i32
    %c0_i32_1 = arith.constant 0 : i32
    return %arg2, %c0_i32, %c0_i32_0 : i32, i32, i32
  }
  func.func @transform_2(%arg0: i32, %arg1: i32, %arg2: i32) -> (i32, i32) {
    %c0_i32 = arith.constant 0 : i32
    %c0_i32_0 = arith.constant 0 : i32
    %c0_i32_1 = arith.constant 0 : i32
    return %c0_i32, %c0_i32_0 : i32, i32
  }
  func.func @transform_3(%arg0: i32, %arg1: i32, %arg2: i32) -> (i32, i32, i32, i32) {
    %c0_i32 = arith.constant 0 : i32
    %c0_i32_0 = arith.constant 0 : i32
    %c0_i32_1 = arith.constant 0 : i32
    return %arg0, %arg1, %c0_i32, %c0_i32_0 : i32, i32, i32, i32
  }
}

module attributes {stable_mosaic.version = 11 : i64} {
  func.func @_conv_s1_row_kernel(%arg0: i32, %arg1: i32, %arg2: i32, %arg3: memref<1x1x3x256xbf16, #tpu.memory_space<vmem>>, %arg4: memref<1x768x1024xbf16, #tpu.memory_space<vmem>>, %arg5: memref<1x1024xf32, #tpu.memory_space<vmem>>, %arg6: memref<1x1x1x1024xf32, #tpu.memory_space<vmem>>, %arg7: memref<1x1024xf32, #tpu.memory_space<vmem>>) attributes {dimension_semantics = [#tpu.dimension_semantics<parallel>, #tpu.dimension_semantics<parallel>, #tpu.dimension_semantics<arbitrary>], iteration_bounds = array<i64: 2, 1, 3>, scalar_prefetch = 0 : i64, scratch_operands = 1 : i64, tpu.core_type = #tpu.core_type<tc>, window_params = [{transform_indices = @transform_0, window_bounds = array<i64: 1, 1, 3, 256>}, {transform_indices = @transform_1, window_bounds = array<i64: 1, 768, 1024>}, {pipeline_mode = #tpu.pipeline_mode<synchronous>, transform_indices = @transform_2, window_bounds = array<i64: 1, 1024>}, {transform_indices = @transform_3, window_bounds = array<i64: 1, 1, 1, 1024>}]} {
    %c0_i32 = arith.constant 0 : i32
    %0 = arith.cmpi eq, %arg2, %c0_i32 : i32
    %1 = arith.extui %0 : i1 to i32
    %c0_i32_0 = arith.constant 0 : i32
    %2 = arith.cmpi ne, %1, %c0_i32_0 : i32
    scf.if %2 {
      %cst_24 = arith.constant 0.000000e+00 : f32
      %26 = vector.broadcast %cst_24 : f32 to vector<1x1024xf32>
      %c0_25 = arith.constant 0 : index
      %c0_26 = arith.constant 0 : index
      %27 = vector.load %arg7[%c0_25, %c0_26] : memref<1x1024xf32, #tpu.memory_space<vmem>>, vector<1x1024xf32>
      tpu.vector_store %arg7[%c0_25, %c0_26], %26 {strides = array<i32>} : memref<1x1024xf32, #tpu.memory_space<vmem>>, vector<1x1024xf32>,
    } else {
    }
    %c0 = arith.constant 0 : index
    %c0_1 = arith.constant 0 : index
    %3 = vector.load %arg7[%c0, %c0_1] : memref<1x1024xf32, #tpu.memory_space<vmem>>, vector<1x1024xf32>
    %c0_2 = arith.constant 0 : index
    %c0_3 = arith.constant 0 : index
    %c0_4 = arith.constant 0 : index
    %c0_5 = arith.constant 0 : index
    %4 = vector.load %arg3[%c0_2, %c0_3, %c0_4, %c0_5] : memref<1x1x3x256xbf16, #tpu.memory_space<vmem>>, vector<1x1x1x256xbf16>
    %5 = vector.shape_cast %4 : vector<1x1x1x256xbf16> to vector<1x256xbf16>
    %c0_6 = arith.constant 0 : index
    %c0_7 = arith.constant 0 : index
    %c0_8 = arith.constant 0 : index
    %6 = vector.load %arg4[%c0_6, %c0_7, %c0_8] : memref<1x768x1024xbf16, #tpu.memory_space<vmem>>, vector<1x256x1024xbf16>
    %7 = vector.shape_cast %6 : vector<1x256x1024xbf16> to vector<256x1024xbf16>
    %cst = arith.constant dense<0.000000e+00> : vector<1x1024xf32>
    %8 = tpu.matmul %5, %7, %cst {dimension_numbers = #tpu.dot_dimension_numbers<[1], [0], [0], [1], [0, 0, 1, 1], [], []>} : vector<1x256xbf16>, vector<256x1024xbf16>, vector<1x1024xf32> -> vector<1x1024xf32>
    %9 = arith.addf %3, %8 : vector<1x1024xf32>
    %c0_9 = arith.constant 0 : index
    %c0_10 = arith.constant 0 : index
    %c1 = arith.constant 1 : index
    %c0_11 = arith.constant 0 : index
    %10 = vector.load %arg3[%c0_9, %c0_10, %c1, %c0_11] : memref<1x1x3x256xbf16, #tpu.memory_space<vmem>>, vector<1x1x1x256xbf16>
    %11 = vector.shape_cast %10 : vector<1x1x1x256xbf16> to vector<1x256xbf16>
    %c0_12 = arith.constant 0 : index
    %c256 = arith.constant 256 : index
    %c0_13 = arith.constant 0 : index
    %12 = vector.load %arg4[%c0_12, %c256, %c0_13] : memref<1x768x1024xbf16, #tpu.memory_space<vmem>>, vector<1x256x1024xbf16>
    %13 = vector.shape_cast %12 : vector<1x256x1024xbf16> to vector<256x1024xbf16>
    %cst_14 = arith.constant dense<0.000000e+00> : vector<1x1024xf32>
    %14 = tpu.matmul %11, %13, %cst_14 {dimension_numbers = #tpu.dot_dimension_numbers<[1], [0], [0], [1], [0, 0, 1, 1], [], []>} : vector<1x256xbf16>, vector<256x1024xbf16>, vector<1x1024xf32> -> vector<1x1024xf32>
    %15 = arith.addf %9, %14 : vector<1x1024xf32>
    %c0_15 = arith.constant 0 : index
    %c0_16 = arith.constant 0 : index
    %c2 = arith.constant 2 : index
    %c0_17 = arith.constant 0 : index
    %16 = vector.load %arg3[%c0_15, %c0_16, %c2, %c0_17] : memref<1x1x3x256xbf16, #tpu.memory_space<vmem>>, vector<1x1x1x256xbf16>
    %17 = vector.shape_cast %16 : vector<1x1x1x256xbf16> to vector<1x256xbf16>
    %c0_18 = arith.constant 0 : index
    %c512 = arith.constant 512 : index
    %c0_19 = arith.constant 0 : index
    %18 = vector.load %arg4[%c0_18, %c512, %c0_19] : memref<1x768x1024xbf16, #tpu.memory_space<vmem>>, vector<1x256x1024xbf16>
    %19 = vector.shape_cast %18 : vector<1x256x1024xbf16> to vector<256x1024xbf16>
    %cst_20 = arith.constant dense<0.000000e+00> : vector<1x1024xf32>
    %20 = tpu.matmul %17, %19, %cst_20 {dimension_numbers = #tpu.dot_dimension_numbers<[1], [0], [0], [1], [0, 0, 1, 1], [], []>} : vector<1x256xbf16>, vector<256x1024xbf16>, vector<1x1024xf32> -> vector<1x1024xf32>
    %21 = arith.addf %15, %20 : vector<1x1024xf32>
    %c0_21 = arith.constant 0 : index
    %c0_22 = arith.constant 0 : index
    %22 = vector.load %arg7[%c0_21, %c0_22] : memref<1x1024xf32, #tpu.memory_space<vmem>>, vector<1x1024xf32>
    tpu.vector_store %arg7[%c0_21, %c0_22], %21 {strides = array<i32>} : memref<1x1024xf32, #tpu.memory_space<vmem>>, vector<1x1024xf32>,
    %c2_i32 = arith.constant 2 : i32
    %23 = arith.cmpi eq, %arg2, %c2_i32 : i32
    %24 = arith.extui %23 : i1 to i32
    %c0_i32_23 = arith.constant 0 : i32
    %25 = arith.cmpi ne, %24, %c0_i32_23 : i32
    scf.if %25 {
      %c0_24 = arith.constant 0 : index
      %c0_25 = arith.constant 0 : index
      %26 = vector.load %arg7[%c0_24, %c0_25] : memref<1x1024xf32, #tpu.memory_space<vmem>>, vector<1x1024xf32>
      %c0_26 = arith.constant 0 : index
      %c0_27 = arith.constant 0 : index
      %27 = vector.load %arg5[%c0_26, %c0_27] : memref<1x1024xf32, #tpu.memory_space<vmem>>, vector<1x1024xf32>
      %28 = arith.addf %26, %27 : vector<1x1024xf32>
      %cst_28 = arith.constant 0.000000e+00 : f32
      %29 = vector.broadcast %cst_28 : f32 to vector<1x1024xf32>
      %30 = arith.maximumf %28, %29 : vector<1x1024xf32>
      %c0_29 = arith.constant 0 : index
      %c0_30 = arith.constant 0 : index
      %c0_31 = arith.constant 0 : index
      %c0_32 = arith.constant 0 : index
      %31 = vector.load %arg6[%c0_29, %c0_30, %c0_31, %c0_32] : memref<1x1x1x1024xf32, #tpu.memory_space<vmem>>, vector<1x1x1x1024xf32>
      %32 = vector.shape_cast %31 : vector<1x1x1x1024xf32> to vector<1x1024xf32>
      %33 = vector.shape_cast %30 : vector<1x1024xf32> to vector<1x1x1x1024xf32>
      tpu.vector_store %arg6[%c0_29, %c0_30, %c0_31, %c0_32], %33 {strides = array<i32>} : memref<1x1x1x1024xf32, #tpu.memory_space<vmem>>, vector<1x1x1x1024xf32>,
    } else {
    }
    return
  }
  func.func @transform_0(%arg0: i32, %arg1: i32, %arg2: i32) -> (i32, i32, i32, i32) {
    %0 = arith.addi %arg1, %arg2 : i32
    %c0_i32 = arith.constant 0 : i32
    %c0_i32_0 = arith.constant 0 : i32
    %c0_i32_1 = arith.constant 0 : i32
    return %arg0, %0, %c0_i32, %c0_i32_0 : i32, i32, i32, i32
  }
  func.func @transform_1(%arg0: i32, %arg1: i32, %arg2: i32) -> (i32, i32, i32) {
    %c0_i32 = arith.constant 0 : i32
    %c0_i32_0 = arith.constant 0 : i32
    %c0_i32_1 = arith.constant 0 : i32
    return %arg2, %c0_i32, %c0_i32_0 : i32, i32, i32
  }
  func.func @transform_2(%arg0: i32, %arg1: i32, %arg2: i32) -> (i32, i32) {
    %c0_i32 = arith.constant 0 : i32
    %c0_i32_0 = arith.constant 0 : i32
    %c0_i32_1 = arith.constant 0 : i32
    return %c0_i32, %c0_i32_0 : i32, i32
  }
  func.func @transform_3(%arg0: i32, %arg1: i32, %arg2: i32) -> (i32, i32, i32, i32) {
    %c0_i32 = arith.constant 0 : i32
    %c0_i32_0 = arith.constant 0 : i32
    %c0_i32_1 = arith.constant 0 : i32
    return %arg0, %arg1, %c0_i32, %c0_i32_0 : i32, i32, i32, i32
  }
}

module attributes {stable_mosaic.version = 11 : i64} {
  func.func @_gap_fc_kernel(%arg0: i32, %arg1: memref<2x1x1024xf32, #tpu.memory_space<vmem>>, %arg2: memref<1024x128xbf16, #tpu.memory_space<vmem>>, %arg3: memref<1x128xf32, #tpu.memory_space<vmem>>, %arg4: memref<2x128xf32, #tpu.memory_space<vmem>>) attributes {dimension_semantics = [#tpu.dimension_semantics<parallel>], iteration_bounds = array<i64: 1>, scalar_prefetch = 0 : i64, scratch_operands = 0 : i64, tpu.core_type = #tpu.core_type<tc>, window_params = [{transform_indices = @transform_0, window_bounds = array<i64: 2, 1, 1024>}, {pipeline_mode = #tpu.pipeline_mode<synchronous>, transform_indices = @transform_1, window_bounds = array<i64: 1024, 128>}, {pipeline_mode = #tpu.pipeline_mode<synchronous>, transform_indices = @transform_2, window_bounds = array<i64: 1, 128>}, {transform_indices = @transform_3, window_bounds = array<i64: 2, 128>}]} {
    %c0 = arith.constant 0 : index
    %c0_0 = arith.constant 0 : index
    %c0_1 = arith.constant 0 : index
    %0 = vector.load %arg1[%c0, %c0_0, %c0_1] : memref<2x1x1024xf32, #tpu.memory_space<vmem>>, vector<2x1x1024xf32>
    %cst = arith.constant dense<0.000000e+00> : vector<2x1024xf32>
    %1 = vector.multi_reduction <add>, %0, %cst [1] : vector<2x1x1024xf32> to vector<2x1024xf32>
    %cst_2 = arith.constant 1.000000e+00 : f32
    %2 = vector.broadcast %cst_2 : f32 to vector<2x1024xf32>
    %3 = arith.divf %1, %2 : vector<2x1024xf32>
    %4 = arith.truncf %3 : vector<2x1024xf32> to vector<2x1024xbf16>
    %c0_3 = arith.constant 0 : index
    %c0_4 = arith.constant 0 : index
    %5 = vector.load %arg2[%c0_3, %c0_4] : memref<1024x128xbf16, #tpu.memory_space<vmem>>, vector<1024x128xbf16>
    %cst_5 = arith.constant dense<0.000000e+00> : vector<2x128xf32>
    %6 = tpu.matmul %4, %5, %cst_5 {dimension_numbers = #tpu.dot_dimension_numbers<[1], [0], [0], [1], [0, 0, 1, 1], [], []>} : vector<2x1024xbf16>, vector<1024x128xbf16>, vector<2x128xf32> -> vector<2x128xf32>
    %c0_6 = arith.constant 0 : index
    %c0_7 = arith.constant 0 : index
    %7 = vector.load %arg3[%c0_6, %c0_7] : memref<1x128xf32, #tpu.memory_space<vmem>>, vector<1x128xf32>
    %8 = vector.broadcast %7 : vector<1x128xf32> to vector<2x128xf32>
    %9 = arith.addf %6, %8 : vector<2x128xf32>
    %c0_8 = arith.constant 0 : index
    %c0_9 = arith.constant 0 : index
    %10 = vector.load %arg4[%c0_8, %c0_9] : memref<2x128xf32, #tpu.memory_space<vmem>>, vector<2x128xf32>
    tpu.vector_store %arg4[%c0_8, %c0_9], %9 {strides = array<i32>} : memref<2x128xf32, #tpu.memory_space<vmem>>, vector<2x128xf32>,
    return
  }
  func.func @transform_0(%arg0: i32) -> (i32, i32, i32) {
    %c0_i32 = arith.constant 0 : i32
    %c0_i32_0 = arith.constant 0 : i32
    %c0_i32_1 = arith.constant 0 : i32
    return %arg0, %c0_i32, %c0_i32_0 : i32, i32, i32
  }
  func.func @transform_1(%arg0: i32) -> (i32, i32) {
    %c0_i32 = arith.constant 0 : i32
    %c0_i32_0 = arith.constant 0 : i32
    %c0_i32_1 = arith.constant 0 : i32
    return %c0_i32, %c0_i32_0 : i32, i32
  }
  func.func @transform_2(%arg0: i32) -> (i32, i32) {
    %c0_i32 = arith.constant 0 : i32
    %c0_i32_0 = arith.constant 0 : i32
    %c0_i32_1 = arith.constant 0 : i32
    return %c0_i32, %c0_i32_0 : i32, i32
  }
  func.func @transform_3(%arg0: i32) -> (i32, i32) {
    %c0_i32 = arith.constant 0 : i32
    %c0_i32_0 = arith.constant 0 : i32
    return %arg0, %c0_i32 : i32, i32
  }
}

</mosaic_0001>

<bundles_post_ra>
// kernel: alexnet_forward.10
= control target key start
LH: loop header
LB: loop body
LE: loop exit
PB: predicated region body
PF: predicated region fallthrough
CT: control target
= control target key end

     0   :  { %s331_s6 = smov 0   ;;  %s408_s0 = inlined_call_operand.vmem [shape: f32[2,7,7,128], index: 0, kind: input, shape index: {}]   ;;  %s409_s1 = inlined_call_operand.vmem [shape: f32[2,5,5,128], index: 1, kind: output, shape index: {}]  }
   0x1 LB: > { %s264_s7 = sadd.s32 4294967295, %s319_s6   ;;  %p268_p0 = scmp.ge.s32.totalorder %s319_s6, 1  ;;  %s319_s6 = sphi %s331_s6, %s11_s6  }
   0x2   : > { %p87_p1 = scmp.lt.s32.totalorder %s319_s6, 3 }
   0x4   : > { %p88_p2 = pnand %p268_p0, %p87_p1 }
   0x5   : > { %p107_p3 = scmp.lt.s32.totalorder (!%p88_p2), %s264_s7, 1 }
   0x6   : > { %91 = sbr.rel (%p88_p2) target bundleno = 43 (0x2b), region = 24 }
   0xd   : > { %s411_s7 = smov (!%p107_p3, %s264_s7), 1 }
   0xe   : > { %s303_s8 = smul.u32 56, %s411_s7 }
   0xf   : > { %s304_s12 = smul.u32 40, %s411_s7 }
  0x10   : > { %s345_s11 = scalar_lea.vmem %s408_s0, %s303_s8 }
  0x11   : > { %v117_v0 = vld [vmem:[%s345_s11] sm:$0x1f]  ;;  %v271_v4 = vld [vmem:[%s345_s11 + $0x8] sm:$0x1f]  ;;  %v272_v13 = vld [vmem:[%s345_s11 + $0x10] sm:$0x1f]  ;;  %s384_s15 = scalar_lea.vmem %s409_s1, %s304_s12 }
  0x12   : > { %v122_v1 = vld [vmem:[%s345_s11 + $0x1] sm:$0x1f]  ;;  %v118_v6 = vld [vmem:[%s345_s11 + $0x8] sm:$0x1f]  ;;  %v119_v15 = vld [vmem:[%s345_s11 + $0x10] sm:$0x1f] }
  0x13   : > { %v132_v2 = vld [vmem:[%s345_s11 + $0x2] sm:$0x1f]  ;;  %v127_v3 = vmax.f32 %v117_v0, %v122_v1  ;;  %v123_v7 = vld [vmem:[%s345_s11 + $0x9] sm:$0x1f]  ;;  %v124_v16 = vld [vmem:[%s345_s11 + $0x11] sm:$0x1f] }
  0x14   : > { %v133_v8 = vld [vmem:[%s345_s11 + $0xa] sm:$0x1f]  ;;  %v128_v10 = vmax.f32 %v118_v6, %v123_v7  ;;  %v134_v17 = vld [vmem:[%s345_s11 + $0x12] sm:$0x1f]  ;;  %v129_v20 = vmax.f32 %v119_v15, %v124_v16  ;;  %v273_v24 = vld [vmem:[%s345_s11 + $0x18] sm:$0x1f] }
  0x15   : > { %v137_v5 = vmax.f32 %v127_v3, %v132_v2  ;;  %v276_v9 = vld [vmem:[%s345_s11 + $0x9] sm:$0x1f]  ;;  %v277_v19 = vld [vmem:[%s345_s11 + $0x11] sm:$0x1f]  ;;  %v120_v27 = vld [vmem:[%s345_s11 + $0x18] sm:$0x1f] }
  0x16   : > { %v281_v12 = vld [vmem:[%s345_s11 + $0xa] sm:$0x1f]  ;;  %v138_v14 = vmax.f32 %v128_v10, %v133_v8  ;;  %v286_v21 = vld [vmem:[%s345_s11 + $0x10] sm:$0x1f]  ;;  %v139_v26 = vmax.f32 %v129_v20, %v134_v17  ;;  %v125_v28 = vld [vmem:[%s345_s11 + $0x19] sm:$0x1f] }
  0x17   : > { %v148_v11 = vmax.f32 %v137_v5, %v271_v4  ;;  %v282_v23 = vld [vmem:[%s345_s11 + $0x12] sm:$0x1f]  ;;  %v135_v29 = vld [vmem:[%s345_s11 + $0x1a] sm:$0x1f]  ;;  %v130_v34 = vmax.f32 %v120_v27, %v125_v28  ;;  %v274_v39 = vld [vmem:[%s345_s11 + $0x20] sm:$0x1f] }
  0x18   : > { %v149_v22 = vmax.f32 %v138_v14, %v272_v13  ;;  %v291_v30 = vld [vmem:[%s345_s11 + $0x11] sm:$0x1f]  ;;  %v278_v33 = vld [vmem:[%s345_s11 + $0x19] sm:$0x1f]  ;;  %v150_v37 = vmax.f32 %v139_v26, %v273_v24  ;;  %v121_v42 = vld [vmem:[%s345_s11 + $0x20] sm:$0x1f] }
  0x19   : > { %v158_v18 = vmax.f32 %v148_v11, %v276_v9  ;;  %v296_v31 = vld [vmem:[%s345_s11 + $0x12] sm:$0x1f]  ;;  %v287_v36 = vld [vmem:[%s345_s11 + $0x18] sm:$0x1f]  ;;  %v140_v41 = vmax.f32 %v130_v34, %v135_v29  ;;  %v126_v43 = vld [vmem:[%s345_s11 + $0x21] sm:$0x1f] }
  0x1a   : > { %v159_v32 = vmax.f32 %v149_v22, %v277_v19  ;;  %v283_v38 = vld [vmem:[%s345_s11 + $0x1a] sm:$0x1f]  ;;  %v136_v44 = vld [vmem:[%s345_s11 + $0x22] sm:$0x1f]  ;;  %v160_v47 = vmax.f32 %v150_v37, %v278_v33  ;;  %v131_v49 = vmax.f32 %v121_v42, %v126_v43  ;;  %v275_v53 = vld [vmem:[%s345_s11 + $0x28] sm:$0x1f] }
  0x1b   : > { %v168_v25 = vmax.f32 %v158_v18, %v281_v12  ;;  %v292_v46 = vld [vmem:[%s345_s11 + $0x19] sm:$0x1f]  ;;  %v279_v48 = vld [vmem:[%s345_s11 + $0x21] sm:$0x1f]  ;;  %v151_v52 = vmax.f32 %v140_v41, %v274_v39  ;;  %v280_v62 = vld [vmem:[%s345_s11 + $0x29] sm:$0x1f] }
  0x1c   : > { %v169_v40 = vmax.f32 %v159_v32, %v282_v23  ;;  %v288_v51 = vld [vmem:[%s345_s11 + $0x20] sm:$0x1f]  ;;  %v297_v55 = vld [vmem:[%s345_s11 + $0x1a] sm:$0x1f]  ;;  %v170_v56 = vmax.f32 %v160_v47, %v283_v38  ;;  %v141_v58 = vmax.f32 %v131_v49, %v136_v44  ;;  %v289_v0 = vld [vmem:[%s345_s11 + $0x28] sm:$0x1f] }
  0x1d   : > { %v179_v35 = vmax.f32 %v168_v25, %v286_v21  ;;  %v284_v57 = vld [vmem:[%s345_s11 + $0x22] sm:$0x1f]  ;;  %v161_v61 = vmax.f32 %v151_v52, %v279_v48  ;;  %v285_v5 = vld [vmem:[%s345_s11 + $0x2a] sm:$0x1f]  ;;  %v290_v10 = vld [vmem:[%s345_s11 + $0x30] sm:$0x1f] }
  0x1e   : > { %v180_v50 = vmax.f32 %v169_v40, %v287_v36  ;;  %v293_v60 = vld [vmem:[%s345_s11 + $0x21] sm:$0x1f]  ;;  %v181_v63 = vmax.f32 %v170_v56, %v288_v51  ;;  %v152_v1 = vmax.f32 %v141_v58, %v275_v53  ;;  %v294_v7 = vld [vmem:[%s345_s11 + $0x29] sm:$0x1f]  ;;  %v295_v15 = vld [vmem:[%s345_s11 + $0x31] sm:$0x1f] }
  0x1f   : > { %v189_v45 = vmax.f32 %v179_v35, %v291_v30  ;;  %v298_v3 = vld [vmem:[%s345_s11 + $0x22] sm:$0x1f]  ;;  %v171_v4 = vmax.f32 %v161_v61, %v284_v57  ;;  %v299_v12 = vld [vmem:[%s345_s11 + $0x2a] sm:$0x1f]  ;;  %v300_v18 = vld [vmem:[%s345_s11 + $0x32] sm:$0x1f] }
  0x20   : > { %v190_v59 = vmax.f32 %v180_v50, %v292_v46  ;;  %v191_v6 = vmax.f32 %v181_v63, %v293_v60  ;;  %v162_v8 = vmax.f32 %v152_v1, %v280_v62 }
  0x21   : > { %v199_v54 = vmax.f32 %v189_v45, %v296_v31  ;;  %v182_v9 = vmax.f32 %v171_v4, %v289_v0 }
  0x22   : > { %v200_v2 = vmax.f32 %v190_v59, %v297_v55  ;;  %v201_v11 = vmax.f32 %v191_v6, %v298_v3  ;;  %v172_v13 = vmax.f32 %v162_v8, %v285_v5 }
  0x23   : > { %204 = vst [vmem:[%s384_s15] sm:$0x1f] %v199_v54  ;;  %v192_v14 = vmax.f32 %v182_v9, %v294_v7 }
  0x24   : > { %205 = vst [vmem:[%s384_s15 + $0x8] sm:$0x1f] %v200_v2  ;;  %206 = vst [vmem:[%s384_s15 + $0x10] sm:$0x1f] %v201_v11  ;;  %v183_v16 = vmax.f32 %v172_v13, %v290_v10 }
  0x25   : > { %v202_v17 = vmax.f32 %v192_v14, %v299_v12 }
  0x26   : > { %v193_v19 = vmax.f32 %v183_v16, %v295_v15 }
  0x27   : > { %207 = vst [vmem:[%s384_s15 + $0x18] sm:$0x1f] %v202_v17 }
  0x28   : > { %v203_v20 = vmax.f32 %v193_v19, %v300_v18 }
  0x2a   : > { %208 = vst [vmem:[%s384_s15 + $0x20] sm:$0x1f] %v203_v20 }
  0x2b PF: > { %s11_s6 = sadd.s32 1, %s319_s6  }
  0x2c   : > { %p8_p4 = scmp.ge.s32.totalorder %s11_s6, 4  }
  0x2e   :  { %10 = sbr.rel (!%p8_p4) target bundleno = 1 (0x1), region = 56 }

// kernel: alexnet_forward.9
= control target key start
LH: loop header
LB: loop body
LE: loop exit
PB: predicated region body
PF: predicated region fallthrough
CT: control target
= control target key end

     0   :  { %v462_v0 = vmov 0.0   ;;  %vm463_vm0 = vmmov 0   ;;  %s597_s1 = inlined_call_operand.vmem [shape: bf16[128,128], index: 1, kind: input, shape index: {}]   ;;  %s598_s0 = inlined_call_operand.vmem [shape: bf16[112,128], index: 0, kind: input, shape index: {}]   ;;  %s599_s2 = inlined_call_operand.vmem [shape: f32[1,128], index: 2, kind: input, shape index: {}]   ;;  %s600_s3 = inlined_call_operand.vmem [shape: f32[112,128], index: 3, kind: output, shape index: {}]  }
   0x1   :  { %385 = vmatprep.subr.bf16.mxu0 %v462_v0  ;;  %v447_v1 = vld [vmem:[%s597_s1] sm:$0xff]   ;;  %429 = vmatprep.subr.bf16.mxu1 %v462_v0  ;;  %v448_v2 = vld [vmem:[%s597_s1 + $0x8] sm:$0xff]   ;;  %v449_v3 = vld [vmem:[%s597_s1 + $0x10] sm:$0xff]  }
   0x2   :  { %401 = vmatprep.mubr.msk.bf16.mxu0 %vm463_vm0, %v462_v0  ;;  %417 = vmatprep.mubr.msk.bf16.mxu1 %vm463_vm0, %v462_v0  ;;  %v450_v4 = vld [vmem:[%s597_s1 + $0x18] sm:$0xff]   ;;  %v451_v5 = vld [vmem:[%s597_s1 + $0x20] sm:$0xff]   ;;  %v452_v6 = vld [vmem:[%s597_s1 + $0x28] sm:$0xff]  }
   0x3   :  { %386 = vmatpush3.bf16.msra.mxu0 %v447_v1  ;;  %437 = vmatpush3.bf16.msra.mxu1 %v447_v1  ;;  %v453_v7 = vld [vmem:[%s597_s1 + $0x30] sm:$0xff]   ;;  %v454_v8 = vld [vmem:[%s597_s1 + $0x38] sm:$0xff]   ;;  %v455_v9 = vld [vmem:[%s598_s0] sm:$0xff]  }
   0x4   :  { %387 = vmatprep.subr.bf16.mxu0 %v462_v0  ;;  %430 = vmatprep.subr.bf16.mxu1 %v462_v0  ;;  %v456_v10 = vld [vmem:[%s598_s0 + $0x20] sm:$0xff]   ;;  %v457_v11 = vld [vmem:[%s598_s0 + $0x8] sm:$0xff]   ;;  %v459_v13 = vld [vmem:[%s598_s0 + $0x10] sm:$0xff]  }
   0x5   :  { %v458_v12 = vld [vmem:[%s598_s0 + $0x28] sm:$0xff]   ;;  %v460_v14 = vld [vmem:[%s598_s0 + $0x30] sm:$0xff]   ;;  %v461_v15 = vld [vmem:[%s598_s0 + $0x18] sm:$0xff]  }
   0x6   :  { %v539_v16 = vld [vmem:[%s599_s2] ss:$0 sm:$0xff] }
   0x7   :  { %388 = vmatpush3.bf16.msra.mxu0 %v448_v2  ;;  %438 = vmatpush3.bf16.msra.mxu1 %v448_v2 }
   0x8   :  { %389 = vmatprep.subr.bf16.mxu0 %v462_v0  ;;  %431 = vmatprep.subr.bf16.mxu1 %v462_v0 }
   0xb   :  { %390 = vmatpush3.bf16.msra.mxu0 %v449_v3  ;;  %439 = vmatpush3.bf16.msra.mxu1 %v449_v3 }
   0xc   :  { %391 = vmatprep.subr.bf16.mxu0 %v462_v0  ;;  %432 = vmatprep.subr.bf16.mxu1 %v462_v0 }
   0xf   :  { %392 = vmatpush3.bf16.msra.mxu0 %v450_v4  ;;  %440 = vmatpush3.bf16.msra.mxu1 %v450_v4 }
  0x10   :  { %393 = vmatprep.subr.bf16.mxu0 %v462_v0  ;;  %433 = vmatprep.subr.bf16.mxu1 %v462_v0 }
  0x13   :  { %394 = vmatpush3.bf16.msra.mxu0 %v451_v5  ;;  %441 = vmatpush3.bf16.msra.mxu1 %v451_v5 }
  0x14   :  { %395 = vmatprep.subr.bf16.mxu0 %v462_v0  ;;  %434 = vmatprep.subr.bf16.mxu1 %v462_v0 }
  0x17   :  { %396 = vmatpush3.bf16.msra.mxu0 %v452_v6  ;;  %442 = vmatpush3.bf16.msra.mxu1 %v452_v6 }
  0x18   :  { %397 = vmatprep.subr.bf16.mxu0 %v462_v0  ;;  %435 = vmatprep.subr.bf16.mxu1 %v462_v0 }
  0x1b   :  { %398 = vmatpush3.bf16.msra.mxu0 %v453_v7  ;;  %443 = vmatpush3.bf16.msra.mxu1 %v453_v7 }
  0x1c   :  { %399 = vmatprep.subr.bf16.mxu0 %v462_v0  ;;  %436 = vmatprep.subr.bf16.mxu1 %v462_v0 }
  0x1f   :  { %400 = vmatpush3.bf16.msra.mxu0 %v454_v8  ;;  %444 = vmatpush3.bf16.msra.mxu1 %v454_v8 }
  0x22   :  { %402 = vmatmul.mubr.bf16.vlgmr.msra.gmra.mrb[0].mxu0 %v455_v9  ;;  %418 = vmatmul.mubr.bf16.vlgmr.msra.gmra.mrb[0].mxu1 %v456_v10 }
  0x23   :  { %405 = vmatprep.mubr.msk.bf16.mxu0 %vm463_vm0, %v462_v0  ;;  %421 = vmatprep.mubr.msk.bf16.mxu1 %vm463_vm0, %v462_v0 }
  0x2a   :  { %406 = vmatmul.mubr.bf16.gmra.mrb[4].mxu0 %v457_v11  ;;  %422 = vmatmul.mubr.bf16.gmra.mrb[4].mxu1 %v458_v12 }
  0x2b   :  { %409 = vmatprep.mubr.msk.bf16.mxu0 %vm463_vm0, %v462_v0  ;;  %425 = vmatprep.mubr.msk.bf16.mxu1 %vm463_vm0, %v462_v0 }
  0x32   :  { %410 = vmatmul.mubr.bf16.gmra.mrb[8].mxu0 %v459_v13  ;;  %426 = vmatmul.mubr.bf16.gmra.mrb[8].mxu1 %v460_v14 }
  0x33   :  { %413 = vmatprep.mubr.msk.bf16.mxu0 %vm463_vm0, %v462_v0 }
  0x3a   :  { %414 = vmatmul.mubr.bf16.gmra.mrb[12].mxu0 %v461_v15 }
  0xf5   :  { %v201_v17 = vpop.f32.mrb[0].mxu0  ;;  %v233_v18 = vpop.f32.mrb[0].mxu1 }
  0xf6   :  { %v308_v19 = vadd.f32 %v539_v16, %v201_v17  ;;  %v403_v20 = vpop.f32.mrb[1].mxu0  ;;  %v316_v21 = vadd.f32 %v539_v16, %v233_v18  ;;  %v419_v22 = vpop.f32.mrb[1].mxu1 }
  0xf7   :  { %v204_v23 = vpop.f32.mrb[2].mxu0  ;;  %v236_v24 = vpop.f32.mrb[2].mxu1 }
  0xf8   :  { %v322_v25 = vmax.f32 %v308_v19, 0.0  ;;  %v309_v26 = vadd.f32 %v539_v16, %v204_v23  ;;  %v404_v27 = vpop.f32.mrb[3].mxu0  ;;  %v330_v28 = vmax.f32 %v316_v21, 0.0  ;;  %v317_v29 = vadd.f32 %v539_v16, %v236_v24  ;;  %v420_v30 = vpop.f32.mrb[3].mxu1 }
  0xfa   :  { %336 = vst [vmem:[%s600_s3] sm:$0xff] %v322_v25  ;;  %v323_v31 = vmax.f32 %v309_v26, 0.0  ;;  %344 = vst [vmem:[%s600_s3 + $0x40] sm:$0xff] %v330_v28  ;;  %v331_v32 = vmax.f32 %v317_v29, 0.0 }
  0xfc   :  { %337 = vst [vmem:[%s600_s3 + $0x8] sm:$0xff] %v323_v31  ;;  %345 = vst [vmem:[%s600_s3 + $0x48] sm:$0xff] %v331_v32 }
  0xfd   :  { %v209_v33 = vpop.f32.mrb[4].mxu0  ;;  %v241_v34 = vpop.f32.mrb[4].mxu1 }
  0xfe   :  { %v310_v35 = vadd.f32 %v539_v16, %v209_v33  ;;  %v407_v36 = vpop.f32.mrb[5].mxu0  ;;  %v318_v37 = vadd.f32 %v539_v16, %v241_v34  ;;  %v423_v38 = vpop.f32.mrb[5].mxu1 }
  0xff   :  { %v212_v39 = vpop.f32.mrb[6].mxu0  ;;  %v244_v40 = vpop.f32.mrb[6].mxu1 }
 0x100   :  { %v324_v41 = vmax.f32 %v310_v35, 0.0  ;;  %v311_v42 = vadd.f32 %v539_v16, %v212_v39  ;;  %v408_v43 = vpop.f32.mrb[7].mxu0  ;;  %v332_v44 = vmax.f32 %v318_v37, 0.0  ;;  %v319_v45 = vadd.f32 %v539_v16, %v244_v40  ;;  %v424_v46 = vpop.f32.mrb[7].mxu1 }
 0x102   :  { %338 = vst [vmem:[%s600_s3 + $0x10] sm:$0xff] %v324_v41  ;;  %v325_v47 = vmax.f32 %v311_v42, 0.0  ;;  %346 = vst [vmem:[%s600_s3 + $0x50] sm:$0xff] %v332_v44  ;;  %v333_v48 = vmax.f32 %v319_v45, 0.0 }
 0x104   :  { %339 = vst [vmem:[%s600_s3 + $0x18] sm:$0xff] %v325_v47  ;;  %347 = vst [vmem:[%s600_s3 + $0x58] sm:$0xff] %v333_v48 }
 0x105   :  { %v217_v49 = vpop.f32.mrb[8].mxu0  ;;  %v249_v50 = vpop.f32.mrb[8].mxu1 }
 0x106   :  { %v312_v51 = vadd.f32 %v539_v16, %v217_v49  ;;  %v411_v52 = vpop.f32.mrb[9].mxu0  ;;  %v320_v53 = vadd.f32 %v539_v16, %v249_v50  ;;  %v427_v54 = vpop.f32.mrb[9].mxu1 }
 0x107   :  { %v220_v55 = vpop.f32.mrb[10].mxu0  ;;  %v252_v56 = vpop.f32.mrb[10].mxu1 }
 0x108   :  { %v326_v57 = vmax.f32 %v312_v51, 0.0  ;;  %v313_v58 = vadd.f32 %v539_v16, %v220_v55  ;;  %v412_v59 = vpop.f32.mrb[11].mxu0  ;;  %v334_v60 = vmax.f32 %v320_v53, 0.0  ;;  %v321_v61 = vadd.f32 %v539_v16, %v252_v56  ;;  %v428_v62 = vpop.f32.mrb[11].mxu1 }
 0x10a   :  { %340 = vst [vmem:[%s600_s3 + $0x20] sm:$0xff] %v326_v57  ;;  %v327_v63 = vmax.f32 %v313_v58, 0.0  ;;  %348 = vst [vmem:[%s600_s3 + $0x60] sm:$0xff] %v334_v60  ;;  %v335_v0 = vmax.f32 %v321_v61, 0.0 }
 0x10c   :  { %341 = vst [vmem:[%s600_s3 + $0x28] sm:$0xff] %v327_v63  ;;  %349 = vst [vmem:[%s600_s3 + $0x68] sm:$0xff] %v335_v0 }
 0x10d   :  { %v225_v1 = vpop.f32.mrb[12].mxu0 }
 0x10e   :  { %v314_v2 = vadd.f32 %v539_v16, %v225_v1  ;;  %v415_v3 = vpop.f32.mrb[13].mxu0 }
 0x10f   :  { %v228_v4 = vpop.f32.mrb[14].mxu0 }
 0x110   :  { %v328_v5 = vmax.f32 %v314_v2, 0.0  ;;  %v315_v6 = vadd.f32 %v539_v16, %v228_v4  ;;  %v416_v7 = vpop.f32.mrb[15].mxu0 }
 0x112   :  { %342 = vst [vmem:[%s600_s3 + $0x30] sm:$0xff] %v328_v5  ;;  %v329_v8 = vmax.f32 %v315_v6, 0.0 }
 0x114   :  { %343 = vst [vmem:[%s600_s3 + $0x38] sm:$0xff] %v329_v8 }

// kernel: alexnet_forward.12
= control target key start
LH: loop header
LB: loop body
LE: loop exit
PB: predicated region body
PF: predicated region fallthrough
CT: control target
= control target key end

     0   :  { %s246_s6 = smov 0   ;;  %s263_s0 = inlined_call_operand.vmem [shape: f32[2,3,3,256], index: 0, kind: input, shape index: {}]   ;;  %s264_s1 = inlined_call_operand.vmem [shape: f32[2,1,1,256], index: 1, kind: output, shape index: {}]  }
   0x1 LB: > { %s202_s7 = sadd.s32 4294967295, %s234_s6   ;;  %p206_p0 = scmp.ge.s32.totalorder %s234_s6, 1  ;;  %s234_s6 = sphi %s246_s6, %s11_s6  }
   0x2   : > { %p87_p1 = scmp.lt.s32.totalorder %s234_s6, 3 }
   0x4   : > { %p88_p2 = pnand %p206_p0, %p87_p1 }
   0x5   : > { %p106_p3 = scmp.lt.s32.totalorder (!%p88_p2), %s202_s7, 1  ;;  %v140_v13 = vlaneseq (!%p88_p2) }
   0x6   : > { %91 = sbr.rel (%p88_p2) target bundleno = 35 (0x23), region = 24 }
   0x7   : > { %vm142_vm0 = vcmp.lt.s32.totalorder (!%p88_p2), %v140_v13, 256 }
   0xd   : > { %s266_s7 = smov (!%p106_p3, %s202_s7), 1 }
   0xe   : > { %s219_s8 = smul.u32 24, %s266_s7  ;;  %s208_s12 = sshll.u32 %s266_s7, 1 }
   0xf   : > { %s114_s15 = scalar_lea.vmem %s264_s1, %s208_s12 }
  0x10   : > { %s110_s11 = scalar_lea.vmem %s263_s0, %s219_s8 }
  0x11   : > { %v115_v0 = vld [vmem:[%s110_s11] ss:$4 sm:$0x3]  ;;  %v209_v1 = vld [vmem:[%s110_s11 + $0x1] ss:$4 sm:$0x3] }
  0x12   : > { %v118_v2 = vmax.f32 %v115_v0, %v209_v1  ;;  %v210_v3 = vld [vmem:[%s110_s11 + $0x2] ss:$4 sm:$0x3]  ;;  %v211_v4 = vld [vmem:[%s110_s11 + $0x8] ss:$4 sm:$0x3] }
  0x13   : > { %v212_v6 = vld [vmem:[%s110_s11 + $0x9] ss:$4 sm:$0x3]  ;;  %v213_v8 = vld [vmem:[%s110_s11 + $0xa] ss:$4 sm:$0x3] }
  0x14   : > { %v121_v5 = vmax.f32 %v118_v2, %v210_v3  ;;  %v214_v10 = vld [vmem:[%s110_s11 + $0x10] ss:$4 sm:$0x3]  ;;  %v215_v12 = vld [vmem:[%s110_s11 + $0x11] ss:$4 sm:$0x3] }
  0x15   : > { %v216_v15 = vld [vmem:[%s110_s11 + $0x12] ss:$4 sm:$0x3] }
  0x16   : > { %v124_v7 = vmax.f32 %v121_v5, %v211_v4 }
  0x18   : > { %v127_v9 = vmax.f32 %v124_v7, %v212_v6 }
  0x1a   : > { %v130_v11 = vmax.f32 %v127_v9, %v213_v8 }
  0x1c   : > { %v133_v14 = vmax.f32 %v130_v11, %v214_v10 }
  0x1e   : > { %v136_v16 = vmax.f32 %v133_v14, %v215_v12 }
  0x20   : > { %v139_v17 = vmax.f32 %v136_v16, %v216_v15 }
  0x22   : > { %144 = vst.msk [vmem:[%s114_s15] sm:$0x3] %vm142_vm0, %v139_v17 }
  0x23 PF: > { %s11_s6 = sadd.s32 1, %s234_s6  }
  0x24   : > { %p8_p4 = scmp.ge.s32.totalorder %s11_s6, 4  }
  0x26   :  { %10 = sbr.rel (!%p8_p4) target bundleno = 1 (0x1), region = 62 }

// kernel: alexnet_forward.11
= control target key start
LH: loop header
LB: loop body
LE: loop exit
PB: predicated region body
PF: predicated region fallthrough
CT: control target
= control target key end

     0   :  { %s1484_s12 = smov 0   ;;  %s1486_s13 = smov 0   ;;  %s1668_s0 = inlined_call_operand.vmem [shape: bf16[2,7,7,128], index: 0, kind: input, shape index: {}]   ;;  %s1669_s1 = inlined_call_operand.vmem [shape: bf16[5,640,256], index: 1, kind: input, shape index: {}]   ;;  %s1670_s2 = inlined_call_operand.vmem [shape: f32[1,256], index: 2, kind: input, shape index: {}]   ;;  %s1671_s3 = inlined_call_operand.vmem [shape: f32[2,3,3,256], index: 3, kind: output, shape index: {}]  }
   0x1   :  { %s1488_s14 = smov 0   ;;  %s1490_s15 = smov 0  }
   0x2   :  { %s1492_s16 = smov 0   ;;  %s1494_s17 = smov 0  }
   0x3   :  { %s1496_s18 = smov 0  }
   0x4 LB: > { %s25_s19 = sadd.s32 1, %s1448_s15  ;;  %s28_s20 = sadd.s32 1, %s1452_s16  ;;  %s1460_s18 = sphi %s1496_s18, %s13_s18   ;;  %s1456_s17 = sphi %s1494_s17, %s1677_s17   ;;  %s1452_s16 = sphi %s1492_s16, %s1676_s16   ;;  %s1448_s15 = sphi %s1490_s15, %s1675_s15   ;;  %s1444_s14 = sphi %s1488_s14, %s1674_s14   ;;  %s1440_s13 = sphi %s1486_s13, %s1673_s13   ;;  %s1436_s12 = sphi %s1484_s12, %s1672_s12  }
   0x5   : > { %p26_p0 = scmp.ge.s32.totalorder %s25_s19, 5  ;;  %p1128_p1 = scmp.ge.s32.totalorder %s1460_s18, 1 }
   0x6   : > { %p177_p2 = scmp.lt.s32.totalorder %s1460_s18, 31  ;;  %s32_s21 = sadd.s32 1, %s1456_s17 }
   0x7   : > { %s1679_s19 = smov (%p26_p0, %s25_s19), 0  ;;  %s1681_s20 = smov (!%p26_p0, %s28_s20), %s1452_s16 }
   0x8   : > { %p178_p3 = pnand %p1128_p1, %p177_p2  ;;  %p30_p4 = scmp.ge.s32.totalorder %s1681_s20, 3 }
   0x9   : > { %s214_s22 = sadd.s32 (!%p178_p3), %s1436_s12, %s1440_s13  ;;  %p215_p6 = scmp.lt.s32.totalorder (!%p178_p3), %s1444_s14, 1 }
   0xa   : > { %s1683_s20 = smov (%p30_p4, %s1681_s20), 0  ;;  %s1685_s21 = smov (!%p30_p4, %s32_s21), %s1456_s17 }
   0xb   : > { %p34_p5 = scmp.ge.s32.totalorder %s1685_s21, 2  ;;  %181 = sbr.rel (%p178_p3) target bundleno = 360 (0x168), region = 32 }
   0xc   : > { %p217_p7 = scmp.lt.s32.totalorder (!%p178_p3), %s214_s22, 6  ;;  %p224_p8 = scmp.lt.s32.totalorder (!%p178_p3), %s1436_s12, 4 }
   0xd   : > { %s1687_s21 = smov (%p34_p5, %s1685_s21), 0  ;;  %p231_p9 = scmp.lt.s32.totalorder (!%p178_p3), %s1440_s13, 2 }
   0xe   : > { %p1133_p10 = scmp.ne.s32.totalorder (!%p178_p3), %s1436_s12, 0 }
  0x12   : > { %s1689_s14 = smov (!%p215_p6, %s1444_s14), 1  ;;  %s1691_s22 = smov (!%p217_p7, %s214_s22), 6 }
  0x13   : > { %s1221_s23 = smul.u32 7, %s1689_s14  ;;  %s1693_s13 = smov (!%p231_p9, %s1440_s13), 2  ;;  %v1462_v0 = vmov (!%p1133_p10), 0.0  }
  0x14   : > { %s225_s24 = scalar_select %p224_p8, %s1436_s12, 4 }
  0x15   : > { %s220_s25 = sadd.s32 %s1221_s23, %s1691_s22  ;;  %s1223_s7 = smul.u32 6, %s1689_s14  ;;  %243 = vst [vmem:[#allocation2] sm:$0x77] (!%p1133_p10), %v1462_v0 }
  0x16   : > { %s1129_s26 = sshll.u32 %s220_s25, 2  ;;  %s1222_s27 = smul.u32 640, %s225_s24 }
  0x17   : > { %s1538_s30 = scalar_lea.vmem %s1668_s0, %s1129_s26  ;;  %s1131_s8 = sshll.u32 %s1693_s13, 1 }
  0x18   : > { %s1543_s6 = scalar_lea.vmem %s1669_s1, %s1222_s27  ;;  %s235_s9 = sadd.s32 %s1223_s7, %s1131_s8 }
  0x19   : > { %s1132_s10 = sshll.u32 %s235_s9, 2  ;;  %242 = sbr.rel (%p1133_p10) target bundleno = 32 (0x20), region = 36 }
  0x1a   : > { %s1549_s23 = scalar_lea.vmem %s1671_s3, %s1132_s10 }
  0x20 PF: > { %v1282_v1 = vld [vmem:[%s1543_s6 + $0x4] ss:$8 sps:$4 sm:$0xff]   ;;  %v1284_v2 = vld [vmem:[%s1543_s6] ss:$8 sps:$4 sm:$0xff]   ;;  %v1463_v3 = vmov 0   ;;  %p1218_p11 = scmp.ne.s32.totalorder %s1436_s12, 4 }
  0x21   : > { %374 = vmatprep.mubr.bf16.mxu0 %v1463_v3  ;;  %528 = vmatprep.mubr.bf16.mxu1 %v1463_v3  ;;  %v1285_v4 = vld [vmem:[%s1543_s6 + $0x84] ss:$8 sps:$4 sm:$0xff]   ;;  %v1287_v5 = vld [vmem:[%s1543_s6 + $0x80] ss:$8 sps:$4 sm:$0xff]   ;;  %v1288_v6 = vld [vmem:[%s1543_s6 + $0x14] ss:$8 sps:$4 sm:$0xff]  }
  0x22   : > { %342 = vmatprep.subr.bf16.mxu0 %v1282_v1  ;;  %v1290_v7 = vld [vmem:[%s1543_s6 + $0x10] ss:$8 sps:$4 sm:$0xff]   ;;  %496 = vmatprep.subr.bf16.mxu1 %v1285_v4  ;;  %v1291_v8 = vld [vmem:[%s1543_s6 + $0x94] ss:$8 sps:$4 sm:$0xff]   ;;  %v1294_v10 = vld [vmem:[%s1543_s6 + $0x24] ss:$8 sps:$4 sm:$0xff]  }
  0x23   : > { %343 = vmatpush1.bf16.msra.mxu0 %v1284_v2  ;;  %497 = vmatpush1.bf16.msra.mxu1 %v1287_v5  ;;  %v1293_v9 = vld [vmem:[%s1543_s6 + $0x90] ss:$8 sps:$4 sm:$0xff]   ;;  %v1296_v11 = vld [vmem:[%s1543_s6 + $0x20] ss:$8 sps:$4 sm:$0xff]   ;;  %v1297_v12 = vld [vmem:[%s1543_s6 + $0xa4] ss:$8 sps:$4 sm:$0xff]  }
  0x24   : > { %344 = vmatprep.subr.bf16.mxu0 %v1288_v6  ;;  %498 = vmatprep.subr.bf16.mxu1 %v1291_v8  ;;  %v1300_v13 = vld [vmem:[%s1543_s6 + $0x34] ss:$8 sps:$4 sm:$0xff]   ;;  %v1299_v14 = vld [vmem:[%s1543_s6 + $0xa0] ss:$8 sps:$4 sm:$0xff]   ;;  %v1302_v16 = vld [vmem:[%s1543_s6 + $0x30] ss:$8 sps:$4 sm:$0xff]  }
  0x25   : > { %v1303_v15 = vld [vmem:[%s1543_s6 + $0xb4] ss:$8 sps:$4 sm:$0xff]   ;;  %v1306_v17 = vld [vmem:[%s1543_s6 + $0x44] ss:$8 sps:$4 sm:$0xff]   ;;  %v1305_v18 = vld [vmem:[%s1543_s6 + $0xb0] ss:$8 sps:$4 sm:$0xff]  }
  0x26   : > { %v1309_v19 = vld [vmem:[%s1543_s6 + $0xc4] ss:$8 sps:$4 sm:$0xff]   ;;  %v1308_v20 = vld [vmem:[%s1543_s6 + $0x40] ss:$8 sps:$4 sm:$0xff]   ;;  %v1312_v21 = vld [vmem:[%s1543_s6 + $0x54] ss:$8 sps:$4 sm:$0xff]  }
  0x27   : > { %345 = vmatpush1.bf16.msra.mxu0 %v1290_v7  ;;  %499 = vmatpush1.bf16.msra.mxu1 %v1293_v9  ;;  %v1311_v22 = vld [vmem:[%s1543_s6 + $0xc0] ss:$8 sps:$4 sm:$0xff]   ;;  %v1315_v23 = vld [vmem:[%s1543_s6 + $0xd4] ss:$8 sps:$4 sm:$0xff]   ;;  %v1314_v24 = vld [vmem:[%s1543_s6 + $0x50] ss:$8 sps:$4 sm:$0xff]  }
  0x28   : > { %346 = vmatprep.subr.bf16.mxu0 %v1294_v10  ;;  %500 = vmatprep.subr.bf16.mxu1 %v1297_v12  ;;  %v1318_v25 = vld [vmem:[%s1543_s6 + $0x64] ss:$8 sps:$4 sm:$0xff]   ;;  %v1317_v26 = vld [vmem:[%s1543_s6 + $0xd0] ss:$8 sps:$4 sm:$0xff]   ;;  %v1320_v27 = vld [vmem:[%s1543_s6 + $0x60] ss:$8 sps:$4 sm:$0xff]  }
  0x29   : > { %v1321_v28 = vld [vmem:[%s1543_s6 + $0xe4] ss:$8 sps:$4 sm:$0xff]   ;;  %v1333_v29 = vld [vmem:[%s1538_s30] ss:$0 sps:$4 sm:$0x33]  }
  0x2a   : > { %v1324_v30 = vld [vmem:[%s1543_s6 + $0x74] ss:$8 sps:$4 sm:$0xff]   ;;  %v1323_v31 = vld [vmem:[%s1543_s6 + $0xe0] ss:$8 sps:$4 sm:$0xff]   ;;  %v411_v32 = vshll.u32 %v1333_v29, 16  ;;  %v409_v36 = vshrl.u32 %v1333_v29, 16 }
  0x2b   : > { %347 = vmatpush1.bf16.msra.mxu0 %v1296_v11  ;;  %501 = vmatpush1.bf16.msra.mxu1 %v1299_v14  ;;  %v1327_v33 = vld [vmem:[%s1543_s6 + $0xf4] ss:$8 sps:$4 sm:$0xff]   ;;  %v1326_v34 = vld [vmem:[%s1543_s6 + $0x70] ss:$8 sps:$4 sm:$0xff]   ;;  %v1332_v35 = vld [vmem:[%s1543_s6 + $0x104] ss:$8 sps:$4 sm:$0xff]  }
  0x2c   : > { %348 = vmatprep.subr.bf16.mxu0 %v1300_v13  ;;  %502 = vmatprep.subr.bf16.mxu1 %v1303_v15  ;;  %v413_v37 = vrot.slane %v411_v32, 1  ;;  %v1329_v38 = vld [vmem:[%s1543_s6 + $0xf0] ss:$8 sps:$4 sm:$0xff]   ;;  %v1336_v39 = vld [vmem:[%s1543_s6 + $0x184] ss:$8 sps:$4 sm:$0xff]  }
  0x2d   : > { %v245_v40 = vld [vmem:[%s1538_s30] sm:$0x3]  ;;  %v1339_v43 = vld [vmem:[%s1543_s6 + $0x114] ss:$8 sps:$4 sm:$0xff]   ;;  %v1337_v46 = vld [vmem:[%s1543_s6 + $0x110] ss:$8 sps:$4 sm:$0xff]  }
  0x2e   : > { %v1330_v41 = vld [vmem:[%s1543_s6 + $0x100] ss:$8 sps:$4 sm:$0xff]   ;;  %v414_v42 = vor.u32 %v413_v37, %v409_v36  ;;  %v1342_v45 = vld [vmem:[%s1543_s6 + $0x194] ss:$8 sps:$4 sm:$0xff]   ;;  %v1345_v47 = vld [vmem:[%s1543_s6 + $0x124] ss:$8 sps:$4 sm:$0xff]  }
  0x2f   : > { %349 = vmatpush1.bf16.msra.mxu0 %v1302_v16  ;;  %503 = vmatpush1.bf16.msra.mxu1 %v1305_v18  ;;  %v1334_v44 = vld [vmem:[%s1543_s6 + $0x180] ss:$8 sps:$4 sm:$0xff]   ;;  %v1340_v48 = vld [vmem:[%s1543_s6 + $0x190] ss:$8 sps:$4 sm:$0xff]   ;;  %v1348_v49 = vld [vmem:[%s1543_s6 + $0x1a4] ss:$8 sps:$4 sm:$0xff]  }
  0x30   : > { %350 = vmatprep.subr.bf16.mxu0 %v1306_v17  ;;  %504 = vmatprep.subr.bf16.mxu1 %v1309_v19  ;;  %v1343_v50 = vld [vmem:[%s1543_s6 + $0x120] ss:$8 sps:$4 sm:$0xff]   ;;  %v1351_v51 = vld [vmem:[%s1543_s6 + $0x134] ss:$8 sps:$4 sm:$0xff]   ;;  %v1349_v54 = vld [vmem:[%s1543_s6 + $0x130] ss:$8 sps:$4 sm:$0xff]  }
  0x31   : > { %v1346_v52 = vld [vmem:[%s1543_s6 + $0x1a0] ss:$8 sps:$4 sm:$0xff]   ;;  %v1354_v53 = vld [vmem:[%s1543_s6 + $0x1b4] ss:$8 sps:$4 sm:$0xff]   ;;  %v1357_v55 = vld [vmem:[%s1543_s6 + $0x144] ss:$8 sps:$4 sm:$0xff]  }
  0x32   : > { %v1352_v56 = vld [vmem:[%s1543_s6 + $0x1b0] ss:$8 sps:$4 sm:$0xff]   ;;  %v1360_v57 = vld [vmem:[%s1543_s6 + $0x1c4] ss:$8 sps:$4 sm:$0xff]   ;;  %v1355_v58 = vld [vmem:[%s1543_s6 + $0x140] ss:$8 sps:$4 sm:$0xff]  }
  0x33   : > { %351 = vmatpush1.bf16.msra.mxu0 %v1308_v20  ;;  %505 = vmatpush1.bf16.msra.mxu1 %v1311_v22  ;;  %v1363_v59 = vld [vmem:[%s1543_s6 + $0x154] ss:$8 sps:$4 sm:$0xff]   ;;  %v1358_v60 = vld [vmem:[%s1543_s6 + $0x1c0] ss:$8 sps:$4 sm:$0xff]   ;;  %v1361_v62 = vld [vmem:[%s1543_s6 + $0x150] ss:$8 sps:$4 sm:$0xff]  }
  0x34   : > { %352 = vmatprep.subr.bf16.mxu0 %v1312_v21  ;;  %506 = vmatprep.subr.bf16.mxu1 %v1315_v23  ;;  %v1366_v61 = vld [vmem:[%s1543_s6 + $0x1d4] ss:$8 sps:$4 sm:$0xff]   ;;  %v1369_v63 = vld [vmem:[%s1543_s6 + $0x164] ss:$8 sps:$4 sm:$0xff]   ;;  %v1364_v1 = vld [vmem:[%s1543_s6 + $0x1d0] ss:$8 sps:$4 sm:$0xff]  }
  0x35   : > { %v1383_v0 = vld [vmem:[%s1538_s30] ss:$0 sps:$4 sm:$0x66]   ;;  %v1372_v2 = vld [vmem:[%s1543_s6 + $0x1e4] ss:$8 sps:$4 sm:$0xff]  }
  0x36   : > { %v1367_v4 = vld [vmem:[%s1543_s6 + $0x160] ss:$8 sps:$4 sm:$0xff]   ;;  %v1375_v5 = vld [vmem:[%s1543_s6 + $0x174] ss:$8 sps:$4 sm:$0xff]   ;;  %v711_v6 = vshrl.u32 %v1383_v0, 16  ;;  %v714_v7 = vshll.u32 %v1383_v0, 16 }
  0x37   : > { %353 = vmatpush1.bf16.msra.mxu0 %v1314_v24  ;;  %507 = vmatpush1.bf16.msra.mxu1 %v1317_v26  ;;  %v1370_v8 = vld [vmem:[%s1543_s6 + $0x1e0] ss:$8 sps:$4 sm:$0xff]   ;;  %v1378_v9 = vld [vmem:[%s1543_s6 + $0x1f4] ss:$8 sps:$4 sm:$0xff]   ;;  %v1373_v11 = vld [vmem:[%s1543_s6 + $0x170] ss:$8 sps:$4 sm:$0xff]  }
  0x38   : > { %354 = vmatprep.subr.bf16.mxu0 %v1318_v25  ;;  %508 = vmatprep.subr.bf16.mxu1 %v1321_v28  ;;  %v1379_v10 = vld [vmem:[%s1538_s30] ss:$0 sps:$4 sm:$0x66]   ;;  %v1382_v12 = vld [vmem:[%s1543_s6 + $0x204] ss:$8 sps:$4 sm:$0xff]   ;;  %v713_v13 = vrot.slane %v711_v6, 1 }
  0x39   : > { %v716_v14 = vrot.slane %v714_v7, 2  ;;  %v1376_v15 = vld [vmem:[%s1543_s6 + $0x1f0] ss:$8 sps:$4 sm:$0xff]   ;;  %v562_v16 = vrot.slane %v1379_v10, 1  ;;  %v1380_v17 = vld [vmem:[%s1543_s6 + $0x200] ss:$8 sps:$4 sm:$0xff]  }
  0x3a   : > { %v1386_v19 = vld [vmem:[%s1543_s6 + $0x214] ss:$8 sps:$4 sm:$0xff]   ;;  %v1384_v20 = vld [vmem:[%s1543_s6 + $0x210] ss:$8 sps:$4 sm:$0xff]   ;;  %v1389_v21 = vld [vmem:[%s1543_s6 + $0x224] ss:$8 sps:$4 sm:$0xff]  }
  0x3b   : > { %355 = vmatpush1.bf16.msra.mxu0 %v1320_v27  ;;  %509 = vmatpush1.bf16.msra.mxu1 %v1323_v31  ;;  %v717_v18 = vor.u32 %v716_v14, %v713_v13  ;;  %v1387_v22 = vld [vmem:[%s1543_s6 + $0x220] ss:$8 sps:$4 sm:$0xff]   ;;  %v1392_v23 = vld [vmem:[%s1543_s6 + $0x234] ss:$8 sps:$4 sm:$0xff]   ;;  %v1390_v24 = vld [vmem:[%s1543_s6 + $0x230] ss:$8 sps:$4 sm:$0xff]  }
  0x3c   : > { %356 = vmatprep.subr.bf16.mxu0 %v1324_v30  ;;  %510 = vmatprep.subr.bf16.mxu1 %v1327_v33  ;;  %v1395_v25 = vld [vmem:[%s1543_s6 + $0x244] ss:$8 sps:$4 sm:$0xff]   ;;  %v1393_v26 = vld [vmem:[%s1543_s6 + $0x240] ss:$8 sps:$4 sm:$0xff]   ;;  %v1396_v27 = vld [vmem:[%s1543_s6 + $0x250] ss:$8 sps:$4 sm:$0xff]  }
  0x3d   : > { %v1401_v28 = vld [vmem:[%s1543_s6 + $0x264] ss:$8 sps:$4 sm:$0xff]   ;;  %v1399_v29 = vld [vmem:[%s1543_s6 + $0x260] ss:$8 sps:$4 sm:$0xff]   ;;  %v1404_v30 = vld [vmem:[%s1543_s6 + $0x274] ss:$8 sps:$4 sm:$0xff]  }
  0x3e   : > { %v1405_v31 = vld [vmem:[%s1538_s30] ss:$0 sps:$4 sm:$0xcc]   ;;  %v1402_v32 = vld [vmem:[%s1543_s6 + $0x270] ss:$8 sps:$4 sm:$0xff]  }
  0x3f   : > { %357 = vmatpush1.bf16.msra.mxu0 %v1326_v34  ;;  %511 = vmatpush1.bf16.msra.mxu1 %v1329_v38  ;;  %v865_v33 = vrot.slane %v1405_v31, 2 }
  0x40   : > { %644 = vmatprep.subr.bf16.mxu0 %v1332_v35  ;;  %799 = vmatprep.subr.bf16.mxu1 %v1336_v39  ;;  %v244_v35 = vld [vmem:[#allocation2] sm:$0x77] }
  0x42   : > { %375 = vmatmul.mubr.bf16.vlgmr.msra.gmra.mrb[0].mxu0 %v245_v40  ;;  %529 = vmatmul.mubr.bf16.vlgmr.msra.gmra.mrb[0].mxu1 %v414_v42 }
  0x43   : > { %645 = vmatpush1.bf16.msra.mxu0 %v1330_v41  ;;  %676 = vmatprep.mubr.bf16.mxu0 %v1463_v3 }
  0x44   : > { %646 = vmatprep.subr.bf16.mxu0 %v1339_v43  ;;  %800 = vmatpush1.bf16.msra.mxu1 %v1334_v44 }
  0x45   : > { %831 = vmatprep.mubr.bf16.mxu1 %v1463_v3  ;;  %801 = vmatprep.subr.bf16.mxu1 %v1342_v45 }
  0x47   : > { %647 = vmatpush1.bf16.msra.mxu0 %v1337_v46 }
  0x48   : > { %648 = vmatprep.subr.bf16.mxu0 %v1345_v47  ;;  %802 = vmatpush1.bf16.msra.mxu1 %v1340_v48 }
  0x49   : > { %803 = vmatprep.subr.bf16.mxu1 %v1348_v49 }
  0x4b   : > { %649 = vmatpush1.bf16.msra.mxu0 %v1343_v50 }
  0x4c   : > { %650 = vmatprep.subr.bf16.mxu0 %v1351_v51  ;;  %804 = vmatpush1.bf16.msra.mxu1 %v1346_v52 }
  0x4d   : > { %805 = vmatprep.subr.bf16.mxu1 %v1354_v53 }
  0x4f   : > { %651 = vmatpush1.bf16.msra.mxu0 %v1349_v54 }
  0x50   : > { %652 = vmatprep.subr.bf16.mxu0 %v1357_v55  ;;  %806 = vmatpush1.bf16.msra.mxu1 %v1352_v56 }
  0x51   : > { %807 = vmatprep.subr.bf16.mxu1 %v1360_v57 }
  0x53   : > { %653 = vmatpush1.bf16.msra.mxu0 %v1355_v58 }
  0x54   : > { %654 = vmatprep.subr.bf16.mxu0 %v1363_v59  ;;  %808 = vmatpush1.bf16.msra.mxu1 %v1358_v60 }
  0x55   : > { %809 = vmatprep.subr.bf16.mxu1 %v1366_v61 }
  0x57   : > { %655 = vmatpush1.bf16.msra.mxu0 %v1361_v62 }
  0x58   : > { %656 = vmatprep.subr.bf16.mxu0 %v1369_v63  ;;  %810 = vmatpush1.bf16.msra.mxu1 %v1364_v1  ;;  %v1001_v1 = vlaneseq (!%p1218_p11) }
  0x59   : > { %811 = vmatprep.subr.bf16.mxu1 %v1372_v2 }
  0x5a   : > { %v1002_v2 = vshrl.u32 (!%p1218_p11), %v1001_v1, 7 }
  0x5b   : > { %657 = vmatpush1.bf16.msra.mxu0 %v1367_v4  ;;  %v999_v4 = vld [vmem:[%s1670_s2] sm:$0x3] (!%p1218_p11) }
  0x5c   : > { %658 = vmatprep.subr.bf16.mxu0 %v1375_v5  ;;  %812 = vmatpush1.bf16.msra.mxu1 %v1370_v8  ;;  %v1003_v5 = vsub.s32 (!%p1218_p11), 0, %v1002_v2  ;;  %v1007_v6 = vsub.s32 (!%p1218_p11), 1, %v1002_v2 }
  0x5d   : > { %813 = vmatprep.subr.bf16.mxu1 %v1378_v9 }
  0x5e   : > { %v1004_v7 = vrot.slane (!%p1218_p11), %v999_v4, %v1003_v5  ;;  %v1008_v8 = vrot.slane (!%p1218_p11), %v999_v4, %v1007_v6 }
  0x5f   : > { %659 = vmatpush1.bf16.msra.mxu0 %v1373_v11 }
  0x60   : > { %947 = vmatprep.subr.bf16.mxu0 %v1382_v12  ;;  %814 = vmatpush1.bf16.msra.mxu1 %v1376_v15  ;;  %v1009_v10 = vcombine.low (!%p1218_p11), %v1004_v7, %v1008_v8 }
  0x62   : > { %677 = vmatmul.mubr.bf16.vlgmr.msra.gmra.mrb[4].mxu0 %v562_v16 }
  0x63   : > { %948 = vmatpush1.bf16.msra.mxu0 %v1380_v17  ;;  %979 = vmatprep.mubr.bf16.mxu0 %v1463_v3  ;;  %v1398_v3 = vld [vmem:[%s1543_s6 + $0x254] ss:$8 sps:$4 sm:$0xff]  }
  0x64   : > { %832 = vmatmul.mubr.bf16.vlgmr.msra.gmra.mrb[4].mxu1 %v717_v18  ;;  %949 = vmatprep.subr.bf16.mxu0 %v1386_v19 }
  0x67   : > { %950 = vmatpush1.bf16.msra.mxu0 %v1384_v20 }
  0x68   : > { %951 = vmatprep.subr.bf16.mxu0 %v1389_v21 }
  0x6b   : > { %952 = vmatpush1.bf16.msra.mxu0 %v1387_v22 }
  0x6c   : > { %953 = vmatprep.subr.bf16.mxu0 %v1392_v23 }
  0x6f   : > { %954 = vmatpush1.bf16.msra.mxu0 %v1390_v24 }
  0x70   : > { %955 = vmatprep.subr.bf16.mxu0 %v1395_v25 }
  0x73   : > { %956 = vmatpush1.bf16.msra.mxu0 %v1393_v26 }
  0x74   : > { %957 = vmatprep.subr.bf16.mxu0 %v1398_v3 }
  0x77   : > { %958 = vmatpush1.bf16.msra.mxu0 %v1396_v27 }
  0x78   : > { %959 = vmatprep.subr.bf16.mxu0 %v1401_v28 }
  0x7b   : > { %960 = vmatpush1.bf16.msra.mxu0 %v1399_v29 }
  0x7c   : > { %961 = vmatprep.subr.bf16.mxu0 %v1404_v30 }
  0x7f   : > { %962 = vmatpush1.bf16.msra.mxu0 %v1402_v32 }
  0x82   : > { %980 = vmatmul.mubr.bf16.vlgmr.msra.gmra.mrb[8].mxu0 %v865_v33 }
 0x115   : > { %v376_v34 = vpop.f32.mrb[0].mxu0  ;;  %v530_v39 = vpop.f32.mrb[0].mxu1 }
 0x116   : > { %v378_v36 = vpop.f32.mrb[1].mxu0  ;;  %v532_v41 = vpop.f32.mrb[1].mxu1 }
 0x117   : > { %v385_v37 = vcombine.low %v376_v34, %v378_v36  ;;  %v380_v38 = vpop.f32.mrb[2].mxu0  ;;  %v539_v43 = vcombine.low %v530_v39, %v532_v41  ;;  %v534_v44 = vpop.f32.mrb[2].mxu1 }
 0x118   : > { %v381_v40 = vpop.f32.mrb[3].mxu0  ;;  %v535_v45 = vpop.f32.mrb[3].mxu1 }
 0x119   : > { %v387_v42 = vadd.f32 %v385_v37, %v244_v35 }
 0x11b   : > { %v541_v46 = vadd.f32 %v539_v43, %v387_v42 }
 0x135   : > { %v678_v47 = vpop.f32.mrb[4].mxu0 }
 0x136   : > { %v680_v48 = vpop.f32.mrb[5].mxu0 }
 0x137   : > { %v687_v49 = vcombine.low %v678_v47, %v680_v48  ;;  %v682_v50 = vpop.f32.mrb[6].mxu0  ;;  %v833_v51 = vpop.f32.mrb[4].mxu1 }
 0x138   : > { %v683_v52 = vpop.f32.mrb[7].mxu0  ;;  %v835_v53 = vpop.f32.mrb[5].mxu1 }
 0x139   : > { %v689_v54 = vadd.f32 %v687_v49, %v541_v46  ;;  %v842_v55 = vcombine.low %v833_v51, %v835_v53  ;;  %v837_v56 = vpop.f32.mrb[6].mxu1 }
 0x13a   : > { %v838_v57 = vpop.f32.mrb[7].mxu1 }
 0x13b   : > { %v844_v58 = vadd.f32 %v842_v55, %v689_v54 }
 0x155   : > { %v981_v59 = vpop.f32.mrb[8].mxu0  ;;  %997 = sbr.rel (%p1218_p11) target bundleno = 360 (0x168), region = 40 }
 0x156   : > { %v983_v60 = vpop.f32.mrb[9].mxu0 }
 0x157   : > { %v990_v61 = vcombine.low %v981_v59, %v983_v60  ;;  %v985_v62 = vpop.f32.mrb[10].mxu0 }
 0x158   : > { %v986_v63 = vpop.f32.mrb[11].mxu0 }
 0x159   : > { %v992_v0 = vadd.f32 %v990_v61, %v844_v58 }
 0x15b   : > { %993 = vst [vmem:[#allocation2] sm:$0x77] %v992_v0 }
 0x162   : > { %v998_v9 = vld [vmem:[#allocation2] sm:$0x77] }
 0x163   : > { %v1011_v11 = vadd.f32 %v1009_v10, %v998_v9 }
 0x165   : > { %v1012_v12 = vmax.f32 %v1011_v11, 0.0 }
 0x167   : > { %1013 = vst [vmem:[%s1549_s23] sm:$0x77] %v1012_v12 }
 0x168 PF: > { %s13_s18 = sadd.s32 1, %s1460_s18   ;;  %s1672_s12 = smov %s1448_s15 }
 0x169   : > { %p10_p12 = scmp.ge.s32.totalorder %s13_s18, 32   ;;  %s1673_s13 = smov %s1452_s16 }
 0x16a   : > { %s1674_s14 = smov %s1456_s17  ;;  %s1675_s15 = smov %s1679_s19 }
 0x16b   : > { %s1676_s16 = smov %s1683_s20  ;;  %s1677_s17 = smov %s1687_s21 }
 0x16c   :  { %12 = sbr.rel (!%p10_p12) target bundleno = 4 (0x4), region = 73 }

// kernel: alexnet_forward.13
= control target key start
LH: loop header
LB: loop body
LE: loop exit
PB: predicated region body
PF: predicated region fallthrough
CT: control target
= control target key end

     0   :  { %s2223_s12 = smov 0   ;;  %s2225_s13 = smov 0   ;;  %s2460_s0 = inlined_call_operand.vmem [shape: bf16[2,3,3,256], index: 0, kind: input, shape index: {}]   ;;  %s2461_s1 = inlined_call_operand.vmem [shape: bf16[3,768,384], index: 1, kind: input, shape index: {}]   ;;  %s2462_s2 = inlined_call_operand.vmem [shape: f32[1,384], index: 2, kind: input, shape index: {}]   ;;  %s2463_s3 = inlined_call_operand.vmem [shape: f32[2,1,1,384], index: 3, kind: output, shape index: {}]  }
   0x1   :  { %s2227_s14 = smov 0   ;;  %s2229_s15 = smov 0  }
   0x2   :  { %s2231_s16 = smov 0  }
   0x3 LB: > { %s25_s17 = sadd.s32 1, %s2191_s14  ;;  %s32_s18 = sadd.s32 1, %s2195_s15  ;;  %s2199_s16 = sphi %s2231_s16, %s13_s16   ;;  %s2195_s15 = sphi %s2229_s15, %s2467_s15   ;;  %s2191_s14 = sphi %s2227_s14, %s2466_s14   ;;  %s2187_s13 = sphi %s2225_s13, %s2465_s13   ;;  %s2183_s12 = sphi %s2223_s12, %s2464_s12  }
   0x4   : > { %p26_p0 = scmp.ge.s32.totalorder %s25_s17, 3  ;;  %p1703_p1 = scmp.ge.s32.totalorder %s2199_s16, 1 }
   0x5   : > { %p178_p2 = scmp.lt.s32.totalorder %s2199_s16, 7 }
   0x6   : > { %s2469_s17 = smov (%p26_p0, %s25_s17), 0  ;;  %s2471_s18 = smov (!%p26_p0, %s32_s18), %s2195_s15 }
   0x7   : > { %p179_p3 = pnand %p1703_p1, %p178_p2  ;;  %p34_p4 = scmp.ge.s32.totalorder %s2471_s18, 2 }
   0x8   : > { %p216_p5 = scmp.lt.s32.totalorder (!%p179_p3), %s2187_s13, 1  ;;  %p218_p6 = scmp.lt.s32.totalorder (!%p179_p3), %s2183_s12, 2 }
   0x9   : > { %s2473_s18 = smov (%p34_p4, %s2471_s18), 0  ;;  %182 = sbr.rel (%p179_p3) target bundleno = 420 (0x1a4), region = 32 }
   0xa   : > { %p1707_p7 = scmp.ne.s32.totalorder (!%p179_p3), %s2183_s12, 0 }
  0x10   : > { %s2475_s13 = smov (!%p216_p5, %s2187_s13), 1  ;;  %243 = sbr.rel (%p1707_p7) target bundleno = 23 (0x17), region = 36 }
  0x11   : > { %s219_s19 = scalar_select %p218_p6, %s2183_s12, 2 }
  0x12   : > { %s1924_s20 = smul.u32 6, %s2475_s13  ;;  %v244_v0 = vlaneseq (!%p1707_p7)  ;;  %v2201_v1 = vmov (!%p1707_p7), 0.0  }
  0x13   : > { %s1704_s21 = sshll.u32 %s219_s19, 1  ;;  %s1925_s22 = smul.u32 1152, %s219_s19 }
  0x14   : > { %s222_s23 = sadd.s32 %s1924_s20, %s1704_s21  ;;  %s1926_s24 = smul.u32 3, %s2475_s13  ;;  %vm246_vm0 = vcmp.lt.s32.totalorder (!%p1707_p7), %v244_v0, 384 }
  0x15   : > { %s1705_s25 = sshll.u32 %s222_s23, 1  ;;  %s2260_s28 = scalar_lea.vmem %s2461_s1, %s1925_s22  ;;  %248 = vst.msk [vmem:[#allocation2] sm:$0x7] (!%p1707_p7), %vm246_vm0, %v2201_v1 }
  0x16   : > { %s2265_s4 = scalar_lea.vmem %s2460_s0, %s1705_s25  ;;  %s2270_s7 = scalar_lea.vmem %s2463_s3, %s1926_s24 }
  0x17 PF: > { %v1969_v2 = vld [vmem:[%s2260_s28 + $0x4] ss:$12 sps:$4 sm:$0xff]   ;;  %v1971_v3 = vld [vmem:[%s2260_s28 + $0xc8] ss:$12 sps:$4 sm:$0xff]   ;;  %v1972_v4 = vld [vmem:[%s2260_s28] ss:$12 sps:$4 sm:$0xff]  }
  0x18   : > { %582 = vmatprep.subr.bf16.mxu0 %v1969_v2  ;;  %1858 = vmatprep.subr.bf16.mxu1 %v1971_v3  ;;  %v1973_v5 = vld [vmem:[%s2260_s28 + $0x8] ss:$12 sps:$4 sm:$0xff]   ;;  %v1976_v7 = vld [vmem:[%s2260_s28 + $0xe0] ss:$12 sps:$4 sm:$0xff]   ;;  %v1977_v8 = vld [vmem:[%s2260_s28 + $0x18] ss:$12 sps:$4 sm:$0xff]  }
  0x19   : > { %583 = vmatpush1.bf16.msra.mxu0 %v1972_v4  ;;  %v1974_v6 = vld [vmem:[%s2260_s28 + $0x1c] ss:$12 sps:$4 sm:$0xff]   ;;  %1859 = vmatpush3.bf16.msra.mxu1 %v1973_v5  ;;  %v1978_v9 = vld [vmem:[%s2260_s28 + $0x20] ss:$12 sps:$4 sm:$0xff]   ;;  %v1981_v11 = vld [vmem:[%s2260_s28 + $0xf8] ss:$12 sps:$4 sm:$0xff]  }
  0x1a   : > { %584 = vmatprep.subr.bf16.mxu0 %v1974_v6  ;;  %1860 = vmatprep.subr.bf16.mxu1 %v1976_v7  ;;  %v1979_v10 = vld [vmem:[%s2260_s28 + $0x34] ss:$12 sps:$4 sm:$0xff]   ;;  %v1982_v12 = vld [vmem:[%s2260_s28 + $0x30] ss:$12 sps:$4 sm:$0xff]   ;;  %v1983_v13 = vld [vmem:[%s2260_s28 + $0x38] ss:$12 sps:$4 sm:$0xff]  }
  0x1b   : > { %v1984_v14 = vld [vmem:[%s2260_s28 + $0x4c] ss:$12 sps:$4 sm:$0xff]   ;;  %v1986_v15 = vld [vmem:[%s2260_s28 + $0x110] ss:$12 sps:$4 sm:$0xff]   ;;  %v1987_v16 = vld [vmem:[%s2260_s28 + $0x48] ss:$12 sps:$4 sm:$0xff]  }
  0x1c   : > { %v1988_v17 = vld [vmem:[%s2260_s28 + $0x50] ss:$12 sps:$4 sm:$0xff]   ;;  %v1991_v19 = vld [vmem:[%s2260_s28 + $0x128] ss:$12 sps:$4 sm:$0xff]   ;;  %v1992_v20 = vld [vmem:[%s2260_s28 + $0x60] ss:$12 sps:$4 sm:$0xff]  }
  0x1d   : > { %585 = vmatpush1.bf16.msra.mxu0 %v1977_v8  ;;  %1861 = vmatpush3.bf16.msra.mxu1 %v1978_v9  ;;  %v1989_v18 = vld [vmem:[%s2260_s28 + $0x64] ss:$12 sps:$4 sm:$0xff]   ;;  %v1993_v21 = vld [vmem:[%s2260_s28 + $0x68] ss:$12 sps:$4 sm:$0xff]   ;;  %v1996_v23 = vld [vmem:[%s2260_s28 + $0x140] ss:$12 sps:$4 sm:$0xff]  }
  0x1e   : > { %586 = vmatprep.subr.bf16.mxu0 %v1979_v10  ;;  %1862 = vmatprep.subr.bf16.mxu1 %v1981_v11  ;;  %v1994_v22 = vld [vmem:[%s2260_s28 + $0x7c] ss:$12 sps:$4 sm:$0xff]   ;;  %v1997_v24 = vld [vmem:[%s2260_s28 + $0x78] ss:$12 sps:$4 sm:$0xff]   ;;  %v1998_v25 = vld [vmem:[%s2260_s28 + $0x80] ss:$12 sps:$4 sm:$0xff]  }
  0x1f   : > { %v1999_v26 = vld [vmem:[%s2260_s28 + $0x94] ss:$12 sps:$4 sm:$0xff]   ;;  %v2001_v27 = vld [vmem:[%s2260_s28 + $0x158] ss:$12 sps:$4 sm:$0xff]   ;;  %v2002_v28 = vld [vmem:[%s2260_s28 + $0x90] ss:$12 sps:$4 sm:$0xff]  }
  0x20   : > { %v2003_v29 = vld [vmem:[%s2260_s28 + $0x98] ss:$12 sps:$4 sm:$0xff]   ;;  %v2006_v31 = vld [vmem:[%s2260_s28 + $0x170] ss:$12 sps:$4 sm:$0xff]   ;;  %v2007_v32 = vld [vmem:[%s2260_s28 + $0xa8] ss:$12 sps:$4 sm:$0xff]  }
  0x21   : > { %587 = vmatpush1.bf16.msra.mxu0 %v1982_v12  ;;  %1863 = vmatpush3.bf16.msra.mxu1 %v1983_v13  ;;  %v2004_v30 = vld [vmem:[%s2260_s28 + $0xac] ss:$12 sps:$4 sm:$0xff]   ;;  %v2305_v33 = vld.sshfl [vmem:[%s2265_s4] sm:$0x11 pattern:$0x76325410] }
  0x22   : > { %588 = vmatprep.subr.bf16.mxu0 %v1984_v14  ;;  %1864 = vmatprep.subr.bf16.mxu1 %v1986_v15  ;;  %v2008_v34 = vld [vmem:[%s2260_s28 + $0xb0] ss:$12 sps:$4 sm:$0xff]   ;;  %v2311_v36 = vcombine.high %v2305_v33, %v2305_v33  ;;  %v2011_v38 = vld [vmem:[%s2260_s28 + $0x180] ss:$12 sps:$4 sm:$0xff]   ;;  %v2020_v43 = vld [vmem:[%s2260_s28 + $0xd8] ss:$12 sps:$4 sm:$0xff]  }
  0x23   : > { %v2009_v35 = vld [vmem:[%s2260_s28 + $0xc4] ss:$12 sps:$4 sm:$0xff]   ;;  %v2014_v39 = vld [vmem:[%s2260_s28 + $0xc0] ss:$12 sps:$4 sm:$0xff]   ;;  %v2015_v40 = vld [vmem:[%s2260_s28 + $0xdc] ss:$12 sps:$4 sm:$0xff]  }
  0x24   : > { %v2013_v37 = vld [vmem:[%s2260_s28 + $0x184] ss:$12 sps:$4 sm:$0xff]   ;;  %655 = vmatprep.mubr.bf16.mxu1 %v2311_v36  ;;  %614 = vmatprep.mubr.bf16.mxu0 %v2311_v36  ;;  %v2019_v41 = vld [vmem:[%s2260_s28 + $0x19c] ss:$12 sps:$4 sm:$0xff]   ;;  %v769_v42 = vshrl.u32 %v2311_v36, 16  ;;  %p1855_p8 = scmp.ne.s32.totalorder %s2183_s12, 2 }
  0x25   : > { %589 = vmatpush1.bf16.msra.mxu0 %v1987_v16  ;;  %1865 = vmatpush3.bf16.msra.mxu1 %v1988_v17  ;;  %v2017_v44 = vld [vmem:[%s2260_s28 + $0x198] ss:$12 sps:$4 sm:$0xff]   ;;  %v2021_v45 = vld [vmem:[%s2260_s28 + $0xf4] ss:$12 sps:$4 sm:$0xff]   ;;  %v2023_v47 = vld [vmem:[%s2260_s28 + $0x1b0] ss:$12 sps:$4 sm:$0xff]  }
  0x26   : > { %590 = vmatprep.subr.bf16.mxu0 %v1989_v18  ;;  %1866 = vmatprep.subr.bf16.mxu1 %v1991_v19  ;;  %v2025_v46 = vld [vmem:[%s2260_s28 + $0x1b4] ss:$12 sps:$4 sm:$0xff]   ;;  %v2026_v48 = vld [vmem:[%s2260_s28 + $0xf0] ss:$12 sps:$4 sm:$0xff]   ;;  %v2027_v49 = vld [vmem:[%s2260_s28 + $0x10c] ss:$12 sps:$4 sm:$0xff]  }
  0x27   : > { %v2031_v50 = vld [vmem:[%s2260_s28 + $0x1cc] ss:$12 sps:$4 sm:$0xff]   ;;  %v2032_v51 = vld [vmem:[%s2260_s28 + $0x108] ss:$12 sps:$4 sm:$0xff]   ;;  %v2033_v53 = vld [vmem:[%s2260_s28 + $0x124] ss:$12 sps:$4 sm:$0xff]  }
  0x28   : > { %v2029_v52 = vld [vmem:[%s2260_s28 + $0x1c8] ss:$12 sps:$4 sm:$0xff]   ;;  %v2037_v54 = vld [vmem:[%s2260_s28 + $0x1e4] ss:$12 sps:$4 sm:$0xff]   ;;  %v2038_v55 = vld [vmem:[%s2260_s28 + $0x120] ss:$12 sps:$4 sm:$0xff]  }
  0x29   : > { %591 = vmatpush1.bf16.msra.mxu0 %v1992_v20  ;;  %1867 = vmatpush3.bf16.msra.mxu1 %v1993_v21  ;;  %v2035_v56 = vld [vmem:[%s2260_s28 + $0x1e0] ss:$12 sps:$4 sm:$0xff]   ;;  %v2039_v57 = vld [vmem:[%s2260_s28 + $0x13c] ss:$12 sps:$4 sm:$0xff]   ;;  %v2041_v59 = vld [vmem:[%s2260_s28 + $0x1f8] ss:$12 sps:$4 sm:$0xff]  }
  0x2a   : > { %592 = vmatprep.subr.bf16.mxu0 %v1994_v22  ;;  %1868 = vmatprep.subr.bf16.mxu1 %v1996_v23  ;;  %v2043_v58 = vld [vmem:[%s2260_s28 + $0x1fc] ss:$12 sps:$4 sm:$0xff]   ;;  %v2044_v60 = vld [vmem:[%s2260_s28 + $0x138] ss:$12 sps:$4 sm:$0xff]   ;;  %v2045_v61 = vld [vmem:[%s2260_s28 + $0x154] ss:$12 sps:$4 sm:$0xff]  }
  0x2b   : > { %v2049_v62 = vld [vmem:[%s2260_s28 + $0x214] ss:$12 sps:$4 sm:$0xff]   ;;  %v2047_v63 = vld [vmem:[%s2260_s28 + $0x210] ss:$12 sps:$4 sm:$0xff]   ;;  %v2051_v1 = vld [vmem:[%s2260_s28 + $0x16c] ss:$12 sps:$4 sm:$0xff]  }
  0x2c   : > { %v2050_v0 = vld [vmem:[%s2260_s28 + $0x150] ss:$12 sps:$4 sm:$0xff]   ;;  %v2055_v2 = vld [vmem:[%s2260_s28 + $0x22c] ss:$12 sps:$4 sm:$0xff]   ;;  %v2053_v3 = vld [vmem:[%s2260_s28 + $0x228] ss:$12 sps:$4 sm:$0xff]  }
  0x2d   : > { %593 = vmatpush1.bf16.msra.mxu0 %v1997_v24  ;;  %1869 = vmatpush3.bf16.msra.mxu1 %v1998_v25  ;;  %v2056_v4 = vld [vmem:[%s2260_s28 + $0x168] ss:$12 sps:$4 sm:$0xff]   ;;  %v2059_v6 = vld [vmem:[%s2260_s28 + $0x244] ss:$12 sps:$4 sm:$0xff]   ;;  %v2057_v7 = vld [vmem:[%s2260_s28 + $0x240] ss:$12 sps:$4 sm:$0xff]  }
  0x2e   : > { %594 = vmatprep.subr.bf16.mxu0 %v1999_v26  ;;  %1870 = vmatprep.subr.bf16.mxu1 %v2001_v27  ;;  %v2060_v5 = vld [vmem:[%s2260_s28 + $0x248] ss:$12 sps:$4 sm:$0xff]   ;;  %v2065_v9 = vld [vmem:[%s2260_s28 + $0x260] ss:$12 sps:$4 sm:$0xff]   ;;  %v2062_v12 = vld [vmem:[%s2260_s28 + $0x258] ss:$12 sps:$4 sm:$0xff]  }
  0x2f   : > { %v2061_v8 = vld [vmem:[%s2260_s28 + $0x188] ss:$12 sps:$4 sm:$0xff]   ;;  %v2066_v11 = vld [vmem:[%s2260_s28 + $0x1a0] ss:$12 sps:$4 sm:$0xff]   ;;  %v2070_v13 = vld [vmem:[%s2260_s28 + $0x278] ss:$12 sps:$4 sm:$0xff]  }
  0x30   : > { %v2064_v10 = vld [vmem:[%s2260_s28 + $0x25c] ss:$12 sps:$4 sm:$0xff]   ;;  %v2069_v14 = vld [vmem:[%s2260_s28 + $0x274] ss:$12 sps:$4 sm:$0xff]   ;;  %v2071_v16 = vld [vmem:[%s2260_s28 + $0x1b8] ss:$12 sps:$4 sm:$0xff]  }
  0x31   : > { %595 = vmatpush1.bf16.msra.mxu0 %v2002_v28  ;;  %1871 = vmatpush3.bf16.msra.mxu1 %v2003_v29  ;;  %v2067_v15 = vld [vmem:[%s2260_s28 + $0x270] ss:$12 sps:$4 sm:$0xff]   ;;  %v2074_v18 = vld [vmem:[%s2260_s28 + $0x28c] ss:$12 sps:$4 sm:$0xff]   ;;  %v2072_v20 = vld [vmem:[%s2260_s28 + $0x288] ss:$12 sps:$4 sm:$0xff]  }
  0x32   : > { %596 = vmatprep.subr.bf16.mxu0 %v2004_v30  ;;  %1872 = vmatprep.subr.bf16.mxu1 %v2006_v31  ;;  %v2075_v17 = vld [vmem:[%s2260_s28 + $0x290] ss:$12 sps:$4 sm:$0xff]   ;;  %v2080_v21 = vld [vmem:[%s2260_s28 + $0x2a8] ss:$12 sps:$4 sm:$0xff]   ;;  %v2077_v24 = vld [vmem:[%s2260_s28 + $0x2a0] ss:$12 sps:$4 sm:$0xff]  }
  0x33   : > { %v2076_v19 = vld [vmem:[%s2260_s28 + $0x1d0] ss:$12 sps:$4 sm:$0xff]   ;;  %v2081_v23 = vld [vmem:[%s2260_s28 + $0x1e8] ss:$12 sps:$4 sm:$0xff]   ;;  %v2085_v25 = vld [vmem:[%s2260_s28 + $0x2c0] ss:$12 sps:$4 sm:$0xff]  }
  0x34   : > { %v2079_v22 = vld [vmem:[%s2260_s28 + $0x2a4] ss:$12 sps:$4 sm:$0xff]   ;;  %v2084_v26 = vld [vmem:[%s2260_s28 + $0x2bc] ss:$12 sps:$4 sm:$0xff]   ;;  %v2086_v27 = vld [vmem:[%s2260_s28 + $0x200] ss:$12 sps:$4 sm:$0xff]  }
  0x35   : > { %597 = vmatpush1.bf16.msra.mxu0 %v2007_v32  ;;  %1873 = vmatpush3.bf16.msra.mxu1 %v2008_v34  ;;  %v2082_v28 = vld [vmem:[%s2260_s28 + $0x2b8] ss:$12 sps:$4 sm:$0xff]   ;;  %v2089_v30 = vld [vmem:[%s2260_s28 + $0x2d4] ss:$12 sps:$4 sm:$0xff]   ;;  %v2087_v31 = vld [vmem:[%s2260_s28 + $0x2d0] ss:$12 sps:$4 sm:$0xff]  }
  0x36   : > { %598 = vmatprep.subr.bf16.mxu0 %v2009_v35  ;;  %1029 = vmatprep.subr.bf16.mxu1 %v2013_v37  ;;  %v2090_v29 = vld [vmem:[%s2260_s28 + $0x2d8] ss:$12 sps:$4 sm:$0xff]   ;;  %v2095_v34 = vld [vmem:[%s2260_s28 + $0x2f0] ss:$12 sps:$4 sm:$0xff]   ;;  %v2092_v36 = vld [vmem:[%s2260_s28 + $0x2e8] ss:$12 sps:$4 sm:$0xff]  }
  0x37   : > { %v2091_v32 = vld [vmem:[%s2260_s28 + $0x218] ss:$12 sps:$4 sm:$0xff]   ;;  %v2096_v37 = vld [vmem:[%s2260_s28 + $0x230] ss:$12 sps:$4 sm:$0xff]  }
  0x38   : > { %656 = vmatmul.mubr.bf16.vlgmr.msra.gmra.mrb[0].mxu1 %v2305_v33  ;;  %v2094_v35 = vld [vmem:[%s2260_s28 + $0x2ec] ss:$12 sps:$4 sm:$0xff]  }
  0x39   : > { %599 = vmatpush1.bf16.msra.mxu0 %v2014_v39  ;;  %1030 = vmatpush1.bf16.msra.mxu1 %v2011_v38  ;;  %v2099_v38 = vld [vmem:[%s2260_s28 + $0x304] ss:$12 sps:$4 sm:$0xff]   ;;  %v2121_v39 = vld [vmem:[%s2260_s28 + $0x3c8] ss:$12 sps:$4 sm:$0xff]  }
  0x3a   : > { %600 = vmatprep.subr.bf16.mxu0 %v2015_v40  ;;  %1031 = vmatprep.subr.bf16.mxu1 %v2019_v41  ;;  %v766_v40 = vshrl.u32 %v2305_v33, 16  ;;  %v2097_v41 = vld [vmem:[%s2260_s28 + $0x300] ss:$12 sps:$4 sm:$0xff]  }
  0x3b   : > { %1061 = vmatprep.mubr.bf16.mxu1 %v769_v42 }
  0x3d   : > { %601 = vmatpush1.bf16.msra.mxu0 %v2020_v43  ;;  %1032 = vmatpush1.bf16.msra.mxu1 %v2017_v44  ;;  %v2122_v43 = vld [vmem:[%s2260_s28 + $0x308] ss:$12 sps:$4 sm:$0xff]   ;;  %v2126_v44 = vld [vmem:[%s2260_s28 + $0x3e0] ss:$12 sps:$4 sm:$0xff]  }
  0x3e   : > { %602 = vmatprep.subr.bf16.mxu0 %v2021_v45  ;;  %1033 = vmatprep.subr.bf16.mxu1 %v2025_v46  ;;  %v2100_v45 = vld [vmem:[%s2260_s28 + $0x318] ss:$12 sps:$4 sm:$0xff]   ;;  %v2127_v46 = vld [vmem:[%s2260_s28 + $0x320] ss:$12 sps:$4 sm:$0xff]  }
  0x41   : > { %603 = vmatpush1.bf16.msra.mxu0 %v2026_v48  ;;  %1034 = vmatpush1.bf16.msra.mxu1 %v2023_v47  ;;  %v2131_v47 = vld [vmem:[%s2260_s28 + $0x3f8] ss:$12 sps:$4 sm:$0xff]   ;;  %v2103_v48 = vld [vmem:[%s2260_s28 + $0x330] ss:$12 sps:$4 sm:$0xff]  }
  0x42   : > { %604 = vmatprep.subr.bf16.mxu0 %v2027_v49  ;;  %1035 = vmatprep.subr.bf16.mxu1 %v2031_v50  ;;  %v2108_v49 = vld [vmem:[%s2260_s28 + $0x34c] ss:$12 sps:$4 sm:$0xff]  }
  0x43   : > { %v2132_v50 = vld [vmem:[%s2260_s28 + $0x338] ss:$12 sps:$4 sm:$0xff]  }
  0x45   : > { %605 = vmatpush1.bf16.msra.mxu0 %v2032_v51  ;;  %1036 = vmatpush1.bf16.msra.mxu1 %v2029_v52  ;;  %v2136_v51 = vld [vmem:[%s2260_s28 + $0x410] ss:$12 sps:$4 sm:$0xff]   ;;  %v2106_v52 = vld [vmem:[%s2260_s28 + $0x348] ss:$12 sps:$4 sm:$0xff]  }
  0x46   : > { %606 = vmatprep.subr.bf16.mxu0 %v2033_v53  ;;  %1037 = vmatprep.subr.bf16.mxu1 %v2037_v54  ;;  %v2111_v53 = vld [vmem:[%s2260_s28 + $0x364] ss:$12 sps:$4 sm:$0xff]  }
  0x47   : > { %v2137_v54 = vld [vmem:[%s2260_s28 + $0x350] ss:$12 sps:$4 sm:$0xff]  }
  0x49   : > { %607 = vmatpush1.bf16.msra.mxu0 %v2038_v55  ;;  %1038 = vmatpush1.bf16.msra.mxu1 %v2035_v56  ;;  %v2141_v55 = vld [vmem:[%s2260_s28 + $0x428] ss:$12 sps:$4 sm:$0xff]   ;;  %v2109_v56 = vld [vmem:[%s2260_s28 + $0x360] ss:$12 sps:$4 sm:$0xff]  }
  0x4a   : > { %608 = vmatprep.subr.bf16.mxu0 %v2039_v57  ;;  %1039 = vmatprep.subr.bf16.mxu1 %v2043_v58  ;;  %v2406_v57 = vld.sshfl [vmem:[%s2265_s4] sm:$0x22 pattern:$0x76325410]  ;;  %v2114_v58 = vld [vmem:[%s2260_s28 + $0x37c] ss:$12 sps:$4 sm:$0xff]  }
  0x4d   : > { %609 = vmatpush1.bf16.msra.mxu0 %v2044_v60  ;;  %1040 = vmatpush1.bf16.msra.mxu1 %v2041_v59  ;;  %v2142_v59 = vld [vmem:[%s2260_s28 + $0x368] ss:$12 sps:$4 sm:$0xff]   ;;  %v1211_v60 = vcombine.high %v2406_v57, %v2406_v57 }
  0x4e   : > { %610 = vmatprep.subr.bf16.mxu0 %v2045_v61  ;;  %1041 = vmatprep.subr.bf16.mxu1 %v2049_v62  ;;  %v2146_v61 = vld [vmem:[%s2260_s28 + $0x440] ss:$12 sps:$4 sm:$0xff]  }
  0x4f   : > { %v1213_v62 = vrot.slane %v1211_v60, 1 }
  0x51   : > { %611 = vmatpush1.bf16.msra.mxu0 %v2050_v0  ;;  %1042 = vmatpush1.bf16.msra.mxu1 %v2047_v63  ;;  %v2112_v63 = vld [vmem:[%s2260_s28 + $0x378] ss:$12 sps:$4 sm:$0xff]   ;;  %v2117_v0 = vld [vmem:[%s2260_s28 + $0x394] ss:$12 sps:$4 sm:$0xff]  }
  0x52   : > { %612 = vmatprep.subr.bf16.mxu0 %v2051_v1  ;;  %1043 = vmatprep.subr.bf16.mxu1 %v2055_v2  ;;  %v2147_v1 = vld [vmem:[%s2260_s28 + $0x380] ss:$12 sps:$4 sm:$0xff]   ;;  %v2151_v2 = vld [vmem:[%s2260_s28 + $0x458] ss:$12 sps:$4 sm:$0xff]  }
  0x55   : > { %613 = vmatpush1.bf16.msra.mxu0 %v2056_v4  ;;  %1044 = vmatpush1.bf16.msra.mxu1 %v2053_v3  ;;  %v2115_v3 = vld [vmem:[%s2260_s28 + $0x390] ss:$12 sps:$4 sm:$0xff]   ;;  %v2120_v4 = vld [vmem:[%s2260_s28 + $0x3ac] ss:$12 sps:$4 sm:$0xff]  }
  0x56   : > { %1880 = vmatprep.subr.bf16.mxu0 %v2060_v5  ;;  %1045 = vmatprep.subr.bf16.mxu1 %v2059_v6  ;;  %v2152_v5 = vld [vmem:[%s2260_s28 + $0x398] ss:$12 sps:$4 sm:$0xff]   ;;  %v2156_v6 = vld [vmem:[%s2260_s28 + $0x470] ss:$12 sps:$4 sm:$0xff]  }
  0x58   : > { %615 = vmatmul.mubr.bf16.vlgmr.msra.gmra.mrb[0].mxu0 %v2305_v33  ;;  %v2105_v33 = vld [vmem:[%s2260_s28 + $0x334] ss:$12 sps:$4 sm:$0xff]  }
  0x59   : > { %1881 = vmatpush3.bf16.msra.mxu0 %v2061_v8  ;;  %1102 = vmatprep.mubr.bf16.mxu0 %v769_v42  ;;  %v2102_v42 = vld [vmem:[%s2260_s28 + $0x31c] ss:$12 sps:$4 sm:$0xff]   ;;  %v2125_v8 = vld [vmem:[%s2260_s28 + $0x3c4] ss:$12 sps:$4 sm:$0xff]  }
  0x5a   : > { %1046 = vmatpush1.bf16.msra.mxu1 %v2057_v7  ;;  %1882 = vmatprep.subr.bf16.mxu0 %v2065_v9  ;;  %v2118_v7 = vld [vmem:[%s2260_s28 + $0x3a8] ss:$12 sps:$4 sm:$0xff]   ;;  %v2157_v9 = vld [vmem:[%s2260_s28 + $0x3b0] ss:$12 sps:$4 sm:$0xff]  }
  0x5b   : > { %1047 = vmatprep.subr.bf16.mxu1 %v2064_v10  ;;  %v2123_v10 = vld [vmem:[%s2260_s28 + $0x3c0] ss:$12 sps:$4 sm:$0xff]  }
  0x5d   : > { %1883 = vmatpush3.bf16.msra.mxu0 %v2066_v11  ;;  %v1212_v11 = vrot.slane %v2406_v57, 1 }
  0x5e   : > { %1048 = vmatpush1.bf16.msra.mxu1 %v2062_v12  ;;  %1884 = vmatprep.subr.bf16.mxu0 %v2070_v13  ;;  %v2130_v12 = vld [vmem:[%s2260_s28 + $0x3dc] ss:$12 sps:$4 sm:$0xff]   ;;  %v2128_v13 = vld [vmem:[%s2260_s28 + $0x3d8] ss:$12 sps:$4 sm:$0xff]  }
  0x5f   : > { %1049 = vmatprep.subr.bf16.mxu1 %v2069_v14  ;;  %v2135_v14 = vld [vmem:[%s2260_s28 + $0x3f4] ss:$12 sps:$4 sm:$0xff]  }
  0x61   : > { %1885 = vmatpush3.bf16.msra.mxu0 %v2071_v16  ;;  %v2140_v16 = vld [vmem:[%s2260_s28 + $0x40c] ss:$12 sps:$4 sm:$0xff]  }
  0x62   : > { %1050 = vmatpush1.bf16.msra.mxu1 %v2067_v15  ;;  %1886 = vmatprep.subr.bf16.mxu0 %v2075_v17  ;;  %v2133_v15 = vld [vmem:[%s2260_s28 + $0x3f0] ss:$12 sps:$4 sm:$0xff]   ;;  %v2138_v17 = vld [vmem:[%s2260_s28 + $0x408] ss:$12 sps:$4 sm:$0xff]  }
  0x63   : > { %1051 = vmatprep.subr.bf16.mxu1 %v2074_v18  ;;  %v2145_v18 = vld [vmem:[%s2260_s28 + $0x424] ss:$12 sps:$4 sm:$0xff]  }
  0x65   : > { %1887 = vmatpush3.bf16.msra.mxu0 %v2076_v19  ;;  %v2143_v19 = vld [vmem:[%s2260_s28 + $0x420] ss:$12 sps:$4 sm:$0xff]  }
  0x66   : > { %1052 = vmatpush1.bf16.msra.mxu1 %v2072_v20  ;;  %1888 = vmatprep.subr.bf16.mxu0 %v2080_v21  ;;  %v2150_v20 = vld [vmem:[%s2260_s28 + $0x43c] ss:$12 sps:$4 sm:$0xff]   ;;  %v2148_v21 = vld [vmem:[%s2260_s28 + $0x438] ss:$12 sps:$4 sm:$0xff]  }
  0x67   : > { %1053 = vmatprep.subr.bf16.mxu1 %v2079_v22  ;;  %v2155_v22 = vld [vmem:[%s2260_s28 + $0x454] ss:$12 sps:$4 sm:$0xff]  }
  0x69   : > { %1889 = vmatpush3.bf16.msra.mxu0 %v2081_v23  ;;  %v2153_v23 = vld [vmem:[%s2260_s28 + $0x450] ss:$12 sps:$4 sm:$0xff]  }
  0x6a   : > { %1054 = vmatpush1.bf16.msra.mxu1 %v2077_v24  ;;  %1890 = vmatprep.subr.bf16.mxu0 %v2085_v25  ;;  %v2160_v24 = vld [vmem:[%s2260_s28 + $0x46c] ss:$12 sps:$4 sm:$0xff]   ;;  %v2158_v25 = vld [vmem:[%s2260_s28 + $0x468] ss:$12 sps:$4 sm:$0xff]  }
  0x6b   : > { %1055 = vmatprep.subr.bf16.mxu1 %v2084_v26 }
  0x6d   : > { %1891 = vmatpush3.bf16.msra.mxu0 %v2086_v27 }
  0x6e   : > { %1056 = vmatpush1.bf16.msra.mxu1 %v2082_v28  ;;  %1892 = vmatprep.subr.bf16.mxu0 %v2090_v29 }
  0x6f   : > { %1057 = vmatprep.subr.bf16.mxu1 %v2089_v30 }
  0x71   : > { %1893 = vmatpush3.bf16.msra.mxu0 %v2091_v32 }
  0x72   : > { %1058 = vmatpush1.bf16.msra.mxu1 %v2087_v31  ;;  %1894 = vmatprep.subr.bf16.mxu0 %v2095_v34  ;;  %v2202_v31 = vmov 1966171168   ;;  %v670_v34 = vlaneseq }
  0x73   : > { %1059 = vmatprep.subr.bf16.mxu1 %v2094_v35  ;;  %v668_v32 = vunpack.c.l.s4 %v2202_v31 }
  0x74   : > { %vm1583_vm1 = vcmp.lt.s32.totalorder %v670_v34, 384 }
  0x75   : > { %1895 = vmatpush3.bf16.msra.mxu0 %v2096_v37  ;;  %v669_v35 = vunpack.c.0.s8 %v668_v32 }
  0x76   : > { %1060 = vmatpush1.bf16.msra.mxu1 %v2092_v36  ;;  %1472 = vmatprep.subr.bf16.mxu0 %v2099_v38  ;;  %v671_v36 = vshrl.u32 %v670_v34, 7 }
  0x77   : > { %1902 = vmatprep.subr.bf16.mxu1 %v2121_v39 }
  0x78   : > { %1103 = vmatmul.mubr.bf16.vlgmr.msra.gmra.mrb[4].mxu0 %v766_v40  ;;  %v672_v37 = vsub.s32 %v669_v35, %v671_v36 }
  0x79   : > { %1062 = vmatmul.mubr.bf16.vlgmr.msra.gmra.mrb[4].mxu1 %v766_v40  ;;  %1473 = vmatpush1.bf16.msra.mxu0 %v2097_v41 }
  0x7a   : > { %1474 = vmatprep.subr.bf16.mxu0 %v2102_v42  ;;  %1903 = vmatpush3.bf16.msra.mxu1 %v2122_v43 }
  0x7b   : > { %1904 = vmatprep.subr.bf16.mxu1 %v2126_v44  ;;  %1545 = vmatprep.mubr.bf16.mxu1 %v1213_v62 }
  0x7c   : > { %1504 = vmatprep.mubr.bf16.mxu0 %v1213_v62 }
  0x7d   : > { %1475 = vmatpush1.bf16.msra.mxu0 %v2100_v45 }
  0x7e   : > { %1476 = vmatprep.subr.bf16.mxu0 %v2105_v33  ;;  %1905 = vmatpush3.bf16.msra.mxu1 %v2127_v46 }
  0x7f   : > { %1906 = vmatprep.subr.bf16.mxu1 %v2131_v47 }
  0x81   : > { %1477 = vmatpush1.bf16.msra.mxu0 %v2103_v48 }
  0x82   : > { %1478 = vmatprep.subr.bf16.mxu0 %v2108_v49  ;;  %1907 = vmatpush3.bf16.msra.mxu1 %v2132_v50 }
  0x83   : > { %1908 = vmatprep.subr.bf16.mxu1 %v2136_v51 }
  0x85   : > { %1479 = vmatpush1.bf16.msra.mxu0 %v2106_v52 }
  0x86   : > { %1480 = vmatprep.subr.bf16.mxu0 %v2111_v53  ;;  %1909 = vmatpush3.bf16.msra.mxu1 %v2137_v54 }
  0x87   : > { %1910 = vmatprep.subr.bf16.mxu1 %v2141_v55 }
  0x89   : > { %1481 = vmatpush1.bf16.msra.mxu0 %v2109_v56 }
  0x8a   : > { %1482 = vmatprep.subr.bf16.mxu0 %v2114_v58  ;;  %1911 = vmatpush3.bf16.msra.mxu1 %v2142_v59  ;;  %v249_v58 = vld [vmem:[#allocation2] sm:$0x7] }
  0x8b   : > { %1912 = vmatprep.subr.bf16.mxu1 %v2146_v61 }
  0x8d   : > { %1483 = vmatpush1.bf16.msra.mxu0 %v2112_v63 }
  0x8e   : > { %1484 = vmatprep.subr.bf16.mxu0 %v2117_v0  ;;  %1913 = vmatpush3.bf16.msra.mxu1 %v2147_v1 }
  0x8f   : > { %1914 = vmatprep.subr.bf16.mxu1 %v2151_v2 }
  0x91   : > { %1485 = vmatpush1.bf16.msra.mxu0 %v2115_v3 }
  0x92   : > { %1486 = vmatprep.subr.bf16.mxu0 %v2120_v4  ;;  %1915 = vmatpush3.bf16.msra.mxu1 %v2152_v5 }
  0x93   : > { %1916 = vmatprep.subr.bf16.mxu1 %v2156_v6 }
  0x95   : > { %1487 = vmatpush1.bf16.msra.mxu0 %v2118_v7 }
  0x96   : > { %1488 = vmatprep.subr.bf16.mxu0 %v2125_v8  ;;  %1917 = vmatpush3.bf16.msra.mxu1 %v2157_v9 }
  0x99   : > { %1489 = vmatpush1.bf16.msra.mxu0 %v2123_v10  ;;  %1546 = vmatmul.mubr.bf16.vlgmr.msra.gmra.mrb[8].mxu1 %v1212_v11 }
  0x9a   : > { %1490 = vmatprep.subr.bf16.mxu0 %v2130_v12 }
  0x9d   : > { %1491 = vmatpush1.bf16.msra.mxu0 %v2128_v13 }
  0x9e   : > { %1492 = vmatprep.subr.bf16.mxu0 %v2135_v14 }
  0xa1   : > { %1493 = vmatpush1.bf16.msra.mxu0 %v2133_v15  ;;  %v1591_v15 = vld [vmem:[%s2462_s2] sm:$0x7] (!%p1855_p8) }
  0xa2   : > { %1494 = vmatprep.subr.bf16.mxu0 %v2140_v16 }
  0xa5   : > { %1495 = vmatpush1.bf16.msra.mxu0 %v2138_v17 }
  0xa6   : > { %1496 = vmatprep.subr.bf16.mxu0 %v2145_v18 }
  0xa9   : > { %1497 = vmatpush1.bf16.msra.mxu0 %v2143_v19 }
  0xaa   : > { %1498 = vmatprep.subr.bf16.mxu0 %v2150_v20 }
  0xad   : > { %1499 = vmatpush1.bf16.msra.mxu0 %v2148_v21 }
  0xae   : > { %1500 = vmatprep.subr.bf16.mxu0 %v2155_v22 }
  0xb1   : > { %1501 = vmatpush1.bf16.msra.mxu0 %v2153_v23 }
  0xb2   : > { %1502 = vmatprep.subr.bf16.mxu0 %v2160_v24 }
  0xb5   : > { %1503 = vmatpush1.bf16.msra.mxu0 %v2158_v25 }
  0xb8   : > { %1505 = vmatmul.mubr.bf16.vlgmr.msra.gmra.mrb[8].mxu0 %v1212_v11 }
 0x10b   : > { %v1874_v26 = vpop.f32.mrb[0].mxu1 }
 0x10c   : > { %v1875_v27 = vpop.f32.mrb[1].mxu1 }
 0x10d   : > { %v1876_v28 = vadd.f32 %v1875_v27, %v1874_v26  ;;  %v1877_v29 = vpop.f32.mrb[2].mxu1 }
 0x10e   : > { %v1878_v30 = vpop.f32.mrb[3].mxu1 }
 0x10f   : > { %v680_v40 = vrot.slane %v1876_v28, %v672_v37 }
 0x12b   : > { %v616_v38 = vpop.f32.mrb[0].mxu0 }
 0x12c   : > { %v618_v39 = vpop.f32.mrb[1].mxu0 }
 0x12d   : > { %v666_v41 = vcombine.low %v616_v38, %v618_v39  ;;  %v620_v42 = vpop.f32.mrb[2].mxu0 }
 0x12e   : > { %v621_v43 = vpop.f32.mrb[3].mxu0 }
 0x12f   : > { %v673_v44 = vrot.slane %v666_v41, %v672_v37 }
 0x131   : > { %v681_v45 = vcombine.low %v673_v44, %v680_v40 }
 0x133   : > { %v688_v56 = vrot.slane %v681_v45, %v672_v37 }
 0x135   : > { %v690_v60 = vadd.f32 %v688_v56, %v249_v58 }
 0x14b   : > { %v1896_v33 = vpop.f32.mrb[4].mxu0 }
 0x14c   : > { %v1063_v46 = vpop.f32.mrb[4].mxu1  ;;  %v1897_v47 = vpop.f32.mrb[5].mxu0 }
 0x14d   : > { %v1065_v48 = vpop.f32.mrb[5].mxu1  ;;  %v1898_v49 = vadd.f32 %v1897_v47, %v1896_v33  ;;  %v1899_v50 = vpop.f32.mrb[6].mxu0 }
 0x14e   : > { %v1113_v51 = vcombine.low %v1063_v46, %v1065_v48  ;;  %v1900_v52 = vpop.f32.mrb[7].mxu0  ;;  %v1067_v53 = vpop.f32.mrb[6].mxu1 }
 0x14f   : > { %v1127_v54 = vrot.slane %v1898_v49, %v672_v37  ;;  %v1068_v55 = vpop.f32.mrb[7].mxu1 }
 0x150   : > { %v1120_v57 = vrot.slane %v1113_v51, %v672_v37 }
 0x152   : > { %v1128_v59 = vcombine.low %v1120_v57, %v1127_v54 }
 0x154   : > { %v1135_v61 = vrot.slane %v1128_v59, %v672_v37 }
 0x156   : > { %v1137_v62 = vadd.f32 %v1135_v61, %v690_v60 }
 0x16c   : > { %v1918_v63 = vpop.f32.mrb[8].mxu1 }
 0x16d   : > { %v1919_v0 = vpop.f32.mrb[9].mxu1 }
 0x16e   : > { %v1920_v1 = vadd.f32 %v1919_v0, %v1918_v63  ;;  %v1921_v2 = vpop.f32.mrb[10].mxu1 }
 0x16f   : > { %v1922_v3 = vpop.f32.mrb[11].mxu1 }
 0x170   : > { %v1570_v6 = vrot.slane %v1920_v1, %v672_v37 }
 0x18b   : > { %v1506_v4 = vpop.f32.mrb[8].mxu0 }
 0x18c   : > { %v1508_v5 = vpop.f32.mrb[9].mxu0 }
 0x18d   : > { %v1556_v7 = vcombine.low %v1506_v4, %v1508_v5  ;;  %v1510_v8 = vpop.f32.mrb[10].mxu0 }
 0x18e   : > { %v1511_v9 = vpop.f32.mrb[11].mxu0 }
 0x18f   : > { %v1563_v10 = vrot.slane %v1556_v7, %v672_v37 }
 0x191   : > { %v1571_v11 = vcombine.low %v1563_v10, %v1570_v6  ;;  %1589 = sbr.rel (%p1855_p8) target bundleno = 420 (0x1a4), region = 40 }
 0x193   : > { %v1578_v12 = vrot.slane %v1571_v11, %v672_v37 }
 0x195   : > { %v1580_v13 = vadd.f32 %v1578_v12, %v1137_v62 }
 0x197   : > { %1585 = vst.msk [vmem:[#allocation2] sm:$0x7] %vm1583_vm1, %v1580_v13 }
 0x19e   : > { %v1590_v14 = vld [vmem:[#allocation2] sm:$0x7] }
 0x19f   : > { %v1592_v16 = vadd.f32 %v1591_v15, %v1590_v14 }
 0x1a1   : > { %v1593_v17 = vmax.f32 %v1592_v16, 0.0 }
 0x1a3   : > { %1594 = vst.msk [vmem:[%s2270_s7] sm:$0x7] %vm1583_vm1, %v1593_v17 }
 0x1a4 PF: > { %s13_s16 = sadd.s32 1, %s2199_s16   ;;  %s2464_s12 = smov %s2191_s14 }
 0x1a5   : > { %p10_p9 = scmp.ge.s32.totalorder %s13_s16, 8   ;;  %s2465_s13 = smov %s2195_s15 }
 0x1a6   : > { %s2466_s14 = smov %s2469_s17  ;;  %s2467_s15 = smov %s2473_s18 }
 0x1a7   :  { %12 = sbr.rel (!%p10_p9) target bundleno = 3 (0x3), region = 73 }

// kernel: alexnet_forward.14
= control target key start
LH: loop header
LB: loop body
LE: loop exit
PB: predicated region body
PF: predicated region fallthrough
CT: control target
= control target key end

     0   :  { %s2106_s12 = smov 0   ;;  %s2108_s13 = smov 0   ;;  %s2363_s0 = inlined_call_operand.vmem [shape: bf16[2,3,3,384], index: 0, kind: input, shape index: {}]   ;;  %s2364_s1 = inlined_call_operand.vmem [shape: bf16[3,1152,256], index: 1, kind: input, shape index: {}]   ;;  %s2365_s2 = inlined_call_operand.vmem [shape: f32[1,256], index: 2, kind: input, shape index: {}]   ;;  %s2366_s3 = inlined_call_operand.vmem [shape: f32[2,1,1,256], index: 3, kind: output, shape index: {}]  }
   0x1   :  { %s2110_s14 = smov 0   ;;  %s2112_s15 = smov 0  }
   0x2   :  { %s2114_s16 = smov 0  }
   0x3 LB: > { %s25_s17 = sadd.s32 1, %s2072_s14  ;;  %s32_s18 = sadd.s32 1, %s2076_s15  ;;  %s2080_s16 = sphi %s2114_s16, %s13_s16   ;;  %s2076_s15 = sphi %s2112_s15, %s2370_s15   ;;  %s2072_s14 = sphi %s2110_s14, %s2369_s14   ;;  %s2068_s13 = sphi %s2108_s13, %s2368_s13   ;;  %s2064_s12 = sphi %s2106_s12, %s2367_s12  }
   0x4   : > { %p26_p0 = scmp.ge.s32.totalorder %s25_s17, 3  ;;  %p1614_p1 = scmp.ge.s32.totalorder %s2080_s16, 1 }
   0x5   : > { %p178_p2 = scmp.lt.s32.totalorder %s2080_s16, 7 }
   0x6   : > { %s2372_s17 = smov (%p26_p0, %s25_s17), 0  ;;  %s2374_s18 = smov (!%p26_p0, %s32_s18), %s2076_s15 }
   0x7   : > { %p179_p3 = pnand %p1614_p1, %p178_p2  ;;  %p34_p4 = scmp.ge.s32.totalorder %s2374_s18, 2 }
   0x8   : > { %p216_p5 = scmp.lt.s32.totalorder (!%p179_p3), %s2068_s13, 1  ;;  %p218_p6 = scmp.lt.s32.totalorder (!%p179_p3), %s2064_s12, 2 }
   0x9   : > { %s2376_s18 = smov (%p34_p4, %s2374_s18), 0  ;;  %182 = sbr.rel (%p179_p3) target bundleno = 425 (0x1a9), region = 32 }
   0xa   : > { %p1618_p7 = scmp.ne.s32.totalorder (!%p179_p3), %s2064_s12, 0 }
  0x10   : > { %s2378_s13 = smov (!%p216_p5, %s2068_s13), 1  ;;  %v244_v0 = vlaneseq (!%p1618_p7)  ;;  %v2082_v1 = vmov (!%p1618_p7), 0.0  }
  0x11   : > { %s219_s19 = scalar_select %p218_p6, %s2064_s12, 2 }
  0x12   : > { %s1777_s20 = smul.u32 9, %s2378_s13  ;;  %s1617_s21 = sshll.u32 %s2378_s13, 1  ;;  %vm246_vm0 = vcmp.lt.s32.totalorder (!%p1618_p7), %v244_v0, 256 }
  0x13   : > { %s1776_s22 = smul.u32 3, %s219_s19  ;;  %s2143_s25 = scalar_lea.vmem %s2366_s3, %s1617_s21  ;;  %248 = vst.msk [vmem:[#allocation2] sm:$0x3] (!%p1618_p7), %vm246_vm0, %v2082_v1 }
  0x14   : > { %s1778_s26 = smul.u32 1152, %s219_s19 }
  0x15   : > { %s222_s27 = sadd.s32 %s1777_s20, %s1776_s22  ;;  %243 = sbr.rel (%p1618_p7) target bundleno = 28 (0x1c), region = 36 }
  0x16   : > { %s1615_s28 = sshll.u32 %s222_s27, 1  ;;  %s2148_s4 = scalar_lea.vmem %s2364_s1, %s1778_s26 }
  0x17   : > { %s2153_s7 = scalar_lea.vmem %s2363_s0, %s1615_s28 }
  0x1c PF: > { %v1823_v2 = vld [vmem:[%s2148_s4 + $0x4] ss:$8 sps:$4 sm:$0xff]   ;;  %v2083_v4 = vmov 0   ;;  %v1827_v5 = vld [vmem:[%s2148_s4] ss:$8 sps:$4 sm:$0xff]   ;;  %v304_v25 = vlaneseq  ;;  %p1763_p8 = scmp.ne.s32.totalorder %s2064_s12, 2 }
  0x1d   : > { %v1825_v3 = vld [vmem:[%s2148_s4 + $0x104] ss:$8 sps:$4 sm:$0xff]   ;;  %632 = vmatprep.mubr.bf16.mxu0 %v2083_v4  ;;  %559 = vmatprep.subr.bf16.mxu1 %v1823_v2  ;;  %v1828_v6 = vld [vmem:[%s2148_s4 + $0x100] ss:$8 sps:$4 sm:$0xff]   ;;  %v1829_v7 = vld [vmem:[%s2148_s4 + $0x14] ss:$8 sps:$4 sm:$0xff]  }
  0x1e   : > { %600 = vmatprep.subr.bf16.mxu0 %v1825_v3  ;;  %560 = vmatpush1.bf16.msra.mxu1 %v1827_v5  ;;  %v1831_v8 = vld [vmem:[%s2148_s4 + $0x114] ss:$8 sps:$4 sm:$0xff]   ;;  %v1833_v9 = vld [vmem:[%s2148_s4 + $0x10] ss:$8 sps:$4 sm:$0xff]   ;;  %v1835_v11 = vld [vmem:[%s2148_s4 + $0x24] ss:$8 sps:$4 sm:$0xff]  }
  0x1f   : > { %601 = vmatpush1.bf16.msra.mxu0 %v1828_v6  ;;  %561 = vmatprep.subr.bf16.mxu1 %v1829_v7  ;;  %v1834_v10 = vld [vmem:[%s2148_s4 + $0x110] ss:$8 sps:$4 sm:$0xff]   ;;  %v1837_v12 = vld [vmem:[%s2148_s4 + $0x124] ss:$8 sps:$4 sm:$0xff]   ;;  %v1839_v13 = vld [vmem:[%s2148_s4 + $0x20] ss:$8 sps:$4 sm:$0xff]  }
  0x20   : > { %602 = vmatprep.subr.bf16.mxu0 %v1831_v8  ;;  %v1840_v14 = vld [vmem:[%s2148_s4 + $0x120] ss:$8 sps:$4 sm:$0xff]   ;;  %v1841_v15 = vld [vmem:[%s2148_s4 + $0x34] ss:$8 sps:$4 sm:$0xff]   ;;  %v1845_v17 = vld [vmem:[%s2148_s4 + $0x30] ss:$8 sps:$4 sm:$0xff]  }
  0x21   : > { %v1843_v16 = vld [vmem:[%s2148_s4 + $0x134] ss:$8 sps:$4 sm:$0xff]   ;;  %v1846_v18 = vld [vmem:[%s2148_s4 + $0x130] ss:$8 sps:$4 sm:$0xff]   ;;  %v1847_v19 = vld [vmem:[%s2148_s4 + $0x44] ss:$8 sps:$4 sm:$0xff]  }
  0x22   : > { %562 = vmatpush1.bf16.msra.mxu1 %v1833_v9  ;;  %v1849_v20 = vld [vmem:[%s2148_s4 + $0x144] ss:$8 sps:$4 sm:$0xff]   ;;  %v1851_v21 = vld [vmem:[%s2148_s4 + $0x40] ss:$8 sps:$4 sm:$0xff]   ;;  %v2084_v23 = vmov 1983009808  }
  0x23   : > { %603 = vmatpush1.bf16.msra.mxu0 %v1834_v10  ;;  %563 = vmatprep.subr.bf16.mxu1 %v1835_v11  ;;  %v1852_v22 = vld [vmem:[%s2148_s4 + $0x140] ss:$8 sps:$4 sm:$0xff]   ;;  %v302_v24 = vunpack.c.l.s4 %v2084_v23  ;;  %v1853_v26 = vld [vmem:[%s2148_s4 + $0x54] ss:$8 sps:$4 sm:$0xff]   ;;  %v1857_v28 = vld [vmem:[%s2148_s4 + $0x50] ss:$8 sps:$4 sm:$0xff]  }
  0x24   : > { %604 = vmatprep.subr.bf16.mxu0 %v1837_v12  ;;  %v1855_v27 = vld [vmem:[%s2148_s4 + $0x154] ss:$8 sps:$4 sm:$0xff]   ;;  %v2181_v30 = vshrl.u32 %v304_v25, 7  ;;  %v1858_v31 = vld [vmem:[%s2148_s4 + $0x150] ss:$8 sps:$4 sm:$0xff]   ;;  %vm1494_vm1 = vcmp.lt.s32.totalorder %v304_v25, 256 }
  0x25   : > { %v303_v29 = vunpack.c.0.s8 %v302_v24  ;;  %v1859_v32 = vld [vmem:[%s2148_s4 + $0x64] ss:$8 sps:$4 sm:$0xff]   ;;  %v1863_v34 = vld [vmem:[%s2148_s4 + $0x60] ss:$8 sps:$4 sm:$0xff]   ;;  %v1865_v36 = vld [vmem:[%s2148_s4 + $0x74] ss:$8 sps:$4 sm:$0xff]  }
  0x26   : > { %564 = vmatpush1.bf16.msra.mxu1 %v1839_v13  ;;  %v1861_v33 = vld [vmem:[%s2148_s4 + $0x164] ss:$8 sps:$4 sm:$0xff]   ;;  %v1864_v35 = vld [vmem:[%s2148_s4 + $0x160] ss:$8 sps:$4 sm:$0xff]   ;;  %v1867_v39 = vld [vmem:[%s2148_s4 + $0x174] ss:$8 sps:$4 sm:$0xff]  }
  0x27   : > { %605 = vmatpush1.bf16.msra.mxu0 %v1840_v14  ;;  %565 = vmatprep.subr.bf16.mxu1 %v1841_v15  ;;  %v2190_v37 = vsub.s32 %v303_v29, %v2181_v30  ;;  %v250_v38 = vld [vmem:[%s2153_s7] sm:$0x15]  ;;  %v1869_v41 = vld [vmem:[%s2148_s4 + $0x70] ss:$8 sps:$4 sm:$0xff]   ;;  %v1878_v50 = vld [vmem:[%s2148_s4 + $0x94] ss:$8 sps:$4 sm:$0xff]  }
  0x28   : > { %606 = vmatprep.subr.bf16.mxu0 %v1843_v16  ;;  %v300_v42 = vcombine.high %v250_v38, %v250_v38  ;;  %v1870_v44 = vld [vmem:[%s2148_s4 + $0x170] ss:$8 sps:$4 sm:$0xff]   ;;  %v1871_v45 = vld [vmem:[%s2148_s4 + $0x84] ss:$8 sps:$4 sm:$0xff]   ;;  %v1873_v47 = vld [vmem:[%s2148_s4 + $0x300] ss:$8 sps:$4 sm:$0xff]  }
  0x29   : > { %v2195_v40 = vrot.slane %v250_v38, %v2190_v37  ;;  %v1875_v46 = vld [vmem:[%s2148_s4 + $0x304] ss:$8 sps:$4 sm:$0xff]   ;;  %v1876_v48 = vld [vmem:[%s2148_s4 + $0x80] ss:$8 sps:$4 sm:$0xff]   ;;  %v1882_v51 = vld [vmem:[%s2148_s4 + $0x314] ss:$8 sps:$4 sm:$0xff]  }
  0x2a   : > { %566 = vmatpush1.bf16.msra.mxu1 %v1845_v17  ;;  %v314_v49 = vrot.slane %v300_v42, %v2190_v37  ;;  %v1880_v52 = vld [vmem:[%s2148_s4 + $0x310] ss:$8 sps:$4 sm:$0xff]   ;;  %v1884_v54 = vld [vmem:[%s2148_s4 + $0xa4] ss:$8 sps:$4 sm:$0xff]   ;;  %v1886_v56 = vld [vmem:[%s2148_s4 + $0x320] ss:$8 sps:$4 sm:$0xff]  }
  0x2b   : > { %607 = vmatpush1.bf16.msra.mxu0 %v1846_v18  ;;  %567 = vmatprep.subr.bf16.mxu1 %v1847_v19  ;;  %v315_v43 = vcombine.high %v2195_v40, %v2195_v40  ;;  %v1883_v53 = vld [vmem:[%s2148_s4 + $0x90] ss:$8 sps:$4 sm:$0xff]   ;;  %v1888_v55 = vld [vmem:[%s2148_s4 + $0x324] ss:$8 sps:$4 sm:$0xff]   ;;  %v1889_v57 = vld [vmem:[%s2148_s4 + $0xa0] ss:$8 sps:$4 sm:$0xff]  }
  0x2c   : > { %608 = vmatprep.subr.bf16.mxu0 %v1849_v20  ;;  %v1890_v58 = vld [vmem:[%s2148_s4 + $0xb4] ss:$8 sps:$4 sm:$0xff]   ;;  %v1892_v60 = vld [vmem:[%s2148_s4 + $0x330] ss:$8 sps:$4 sm:$0xff]   ;;  %v1896_v62 = vld [vmem:[%s2148_s4 + $0xc4] ss:$8 sps:$4 sm:$0xff]  }
  0x2d   : > { %591 = vmatprep.mubr.bf16.mxu1 %v315_v43  ;;  %v1894_v59 = vld [vmem:[%s2148_s4 + $0x334] ss:$8 sps:$4 sm:$0xff]   ;;  %v1895_v61 = vld [vmem:[%s2148_s4 + $0xb0] ss:$8 sps:$4 sm:$0xff]   ;;  %v1900_v63 = vld [vmem:[%s2148_s4 + $0x344] ss:$8 sps:$4 sm:$0xff]  }
  0x2e   : > { %568 = vmatpush1.bf16.msra.mxu1 %v1851_v21  ;;  %v1898_v0 = vld [vmem:[%s2148_s4 + $0x340] ss:$8 sps:$4 sm:$0xff]   ;;  %v1902_v2 = vld [vmem:[%s2148_s4 + $0xd4] ss:$8 sps:$4 sm:$0xff]   ;;  %v1904_v5 = vld [vmem:[%s2148_s4 + $0x350] ss:$8 sps:$4 sm:$0xff]  }
  0x2f   : > { %609 = vmatpush1.bf16.msra.mxu0 %v1852_v22  ;;  %569 = vmatprep.subr.bf16.mxu1 %v1853_v26  ;;  %v1901_v1 = vld [vmem:[%s2148_s4 + $0xc0] ss:$8 sps:$4 sm:$0xff]   ;;  %v1906_v3 = vld [vmem:[%s2148_s4 + $0x354] ss:$8 sps:$4 sm:$0xff]   ;;  %v1907_v6 = vld [vmem:[%s2148_s4 + $0xd0] ss:$8 sps:$4 sm:$0xff]  }
  0x30   : > { %610 = vmatprep.subr.bf16.mxu0 %v1855_v27  ;;  %v1908_v7 = vld [vmem:[%s2148_s4 + $0xe4] ss:$8 sps:$4 sm:$0xff]   ;;  %v1910_v9 = vld [vmem:[%s2148_s4 + $0x360] ss:$8 sps:$4 sm:$0xff]   ;;  %v1914_v11 = vld [vmem:[%s2148_s4 + $0xf4] ss:$8 sps:$4 sm:$0xff]  }
  0x31   : > { %v1912_v8 = vld [vmem:[%s2148_s4 + $0x364] ss:$8 sps:$4 sm:$0xff]   ;;  %v1913_v10 = vld [vmem:[%s2148_s4 + $0xe0] ss:$8 sps:$4 sm:$0xff]   ;;  %v1918_v12 = vld [vmem:[%s2148_s4 + $0x374] ss:$8 sps:$4 sm:$0xff]  }
  0x32   : > { %570 = vmatpush1.bf16.msra.mxu1 %v1857_v28  ;;  %v1916_v13 = vld [vmem:[%s2148_s4 + $0x370] ss:$8 sps:$4 sm:$0xff]   ;;  %v1922_v15 = vld [vmem:[%s2148_s4 + $0x184] ss:$8 sps:$4 sm:$0xff]   ;;  %v1920_v17 = vld [vmem:[%s2148_s4 + $0x180] ss:$8 sps:$4 sm:$0xff]  }
  0x33   : > { %611 = vmatpush1.bf16.msra.mxu0 %v1858_v31  ;;  %571 = vmatprep.subr.bf16.mxu1 %v1859_v32  ;;  %v1919_v14 = vld [vmem:[%s2148_s4 + $0xf0] ss:$8 sps:$4 sm:$0xff]   ;;  %v1925_v16 = vld [vmem:[%s2148_s4 + $0x384] ss:$8 sps:$4 sm:$0xff]   ;;  %v1923_v18 = vld [vmem:[%s2148_s4 + $0x380] ss:$8 sps:$4 sm:$0xff]  }
  0x34   : > { %612 = vmatprep.subr.bf16.mxu0 %v1861_v33  ;;  %v1928_v19 = vld [vmem:[%s2148_s4 + $0x194] ss:$8 sps:$4 sm:$0xff]   ;;  %v2241_v21 = vld [vmem:[%s2153_s7] sm:$0x2a]  ;;  %v1926_v23 = vld [vmem:[%s2148_s4 + $0x190] ss:$8 sps:$4 sm:$0xff]  }
  0x35   : > { %v1931_v20 = vld [vmem:[%s2148_s4 + $0x394] ss:$8 sps:$4 sm:$0xff]   ;;  %v2245_v22 = vrot.slane %v2241_v21, %v2190_v37  ;;  %v1929_v24 = vld [vmem:[%s2148_s4 + $0x390] ss:$8 sps:$4 sm:$0xff]   ;;  %v1934_v27 = vld [vmem:[%s2148_s4 + $0x1a4] ss:$8 sps:$4 sm:$0xff]  }
  0x36   : > { %572 = vmatpush1.bf16.msra.mxu1 %v1863_v34  ;;  %v1937_v28 = vld [vmem:[%s2148_s4 + $0x3a4] ss:$8 sps:$4 sm:$0xff]   ;;  %v1932_v31 = vld [vmem:[%s2148_s4 + $0x1a0] ss:$8 sps:$4 sm:$0xff]   ;;  %v1940_v33 = vld [vmem:[%s2148_s4 + $0x1b4] ss:$8 sps:$4 sm:$0xff]  }
  0x37   : > { %613 = vmatpush1.bf16.msra.mxu0 %v1864_v35  ;;  %573 = vmatprep.subr.bf16.mxu1 %v1865_v36  ;;  %v1144_v26 = vcombine.high %v2245_v22, %v2245_v22  ;;  %v1935_v32 = vld [vmem:[%s2148_s4 + $0x3a0] ss:$8 sps:$4 sm:$0xff]   ;;  %v1943_v34 = vld [vmem:[%s2148_s4 + $0x3b4] ss:$8 sps:$4 sm:$0xff]   ;;  %v1938_v35 = vld [vmem:[%s2148_s4 + $0x1b0] ss:$8 sps:$4 sm:$0xff]  }
  0x38   : > { %614 = vmatprep.subr.bf16.mxu0 %v1867_v39  ;;  %v1941_v36 = vld [vmem:[%s2148_s4 + $0x3b0] ss:$8 sps:$4 sm:$0xff]   ;;  %v1946_v38 = vld [vmem:[%s2148_s4 + $0x1c4] ss:$8 sps:$4 sm:$0xff]   ;;  %v1952_v42 = vld [vmem:[%s2148_s4 + $0x1d4] ss:$8 sps:$4 sm:$0xff]  }
  0x39   : > { %v1146_v29 = vrot.slane %v1144_v26, 1  ;;  %v1949_v39 = vld [vmem:[%s2148_s4 + $0x3c4] ss:$8 sps:$4 sm:$0xff]   ;;  %v1955_v43 = vld [vmem:[%s2148_s4 + $0x3d4] ss:$8 sps:$4 sm:$0xff]   ;;  %v1129_v26 = vcombine.high %v2241_v21, %v2241_v21 }
  0x3a   : > { %574 = vmatpush1.bf16.msra.mxu1 %v1869_v41  ;;  %v1947_v41 = vld [vmem:[%s2148_s4 + $0x3c0] ss:$8 sps:$4 sm:$0xff]   ;;  %v2020_v21 = vld [vmem:[%s2148_s4 + $0x284] ss:$8 sps:$4 sm:$0xff]  }
  0x3b   : > { %615 = vmatpush1.bf16.msra.mxu0 %v1870_v44  ;;  %575 = vmatprep.subr.bf16.mxu1 %v1871_v45  ;;  %v1950_v44 = vld [vmem:[%s2148_s4 + $0x1d0] ss:$8 sps:$4 sm:$0xff]  }
  0x3c   : > { %1391 = vmatprep.subr.bf16.mxu0 %v1875_v46  ;;  %v1953_v45 = vld [vmem:[%s2148_s4 + $0x3d0] ss:$8 sps:$4 sm:$0xff]   ;;  %v1958_v46 = vld [vmem:[%s2148_s4 + $0x1e4] ss:$8 sps:$4 sm:$0xff]  }
  0x3e   : > { %633 = vmatmul.mubr.bf16.vlgmr.msra.gmra.mrb[0].mxu0 %v314_v49  ;;  %576 = vmatpush1.bf16.msra.mxu1 %v1876_v48  ;;  %v660_v48 = vld [vmem:[%s2153_s7] sm:$0x15] }
  0x3f   : > { %1392 = vmatpush1.bf16.msra.mxu0 %v1873_v47  ;;  %577 = vmatprep.subr.bf16.mxu1 %v1878_v50  ;;  %v1961_v47 = vld [vmem:[%s2148_s4 + $0x3e4] ss:$8 sps:$4 sm:$0xff]   ;;  %v1956_v49 = vld [vmem:[%s2148_s4 + $0x1e0] ss:$8 sps:$4 sm:$0xff]   ;;  %v710_v50 = vcombine.high %v660_v48, %v660_v48 }
  0x40   : > { %1393 = vmatprep.subr.bf16.mxu0 %v1882_v51  ;;  %1423 = vmatprep.mubr.bf16.mxu0 %v1146_v29  ;;  %v2273_v51 = vrot.slane %v660_v48, %v2190_v37  ;;  %v2013_v29 = vld [vmem:[%s2148_s4 + $0x274] ss:$8 sps:$4 sm:$0xff]   ;;  %v2036_v48 = vld [vmem:[%s2148_s4 + $0x2e0] ss:$8 sps:$4 sm:$0xff]  }
  0x42   : > { %578 = vmatpush1.bf16.msra.mxu1 %v1883_v53  ;;  %v1964_v53 = vld [vmem:[%s2148_s4 + $0x1f4] ss:$8 sps:$4 sm:$0xff]  }
  0x43   : > { %1394 = vmatpush1.bf16.msra.mxu0 %v1880_v52  ;;  %579 = vmatprep.subr.bf16.mxu1 %v1884_v54  ;;  %v1959_v52 = vld [vmem:[%s2148_s4 + $0x3e0] ss:$8 sps:$4 sm:$0xff]   ;;  %v1967_v54 = vld [vmem:[%s2148_s4 + $0x3f4] ss:$8 sps:$4 sm:$0xff]  }
  0x44   : > { %1395 = vmatprep.subr.bf16.mxu0 %v1888_v55  ;;  %v725_v55 = vcombine.high %v2273_v51, %v2273_v51 }
  0x46   : > { %580 = vmatpush1.bf16.msra.mxu1 %v1889_v57  ;;  %v1962_v57 = vld [vmem:[%s2148_s4 + $0x1f0] ss:$8 sps:$4 sm:$0xff]  }
  0x47   : > { %1396 = vmatpush1.bf16.msra.mxu0 %v1886_v56  ;;  %581 = vmatprep.subr.bf16.mxu1 %v1890_v58  ;;  %v2281_v56 = vrot.slane %v710_v50, %v2190_v37  ;;  %v730_v58 = vshrl.u32 %v725_v55, 16  ;;  %v2039_v50 = vld [vmem:[%s2148_s4 + $0x2f0] ss:$8 sps:$4 sm:$0xff]  }
  0x48   : > { %1397 = vmatprep.subr.bf16.mxu0 %v1894_v59  ;;  %v1965_v59 = vld [vmem:[%s2148_s4 + $0x3f0] ss:$8 sps:$4 sm:$0xff]  }
  0x4a   : > { %582 = vmatpush1.bf16.msra.mxu1 %v1895_v61  ;;  %v1974_v61 = vld [vmem:[%s2148_s4 + $0x404] ss:$8 sps:$4 sm:$0xff]  }
  0x4b   : > { %1398 = vmatpush1.bf16.msra.mxu0 %v1892_v60  ;;  %583 = vmatprep.subr.bf16.mxu1 %v1896_v62  ;;  %v1970_v60 = vld [vmem:[%s2148_s4 + $0x204] ss:$8 sps:$4 sm:$0xff]   ;;  %v1145_v62 = vrot.slane %v2245_v22, 1  ;;  %v2002_v22 = vld [vmem:[%s2148_s4 + $0x450] ss:$8 sps:$4 sm:$0xff]  }
  0x4c   : > { %1399 = vmatprep.subr.bf16.mxu0 %v1900_v63  ;;  %v1968_v63 = vld [vmem:[%s2148_s4 + $0x200] ss:$8 sps:$4 sm:$0xff]  }
  0x4e   : > { %584 = vmatpush1.bf16.msra.mxu1 %v1901_v1  ;;  %v1977_v1 = vld [vmem:[%s2148_s4 + $0x214] ss:$8 sps:$4 sm:$0xff]  }
  0x4f   : > { %1400 = vmatpush1.bf16.msra.mxu0 %v1898_v0  ;;  %585 = vmatprep.subr.bf16.mxu1 %v1902_v2  ;;  %v1972_v0 = vld [vmem:[%s2148_s4 + $0x400] ss:$8 sps:$4 sm:$0xff]   ;;  %v1980_v2 = vld [vmem:[%s2148_s4 + $0x414] ss:$8 sps:$4 sm:$0xff]  }
  0x50   : > { %1401 = vmatprep.subr.bf16.mxu0 %v1906_v3  ;;  %v1975_v3 = vld [vmem:[%s2148_s4 + $0x210] ss:$8 sps:$4 sm:$0xff]  }
  0x52   : > { %586 = vmatpush1.bf16.msra.mxu1 %v1907_v6  ;;  %v1983_v6 = vld [vmem:[%s2148_s4 + $0x224] ss:$8 sps:$4 sm:$0xff]  }
  0x53   : > { %1402 = vmatpush1.bf16.msra.mxu0 %v1904_v5  ;;  %587 = vmatprep.subr.bf16.mxu1 %v1908_v7  ;;  %v1978_v5 = vld [vmem:[%s2148_s4 + $0x410] ss:$8 sps:$4 sm:$0xff]   ;;  %v1986_v7 = vld [vmem:[%s2148_s4 + $0x424] ss:$8 sps:$4 sm:$0xff]  }
  0x54   : > { %1403 = vmatprep.subr.bf16.mxu0 %v1912_v8  ;;  %v1981_v8 = vld [vmem:[%s2148_s4 + $0x220] ss:$8 sps:$4 sm:$0xff]  }
  0x56   : > { %588 = vmatpush1.bf16.msra.mxu1 %v1913_v10  ;;  %v1989_v10 = vld [vmem:[%s2148_s4 + $0x234] ss:$8 sps:$4 sm:$0xff]  }
  0x57   : > { %1404 = vmatpush1.bf16.msra.mxu0 %v1910_v9  ;;  %589 = vmatprep.subr.bf16.mxu1 %v1914_v11  ;;  %v1984_v9 = vld [vmem:[%s2148_s4 + $0x420] ss:$8 sps:$4 sm:$0xff]   ;;  %v1992_v11 = vld [vmem:[%s2148_s4 + $0x434] ss:$8 sps:$4 sm:$0xff]  }
  0x58   : > { %1405 = vmatprep.subr.bf16.mxu0 %v1918_v12  ;;  %v1987_v12 = vld [vmem:[%s2148_s4 + $0x230] ss:$8 sps:$4 sm:$0xff]  }
  0x5a   : > { %590 = vmatpush1.bf16.msra.mxu1 %v1919_v14  ;;  %v1995_v14 = vld [vmem:[%s2148_s4 + $0x244] ss:$8 sps:$4 sm:$0xff]  }
  0x5b   : > { %1406 = vmatpush1.bf16.msra.mxu0 %v1916_v13  ;;  %978 = vmatprep.subr.bf16.mxu1 %v1922_v15  ;;  %v1990_v13 = vld [vmem:[%s2148_s4 + $0x430] ss:$8 sps:$4 sm:$0xff]   ;;  %v1998_v15 = vld [vmem:[%s2148_s4 + $0x444] ss:$8 sps:$4 sm:$0xff]  }
  0x5c   : > { %1407 = vmatprep.subr.bf16.mxu0 %v1925_v16  ;;  %v1993_v16 = vld [vmem:[%s2148_s4 + $0x240] ss:$8 sps:$4 sm:$0xff]  }
  0x5d   : > { %592 = vmatmul.mubr.bf16.vlgmr.msra.gmra.mrb[0].mxu1 %v2195_v40  ;;  %v1944_v40 = vld [vmem:[%s2148_s4 + $0x1c0] ss:$8 sps:$4 sm:$0xff]  }
  0x5e   : > { %979 = vmatpush1.bf16.msra.mxu1 %v1920_v17  ;;  %1010 = vmatprep.mubr.bf16.mxu1 %v730_v58  ;;  %v1996_v17 = vld [vmem:[%s2148_s4 + $0x440] ss:$8 sps:$4 sm:$0xff]  }
  0x5f   : > { %1408 = vmatpush1.bf16.msra.mxu0 %v1923_v18  ;;  %980 = vmatprep.subr.bf16.mxu1 %v1928_v19  ;;  %v2001_v18 = vld [vmem:[%s2148_s4 + $0x254] ss:$8 sps:$4 sm:$0xff]  }
  0x60   : > { %1409 = vmatprep.subr.bf16.mxu0 %v1931_v20  ;;  %v2004_v19 = vld [vmem:[%s2148_s4 + $0x454] ss:$8 sps:$4 sm:$0xff]   ;;  %v1999_v20 = vld [vmem:[%s2148_s4 + $0x250] ss:$8 sps:$4 sm:$0xff]  }
  0x62   : > { %981 = vmatpush1.bf16.msra.mxu1 %v1926_v23  ;;  %v2007_v23 = vld [vmem:[%s2148_s4 + $0x264] ss:$8 sps:$4 sm:$0xff]  }
  0x63   : > { %1410 = vmatpush1.bf16.msra.mxu0 %v1929_v24  ;;  %982 = vmatprep.subr.bf16.mxu1 %v1934_v27  ;;  %v2010_v24 = vld [vmem:[%s2148_s4 + $0x464] ss:$8 sps:$4 sm:$0xff]   ;;  %v2005_v27 = vld [vmem:[%s2148_s4 + $0x260] ss:$8 sps:$4 sm:$0xff]  }
  0x64   : > { %1411 = vmatprep.subr.bf16.mxu0 %v1937_v28  ;;  %v2008_v28 = vld [vmem:[%s2148_s4 + $0x460] ss:$8 sps:$4 sm:$0xff]  }
  0x66   : > { %983 = vmatpush1.bf16.msra.mxu1 %v1932_v31  ;;  %v2016_v31 = vld [vmem:[%s2148_s4 + $0x474] ss:$8 sps:$4 sm:$0xff]  }
  0x67   : > { %1412 = vmatpush1.bf16.msra.mxu0 %v1935_v32  ;;  %984 = vmatprep.subr.bf16.mxu1 %v1940_v33  ;;  %v1143_v32 = vrot.slane %v1129_v26, %v2190_v37  ;;  %v2011_v33 = vld [vmem:[%s2148_s4 + $0x270] ss:$8 sps:$4 sm:$0xff]   ;;  %v2023_v37 = vld [vmem:[%s2148_s4 + $0x294] ss:$8 sps:$4 sm:$0xff]   ;;  %v1502_v26 = vld [vmem:[%s2365_s2] sm:$0x3] (!%p1763_p8) }
  0x68   : > { %1413 = vmatprep.subr.bf16.mxu0 %v1943_v34  ;;  %v2014_v34 = vld [vmem:[%s2148_s4 + $0x470] ss:$8 sps:$4 sm:$0xff]  }
  0x6a   : > { %985 = vmatpush1.bf16.msra.mxu1 %v1938_v35  ;;  %v1147_v35 = vrot.slane %v1143_v32, 1 }
  0x6b   : > { %1414 = vmatpush1.bf16.msra.mxu0 %v1941_v36  ;;  %986 = vmatprep.subr.bf16.mxu1 %v1946_v38  ;;  %v727_v36 = vshrl.u32 %v2273_v51, 16  ;;  %v2018_v38 = vld [vmem:[%s2148_s4 + $0x280] ss:$8 sps:$4 sm:$0xff]   ;;  %v733_v51 = vshrl.u32 %v2281_v56, 16 }
  0x6c   : > { %1415 = vmatprep.subr.bf16.mxu0 %v1949_v39  ;;  %v2021_v39 = vld [vmem:[%s2148_s4 + $0x290] ss:$8 sps:$4 sm:$0xff]  }
  0x6e   : > { %987 = vmatpush1.bf16.msra.mxu1 %v1944_v40  ;;  %v2026_v40 = vld [vmem:[%s2148_s4 + $0x2a4] ss:$8 sps:$4 sm:$0xff]  }
  0x6f   : > { %1416 = vmatpush1.bf16.msra.mxu0 %v1947_v41  ;;  %988 = vmatprep.subr.bf16.mxu1 %v1952_v42  ;;  %v2024_v41 = vld [vmem:[%s2148_s4 + $0x2a0] ss:$8 sps:$4 sm:$0xff]   ;;  %v2029_v42 = vld [vmem:[%s2148_s4 + $0x2b4] ss:$8 sps:$4 sm:$0xff]  }
  0x70   : > { %1417 = vmatprep.subr.bf16.mxu0 %v1955_v43  ;;  %v2027_v43 = vld [vmem:[%s2148_s4 + $0x2b0] ss:$8 sps:$4 sm:$0xff]  }
  0x72   : > { %989 = vmatpush1.bf16.msra.mxu1 %v1950_v44  ;;  %v2032_v44 = vld [vmem:[%s2148_s4 + $0x2c4] ss:$8 sps:$4 sm:$0xff]  }
  0x73   : > { %1418 = vmatpush1.bf16.msra.mxu0 %v1953_v45  ;;  %990 = vmatprep.subr.bf16.mxu1 %v1958_v46  ;;  %v2030_v45 = vld [vmem:[%s2148_s4 + $0x2c0] ss:$8 sps:$4 sm:$0xff]   ;;  %v2035_v46 = vld [vmem:[%s2148_s4 + $0x2d4] ss:$8 sps:$4 sm:$0xff]  }
  0x74   : > { %1419 = vmatprep.subr.bf16.mxu0 %v1961_v47  ;;  %v2038_v47 = vld [vmem:[%s2148_s4 + $0x2e4] ss:$8 sps:$4 sm:$0xff]  }
  0x76   : > { %991 = vmatpush1.bf16.msra.mxu1 %v1956_v49  ;;  %v2041_v49 = vld [vmem:[%s2148_s4 + $0x2f4] ss:$8 sps:$4 sm:$0xff]  }
  0x77   : > { %1420 = vmatpush1.bf16.msra.mxu0 %v1959_v52  ;;  %992 = vmatprep.subr.bf16.mxu1 %v1964_v53 }
  0x78   : > { %1421 = vmatprep.subr.bf16.mxu0 %v1967_v54 }
  0x7a   : > { %993 = vmatpush1.bf16.msra.mxu1 %v1962_v57 }
  0x7b   : > { %1422 = vmatpush1.bf16.msra.mxu0 %v1965_v59  ;;  %994 = vmatprep.subr.bf16.mxu1 %v1970_v60 }
  0x7c   : > { %1432 = vmatprep.subr.bf16.mxu0 %v1974_v61 }
  0x7e   : > { %1424 = vmatmul.mubr.bf16.vlgmr.msra.gmra.mrb[4].mxu0 %v1145_v62  ;;  %995 = vmatpush1.bf16.msra.mxu1 %v1968_v63 }
  0x7f   : > { %1433 = vmatpush1.bf16.msra.mxu0 %v1972_v0  ;;  %996 = vmatprep.subr.bf16.mxu1 %v1977_v1 }
  0x80   : > { %1434 = vmatprep.subr.bf16.mxu0 %v1980_v2  ;;  %1464 = vmatprep.mubr.bf16.mxu0 %v2083_v4 }
  0x82   : > { %997 = vmatpush1.bf16.msra.mxu1 %v1975_v3 }
  0x83   : > { %1435 = vmatpush1.bf16.msra.mxu0 %v1978_v5  ;;  %998 = vmatprep.subr.bf16.mxu1 %v1983_v6  ;;  %v2085_v6 = vmov 1966171168  }
  0x84   : > { %1436 = vmatprep.subr.bf16.mxu0 %v1986_v7  ;;  %v645_v56 = vunpack.c.l.s4 %v2085_v6 }
  0x86   : > { %999 = vmatpush1.bf16.msra.mxu1 %v1981_v8  ;;  %v646_v7 = vunpack.c.0.s8 %v645_v56 }
  0x87   : > { %1437 = vmatpush1.bf16.msra.mxu0 %v1984_v9  ;;  %1000 = vmatprep.subr.bf16.mxu1 %v1989_v10 }
  0x88   : > { %1438 = vmatprep.subr.bf16.mxu0 %v1992_v11  ;;  %v649_v8 = vsub.s32 %v646_v7, %v2181_v30 }
  0x8a   : > { %1001 = vmatpush1.bf16.msra.mxu1 %v1987_v12 }
  0x8b   : > { %1439 = vmatpush1.bf16.msra.mxu0 %v1990_v13  ;;  %1002 = vmatprep.subr.bf16.mxu1 %v1995_v14 }
  0x8c   : > { %1440 = vmatprep.subr.bf16.mxu0 %v1998_v15  ;;  %v249_v15 = vld [vmem:[#allocation2] sm:$0x3] }
  0x8e   : > { %1003 = vmatpush1.bf16.msra.mxu1 %v1993_v16 }
  0x8f   : > { %1441 = vmatpush1.bf16.msra.mxu0 %v1996_v17  ;;  %1004 = vmatprep.subr.bf16.mxu1 %v2001_v18 }
  0x90   : > { %1442 = vmatprep.subr.bf16.mxu0 %v2004_v19 }
  0x92   : > { %1005 = vmatpush1.bf16.msra.mxu1 %v1999_v20 }
  0x93   : > { %1443 = vmatpush1.bf16.msra.mxu0 %v2002_v22  ;;  %1006 = vmatprep.subr.bf16.mxu1 %v2007_v23 }
  0x94   : > { %1444 = vmatprep.subr.bf16.mxu0 %v2010_v24 }
  0x96   : > { %1007 = vmatpush1.bf16.msra.mxu1 %v2005_v27 }
  0x97   : > { %1445 = vmatpush1.bf16.msra.mxu0 %v2008_v28  ;;  %1008 = vmatprep.subr.bf16.mxu1 %v2013_v29 }
  0x98   : > { %1446 = vmatprep.subr.bf16.mxu0 %v2016_v31 }
  0x9a   : > { %1009 = vmatpush1.bf16.msra.mxu1 %v2011_v33 }
  0x9b   : > { %1447 = vmatpush1.bf16.msra.mxu0 %v2014_v34  ;;  %1019 = vmatprep.subr.bf16.mxu1 %v2020_v21 }
  0x9d   : > { %1011 = vmatmul.mubr.bf16.vlgmr.msra.gmra.mrb[4].mxu1 %v727_v36 }
  0x9e   : > { %1465 = vmatmul.mubr.bf16.vlgmr.msra.gmra.mrb[4].mxu0 %v1147_v35  ;;  %1020 = vmatpush1.bf16.msra.mxu1 %v2018_v38 }
  0x9f   : > { %1051 = vmatprep.mubr.bf16.mxu1 %v2083_v4  ;;  %1021 = vmatprep.subr.bf16.mxu1 %v2023_v37  ;;  %v2033_v4 = vld [vmem:[%s2148_s4 + $0x2d0] ss:$8 sps:$4 sm:$0xff]  }
  0xa2   : > { %1022 = vmatpush1.bf16.msra.mxu1 %v2021_v39 }
  0xa3   : > { %1023 = vmatprep.subr.bf16.mxu1 %v2026_v40 }
  0xa6   : > { %1024 = vmatpush1.bf16.msra.mxu1 %v2024_v41 }
  0xa7   : > { %1025 = vmatprep.subr.bf16.mxu1 %v2029_v42 }
  0xaa   : > { %1026 = vmatpush1.bf16.msra.mxu1 %v2027_v43 }
  0xab   : > { %1027 = vmatprep.subr.bf16.mxu1 %v2032_v44 }
  0xae   : > { %1028 = vmatpush1.bf16.msra.mxu1 %v2030_v45 }
  0xaf   : > { %1029 = vmatprep.subr.bf16.mxu1 %v2035_v46 }
  0xb2   : > { %1030 = vmatpush1.bf16.msra.mxu1 %v2033_v4 }
  0xb3   : > { %1031 = vmatprep.subr.bf16.mxu1 %v2038_v47 }
  0xb6   : > { %1032 = vmatpush1.bf16.msra.mxu1 %v2036_v48 }
  0xb7   : > { %1033 = vmatprep.subr.bf16.mxu1 %v2041_v49 }
  0xba   : > { %1034 = vmatpush1.bf16.msra.mxu1 %v2039_v50 }
  0xbd   : > { %1052 = vmatmul.mubr.bf16.vlgmr.msra.gmra.mrb[4].mxu1 %v733_v51 }
 0x111   : > { %v634_v52 = vpop.f32.mrb[0].mxu0 }
 0x112   : > { %v636_v53 = vpop.f32.mrb[1].mxu0 }
 0x113   : > { %v638_v54 = vpop.f32.mrb[2].mxu0 }
 0x114   : > { %v639_v55 = vpop.f32.mrb[3].mxu0 }
 0x130   : > { %v593_v57 = vpop.f32.mrb[0].mxu1 }
 0x131   : > { %v635_v58 = vadd.f32 %v634_v52, %v593_v57  ;;  %v595_v59 = vpop.f32.mrb[1].mxu1 }
 0x132   : > { %v637_v60 = vadd.f32 %v636_v53, %v595_v59  ;;  %v597_v61 = vpop.f32.mrb[2].mxu1 }
 0x133   : > { %v598_v62 = vpop.f32.mrb[3].mxu1 }
 0x134   : > { %v643_v63 = vcombine.low %v635_v58, %v637_v60 }
 0x136   : > { %v650_v9 = vrot.slane %v643_v63, %v649_v8 }
 0x138   : > { %v657_v12 = vrot.slane %v650_v9, %v649_v8 }
 0x13a   : > { %v659_v19 = vadd.f32 %v657_v12, %v249_v15 }
 0x171   : > { %v1466_v0 = vpop.f32.mrb[4].mxu0 }
 0x172   : > { %v1468_v1 = vpop.f32.mrb[5].mxu0 }
 0x173   : > { %v1475_v2 = vcombine.low %v1466_v0, %v1468_v1  ;;  %v1470_v3 = vpop.f32.mrb[6].mxu0 }
 0x174   : > { %v1471_v5 = vpop.f32.mrb[7].mxu0 }
 0x175   : > { %v1482_v17 = vrot.slane %v1475_v2, %v649_v8 }
 0x177   : > { %v1489_v22 = vrot.slane %v1482_v17, %v649_v8 }
 0x190   : > { %v1053_v10 = vpop.f32.mrb[4].mxu1 }
 0x191   : > { %v1055_v11 = vpop.f32.mrb[5].mxu1 }
 0x192   : > { %v1062_v13 = vcombine.low %v1053_v10, %v1055_v11  ;;  %v1057_v14 = vpop.f32.mrb[6].mxu1 }
 0x193   : > { %v1058_v16 = vpop.f32.mrb[7].mxu1 }
 0x194   : > { %v1069_v18 = vrot.slane %v1062_v13, %v649_v8 }
 0x196   : > { %v1076_v20 = vrot.slane %v1069_v18, %v649_v8  ;;  %1500 = sbr.rel (%p1763_p8) target bundleno = 425 (0x1a9), region = 40 }
 0x198   : > { %v1078_v23 = vadd.f32 %v1076_v20, %v659_v19 }
 0x19a   : > { %v1491_v24 = vadd.f32 %v1489_v22, %v1078_v23 }
 0x19c   : > { %1496 = vst.msk [vmem:[#allocation2] sm:$0x3] %vm1494_vm1, %v1491_v24 }
 0x1a3   : > { %v1501_v30 = vld [vmem:[#allocation2] sm:$0x3] }
 0x1a4   : > { %v1503_v27 = vadd.f32 %v1502_v26, %v1501_v30 }
 0x1a6   : > { %v1504_v28 = vmax.f32 %v1503_v27, 0.0 }
 0x1a8   : > { %1505 = vst.msk [vmem:[%s2143_s25] sm:$0x3] %vm1494_vm1, %v1504_v28 }
 0x1a9 PF: > { %s13_s16 = sadd.s32 1, %s2080_s16   ;;  %s2367_s12 = smov %s2072_s14 }
 0x1aa   : > { %p10_p9 = scmp.ge.s32.totalorder %s13_s16, 8   ;;  %s2368_s13 = smov %s2076_s15 }
 0x1ab   : > { %s2369_s14 = smov %s2372_s17  ;;  %s2370_s15 = smov %s2376_s18 }
 0x1ac   :  { %12 = sbr.rel (!%p10_p9) target bundleno = 3 (0x3), region = 73 }

// kernel: alexnet_forward.15
= control target key start
LH: loop header
LB: loop body
LE: loop exit
PB: predicated region body
PF: predicated region fallthrough
CT: control target
= control target key end

     0   :  { %s1529_s12 = smov 0   ;;  %s1531_s13 = smov 0   ;;  %s1702_s0 = inlined_call_operand.vmem [shape: bf16[2,3,3,256], index: 0, kind: input, shape index: {}]   ;;  %s1703_s1 = inlined_call_operand.vmem [shape: bf16[3,768,256], index: 1, kind: input, shape index: {}]   ;;  %s1704_s2 = inlined_call_operand.vmem [shape: f32[1,256], index: 2, kind: input, shape index: {}]   ;;  %s1705_s3 = inlined_call_operand.vmem [shape: f32[2,1,1,256], index: 3, kind: output, shape index: {}]  }
   0x1   :  { %s1533_s14 = smov 0   ;;  %s1535_s15 = smov 0  }
   0x2   :  { %s1537_s16 = smov 0  }
   0x3 LB: > { %s25_s17 = sadd.s32 1, %s1497_s14  ;;  %s32_s18 = sadd.s32 1, %s1501_s15  ;;  %s1505_s16 = sphi %s1537_s16, %s13_s16   ;;  %s1501_s15 = sphi %s1535_s15, %s1709_s15   ;;  %s1497_s14 = sphi %s1533_s14, %s1708_s14   ;;  %s1493_s13 = sphi %s1531_s13, %s1707_s13   ;;  %s1489_s12 = sphi %s1529_s12, %s1706_s12  }
   0x4   : > { %p26_p0 = scmp.ge.s32.totalorder %s25_s17, 3  ;;  %p1171_p1 = scmp.ge.s32.totalorder %s1505_s16, 1 }
   0x5   : > { %p178_p2 = scmp.lt.s32.totalorder %s1505_s16, 7 }
   0x6   : > { %s1711_s17 = smov (%p26_p0, %s25_s17), 0  ;;  %s1713_s18 = smov (!%p26_p0, %s32_s18), %s1501_s15 }
   0x7   : > { %p179_p3 = pnand %p1171_p1, %p178_p2  ;;  %p34_p4 = scmp.ge.s32.totalorder %s1713_s18, 2 }
   0x8   : > { %p216_p5 = scmp.lt.s32.totalorder (!%p179_p3), %s1493_s13, 1  ;;  %p218_p6 = scmp.lt.s32.totalorder (!%p179_p3), %s1489_s12, 2 }
   0x9   : > { %s1715_s18 = smov (%p34_p4, %s1713_s18), 0  ;;  %182 = sbr.rel (%p179_p3) target bundleno = 386 (0x182), region = 32 }
   0xa   : > { %p1176_p7 = scmp.ne.s32.totalorder (!%p179_p3), %s1489_s12, 0 }
  0x10   : > { %s1717_s13 = smov (!%p216_p5, %s1493_s13), 1  ;;  %242 = sbr.rel (%p1176_p7) target bundleno = 23 (0x17), region = 36 }
  0x11   : > { %s219_s19 = scalar_select %p218_p6, %s1489_s12, 2 }
  0x12   : > { %s1279_s20 = smul.u32 6, %s1717_s13  ;;  %s1175_s21 = sshll.u32 %s1717_s13, 1  ;;  %v243_v0 = vlaneseq (!%p1176_p7)  ;;  %v1507_v1 = vmov (!%p1176_p7), 0.0  }
  0x13   : > { %s1172_s22 = sshll.u32 %s219_s19, 1  ;;  %s1280_s23 = smul.u32 768, %s219_s19 }
  0x14   : > { %s222_s24 = sadd.s32 %s1279_s20, %s1172_s22  ;;  %s1566_s27 = scalar_lea.vmem %s1705_s3, %s1175_s21  ;;  %vm245_vm0 = vcmp.lt.s32.totalorder (!%p1176_p7), %v243_v0, 256 }
  0x15   : > { %s1173_s28 = sshll.u32 %s222_s24, 1  ;;  %s1571_s4 = scalar_lea.vmem %s1703_s1, %s1280_s23  ;;  %247 = vst.msk [vmem:[#allocation2] sm:$0x3] (!%p1176_p7), %vm245_vm0, %v1507_v1 }
  0x16   : > { %s1576_s7 = scalar_lea.vmem %s1702_s0, %s1173_s28 }
  0x17 PF: > { %v1323_v2 = vld [vmem:[%s1571_s4 + $0x4] ss:$8 sps:$4 sm:$0xff]   ;;  %v1325_v3 = vld [vmem:[%s1571_s4] ss:$8 sps:$4 sm:$0xff]   ;;  %v1329_v6 = vld [vmem:[%s1571_s4 + $0x14] ss:$8 sps:$4 sm:$0xff]  }
  0x18   : > { %453 = vmatprep.subr.bf16.mxu0 %v1323_v2  ;;  %v1326_v4 = vld [vmem:[%s1571_s4 + $0x104] ss:$8 sps:$4 sm:$0xff]   ;;  %v1328_v5 = vld [vmem:[%s1571_s4 + $0x100] ss:$8 sps:$4 sm:$0xff]   ;;  %v1331_v7 = vld [vmem:[%s1571_s4 + $0x10] ss:$8 sps:$4 sm:$0xff]  }
  0x19   : > { %454 = vmatpush1.bf16.msra.mxu0 %v1325_v3  ;;  %723 = vmatprep.subr.bf16.mxu1 %v1326_v4  ;;  %v1332_v8 = vld [vmem:[%s1571_s4 + $0x114] ss:$8 sps:$4 sm:$0xff]   ;;  %v1334_v9 = vld [vmem:[%s1571_s4 + $0x110] ss:$8 sps:$4 sm:$0xff]   ;;  %v1335_v10 = vld [vmem:[%s1571_s4 + $0x24] ss:$8 sps:$4 sm:$0xff]  }
  0x1a   : > { %724 = vmatpush1.bf16.msra.mxu1 %v1328_v5  ;;  %455 = vmatprep.subr.bf16.mxu0 %v1329_v6  ;;  %v1337_v11 = vld [vmem:[%s1571_s4 + $0x20] ss:$8 sps:$4 sm:$0xff]   ;;  %v1338_v12 = vld [vmem:[%s1571_s4 + $0x124] ss:$8 sps:$4 sm:$0xff]   ;;  %v1341_v13 = vld [vmem:[%s1571_s4 + $0x34] ss:$8 sps:$4 sm:$0xff]  }
  0x1b   : > { %725 = vmatprep.subr.bf16.mxu1 %v1332_v8  ;;  %v1340_v14 = vld [vmem:[%s1571_s4 + $0x120] ss:$8 sps:$4 sm:$0xff]   ;;  %v1344_v15 = vld [vmem:[%s1571_s4 + $0x134] ss:$8 sps:$4 sm:$0xff]   ;;  %v1343_v16 = vld [vmem:[%s1571_s4 + $0x30] ss:$8 sps:$4 sm:$0xff]  }
  0x1c   : > { %v1347_v17 = vld [vmem:[%s1571_s4 + $0x44] ss:$8 sps:$4 sm:$0xff]   ;;  %v1346_v18 = vld [vmem:[%s1571_s4 + $0x130] ss:$8 sps:$4 sm:$0xff]   ;;  %v1349_v20 = vld [vmem:[%s1571_s4 + $0x40] ss:$8 sps:$4 sm:$0xff]  }
  0x1d   : > { %456 = vmatpush1.bf16.msra.mxu0 %v1331_v7  ;;  %v1350_v19 = vld [vmem:[%s1571_s4 + $0x144] ss:$8 sps:$4 sm:$0xff]   ;;  %v1353_v21 = vld [vmem:[%s1571_s4 + $0x54] ss:$8 sps:$4 sm:$0xff]   ;;  %v1352_v22 = vld [vmem:[%s1571_s4 + $0x140] ss:$8 sps:$4 sm:$0xff]  }
  0x1e   : > { %457 = vmatprep.subr.bf16.mxu0 %v1335_v10  ;;  %726 = vmatpush1.bf16.msra.mxu1 %v1334_v9  ;;  %v1356_v23 = vld [vmem:[%s1571_s4 + $0x154] ss:$8 sps:$4 sm:$0xff]   ;;  %v1355_v24 = vld [vmem:[%s1571_s4 + $0x50] ss:$8 sps:$4 sm:$0xff]   ;;  %v1359_v25 = vld [vmem:[%s1571_s4 + $0x64] ss:$8 sps:$4 sm:$0xff]  }
  0x1f   : > { %727 = vmatprep.subr.bf16.mxu1 %v1338_v12  ;;  %v1358_v26 = vld [vmem:[%s1571_s4 + $0x150] ss:$8 sps:$4 sm:$0xff]   ;;  %v1362_v27 = vld [vmem:[%s1571_s4 + $0x164] ss:$8 sps:$4 sm:$0xff]   ;;  %v1361_v28 = vld [vmem:[%s1571_s4 + $0x60] ss:$8 sps:$4 sm:$0xff]  }
  0x20   : > { %v1365_v29 = vld [vmem:[%s1571_s4 + $0x74] ss:$8 sps:$4 sm:$0xff]   ;;  %v1364_v30 = vld [vmem:[%s1571_s4 + $0x160] ss:$8 sps:$4 sm:$0xff]   ;;  %v1367_v32 = vld [vmem:[%s1571_s4 + $0x70] ss:$8 sps:$4 sm:$0xff]  }
  0x21   : > { %458 = vmatpush1.bf16.msra.mxu0 %v1337_v11  ;;  %v1368_v31 = vld [vmem:[%s1571_s4 + $0x174] ss:$8 sps:$4 sm:$0xff]   ;;  %v1371_v33 = vld [vmem:[%s1571_s4 + $0x84] ss:$8 sps:$4 sm:$0xff]   ;;  %v1370_v34 = vld [vmem:[%s1571_s4 + $0x170] ss:$8 sps:$4 sm:$0xff]  }
  0x22   : > { %459 = vmatprep.subr.bf16.mxu0 %v1341_v13  ;;  %728 = vmatpush1.bf16.msra.mxu1 %v1340_v14  ;;  %v1374_v35 = vld [vmem:[%s1571_s4 + $0x184] ss:$8 sps:$4 sm:$0xff]   ;;  %v1373_v36 = vld [vmem:[%s1571_s4 + $0x80] ss:$8 sps:$4 sm:$0xff]   ;;  %v1377_v37 = vld [vmem:[%s1571_s4 + $0x94] ss:$8 sps:$4 sm:$0xff]  }
  0x23   : > { %729 = vmatprep.subr.bf16.mxu1 %v1344_v15  ;;  %v1376_v38 = vld [vmem:[%s1571_s4 + $0x180] ss:$8 sps:$4 sm:$0xff]   ;;  %v1380_v39 = vld [vmem:[%s1571_s4 + $0x194] ss:$8 sps:$4 sm:$0xff]   ;;  %v1379_v40 = vld [vmem:[%s1571_s4 + $0x90] ss:$8 sps:$4 sm:$0xff]  }
  0x24   : > { %v1383_v41 = vld [vmem:[%s1571_s4 + $0xa4] ss:$8 sps:$4 sm:$0xff]   ;;  %v1382_v42 = vld [vmem:[%s1571_s4 + $0x190] ss:$8 sps:$4 sm:$0xff]   ;;  %v1385_v44 = vld [vmem:[%s1571_s4 + $0xa0] ss:$8 sps:$4 sm:$0xff]  }
  0x25   : > { %460 = vmatpush1.bf16.msra.mxu0 %v1343_v16  ;;  %v1386_v43 = vld [vmem:[%s1571_s4 + $0x1a4] ss:$8 sps:$4 sm:$0xff]   ;;  %v1389_v45 = vld [vmem:[%s1571_s4 + $0xb4] ss:$8 sps:$4 sm:$0xff]   ;;  %v1388_v46 = vld [vmem:[%s1571_s4 + $0x1a0] ss:$8 sps:$4 sm:$0xff]  }
  0x26   : > { %461 = vmatprep.subr.bf16.mxu0 %v1347_v17  ;;  %730 = vmatpush1.bf16.msra.mxu1 %v1346_v18  ;;  %v1392_v47 = vld [vmem:[%s1571_s4 + $0x1b4] ss:$8 sps:$4 sm:$0xff]   ;;  %v1177_v48 = vld.sshfl [vmem:[%s1576_s7] sm:$0x11 pattern:$0x76325410] }
  0x27   : > { %731 = vmatprep.subr.bf16.mxu1 %v1350_v19  ;;  %v1391_v49 = vld [vmem:[%s1571_s4 + $0xb0] ss:$8 sps:$4 sm:$0xff]   ;;  %v290_v50 = vcombine.high %v1177_v48, %v1177_v48  ;;  %v1395_v51 = vld [vmem:[%s1571_s4 + $0xc4] ss:$8 sps:$4 sm:$0xff]   ;;  %v1397_v55 = vld [vmem:[%s1571_s4 + $0xc0] ss:$8 sps:$4 sm:$0xff]  }
  0x28   : > { %v1394_v52 = vld [vmem:[%s1571_s4 + $0x1b0] ss:$8 sps:$4 sm:$0xff]   ;;  %v1398_v54 = vld [vmem:[%s1571_s4 + $0x1c4] ss:$8 sps:$4 sm:$0xff]   ;;  %v1401_v56 = vld [vmem:[%s1571_s4 + $0xd4] ss:$8 sps:$4 sm:$0xff]  }
  0x29   : > { %462 = vmatpush1.bf16.msra.mxu0 %v1349_v20  ;;  %485 = vmatprep.mubr.bf16.mxu0 %v290_v50  ;;  %v559_v53 = vshrl.u32 %v290_v50, 16  ;;  %v1400_v57 = vld [vmem:[%s1571_s4 + $0x1c0] ss:$8 sps:$4 sm:$0xff]   ;;  %v1404_v58 = vld [vmem:[%s1571_s4 + $0x1d4] ss:$8 sps:$4 sm:$0xff]   ;;  %v556_v7 = vshrl.u32 %v1177_v48, 16 }
  0x2a   : > { %463 = vmatprep.subr.bf16.mxu0 %v1353_v21  ;;  %732 = vmatpush1.bf16.msra.mxu1 %v1352_v22  ;;  %v1403_v59 = vld [vmem:[%s1571_s4 + $0xd0] ss:$8 sps:$4 sm:$0xff]   ;;  %v1407_v60 = vld [vmem:[%s1571_s4 + $0xe4] ss:$8 sps:$4 sm:$0xff]   ;;  %v1409_v63 = vld [vmem:[%s1571_s4 + $0xe0] ss:$8 sps:$4 sm:$0xff]  }
  0x2b   : > { %733 = vmatprep.subr.bf16.mxu1 %v1356_v23  ;;  %755 = vmatprep.mubr.bf16.mxu1 %v559_v53  ;;  %v1406_v61 = vld [vmem:[%s1571_s4 + $0x1d0] ss:$8 sps:$4 sm:$0xff]   ;;  %v1410_v62 = vld [vmem:[%s1571_s4 + $0x1e4] ss:$8 sps:$4 sm:$0xff]   ;;  %v1413_v0 = vld [vmem:[%s1571_s4 + $0xf4] ss:$8 sps:$4 sm:$0xff]  }
  0x2c   : > { %v1412_v1 = vld [vmem:[%s1571_s4 + $0x1e0] ss:$8 sps:$4 sm:$0xff]   ;;  %v1416_v2 = vld [vmem:[%s1571_s4 + $0x1f4] ss:$8 sps:$4 sm:$0xff]   ;;  %v1415_v3 = vld [vmem:[%s1571_s4 + $0xf0] ss:$8 sps:$4 sm:$0xff]  }
  0x2d   : > { %464 = vmatpush1.bf16.msra.mxu0 %v1355_v24  ;;  %v1421_v4 = vld [vmem:[%s1571_s4 + $0x204] ss:$8 sps:$4 sm:$0xff]   ;;  %v1418_v5 = vld [vmem:[%s1571_s4 + $0x1f0] ss:$8 sps:$4 sm:$0xff]   ;;  %v1419_v6 = vld [vmem:[%s1571_s4 + $0x200] ss:$8 sps:$4 sm:$0xff]  }
  0x2e   : > { %465 = vmatprep.subr.bf16.mxu0 %v1359_v25  ;;  %734 = vmatpush1.bf16.msra.mxu1 %v1358_v26  ;;  %v1424_v8 = vld [vmem:[%s1571_s4 + $0x214] ss:$8 sps:$4 sm:$0xff]   ;;  %v1648_v9 = vld.sshfl [vmem:[%s1576_s7] sm:$0x22 pattern:$0x76325410] }
  0x2f   : > { %735 = vmatprep.subr.bf16.mxu1 %v1362_v27  ;;  %v824_v10 = vcombine.high %v1648_v9, %v1648_v9  ;;  %v1422_v11 = vld [vmem:[%s1571_s4 + $0x210] ss:$8 sps:$4 sm:$0xff]   ;;  %v1427_v12 = vld [vmem:[%s1571_s4 + $0x224] ss:$8 sps:$4 sm:$0xff]   ;;  %v1425_v14 = vld [vmem:[%s1571_s4 + $0x220] ss:$8 sps:$4 sm:$0xff]  }
  0x30   : > { %v1430_v15 = vld [vmem:[%s1571_s4 + $0x234] ss:$8 sps:$4 sm:$0xff]   ;;  %v1428_v16 = vld [vmem:[%s1571_s4 + $0x230] ss:$8 sps:$4 sm:$0xff]   ;;  %v1433_v17 = vld [vmem:[%s1571_s4 + $0x244] ss:$8 sps:$4 sm:$0xff]  }
  0x31   : > { %466 = vmatpush1.bf16.msra.mxu0 %v1361_v28  ;;  %v826_v13 = vrot.slane %v824_v10, 1  ;;  %v1431_v18 = vld [vmem:[%s1571_s4 + $0x240] ss:$8 sps:$4 sm:$0xff]   ;;  %v1436_v19 = vld [vmem:[%s1571_s4 + $0x254] ss:$8 sps:$4 sm:$0xff]   ;;  %p1276_p8 = scmp.ne.s32.totalorder %s1489_s12, 2 }
  0x32   : > { %467 = vmatprep.subr.bf16.mxu0 %v1365_v29  ;;  %736 = vmatpush1.bf16.msra.mxu1 %v1364_v30  ;;  %v1434_v20 = vld [vmem:[%s1571_s4 + $0x250] ss:$8 sps:$4 sm:$0xff]   ;;  %v1439_v21 = vld [vmem:[%s1571_s4 + $0x264] ss:$8 sps:$4 sm:$0xff]   ;;  %v1437_v22 = vld [vmem:[%s1571_s4 + $0x260] ss:$8 sps:$4 sm:$0xff]  }
  0x33   : > { %737 = vmatprep.subr.bf16.mxu1 %v1368_v31  ;;  %v1442_v23 = vld [vmem:[%s1571_s4 + $0x274] ss:$8 sps:$4 sm:$0xff]   ;;  %v1440_v24 = vld [vmem:[%s1571_s4 + $0x270] ss:$8 sps:$4 sm:$0xff]   ;;  %v1445_v25 = vld [vmem:[%s1571_s4 + $0x284] ss:$8 sps:$4 sm:$0xff]  }
  0x34   : > { %v1443_v26 = vld [vmem:[%s1571_s4 + $0x280] ss:$8 sps:$4 sm:$0xff]   ;;  %v1448_v27 = vld [vmem:[%s1571_s4 + $0x294] ss:$8 sps:$4 sm:$0xff]   ;;  %v1446_v28 = vld [vmem:[%s1571_s4 + $0x290] ss:$8 sps:$4 sm:$0xff]  }
  0x35   : > { %468 = vmatpush1.bf16.msra.mxu0 %v1367_v32  ;;  %v1451_v29 = vld [vmem:[%s1571_s4 + $0x2a4] ss:$8 sps:$4 sm:$0xff]   ;;  %v1449_v30 = vld [vmem:[%s1571_s4 + $0x2a0] ss:$8 sps:$4 sm:$0xff]   ;;  %v1454_v31 = vld [vmem:[%s1571_s4 + $0x2b4] ss:$8 sps:$4 sm:$0xff]  }
  0x36   : > { %469 = vmatprep.subr.bf16.mxu0 %v1371_v33  ;;  %738 = vmatpush1.bf16.msra.mxu1 %v1370_v34  ;;  %v1452_v32 = vld [vmem:[%s1571_s4 + $0x2b0] ss:$8 sps:$4 sm:$0xff]   ;;  %v1457_v33 = vld [vmem:[%s1571_s4 + $0x2c4] ss:$8 sps:$4 sm:$0xff]   ;;  %v1455_v34 = vld [vmem:[%s1571_s4 + $0x2c0] ss:$8 sps:$4 sm:$0xff]  }
  0x37   : > { %739 = vmatprep.subr.bf16.mxu1 %v1374_v35  ;;  %v1460_v35 = vld [vmem:[%s1571_s4 + $0x2d4] ss:$8 sps:$4 sm:$0xff]   ;;  %v1059_v10 = vld [vmem:[%s1704_s2] sm:$0x3] (!%p1276_p8) }
  0x39   : > { %470 = vmatpush1.bf16.msra.mxu0 %v1373_v36  ;;  %v1458_v36 = vld [vmem:[%s1571_s4 + $0x2d0] ss:$8 sps:$4 sm:$0xff]  }
  0x3a   : > { %471 = vmatprep.subr.bf16.mxu0 %v1377_v37  ;;  %740 = vmatpush1.bf16.msra.mxu1 %v1376_v38  ;;  %v1463_v37 = vld [vmem:[%s1571_s4 + $0x2e4] ss:$8 sps:$4 sm:$0xff]   ;;  %v1461_v38 = vld [vmem:[%s1571_s4 + $0x2e0] ss:$8 sps:$4 sm:$0xff]  }
  0x3b   : > { %741 = vmatprep.subr.bf16.mxu1 %v1380_v39  ;;  %v1466_v39 = vld [vmem:[%s1571_s4 + $0x2f4] ss:$8 sps:$4 sm:$0xff]  }
  0x3d   : > { %472 = vmatpush1.bf16.msra.mxu0 %v1379_v40  ;;  %v1464_v40 = vld [vmem:[%s1571_s4 + $0x2f0] ss:$8 sps:$4 sm:$0xff]  }
  0x3e   : > { %473 = vmatprep.subr.bf16.mxu0 %v1383_v41  ;;  %742 = vmatpush1.bf16.msra.mxu1 %v1382_v42  ;;  %v825_v41 = vrot.slane %v1648_v9, 1  ;;  %v1508_v42 = vmov 1966171168  }
  0x3f   : > { %743 = vmatprep.subr.bf16.mxu1 %v1386_v43  ;;  %v498_v43 = vunpack.c.l.s4 %v1508_v42 }
  0x41   : > { %474 = vmatpush1.bf16.msra.mxu0 %v1385_v44  ;;  %v500_v44 = vlaneseq }
  0x42   : > { %475 = vmatprep.subr.bf16.mxu0 %v1389_v45  ;;  %744 = vmatpush1.bf16.msra.mxu1 %v1388_v46  ;;  %v499_v45 = vunpack.c.0.s8 %v498_v43 }
  0x43   : > { %745 = vmatprep.subr.bf16.mxu1 %v1392_v47  ;;  %v501_v46 = vshrl.u32 %v500_v44, 7  ;;  %vm1051_vm1 = vcmp.lt.s32.totalorder %v500_v44, 256 }
  0x45   : > { %476 = vmatpush1.bf16.msra.mxu0 %v1391_v49 }
  0x46   : > { %477 = vmatprep.subr.bf16.mxu0 %v1395_v51  ;;  %746 = vmatpush1.bf16.msra.mxu1 %v1394_v52 }
  0x47   : > { %747 = vmatprep.subr.bf16.mxu1 %v1398_v54 }
  0x49   : > { %478 = vmatpush1.bf16.msra.mxu0 %v1397_v55 }
  0x4a   : > { %479 = vmatprep.subr.bf16.mxu0 %v1401_v56  ;;  %748 = vmatpush1.bf16.msra.mxu1 %v1400_v57 }
  0x4b   : > { %749 = vmatprep.subr.bf16.mxu1 %v1404_v58  ;;  %v248_v58 = vld [vmem:[#allocation2] sm:$0x3] }
  0x4d   : > { %480 = vmatpush1.bf16.msra.mxu0 %v1403_v59 }
  0x4e   : > { %481 = vmatprep.subr.bf16.mxu0 %v1407_v60  ;;  %750 = vmatpush1.bf16.msra.mxu1 %v1406_v61 }
  0x4f   : > { %751 = vmatprep.subr.bf16.mxu1 %v1410_v62 }
  0x51   : > { %482 = vmatpush1.bf16.msra.mxu0 %v1409_v63 }
  0x52   : > { %483 = vmatprep.subr.bf16.mxu0 %v1413_v0  ;;  %752 = vmatpush1.bf16.msra.mxu1 %v1412_v1 }
  0x53   : > { %753 = vmatprep.subr.bf16.mxu1 %v1416_v2 }
  0x55   : > { %484 = vmatpush1.bf16.msra.mxu0 %v1415_v3 }
  0x56   : > { %989 = vmatprep.subr.bf16.mxu0 %v1421_v4  ;;  %754 = vmatpush1.bf16.msra.mxu1 %v1418_v5 }
  0x58   : > { %486 = vmatmul.mubr.bf16.vlgmr.msra.gmra.mrb[0].mxu0 %v1177_v48  ;;  %v502_v48 = vsub.s32 %v499_v45, %v501_v46 }
  0x59   : > { %990 = vmatpush1.bf16.msra.mxu0 %v1419_v6  ;;  %756 = vmatmul.mubr.bf16.vlgmr.msra.gmra.mrb[0].mxu1 %v556_v7 }
  0x5a   : > { %991 = vmatprep.subr.bf16.mxu0 %v1424_v8  ;;  %1021 = vmatprep.mubr.bf16.mxu0 %v826_v13 }
  0x5d   : > { %992 = vmatpush1.bf16.msra.mxu0 %v1422_v11 }
  0x5e   : > { %993 = vmatprep.subr.bf16.mxu0 %v1427_v12 }
  0x61   : > { %994 = vmatpush1.bf16.msra.mxu0 %v1425_v14 }
  0x62   : > { %995 = vmatprep.subr.bf16.mxu0 %v1430_v15 }
  0x65   : > { %996 = vmatpush1.bf16.msra.mxu0 %v1428_v16 }
  0x66   : > { %997 = vmatprep.subr.bf16.mxu0 %v1433_v17 }
  0x69   : > { %998 = vmatpush1.bf16.msra.mxu0 %v1431_v18 }
  0x6a   : > { %999 = vmatprep.subr.bf16.mxu0 %v1436_v19 }
  0x6d   : > { %1000 = vmatpush1.bf16.msra.mxu0 %v1434_v20 }
  0x6e   : > { %1001 = vmatprep.subr.bf16.mxu0 %v1439_v21 }
  0x71   : > { %1002 = vmatpush1.bf16.msra.mxu0 %v1437_v22 }
  0x72   : > { %1003 = vmatprep.subr.bf16.mxu0 %v1442_v23 }
  0x75   : > { %1004 = vmatpush1.bf16.msra.mxu0 %v1440_v24 }
  0x76   : > { %1005 = vmatprep.subr.bf16.mxu0 %v1445_v25 }
  0x79   : > { %1006 = vmatpush1.bf16.msra.mxu0 %v1443_v26 }
  0x7a   : > { %1007 = vmatprep.subr.bf16.mxu0 %v1448_v27 }
  0x7d   : > { %1008 = vmatpush1.bf16.msra.mxu0 %v1446_v28 }
  0x7e   : > { %1009 = vmatprep.subr.bf16.mxu0 %v1451_v29 }
  0x81   : > { %1010 = vmatpush1.bf16.msra.mxu0 %v1449_v30 }
  0x82   : > { %1011 = vmatprep.subr.bf16.mxu0 %v1454_v31 }
  0x85   : > { %1012 = vmatpush1.bf16.msra.mxu0 %v1452_v32 }
  0x86   : > { %1013 = vmatprep.subr.bf16.mxu0 %v1457_v33 }
  0x89   : > { %1014 = vmatpush1.bf16.msra.mxu0 %v1455_v34 }
  0x8a   : > { %1015 = vmatprep.subr.bf16.mxu0 %v1460_v35 }
  0x8d   : > { %1016 = vmatpush1.bf16.msra.mxu0 %v1458_v36 }
  0x8e   : > { %1017 = vmatprep.subr.bf16.mxu0 %v1463_v37 }
  0x91   : > { %1018 = vmatpush1.bf16.msra.mxu0 %v1461_v38 }
  0x92   : > { %1019 = vmatprep.subr.bf16.mxu0 %v1466_v39 }
  0x95   : > { %1020 = vmatpush1.bf16.msra.mxu0 %v1464_v40 }
  0x98   : > { %1022 = vmatmul.mubr.bf16.vlgmr.msra.gmra.mrb[4].mxu0 %v825_v41 }
 0x12b   : > { %v487_v47 = vpop.f32.mrb[0].mxu0 }
 0x12c   : > { %v489_v49 = vpop.f32.mrb[1].mxu0  ;;  %v757_v52 = vpop.f32.mrb[0].mxu1 }
 0x12d   : > { %v496_v50 = vcombine.low %v487_v47, %v489_v49  ;;  %v491_v51 = vpop.f32.mrb[2].mxu0  ;;  %v759_v54 = vpop.f32.mrb[1].mxu1 }
 0x12e   : > { %v492_v53 = vpop.f32.mrb[3].mxu0  ;;  %v766_v56 = vcombine.low %v757_v52, %v759_v54  ;;  %v761_v57 = vpop.f32.mrb[2].mxu1 }
 0x12f   : > { %v503_v55 = vrot.slane %v496_v50, %v502_v48  ;;  %v762_v59 = vpop.f32.mrb[3].mxu1 }
 0x130   : > { %v773_v61 = vrot.slane %v766_v56, %v502_v48 }
 0x131   : > { %v510_v60 = vrot.slane %v503_v55, %v502_v48 }
 0x132   : > { %v780_v63 = vrot.slane %v773_v61, %v502_v48 }
 0x133   : > { %v512_v62 = vadd.f32 %v510_v60, %v248_v58 }
 0x135   : > { %v782_v0 = vadd.f32 %v780_v63, %v512_v62 }
 0x16b   : > { %v1023_v1 = vpop.f32.mrb[4].mxu0 }
 0x16c   : > { %v1025_v2 = vpop.f32.mrb[5].mxu0 }
 0x16d   : > { %v1032_v3 = vcombine.low %v1023_v1, %v1025_v2  ;;  %v1027_v4 = vpop.f32.mrb[6].mxu0 }
 0x16e   : > { %v1028_v5 = vpop.f32.mrb[7].mxu0 }
 0x16f   : > { %v1039_v6 = vrot.slane %v1032_v3, %v502_v48  ;;  %1057 = sbr.rel (%p1276_p8) target bundleno = 386 (0x182), region = 40 }
 0x171   : > { %v1046_v7 = vrot.slane %v1039_v6, %v502_v48 }
 0x173   : > { %v1048_v8 = vadd.f32 %v1046_v7, %v782_v0 }
 0x175   : > { %1053 = vst.msk [vmem:[#allocation2] sm:$0x3] %vm1051_vm1, %v1048_v8 }
 0x17c   : > { %v1058_v9 = vld [vmem:[#allocation2] sm:$0x3] }
 0x17d   : > { %v1060_v11 = vadd.f32 %v1059_v10, %v1058_v9 }
 0x17f   : > { %v1061_v12 = vmax.f32 %v1060_v11, 0.0 }
 0x181   : > { %1062 = vst.msk [vmem:[%s1566_s27] sm:$0x3] %vm1051_vm1, %v1061_v12 }
 0x182 PF: > { %s13_s16 = sadd.s32 1, %s1505_s16   ;;  %s1706_s12 = smov %s1497_s14 }
 0x183   : > { %p10_p9 = scmp.ge.s32.totalorder %s13_s16, 8   ;;  %s1707_s13 = smov %s1501_s15 }
 0x184   : > { %s1708_s14 = smov %s1711_s17  ;;  %s1709_s15 = smov %s1715_s18 }
 0x185   :  { %12 = sbr.rel (!%p10_p9) target bundleno = 3 (0x3), region = 73 }

// kernel: alexnet_forward.17
= control target key start
LH: loop header
LB: loop body
LE: loop exit
PB: predicated region body
PF: predicated region fallthrough
CT: control target
= control target key end

     0   :  { %v22_v20 = vlaneseq  ;;  %vm286_vm0 = vcmask 1041409   ;;  %s1391_s0 = inlined_call_operand.vmem [shape: f32[2,1,1024], index: 0, kind: input, shape index: {}]   ;;  %s1392_s1 = inlined_call_operand.vmem [shape: bf16[1024,128], index: 1, kind: input, shape index: {}]   ;;  %s1393_s2 = inlined_call_operand.vmem [shape: f32[1,128], index: 2, kind: input, shape index: {}]   ;;  %s1394_s3 = inlined_call_operand.hbm [shape: f32[2,128], index: 3, kind: output, shape index: {}]  }
   0x1   :  { %v1031_v0 = vld [vmem:[%s1392_s1 + $0x40] sm:$0xff]   ;;  %v1035_v4 = vld [vmem:[%s1392_s1 + $0x48] sm:$0xff]   ;;  %v1039_v8 = vld [vmem:[%s1392_s1 + $0x50] sm:$0xff]  }
   0x2   :  { %v1032_v1 = vld [vmem:[%s1392_s1 + $0xc0] sm:$0xff]   ;;  %942 = vmatprep.subr.bf16.mxu0 %v1031_v0  ;;  %v1036_v5 = vld [vmem:[%s1392_s1 + $0xc8] sm:$0xff]   ;;  %v1040_v9 = vld [vmem:[%s1392_s1 + $0xd0] sm:$0xff]   ;;  %v1212_v25 = vshrl.u32 %v22_v20, 7 }
   0x3   :  { %v1033_v2 = vld [vmem:[%s1392_s1] sm:$0xff]   ;;  %964 = vmatprep.subr.bf16.mxu1 %v1032_v1  ;;  %v1037_v6 = vld [vmem:[%s1392_s1 + $0x8] sm:$0xff]   ;;  %v1041_v10 = vld [vmem:[%s1392_s1 + $0x10] sm:$0xff]  }
   0x4   :  { %v1034_v3 = vld [vmem:[%s1392_s1 + $0x80] sm:$0xff]   ;;  %943 = vmatpush3.bf16.msra.mxu0 %v1033_v2  ;;  %v1038_v7 = vld [vmem:[%s1392_s1 + $0x88] sm:$0xff]   ;;  %v1042_v11 = vld [vmem:[%s1392_s1 + $0x90] sm:$0xff]   ;;  %v28_v30 = vsub.s32 1, %v1212_v25  ;;  %v36_v32 = vsub.s32 3, %v1212_v25  ;;  %v24_v34 = vsub.s32 0, %v1212_v25 }
   0x5   :  { %965 = vmatpush3.bf16.msra.mxu1 %v1034_v3  ;;  %944 = vmatprep.subr.bf16.mxu0 %v1035_v4  ;;  %v1043_v12 = vld [vmem:[%s1392_s1 + $0x58] sm:$0xff]   ;;  %v1047_v16 = vld [vmem:[%s1392_s1 + $0x60] sm:$0xff]   ;;  %v1051_v21 = vld [vmem:[%s1392_s1 + $0x68] sm:$0xff]   ;;  %v32_v36 = vsub.s32 2, %v1212_v25  ;;  %v44_v40 = vsub.s32 5, %v1212_v25  ;;  %v52_v41 = vsub.s32 7, %v1212_v25 }
   0x6   :  { %966 = vmatprep.subr.bf16.mxu1 %v1036_v5  ;;  %v1044_v13 = vld [vmem:[%s1392_s1 + $0xd8] sm:$0xff]   ;;  %v1048_v17 = vld [vmem:[%s1392_s1 + $0xe0] sm:$0xff]   ;;  %v1052_v22 = vld [vmem:[%s1392_s1 + $0xe8] sm:$0xff]  }
   0x7   :  { %v1045_v14 = vld [vmem:[%s1392_s1 + $0x18] sm:$0xff]   ;;  %v1049_v18 = vld [vmem:[%s1392_s1 + $0x20] sm:$0xff]   ;;  %v1053_v23 = vld [vmem:[%s1392_s1 + $0x28] sm:$0xff]  }
   0x8   :  { %945 = vmatpush3.bf16.msra.mxu0 %v1037_v6  ;;  %v1046_v15 = vld [vmem:[%s1392_s1 + $0x98] sm:$0xff]   ;;  %v1050_v19 = vld [vmem:[%s1392_s1 + $0xa0] sm:$0xff]   ;;  %v1054_v24 = vld [vmem:[%s1392_s1 + $0xa8] sm:$0xff]  }
   0x9   :  { %967 = vmatpush3.bf16.msra.mxu1 %v1038_v7  ;;  %946 = vmatprep.subr.bf16.mxu0 %v1039_v8  ;;  %v1055_v26 = vld [vmem:[%s1392_s1 + $0x70] sm:$0xff]   ;;  %v1059_v31 = vld [vmem:[%s1392_s1 + $0x78] sm:$0xff]   ;;  %v1245_v38 = vld [vmem:[%s1391_s0] sm:$0xff] }
   0xa   :  { %968 = vmatprep.subr.bf16.mxu1 %v1040_v9  ;;  %v1056_v27 = vld [vmem:[%s1392_s1 + $0xf0] sm:$0xff]   ;;  %v1060_v33 = vld [vmem:[%s1392_s1 + $0xf8] sm:$0xff]   ;;  %v1250_v39 = vld [vmem:[%s1391_s0 + $0x8] sm:$0xff]  ;;  %v29_v42 = vrot.slane %v1245_v38, %v28_v30  ;;  %v37_v44 = vrot.slane %v1245_v38, %v36_v32  ;;  %v25_v47 = vrot.slane %v1245_v38, %v24_v34  ;;  %v33_v49 = vrot.slane %v1245_v38, %v32_v36 }
   0xb   :  { %v1057_v28 = vld [vmem:[%s1392_s1 + $0x30] sm:$0xff]   ;;  %v1061_v35 = vld [vmem:[%s1392_s1 + $0x38] sm:$0xff]   ;;  %v61_v43 = vrot.slane %v1250_v39, %v28_v30  ;;  %v69_v45 = vrot.slane %v1250_v39, %v36_v32  ;;  %v1063_v46 = vld [vmem:[%s1392_s1 + $0x140] sm:$0xff]   ;;  %v57_v48 = vrot.slane %v1250_v39, %v24_v34  ;;  %v65_v50 = vrot.slane %v1250_v39, %v32_v36 }
   0xc   :  { %947 = vmatpush3.bf16.msra.mxu0 %v1041_v10  ;;  %v1058_v29 = vld [vmem:[%s1392_s1 + $0xb0] sm:$0xff]   ;;  %v1062_v37 = vld [vmem:[%s1392_s1 + $0xb8] sm:$0xff]   ;;  %v1064_v51 = vld [vmem:[%s1392_s1 + $0x1c0] sm:$0xff]   ;;  %v103_v52 = vpack.c.bf16 %v29_v42, %v29_v42  ;;  %v105_v54 = vpack.c.bf16 %v37_v44, %v37_v44  ;;  %v102_v56 = vpack.c.bf16 %v25_v47, %v25_v47  ;;  %v104_v58 = vpack.c.bf16 %v33_v49, %v33_v49 }
   0xd   :  { %969 = vmatpush3.bf16.msra.mxu1 %v1042_v11  ;;  %948 = vmatprep.subr.bf16.mxu0 %v1043_v12  ;;  %v111_v53 = vpack.c.bf16 %v61_v43, %v61_v43  ;;  %v113_v55 = vpack.c.bf16 %v69_v45, %v69_v45  ;;  %v110_v57 = vpack.c.bf16 %v57_v48, %v57_v48  ;;  %v1065_v10 = vld [vmem:[%s1392_s1 + $0x100] sm:$0xff]   ;;  %v1070_v32 = vld [vmem:[%s1392_s1 + $0x188] sm:$0xff]   ;;  %v1071_v34 = vld [vmem:[%s1392_s1 + $0x150] sm:$0xff]   ;;  %v40_v45 = vsub.s32 4, %v1212_v25 }
   0xe   :  { %970 = vmatprep.subr.bf16.mxu1 %v1044_v13  ;;  %v112_v59 = vpack.c.bf16 %v65_v50, %v65_v50  ;;  %v270_v60 = vunpack.c.l.b16 %v103_v52  ;;  %v272_v62 = vunpack.c.l.b16 %v105_v54  ;;  %v269_v0 = vunpack.c.l.b16 %v102_v56  ;;  %v1074_v44 = vld [vmem:[%s1392_s1 + $0x190] sm:$0xff]   ;;  %v1076_v49 = vld [vmem:[%s1392_s1 + $0x1d8] sm:$0xff]   ;;  %v1081_v56 = vld [vmem:[%s1392_s1 + $0x120] sm:$0xff]  }
   0xf   :  { %v278_v61 = vunpack.c.l.b16 %v111_v53  ;;  %v280_v63 = vunpack.c.l.b16 %v113_v55  ;;  %v277_v1 = vunpack.c.l.b16 %v110_v57  ;;  %v271_v2 = vunpack.c.l.b16 %v104_v58  ;;  %v1078_v52 = vld [vmem:[%s1392_s1 + $0x198] sm:$0xff]   ;;  %v1080_v55 = vld [vmem:[%s1392_s1 + $0x1e0] sm:$0xff]  }
  0x10   :  { %949 = vmatpush3.bf16.msra.mxu0 %v1045_v14  ;;  %v279_v3 = vunpack.c.l.b16 %v112_v59  ;;  %v45_v6 = vrot.slane %v1245_v38, %v44_v40  ;;  %v77_v7 = vrot.slane %v1250_v39, %v44_v40  ;;  %v53_v11 = vrot.slane %v1245_v38, %v52_v41  ;;  %v1082_v57 = vld [vmem:[%s1392_s1 + $0x1a0] sm:$0xff]  }
  0x11   :  { %971 = vmatpush3.bf16.msra.mxu1 %v1046_v15  ;;  %950 = vmatprep.subr.bf16.mxu0 %v1047_v16  ;;  %v288_v4 = vrot.slane %v278_v61, 7  ;;  %v292_v5 = vrot.slane %v280_v63, 7  ;;  %v285_v8 = vrot.slane %v277_v1, 7  ;;  %v85_v12 = vrot.slane %v1250_v39, %v52_v41  ;;  %v1066_v15 = vld [vmem:[%s1392_s1 + $0x180] sm:$0xff]   ;;  %v1073_v41 = vld [vmem:[%s1392_s1 + $0x110] sm:$0xff]   ;;  %v1085_v63 = vld [vmem:[%s1392_s1 + $0x128] sm:$0xff]  }
  0x12   :  { %972 = vmatprep.subr.bf16.mxu1 %v1048_v17  ;;  %v290_v9 = vrot.slane %v279_v3, 7  ;;  %v107_v16 = vpack.c.bf16 %v45_v6, %v45_v6  ;;  %v115_v17 = vpack.c.bf16 %v77_v7, %v77_v7  ;;  %v109_v30 = vpack.c.bf16 %v53_v11, %v53_v11 }
  0x13   :  { %v289_v13 = vsel %vm286_vm0, %v288_v4, %v270_v60  ;;  %v293_v14 = vsel %vm286_vm0, %v292_v5, %v272_v62  ;;  %v287_v20 = vsel %vm286_vm0, %v285_v8, %v269_v0  ;;  %v48_v48 = vsub.s32 6, %v1212_v25  ;;  %v1079_v25 = vld [vmem:[%s1392_s1 + $0x160] sm:$0xff]   ;;  %v1084_v62 = vld [vmem:[%s1392_s1 + $0x1e8] sm:$0xff]   ;;  %v1088_v5 = vld [vmem:[%s1392_s1 + $0x1f0] sm:$0xff]  }
  0x14   :  { %951 = vmatpush3.bf16.msra.mxu0 %v1049_v18  ;;  %v303_v18 = vpack.c.b16 %v289_v13, %v289_v13  ;;  %v73_v53 = vrot.slane %v1250_v39, %v40_v45  ;;  %v41_v58 = vrot.slane %v1245_v38, %v40_v45  ;;  %v1086_v0 = vld [vmem:[%s1392_s1 + $0x1a8] sm:$0xff]  }
  0x15   :  { %973 = vmatpush3.bf16.msra.mxu1 %v1050_v19  ;;  %952 = vmatprep.subr.bf16.mxu0 %v1051_v21  ;;  %v305_v19 = vpack.c.b16 %v293_v14, %v293_v14  ;;  %v291_v21 = vsel %vm286_vm0, %v290_v9, %v271_v2  ;;  %v81_v54 = vrot.slane %v1250_v39, %v48_v48  ;;  %v1083_v39 = vld [vmem:[%s1392_s1 + $0x168] sm:$0xff]  }
  0x16   :  { %974 = vmatprep.subr.bf16.mxu1 %v1052_v22  ;;  %v1067_v22 = vld [vmem:[%s1392_s1 + $0x148] sm:$0xff]   ;;  %734 = vmatprep.mubr.bf16.mxu0 %v303_v18  ;;  %v114_v59 = vpack.c.bf16 %v73_v53, %v73_v53  ;;  %v49_v60 = vrot.slane %v1245_v38, %v48_v48  ;;  %v1087_v38 = vld [vmem:[%s1392_s1 + $0x170] sm:$0xff]   ;;  %v106_v1 = vpack.c.bf16 %v41_v58, %v41_v58 }
  0x17   :  { %774 = vmatprep.mubr.bf16.mxu1 %v305_v19  ;;  %v116_v61 = vpack.c.bf16 %v81_v54, %v81_v54 }
  0x18   :  { %953 = vmatpush3.bf16.msra.mxu0 %v1053_v23  ;;  %v302_v23 = vpack.c.b16 %v287_v20, %v287_v20  ;;  %v281_v2 = vunpack.c.l.b16 %v114_v59  ;;  %v108_v3 = vpack.c.bf16 %v49_v60, %v49_v60 }
  0x19   :  { %975 = vmatpush3.bf16.msra.mxu1 %v1054_v24  ;;  %954 = vmatprep.subr.bf16.mxu0 %v1055_v26  ;;  %v304_v24 = vpack.c.b16 %v291_v21, %v291_v21  ;;  %v1068_v26 = vld [vmem:[%s1392_s1 + $0x1c8] sm:$0xff]   ;;  %v283_v4 = vunpack.c.l.b16 %v116_v61 }
  0x1a   :  { %976 = vmatprep.subr.bf16.mxu1 %v1056_v27  ;;  %v274_v27 = vunpack.c.l.b16 %v107_v16 }
  0x1c   :  { %955 = vmatpush3.bf16.msra.mxu0 %v1057_v28  ;;  %v282_v28 = vunpack.c.l.b16 %v115_v17 }
  0x1d   :  { %977 = vmatpush3.bf16.msra.mxu1 %v1058_v29  ;;  %956 = vmatprep.subr.bf16.mxu0 %v1059_v31  ;;  %v1069_v29 = vld [vmem:[%s1392_s1 + $0x108] sm:$0xff]   ;;  %v117_v31 = vpack.c.bf16 %v85_v12, %v85_v12 }
  0x1e   :  { %978 = vmatprep.subr.bf16.mxu1 %v1060_v33  ;;  %v296_v33 = vrot.slane %v282_v28, 7 }
  0x1f   :  { %v284_v36 = vunpack.c.l.b16 %v117_v31 }
  0x20   :  { %957 = vmatpush3.bf16.msra.mxu0 %v1061_v35  ;;  %v276_v35 = vunpack.c.l.b16 %v109_v30  ;;  %v297_v40 = vsel %vm286_vm0, %v296_v33, %v274_v27 }
  0x21   :  { %979 = vmatpush3.bf16.msra.mxu1 %v1062_v37  ;;  %986 = vmatprep.subr.bf16.mxu0 %v1063_v46  ;;  %v1072_v37 = vld [vmem:[%s1392_s1 + $0x1d0] sm:$0xff]   ;;  %v307_v42 = vpack.c.b16 %v297_v40, %v297_v40  ;;  %v300_v43 = vrot.slane %v284_v36, 7  ;;  %v1075_v46 = vld [vmem:[%s1392_s1 + $0x158] sm:$0xff]  }
  0x22   :  { %1008 = vmatprep.subr.bf16.mxu1 %v1064_v51  ;;  %v1077_v51 = vld [vmem:[%s1392_s1 + $0x118] sm:$0xff]  }
  0x23   :  { %735 = vmatmul.mubr.bf16.vlgmr.msra.gmra.mrb[0].mxu0 %v302_v23  ;;  %v301_v47 = vsel %vm286_vm0, %v300_v43, %v276_v35 }
  0x24   :  { %775 = vmatmul.mubr.bf16.vlgmr.msra.gmra.mrb[0].mxu1 %v304_v24  ;;  %987 = vmatpush3.bf16.msra.mxu0 %v1065_v10  ;;  %v309_v50 = vpack.c.b16 %v301_v47, %v301_v47 }
  0x25   :  { %1009 = vmatpush3.bf16.msra.mxu1 %v1066_v15  ;;  %988 = vmatprep.subr.bf16.mxu0 %v1067_v22 }
  0x26   :  { %1010 = vmatprep.subr.bf16.mxu1 %v1068_v26  ;;  %814 = vmatprep.mubr.bf16.mxu0 %v307_v42 }
  0x27   :  { %854 = vmatprep.mubr.bf16.mxu1 %v309_v50 }
  0x28   :  { %989 = vmatpush3.bf16.msra.mxu0 %v1069_v29 }
  0x29   :  { %1011 = vmatpush3.bf16.msra.mxu1 %v1070_v32  ;;  %990 = vmatprep.subr.bf16.mxu0 %v1071_v34 }
  0x2a   :  { %1012 = vmatprep.subr.bf16.mxu1 %v1072_v37 }
  0x2c   :  { %991 = vmatpush3.bf16.msra.mxu0 %v1073_v41 }
  0x2d   :  { %1013 = vmatpush3.bf16.msra.mxu1 %v1074_v44  ;;  %992 = vmatprep.subr.bf16.mxu0 %v1075_v46 }
  0x2e   :  { %1014 = vmatprep.subr.bf16.mxu1 %v1076_v49 }
  0x30   :  { %993 = vmatpush3.bf16.msra.mxu0 %v1077_v51 }
  0x31   :  { %1015 = vmatpush3.bf16.msra.mxu1 %v1078_v52  ;;  %994 = vmatprep.subr.bf16.mxu0 %v1079_v25 }
  0x32   :  { %1016 = vmatprep.subr.bf16.mxu1 %v1080_v55 }
  0x34   :  { %995 = vmatpush3.bf16.msra.mxu0 %v1081_v56 }
  0x35   :  { %1017 = vmatpush3.bf16.msra.mxu1 %v1082_v57  ;;  %996 = vmatprep.subr.bf16.mxu0 %v1083_v39 }
  0x36   :  { %1018 = vmatprep.subr.bf16.mxu1 %v1084_v62 }
  0x37   :  { %8 = vsyncpa [#allocation3], 0  ;;  %v1089_v6 = vld [vmem:[%s1392_s1 + $0x130] sm:$0xff]   ;;  %v273_v8 = vunpack.c.l.b16 %v106_v1  ;;  %v294_v9 = vrot.slane %v281_v2, 7  ;;  %v275_v10 = vunpack.c.l.b16 %v108_v3  ;;  %v298_v11 = vrot.slane %v283_v4, 7  ;;  %v1091_v12 = vld [vmem:[%s1392_s1 + $0x178] sm:$0xff]  }
  0x38   :  { %997 = vmatpush3.bf16.msra.mxu0 %v1085_v63  ;;  %v1090_v7 = vld [vmem:[%s1392_s1 + $0x1b0] sm:$0xff]   ;;  %v1092_v13 = vld [vmem:[%s1392_s1 + $0x1f8] sm:$0xff]   ;;  %v877_v22 = vld [vmem:[%s1393_s2] ss:$0 sm:$0xff] }
  0x39   :  { %1019 = vmatpush3.bf16.msra.mxu1 %v1086_v0  ;;  %998 = vmatprep.subr.bf16.mxu0 %v1087_v38  ;;  %v1093_v14 = vld [vmem:[%s1392_s1 + $0x138] sm:$0xff]   ;;  %v295_v16 = vsel %vm286_vm0, %v294_v9, %v273_v8  ;;  %v299_v17 = vsel %vm286_vm0, %v298_v11, %v275_v10 }
  0x3a   :  { %1020 = vmatprep.subr.bf16.mxu1 %v1088_v5  ;;  %v1094_v15 = vld [vmem:[%s1392_s1 + $0x1b8] sm:$0xff]   ;;  %v306_v18 = vpack.c.b16 %v295_v16, %v295_v16  ;;  %v308_v19 = vpack.c.b16 %v299_v17, %v299_v17  ;;  %s1119_s1 = smov [#allocation2]  }
  0x3b   :  { %s869_s2 = sshll.u32 %s1119_s1, 4  ;;  %s870_s2 = int_to_ptr.vmem [resolvable:$true] %s869_s2 }
  0x3c   :  { %999 = vmatpush3.bf16.msra.mxu0 %v1089_v6  ;;  %s1095_s8 = scalar_lea.vmem %s870_s2, 32  ;;  %p1100_p1 = scmp.lt.s32.totalorder %s870_s2, %s870_s2 }
  0x3d   :  { %1021 = vmatpush3.bf16.msra.mxu1 %v1090_v7  ;;  %1000 = vmatprep.subr.bf16.mxu0 %v1091_v12  ;;  %p1096_p0 = scmp.ne.s32.totalorder %s870_s2, %s1095_s8  ;;  %p1101_p2 = scmp.lt.s32.totalorder %s1095_s8, %s1095_s8 }
  0x3e   :  { %1022 = vmatprep.subr.bf16.mxu1 %v1092_v13 }
  0x3f   :  { %p1102_p3 = por %p1101_p2, %p1100_p1 }
  0x40   :  { %1001 = vmatpush3.bf16.msra.mxu0 %v1093_v14 }
  0x41   :  { %1023 = vmatpush3.bf16.msra.mxu1 %v1094_v15  ;;  %p1103_p4 = pnand %p1102_p3, %p1096_p0 }
  0x43   :  { %815 = vmatmul.mubr.bf16.vlgmr.msra.gmra.mrb[4].mxu0 %v306_v18 }
  0x44   :  { %855 = vmatmul.mubr.bf16.vlgmr.msra.gmra.mrb[4].mxu1 %v308_v19 }
  0xf6   :  { %v958_v20 = vpop.f32.mrb[0].mxu0 }
  0xf7   :  { %v980_v21 = vpop.f32.mrb[0].mxu1  ;;  %v959_v23 = vpop.f32.mrb[1].mxu0 }
  0xf8   :  { %v981_v24 = vpop.f32.mrb[1].mxu1  ;;  %v960_v26 = vadd.f32 %v959_v23, %v958_v20  ;;  %v961_v28 = vpop.f32.mrb[2].mxu0 }
  0xf9   :  { %v982_v27 = vadd.f32 %v981_v24, %v980_v21  ;;  %v983_v29 = vpop.f32.mrb[2].mxu1  ;;  %v962_v30 = vpop.f32.mrb[3].mxu0 }
  0xfa   :  { %v984_v31 = vpop.f32.mrb[3].mxu1  ;;  %v737_v32 = vadd.f32 %v960_v26, %v877_v22 }
  0xfc   :  { %v777_v33 = vadd.f32 %v982_v27, %v737_v32 }
 0x116   :  { %v1002_v34 = vpop.f32.mrb[4].mxu0 }
 0x117   :  { %v1024_v35 = vpop.f32.mrb[4].mxu1  ;;  %v1003_v36 = vpop.f32.mrb[5].mxu0 }
 0x118   :  { %v1025_v37 = vpop.f32.mrb[5].mxu1  ;;  %v1004_v40 = vadd.f32 %v1003_v36, %v1002_v34  ;;  %v1005_v42 = vpop.f32.mrb[6].mxu0 }
 0x119   :  { %v1026_v41 = vadd.f32 %v1025_v37, %v1024_v35  ;;  %v1027_v43 = vpop.f32.mrb[6].mxu1  ;;  %v1006_v44 = vpop.f32.mrb[7].mxu0 }
 0x11a   :  { %v1028_v45 = vpop.f32.mrb[7].mxu1  ;;  %v817_v46 = vadd.f32 %v1004_v40, %v777_v33 }
 0x11c   :  { %v857_v47 = vadd.f32 %v1026_v41, %v817_v46 }
 0x11e   :  { %862 = vst [vmem:[#allocation2] sm:$0x3] %v857_v47 }
 0x11f   :  { %1106 = shalt.err (!%p1103_p4)
}
 0x120   :  { %s1107_s11 = scalar_lea.hbm %s1394_s3, 32 }
 0x121   :  { %p1108_p5 = scmp.ne.s32.totalorder %s1394_s3, %s1107_s11  ;;  %p1111_p6 = scmp.lt.u32.totalorder %s1107_s11, %s1394_s3 }
 0x123   :  { %p1113_p7 = pnand %p1111_p6, %p1108_p5 }
 0x125   :  { %1116 = shalt.err (!%p1113_p7)
}
 0x126   :  { %872 = dma.vmem_to_hbm [thread:$0]  %s870_s2, 32, %s1394_s3, [#allocation3]  }
 0x127   :  { %1117 = dma.done.wait [#allocation3], 32  }
 0x128   :  { %1118 = vsyncadd [#allocation3], 4294967264 }
 0x129   :  { %876 = vsyncpa [#allocation3], 1 }

// kernel: alexnet_forward.16
= control target key start
LH: loop header
LB: loop body
LE: loop exit
PB: predicated region body
PF: predicated region fallthrough
CT: control target
= control target key end

     0   :  { %s3883_s12 = smov 0   ;;  %s3885_s13 = smov 0   ;;  %s4422_s0 = inlined_call_operand.vmem [shape: bf16[2,3,3,256], index: 0, kind: input, shape index: {}]   ;;  %s4423_s1 = inlined_call_operand.vmem [shape: bf16[3,768,1024], index: 1, kind: input, shape index: {}]   ;;  %s4424_s2 = inlined_call_operand.vmem [shape: f32[1,1024], index: 2, kind: input, shape index: {}]   ;;  %s4425_s3 = inlined_call_operand.vmem [shape: f32[2,1,1,1024], index: 3, kind: output, shape index: {}]  }
   0x1   :  { %s3887_s14 = smov 0   ;;  %s3889_s15 = smov 0  }
   0x2   :  { %s3891_s16 = smov 0  }
   0x3 LB: > { %s25_s17 = sadd.s32 1, %s3851_s14  ;;  %s32_s18 = sadd.s32 1, %s3855_s15  ;;  %s3859_s16 = sphi %s3891_s16, %s13_s16   ;;  %s3855_s15 = sphi %s3889_s15, %s4429_s15   ;;  %s3851_s14 = sphi %s3887_s14, %s4428_s14   ;;  %s3847_s13 = sphi %s3885_s13, %s4427_s13   ;;  %s3843_s12 = sphi %s3883_s12, %s4426_s12  }
   0x4   : > { %p26_p0 = scmp.ge.s32.totalorder %s25_s17, 3  ;;  %p3380_p1 = scmp.ge.s32.totalorder %s3859_s16, 1 }
   0x5   : > { %p178_p2 = scmp.lt.s32.totalorder %s3859_s16, 7 }
   0x6   : > { %s4431_s17 = smov (%p26_p0, %s25_s17), 0  ;;  %s4433_s18 = smov (!%p26_p0, %s32_s18), %s3855_s15 }
   0x7   : > { %p179_p3 = pnand %p3380_p1, %p178_p2  ;;  %p34_p4 = scmp.ge.s32.totalorder %s4433_s18, 2 }
   0x8   : > { %p216_p5 = scmp.lt.s32.totalorder (!%p179_p3), %s3847_s13, 1  ;;  %p218_p6 = scmp.lt.s32.totalorder (!%p179_p3), %s3843_s12, 2 }
   0x9   : > { %s4435_s18 = smov (%p34_p4, %s4433_s18), 0  ;;  %182 = sbr.rel (%p179_p3) target bundleno = 649 (0x289), region = 32 }
   0xa   : > { %p3385_p7 = scmp.ne.s32.totalorder (!%p179_p3), %s3843_s12, 0 }
  0x10   : > { %s4437_s13 = smov (!%p216_p5, %s3847_s13), 1  ;;  %242 = sbr.rel (%p3385_p7) target bundleno = 23 (0x17), region = 36 }
  0x11   : > { %s219_s19 = scalar_select %p218_p6, %s3843_s12, 2 }
  0x12   : > { %s3776_s20 = smul.u32 6, %s4437_s13  ;;  %s3384_s21 = sshll.u32 %s4437_s13, 3  ;;  %v3861_v0 = vmov (!%p3385_p7), 0.0  }
  0x13   : > { %s3381_s22 = sshll.u32 %s219_s19, 1  ;;  %s3777_s23 = smul.u32 3072, %s219_s19  ;;  %243 = vst [vmem:[#allocation2] sm:$0xff] (!%p3385_p7), %v3861_v0 }
  0x14   : > { %s222_s24 = sadd.s32 %s3776_s20, %s3381_s22  ;;  %s3920_s27 = scalar_lea.vmem %s4425_s3, %s3384_s21 }
  0x15   : > { %s3382_s28 = sshll.u32 %s222_s24, 1  ;;  %s3925_s4 = scalar_lea.vmem %s4423_s1, %s3777_s23 }
  0x16   : > { %s3930_s7 = scalar_lea.vmem %s4422_s0, %s3382_s28 }
  0x17 PF: > { %v246_v1 = vld [vmem:[%s3925_s4] sm:$0xff]  ;;  %v247_v3 = vld [vmem:[%s3925_s4 + $0x8] sm:$0xff]  ;;  %p3773_p8 = scmp.ne.s32.totalorder %s3843_s12, 2 }
  0x18   : > { %v250_v2 = vld [vmem:[%s3925_s4 + $0x20] sm:$0xff]  ;;  %v251_v5 = vld [vmem:[%s3925_s4 + $0x28] sm:$0xff] }
  0x19   : > { %v3388_v4 = vcombine.high %v246_v1, %v250_v2  ;;  %v3387_v6 = vcombine.low %v246_v1, %v250_v2  ;;  %v254_v7 = vld [vmem:[%s3925_s4 + $0x40] sm:$0xff]  ;;  %v3390_v9 = vcombine.high %v247_v3, %v251_v5  ;;  %v3389_v10 = vcombine.low %v247_v3, %v251_v5  ;;  %v255_v12 = vld [vmem:[%s3925_s4 + $0x48] sm:$0xff] }
  0x1a   : > { %v258_v8 = vld [vmem:[%s3925_s4 + $0x60] sm:$0xff]  ;;  %v259_v13 = vld [vmem:[%s3925_s4 + $0x68] sm:$0xff] }
  0x1b   : > { %v3396_v11 = vcombine.high %v254_v7, %v258_v8  ;;  %v262_v14 = vld [vmem:[%s3925_s4 + $0x80] sm:$0xff]  ;;  %1025 = vmatprep.subr.bf16.mxu0 %v3388_v4  ;;  %v3398_v15 = vcombine.high %v255_v12, %v259_v13  ;;  %v263_v17 = vld [vmem:[%s3925_s4 + $0x88] sm:$0xff]  ;;  %1066 = vmatprep.subr.bf16.mxu1 %v3390_v9  ;;  %v3395_v19 = vcombine.low %v254_v7, %v258_v8 }
  0x1c   : > { %v266_v16 = vld [vmem:[%s3925_s4 + $0xa0] sm:$0xff]  ;;  %v267_v18 = vld [vmem:[%s3925_s4 + $0xa8] sm:$0xff]  ;;  %1026 = vmatpush1.bf16.msra.mxu0 %v3387_v6  ;;  %1067 = vmatpush1.bf16.msra.mxu1 %v3389_v10  ;;  %v3397_v20 = vcombine.low %v255_v12, %v259_v13 }
  0x1d   : > { %1027 = vmatprep.subr.bf16.mxu0 %v3396_v11  ;;  %v3404_v21 = vcombine.high %v262_v14, %v266_v16  ;;  %1068 = vmatprep.subr.bf16.mxu1 %v3398_v15  ;;  %v3406_v22 = vcombine.high %v263_v17, %v267_v18  ;;  %v270_v23 = vld [vmem:[%s3925_s4 + $0xc0] sm:$0xff]  ;;  %v271_v25 = vld [vmem:[%s3925_s4 + $0xc8] sm:$0xff]  ;;  %v3403_v27 = vcombine.low %v262_v14, %v266_v16 }
  0x1e   : > { %v274_v24 = vld [vmem:[%s3925_s4 + $0xe0] sm:$0xff]  ;;  %v275_v26 = vld [vmem:[%s3925_s4 + $0xe8] sm:$0xff]  ;;  %v3405_v28 = vcombine.low %v263_v17, %v267_v18 }
  0x1f   : > { %v3412_v29 = vcombine.high %v270_v23, %v274_v24  ;;  %v3414_v30 = vcombine.high %v271_v25, %v275_v26  ;;  %v278_v31 = vld [vmem:[%s3925_s4 + $0x100] sm:$0xff]  ;;  %v279_v33 = vld [vmem:[%s3925_s4 + $0x108] sm:$0xff]  ;;  %v3411_v35 = vcombine.low %v270_v23, %v274_v24  ;;  %v3413_v36 = vcombine.low %v271_v25, %v275_v26 }
  0x20   : > { %1028 = vmatpush1.bf16.msra.mxu0 %v3395_v19  ;;  %1069 = vmatpush1.bf16.msra.mxu1 %v3397_v20  ;;  %v282_v32 = vld [vmem:[%s3925_s4 + $0x120] sm:$0xff]  ;;  %v283_v34 = vld [vmem:[%s3925_s4 + $0x128] sm:$0xff] }
  0x21   : > { %1029 = vmatprep.subr.bf16.mxu0 %v3404_v21  ;;  %1070 = vmatprep.subr.bf16.mxu1 %v3406_v22  ;;  %v3420_v37 = vcombine.high %v278_v31, %v282_v32  ;;  %v3422_v38 = vcombine.high %v279_v33, %v283_v34  ;;  %v286_v39 = vld [vmem:[%s3925_s4 + $0x140] sm:$0xff]  ;;  %v287_v41 = vld [vmem:[%s3925_s4 + $0x148] sm:$0xff]  ;;  %v3419_v43 = vcombine.low %v278_v31, %v282_v32 }
  0x22   : > { %v290_v40 = vld [vmem:[%s3925_s4 + $0x160] sm:$0xff]  ;;  %v291_v42 = vld [vmem:[%s3925_s4 + $0x168] sm:$0xff]  ;;  %v3421_v44 = vcombine.low %v279_v33, %v283_v34 }
  0x23   : > { %v3428_v45 = vcombine.high %v286_v39, %v290_v40  ;;  %v3430_v46 = vcombine.high %v287_v41, %v291_v42  ;;  %v294_v47 = vld [vmem:[%s3925_s4 + $0x180] sm:$0xff]  ;;  %v295_v49 = vld [vmem:[%s3925_s4 + $0x188] sm:$0xff]  ;;  %v3427_v51 = vcombine.low %v286_v39, %v290_v40  ;;  %v3429_v52 = vcombine.low %v287_v41, %v291_v42 }
  0x24   : > { %1030 = vmatpush1.bf16.msra.mxu0 %v3403_v27  ;;  %1071 = vmatpush1.bf16.msra.mxu1 %v3405_v28  ;;  %v298_v48 = vld [vmem:[%s3925_s4 + $0x1a0] sm:$0xff]  ;;  %v299_v50 = vld [vmem:[%s3925_s4 + $0x1a8] sm:$0xff] }
  0x25   : > { %1031 = vmatprep.subr.bf16.mxu0 %v3412_v29  ;;  %1072 = vmatprep.subr.bf16.mxu1 %v3414_v30  ;;  %v3436_v53 = vcombine.high %v294_v47, %v298_v48  ;;  %v3962_v54 = vld.sshfl [vmem:[%s3930_s7] sm:$0x11 pattern:$0x76325410]  ;;  %v3438_v55 = vcombine.high %v295_v49, %v299_v50  ;;  %v303_v59 = vld [vmem:[%s3925_s4 + $0x1c8] sm:$0xff]  ;;  %v3435_v61 = vcombine.low %v294_v47, %v298_v48 }
  0x26   : > { %v302_v56 = vld [vmem:[%s3925_s4 + $0x1c0] sm:$0xff]  ;;  %v3968_v58 = vcombine.high %v3962_v54, %v3962_v54  ;;  %v307_v60 = vld [vmem:[%s3925_s4 + $0x1e8] sm:$0xff]  ;;  %v3437_v62 = vcombine.low %v295_v49, %v299_v50 }
  0x27   : > { %v306_v57 = vld [vmem:[%s3925_s4 + $0x1e0] sm:$0xff]  ;;  %v3446_v0 = vcombine.high %v303_v59, %v307_v60  ;;  %v311_v3 = vld [vmem:[%s3925_s4 + $0x208] sm:$0xff]  ;;  %v3445_v6 = vcombine.low %v303_v59, %v307_v60 }
  0x28   : > { %1032 = vmatpush1.bf16.msra.mxu0 %v3411_v35  ;;  %1073 = vmatpush1.bf16.msra.mxu1 %v3413_v36  ;;  %v3444_v63 = vcombine.high %v302_v56, %v306_v57  ;;  %v310_v1 = vld [vmem:[%s3925_s4 + $0x200] sm:$0xff]  ;;  %v315_v4 = vld [vmem:[%s3925_s4 + $0x228] sm:$0xff]  ;;  %v3443_v5 = vcombine.low %v302_v56, %v306_v57 }
  0x29   : > { %1033 = vmatprep.subr.bf16.mxu0 %v3420_v37  ;;  %1074 = vmatprep.subr.bf16.mxu1 %v3422_v38  ;;  %v314_v2 = vld [vmem:[%s3925_s4 + $0x220] sm:$0xff]  ;;  %v3454_v8 = vcombine.high %v311_v3, %v315_v4  ;;  %v319_v11 = vld [vmem:[%s3925_s4 + $0x248] sm:$0xff]  ;;  %v3453_v14 = vcombine.low %v311_v3, %v315_v4  ;;  %v248_v3 = vld [vmem:[%s3925_s4 + $0x10] sm:$0xff] }
  0x2a   : > { %1057 = vmatprep.mubr.bf16.mxu0 %v3968_v58  ;;  %1098 = vmatprep.mubr.bf16.mxu1 %v3968_v58  ;;  %v3452_v7 = vcombine.high %v310_v1, %v314_v2  ;;  %v318_v9 = vld [vmem:[%s3925_s4 + $0x240] sm:$0xff]  ;;  %v323_v12 = vld [vmem:[%s3925_s4 + $0x268] sm:$0xff]  ;;  %v3451_v13 = vcombine.low %v310_v1, %v314_v2  ;;  %v252_v4 = vld [vmem:[%s3925_s4 + $0x30] sm:$0xff] }
  0x2b   : > { %v322_v10 = vld [vmem:[%s3925_s4 + $0x260] sm:$0xff]  ;;  %v3462_v16 = vcombine.high %v319_v11, %v323_v12  ;;  %v327_v19 = vld [vmem:[%s3925_s4 + $0x288] sm:$0xff]  ;;  %v3461_v22 = vcombine.low %v319_v11, %v323_v12  ;;  %v256_v11 = vld [vmem:[%s3925_s4 + $0x50] sm:$0xff] }
  0x2c   : > { %1034 = vmatpush1.bf16.msra.mxu0 %v3419_v43  ;;  %1075 = vmatpush1.bf16.msra.mxu1 %v3421_v44  ;;  %v3460_v15 = vcombine.high %v318_v9, %v322_v10  ;;  %v326_v17 = vld [vmem:[%s3925_s4 + $0x280] sm:$0xff]  ;;  %v331_v20 = vld [vmem:[%s3925_s4 + $0x2a8] sm:$0xff]  ;;  %v3459_v21 = vcombine.low %v318_v9, %v322_v10  ;;  %v3392_v9 = vcombine.high %v248_v3, %v252_v4  ;;  %v260_v12 = vld [vmem:[%s3925_s4 + $0x70] sm:$0xff] }
  0x2d   : > { %1035 = vmatprep.subr.bf16.mxu0 %v3428_v45  ;;  %1076 = vmatprep.subr.bf16.mxu1 %v3430_v46  ;;  %v330_v18 = vld [vmem:[%s3925_s4 + $0x2a0] sm:$0xff]  ;;  %v3470_v24 = vcombine.high %v327_v19, %v331_v20  ;;  %v335_v27 = vld [vmem:[%s3925_s4 + $0x2c8] sm:$0xff]  ;;  %v3469_v30 = vcombine.low %v327_v19, %v331_v20  ;;  %v264_v19 = vld [vmem:[%s3925_s4 + $0x90] sm:$0xff] }
  0x2e   : > { %v3468_v23 = vcombine.high %v326_v17, %v330_v18  ;;  %v334_v25 = vld [vmem:[%s3925_s4 + $0x2c0] sm:$0xff]  ;;  %v339_v28 = vld [vmem:[%s3925_s4 + $0x2e8] sm:$0xff]  ;;  %v3467_v29 = vcombine.low %v326_v17, %v330_v18  ;;  %v3400_v17 = vcombine.high %v256_v11, %v260_v12  ;;  %v268_v20 = vld [vmem:[%s3925_s4 + $0xb0] sm:$0xff] }
  0x2f   : > { %v338_v26 = vld [vmem:[%s3925_s4 + $0x2e0] sm:$0xff]  ;;  %v3478_v32 = vcombine.high %v335_v27, %v339_v28  ;;  %v343_v35 = vld [vmem:[%s3925_s4 + $0x308] sm:$0xff]  ;;  %v3477_v38 = vcombine.low %v335_v27, %v339_v28  ;;  %v272_v27 = vld [vmem:[%s3925_s4 + $0xd0] sm:$0xff] }
  0x30   : > { %1036 = vmatpush1.bf16.msra.mxu0 %v3427_v51  ;;  %1077 = vmatpush1.bf16.msra.mxu1 %v3429_v52  ;;  %v3476_v31 = vcombine.high %v334_v25, %v338_v26  ;;  %v342_v33 = vld [vmem:[%s3925_s4 + $0x300] sm:$0xff]  ;;  %v347_v36 = vld [vmem:[%s3925_s4 + $0x328] sm:$0xff]  ;;  %v3475_v37 = vcombine.low %v334_v25, %v338_v26  ;;  %v3408_v25 = vcombine.high %v264_v19, %v268_v20  ;;  %v276_v28 = vld [vmem:[%s3925_s4 + $0xf0] sm:$0xff] }
  0x31   : > { %1037 = vmatprep.subr.bf16.mxu0 %v3436_v53  ;;  %1078 = vmatprep.subr.bf16.mxu1 %v3438_v55  ;;  %v346_v34 = vld [vmem:[%s3925_s4 + $0x320] sm:$0xff]  ;;  %v3486_v40 = vcombine.high %v343_v35, %v347_v36  ;;  %v351_v43 = vld [vmem:[%s3925_s4 + $0x348] sm:$0xff]  ;;  %v3485_v46 = vcombine.low %v343_v35, %v347_v36  ;;  %v280_v35 = vld [vmem:[%s3925_s4 + $0x110] sm:$0xff] }
  0x32   : > { %v3484_v39 = vcombine.high %v342_v33, %v346_v34  ;;  %v350_v41 = vld [vmem:[%s3925_s4 + $0x340] sm:$0xff]  ;;  %v355_v44 = vld [vmem:[%s3925_s4 + $0x368] sm:$0xff]  ;;  %v3483_v45 = vcombine.low %v342_v33, %v346_v34  ;;  %v3416_v33 = vcombine.high %v272_v27, %v276_v28  ;;  %v284_v36 = vld [vmem:[%s3925_s4 + $0x130] sm:$0xff] }
  0x33   : > { %v354_v42 = vld [vmem:[%s3925_s4 + $0x360] sm:$0xff]  ;;  %v3494_v48 = vcombine.high %v351_v43, %v355_v44  ;;  %v359_v51 = vld [vmem:[%s3925_s4 + $0x388] sm:$0xff]  ;;  %v3493_v55 = vcombine.low %v351_v43, %v355_v44  ;;  %v288_v43 = vld [vmem:[%s3925_s4 + $0x150] sm:$0xff] }
  0x34   : > { %1038 = vmatpush1.bf16.msra.mxu0 %v3435_v61  ;;  %1079 = vmatpush1.bf16.msra.mxu1 %v3437_v62  ;;  %v3492_v47 = vcombine.high %v350_v41, %v354_v42  ;;  %v358_v49 = vld [vmem:[%s3925_s4 + $0x380] sm:$0xff]  ;;  %v363_v52 = vld [vmem:[%s3925_s4 + $0x3a8] sm:$0xff]  ;;  %v3491_v53 = vcombine.low %v350_v41, %v354_v42  ;;  %v3424_v41 = vcombine.high %v280_v35, %v284_v36  ;;  %v292_v44 = vld [vmem:[%s3925_s4 + $0x170] sm:$0xff] }
  0x35   : > { %1039 = vmatprep.subr.bf16.mxu0 %v3444_v63  ;;  %1080 = vmatprep.subr.bf16.mxu1 %v3446_v0  ;;  %v362_v50 = vld [vmem:[%s3925_s4 + $0x3a0] sm:$0xff]  ;;  %v3502_v57 = vcombine.high %v359_v51, %v363_v52  ;;  %v367_v61 = vld [vmem:[%s3925_s4 + $0x3c8] sm:$0xff]  ;;  %v3501_v0 = vcombine.low %v359_v51, %v363_v52  ;;  %v296_v51 = vld [vmem:[%s3925_s4 + $0x190] sm:$0xff] }
  0x36   : > { %v3500_v56 = vcombine.high %v358_v49, %v362_v50  ;;  %v366_v59 = vld [vmem:[%s3925_s4 + $0x3c0] sm:$0xff]  ;;  %v371_v62 = vld [vmem:[%s3925_s4 + $0x3e8] sm:$0xff]  ;;  %v3499_v63 = vcombine.low %v358_v49, %v362_v50  ;;  %v3432_v49 = vcombine.high %v288_v43, %v292_v44  ;;  %v300_v52 = vld [vmem:[%s3925_s4 + $0x1b0] sm:$0xff] }
  0x37   : > { %v370_v60 = vld [vmem:[%s3925_s4 + $0x3e0] sm:$0xff]  ;;  %v3510_v2 = vcombine.high %v367_v61, %v371_v62 }
  0x38   : > { %1040 = vmatpush1.bf16.msra.mxu0 %v3443_v5  ;;  %1081 = vmatpush1.bf16.msra.mxu1 %v3445_v6  ;;  %v3508_v1 = vcombine.high %v366_v59, %v370_v60  ;;  %v249_v5 = vld [vmem:[%s3925_s4 + $0x18] sm:$0xff] }
  0x39   : > { %1041 = vmatprep.subr.bf16.mxu0 %v3452_v7  ;;  %1082 = vmatprep.subr.bf16.mxu1 %v3454_v8  ;;  %v253_v6 = vld [vmem:[%s3925_s4 + $0x38] sm:$0xff]  ;;  %v3507_v7 = vcombine.low %v366_v59, %v370_v60  ;;  %v3509_v8 = vcombine.low %v367_v61, %v371_v62  ;;  %v3440_v59 = vcombine.high %v296_v51, %v300_v52  ;;  %v304_v61 = vld [vmem:[%s3925_s4 + $0x1d0] sm:$0xff] }
  0x3a   : > { %v3394_v10 = vcombine.high %v249_v5, %v253_v6  ;;  %v308_v62 = vld [vmem:[%s3925_s4 + $0x1f0] sm:$0xff] }
  0x3c   : > { %1042 = vmatpush1.bf16.msra.mxu0 %v3451_v13  ;;  %1083 = vmatpush1.bf16.msra.mxu1 %v3453_v14  ;;  %v257_v13 = vld [vmem:[%s3925_s4 + $0x58] sm:$0xff] }
  0x3d   : > { %1043 = vmatprep.subr.bf16.mxu0 %v3460_v15  ;;  %1084 = vmatprep.subr.bf16.mxu1 %v3462_v16  ;;  %v261_v14 = vld [vmem:[%s3925_s4 + $0x78] sm:$0xff]  ;;  %v3391_v15 = vcombine.low %v248_v3, %v252_v4  ;;  %v3393_v16 = vcombine.low %v249_v5, %v253_v6  ;;  %v3448_v3 = vcombine.high %v304_v61, %v308_v62  ;;  %v312_v5 = vld [vmem:[%s3925_s4 + $0x210] sm:$0xff] }
  0x3e   : > { %v3402_v18 = vcombine.high %v257_v13, %v261_v14  ;;  %v316_v6 = vld [vmem:[%s3925_s4 + $0x230] sm:$0xff] }
  0x40   : > { %1044 = vmatpush1.bf16.msra.mxu0 %v3459_v21  ;;  %1085 = vmatpush1.bf16.msra.mxu1 %v3461_v22  ;;  %v265_v21 = vld [vmem:[%s3925_s4 + $0x98] sm:$0xff] }
  0x41   : > { %1045 = vmatprep.subr.bf16.mxu0 %v3468_v23  ;;  %1086 = vmatprep.subr.bf16.mxu1 %v3470_v24  ;;  %v269_v22 = vld [vmem:[%s3925_s4 + $0xb8] sm:$0xff]  ;;  %v3399_v23 = vcombine.low %v256_v11, %v260_v12  ;;  %v3401_v24 = vcombine.low %v257_v13, %v261_v14  ;;  %v3456_v11 = vcombine.high %v312_v5, %v316_v6  ;;  %v320_v13 = vld [vmem:[%s3925_s4 + $0x250] sm:$0xff] }
  0x42   : > { %v3410_v26 = vcombine.high %v265_v21, %v269_v22  ;;  %v324_v14 = vld [vmem:[%s3925_s4 + $0x270] sm:$0xff] }
  0x44   : > { %1046 = vmatpush1.bf16.msra.mxu0 %v3467_v29  ;;  %1087 = vmatpush1.bf16.msra.mxu1 %v3469_v30  ;;  %v273_v29 = vld [vmem:[%s3925_s4 + $0xd8] sm:$0xff] }
  0x45   : > { %1047 = vmatprep.subr.bf16.mxu0 %v3476_v31  ;;  %1088 = vmatprep.subr.bf16.mxu1 %v3478_v32  ;;  %v277_v30 = vld [vmem:[%s3925_s4 + $0xf8] sm:$0xff]  ;;  %v3407_v31 = vcombine.low %v264_v19, %v268_v20  ;;  %v3409_v32 = vcombine.low %v265_v21, %v269_v22  ;;  %v3464_v19 = vcombine.high %v320_v13, %v324_v14  ;;  %v328_v21 = vld [vmem:[%s3925_s4 + $0x290] sm:$0xff] }
  0x46   : > { %v3418_v34 = vcombine.high %v273_v29, %v277_v30  ;;  %v332_v22 = vld [vmem:[%s3925_s4 + $0x2b0] sm:$0xff] }
  0x48   : > { %1048 = vmatpush1.bf16.msra.mxu0 %v3475_v37  ;;  %1089 = vmatpush1.bf16.msra.mxu1 %v3477_v38  ;;  %v281_v37 = vld [vmem:[%s3925_s4 + $0x118] sm:$0xff] }
  0x49   : > { %1049 = vmatprep.subr.bf16.mxu0 %v3484_v39  ;;  %1090 = vmatprep.subr.bf16.mxu1 %v3486_v40  ;;  %v285_v38 = vld [vmem:[%s3925_s4 + $0x138] sm:$0xff]  ;;  %v3415_v39 = vcombine.low %v272_v27, %v276_v28  ;;  %v3417_v40 = vcombine.low %v273_v29, %v277_v30  ;;  %v3472_v27 = vcombine.high %v328_v21, %v332_v22  ;;  %v336_v29 = vld [vmem:[%s3925_s4 + $0x2d0] sm:$0xff] }
  0x4a   : > { %v3426_v42 = vcombine.high %v281_v37, %v285_v38  ;;  %v340_v30 = vld [vmem:[%s3925_s4 + $0x2f0] sm:$0xff] }
  0x4c   : > { %1050 = vmatpush1.bf16.msra.mxu0 %v3483_v45  ;;  %1091 = vmatpush1.bf16.msra.mxu1 %v3485_v46  ;;  %v289_v45 = vld [vmem:[%s3925_s4 + $0x158] sm:$0xff] }
  0x4d   : > { %1051 = vmatprep.subr.bf16.mxu0 %v3492_v47  ;;  %1092 = vmatprep.subr.bf16.mxu1 %v3494_v48  ;;  %v293_v46 = vld [vmem:[%s3925_s4 + $0x178] sm:$0xff]  ;;  %v3423_v47 = vcombine.low %v280_v35, %v284_v36  ;;  %v3425_v48 = vcombine.low %v281_v37, %v285_v38  ;;  %v3480_v35 = vcombine.high %v336_v29, %v340_v30  ;;  %v344_v37 = vld [vmem:[%s3925_s4 + $0x310] sm:$0xff] }
  0x4e   : > { %v3434_v50 = vcombine.high %v289_v45, %v293_v46  ;;  %v348_v38 = vld [vmem:[%s3925_s4 + $0x330] sm:$0xff] }
  0x50   : > { %1052 = vmatpush1.bf16.msra.mxu0 %v3491_v53  ;;  %1093 = vmatpush1.bf16.msra.mxu1 %v3493_v55  ;;  %v297_v53 = vld [vmem:[%s3925_s4 + $0x198] sm:$0xff] }
  0x51   : > { %1053 = vmatprep.subr.bf16.mxu0 %v3500_v56  ;;  %1094 = vmatprep.subr.bf16.mxu1 %v3502_v57  ;;  %v301_v55 = vld [vmem:[%s3925_s4 + $0x1b8] sm:$0xff]  ;;  %v3431_v56 = vcombine.low %v288_v43, %v292_v44  ;;  %v3433_v57 = vcombine.low %v289_v45, %v293_v46  ;;  %v3488_v43 = vcombine.high %v344_v37, %v348_v38  ;;  %v352_v45 = vld [vmem:[%s3925_s4 + $0x350] sm:$0xff] }
  0x52   : > { %v3442_v60 = vcombine.high %v297_v53, %v301_v55  ;;  %v356_v46 = vld [vmem:[%s3925_s4 + $0x370] sm:$0xff] }
  0x54   : > { %1054 = vmatpush1.bf16.msra.mxu0 %v3499_v63  ;;  %1095 = vmatpush1.bf16.msra.mxu1 %v3501_v0  ;;  %v305_v63 = vld [vmem:[%s3925_s4 + $0x1d8] sm:$0xff] }
  0x55   : > { %1055 = vmatprep.subr.bf16.mxu0 %v3508_v1  ;;  %1096 = vmatprep.subr.bf16.mxu1 %v3510_v2  ;;  %v309_v0 = vld [vmem:[%s3925_s4 + $0x1f8] sm:$0xff]  ;;  %v3439_v1 = vcombine.low %v296_v51, %v300_v52  ;;  %v3441_v2 = vcombine.low %v297_v53, %v301_v55  ;;  %v3496_v51 = vcombine.high %v352_v45, %v356_v46  ;;  %v360_v53 = vld [vmem:[%s3925_s4 + $0x390] sm:$0xff] }
  0x56   : > { %v3450_v4 = vcombine.high %v305_v63, %v309_v0  ;;  %v364_v55 = vld [vmem:[%s3925_s4 + $0x3b0] sm:$0xff] }
  0x58   : > { %1056 = vmatpush1.bf16.msra.mxu0 %v3507_v7  ;;  %1097 = vmatpush1.bf16.msra.mxu1 %v3509_v8  ;;  %v313_v7 = vld [vmem:[%s3925_s4 + $0x218] sm:$0xff] }
  0x59   : > { %1107 = vmatprep.subr.bf16.mxu0 %v3392_v9  ;;  %1148 = vmatprep.subr.bf16.mxu1 %v3394_v10  ;;  %v317_v8 = vld [vmem:[%s3925_s4 + $0x238] sm:$0xff]  ;;  %v3447_v9 = vcombine.low %v304_v61, %v308_v62  ;;  %v3449_v10 = vcombine.low %v305_v63, %v309_v0  ;;  %v3504_v61 = vcombine.high %v360_v53, %v364_v55  ;;  %v368_v63 = vld [vmem:[%s3925_s4 + $0x3d0] sm:$0xff] }
  0x5a   : > { %v3458_v12 = vcombine.high %v313_v7, %v317_v8  ;;  %v372_v0 = vld [vmem:[%s3925_s4 + $0x3f0] sm:$0xff] }
  0x5b   : > { %1058 = vmatmul.mubr.bf16.vlgmr.msra.gmra.mrb[0].mxu0 %v3962_v54  ;;  %1099 = vmatmul.mubr.bf16.vlgmr.msra.gmra.mrb[0].mxu1 %v3962_v54 }
  0x5c   : > { %1108 = vmatpush1.bf16.msra.mxu0 %v3391_v15  ;;  %1149 = vmatpush1.bf16.msra.mxu1 %v3393_v16  ;;  %v321_v15 = vld [vmem:[%s3925_s4 + $0x258] sm:$0xff] }
  0x5d   : > { %1109 = vmatprep.subr.bf16.mxu0 %v3400_v17  ;;  %1150 = vmatprep.subr.bf16.mxu1 %v3402_v18  ;;  %v325_v16 = vld [vmem:[%s3925_s4 + $0x278] sm:$0xff]  ;;  %v3455_v17 = vcombine.low %v312_v5, %v316_v6  ;;  %v3457_v18 = vcombine.low %v313_v7, %v317_v8  ;;  %v3512_v5 = vcombine.high %v368_v63, %v372_v0  ;;  %v1249_v7 = vld [vmem:[%s3925_s4 + $0x400] sm:$0xff] }
  0x5e   : > { %1139 = vmatprep.mubr.bf16.mxu0 %v3968_v58  ;;  %1180 = vmatprep.mubr.bf16.mxu1 %v3968_v58  ;;  %v3466_v20 = vcombine.high %v321_v15, %v325_v16  ;;  %v1253_v8 = vld [vmem:[%s3925_s4 + $0x420] sm:$0xff] }
  0x60   : > { %1110 = vmatpush1.bf16.msra.mxu0 %v3399_v23  ;;  %1151 = vmatpush1.bf16.msra.mxu1 %v3401_v24  ;;  %v329_v23 = vld [vmem:[%s3925_s4 + $0x298] sm:$0xff] }
  0x61   : > { %1111 = vmatprep.subr.bf16.mxu0 %v3408_v25  ;;  %1152 = vmatprep.subr.bf16.mxu1 %v3410_v26  ;;  %v333_v24 = vld [vmem:[%s3925_s4 + $0x2b8] sm:$0xff]  ;;  %v3463_v25 = vcombine.low %v320_v13, %v324_v14  ;;  %v3465_v26 = vcombine.low %v321_v15, %v325_v16  ;;  %v3517_v13 = vcombine.high %v1249_v7, %v1253_v8  ;;  %v1257_v15 = vld [vmem:[%s3925_s4 + $0x440] sm:$0xff] }
  0x62   : > { %v3474_v28 = vcombine.high %v329_v23, %v333_v24  ;;  %v1261_v16 = vld [vmem:[%s3925_s4 + $0x460] sm:$0xff] }
  0x64   : > { %1112 = vmatpush1.bf16.msra.mxu0 %v3407_v31  ;;  %1153 = vmatpush1.bf16.msra.mxu1 %v3409_v32  ;;  %v337_v31 = vld [vmem:[%s3925_s4 + $0x2d8] sm:$0xff] }
  0x65   : > { %1113 = vmatprep.subr.bf16.mxu0 %v3416_v33  ;;  %1154 = vmatprep.subr.bf16.mxu1 %v3418_v34  ;;  %v341_v32 = vld [vmem:[%s3925_s4 + $0x2f8] sm:$0xff]  ;;  %v3471_v33 = vcombine.low %v328_v21, %v332_v22  ;;  %v3473_v34 = vcombine.low %v329_v23, %v333_v24  ;;  %v3525_v21 = vcombine.high %v1257_v15, %v1261_v16  ;;  %v1265_v23 = vld [vmem:[%s3925_s4 + $0x480] sm:$0xff] }
  0x66   : > { %v3482_v36 = vcombine.high %v337_v31, %v341_v32  ;;  %v1269_v24 = vld [vmem:[%s3925_s4 + $0x4a0] sm:$0xff] }
  0x68   : > { %1114 = vmatpush1.bf16.msra.mxu0 %v3415_v39  ;;  %1155 = vmatpush1.bf16.msra.mxu1 %v3417_v40  ;;  %v345_v39 = vld [vmem:[%s3925_s4 + $0x318] sm:$0xff] }
  0x69   : > { %1115 = vmatprep.subr.bf16.mxu0 %v3424_v41  ;;  %1156 = vmatprep.subr.bf16.mxu1 %v3426_v42  ;;  %v349_v40 = vld [vmem:[%s3925_s4 + $0x338] sm:$0xff]  ;;  %v3479_v41 = vcombine.low %v336_v29, %v340_v30  ;;  %v3481_v42 = vcombine.low %v337_v31, %v341_v32  ;;  %v3533_v30 = vcombine.high %v1265_v23, %v1269_v24  ;;  %v1277_v32 = vld [vmem:[%s3925_s4 + $0x4e0] sm:$0xff] }
  0x6a   : > { %v3490_v44 = vcombine.high %v345_v39, %v349_v40 }
  0x6c   : > { %1116 = vmatpush1.bf16.msra.mxu0 %v3423_v47  ;;  %1157 = vmatpush1.bf16.msra.mxu1 %v3425_v48  ;;  %v353_v47 = vld [vmem:[%s3925_s4 + $0x358] sm:$0xff] }
  0x6d   : > { %1117 = vmatprep.subr.bf16.mxu0 %v3432_v49  ;;  %1158 = vmatprep.subr.bf16.mxu1 %v3434_v50  ;;  %v357_v48 = vld [vmem:[%s3925_s4 + $0x378] sm:$0xff]  ;;  %v3487_v49 = vcombine.low %v344_v37, %v348_v38  ;;  %v3489_v50 = vcombine.low %v345_v39, %v349_v40  ;;  %v1281_v38 = vld [vmem:[%s3925_s4 + $0x500] sm:$0xff]  ;;  %v1282_v40 = vld [vmem:[%s3925_s4 + $0x508] sm:$0xff] }
  0x6e   : > { %v3498_v52 = vcombine.high %v353_v47, %v357_v48  ;;  %v1285_v39 = vld [vmem:[%s3925_s4 + $0x520] sm:$0xff] }
  0x70   : > { %1118 = vmatpush1.bf16.msra.mxu0 %v3431_v56  ;;  %1159 = vmatpush1.bf16.msra.mxu1 %v3433_v57  ;;  %v361_v56 = vld [vmem:[%s3925_s4 + $0x398] sm:$0xff] }
  0x71   : > { %1119 = vmatprep.subr.bf16.mxu0 %v3440_v59  ;;  %1160 = vmatprep.subr.bf16.mxu1 %v3442_v60  ;;  %v365_v57 = vld [vmem:[%s3925_s4 + $0x3b8] sm:$0xff]  ;;  %v3495_v59 = vcombine.low %v352_v45, %v356_v46  ;;  %v3497_v60 = vcombine.low %v353_v47, %v357_v48  ;;  %v1289_v46 = vld [vmem:[%s3925_s4 + $0x540] sm:$0xff]  ;;  %v1290_v48 = vld [vmem:[%s3925_s4 + $0x548] sm:$0xff] }
  0x72   : > { %v3506_v62 = vcombine.high %v361_v56, %v365_v57  ;;  %v1293_v47 = vld [vmem:[%s3925_s4 + $0x560] sm:$0xff] }
  0x74   : > { %1120 = vmatpush1.bf16.msra.mxu0 %v3439_v1  ;;  %1161 = vmatpush1.bf16.msra.mxu1 %v3441_v2  ;;  %v369_v1 = vld [vmem:[%s3925_s4 + $0x3d8] sm:$0xff] }
  0x75   : > { %1121 = vmatprep.subr.bf16.mxu0 %v3448_v3  ;;  %1162 = vmatprep.subr.bf16.mxu1 %v3450_v4  ;;  %v373_v2 = vld [vmem:[%s3925_s4 + $0x3f8] sm:$0xff]  ;;  %v3503_v3 = vcombine.low %v360_v53, %v364_v55  ;;  %v3505_v4 = vcombine.low %v361_v56, %v365_v57  ;;  %v1297_v55 = vld [vmem:[%s3925_s4 + $0x580] sm:$0xff]  ;;  %v1298_v57 = vld [vmem:[%s3925_s4 + $0x588] sm:$0xff] }
  0x76   : > { %v3514_v6 = vcombine.high %v369_v1, %v373_v2  ;;  %v1301_v56 = vld [vmem:[%s3925_s4 + $0x5a0] sm:$0xff] }
  0x78   : > { %1122 = vmatpush1.bf16.msra.mxu0 %v3447_v9  ;;  %1163 = vmatpush1.bf16.msra.mxu1 %v3449_v10  ;;  %v1250_v9 = vld [vmem:[%s3925_s4 + $0x408] sm:$0xff] }
  0x79   : > { %1123 = vmatprep.subr.bf16.mxu0 %v3456_v11  ;;  %1164 = vmatprep.subr.bf16.mxu1 %v3458_v12  ;;  %v1254_v10 = vld [vmem:[%s3925_s4 + $0x428] sm:$0xff]  ;;  %v3511_v11 = vcombine.low %v368_v63, %v372_v0  ;;  %v3513_v12 = vcombine.low %v369_v1, %v373_v2  ;;  %v1305_v0 = vld [vmem:[%s3925_s4 + $0x5c0] sm:$0xff] }
  0x7a   : > { %v3519_v14 = vcombine.high %v1250_v9, %v1254_v10  ;;  %v1309_v1 = vld [vmem:[%s3925_s4 + $0x5e0] sm:$0xff]  ;;  %v1306_v2 = vld [vmem:[%s3925_s4 + $0x5c8] sm:$0xff] }
  0x7c   : > { %1124 = vmatpush1.bf16.msra.mxu0 %v3455_v17  ;;  %1165 = vmatpush1.bf16.msra.mxu1 %v3457_v18  ;;  %v1258_v17 = vld [vmem:[%s3925_s4 + $0x448] sm:$0xff] }
  0x7d   : > { %1125 = vmatprep.subr.bf16.mxu0 %v3464_v19  ;;  %1166 = vmatprep.subr.bf16.mxu1 %v3466_v20  ;;  %v1262_v18 = vld [vmem:[%s3925_s4 + $0x468] sm:$0xff]  ;;  %v3516_v19 = vcombine.low %v1249_v7, %v1253_v8  ;;  %v3518_v20 = vcombine.low %v1250_v9, %v1254_v10  ;;  %v1313_v8 = vld [vmem:[%s3925_s4 + $0x600] sm:$0xff] }
  0x7e   : > { %v3527_v22 = vcombine.high %v1258_v17, %v1262_v18  ;;  %v3526_v29 = vcombine.low %v1258_v17, %v1262_v18  ;;  %v1317_v9 = vld [vmem:[%s3925_s4 + $0x620] sm:$0xff]  ;;  %v1314_v10 = vld [vmem:[%s3925_s4 + $0x608] sm:$0xff] }
  0x7f   : > { %v1325_v17 = vld [vmem:[%s3925_s4 + $0x660] sm:$0xff]  ;;  %v1322_v18 = vld [vmem:[%s3925_s4 + $0x648] sm:$0xff] }
  0x80   : > { %1126 = vmatpush1.bf16.msra.mxu0 %v3463_v25  ;;  %1167 = vmatpush1.bf16.msra.mxu1 %v3465_v26  ;;  %v4085_v25 = vshrl.u32 %v3968_v58, 16  ;;  %v1266_v26 = vld [vmem:[%s3925_s4 + $0x488] sm:$0xff]  ;;  %v1273_v58 = vld [vmem:[%s3925_s4 + $0x4c0] sm:$0xff] }
  0x81   : > { %1127 = vmatprep.subr.bf16.mxu0 %v3472_v27  ;;  %1168 = vmatprep.subr.bf16.mxu1 %v3474_v28  ;;  %v1270_v27 = vld [vmem:[%s3925_s4 + $0x4a8] sm:$0xff]  ;;  %v3524_v28 = vcombine.low %v1257_v15, %v1261_v16  ;;  %v1321_v16 = vld [vmem:[%s3925_s4 + $0x640] sm:$0xff] }
  0x82   : > { %v3535_v31 = vcombine.high %v1266_v26, %v1270_v27 }
  0x84   : > { %1128 = vmatpush1.bf16.msra.mxu0 %v3471_v33  ;;  %1169 = vmatpush1.bf16.msra.mxu1 %v3473_v34  ;;  %v1274_v33 = vld [vmem:[%s3925_s4 + $0x4c8] sm:$0xff] }
  0x85   : > { %1129 = vmatprep.subr.bf16.mxu0 %v3480_v35  ;;  %1170 = vmatprep.subr.bf16.mxu1 %v3482_v36  ;;  %v1278_v34 = vld [vmem:[%s3925_s4 + $0x4e8] sm:$0xff]  ;;  %v3534_v35 = vcombine.low %v1266_v26, %v1270_v27  ;;  %v3541_v36 = vcombine.high %v1273_v58, %v1277_v32  ;;  %v1333_v26 = vld [vmem:[%s3925_s4 + $0x6a0] sm:$0xff] }
  0x86   : > { %v3543_v37 = vcombine.high %v1274_v33, %v1278_v34  ;;  %v1330_v27 = vld [vmem:[%s3925_s4 + $0x688] sm:$0xff] }
  0x88   : > { %1130 = vmatpush1.bf16.msra.mxu0 %v3479_v41  ;;  %1171 = vmatpush1.bf16.msra.mxu1 %v3481_v42  ;;  %v1286_v41 = vld [vmem:[%s3925_s4 + $0x528] sm:$0xff]  ;;  %v3540_v42 = vcombine.low %v1273_v58, %v1277_v32  ;;  %v1337_v32 = vld [vmem:[%s3925_s4 + $0x6c0] sm:$0xff] }
  0x89   : > { %1131 = vmatprep.subr.bf16.mxu0 %v3488_v43  ;;  %1172 = vmatprep.subr.bf16.mxu1 %v3490_v44  ;;  %v3542_v43 = vcombine.low %v1274_v33, %v1278_v34  ;;  %v3549_v44 = vcombine.high %v1281_v38, %v1285_v39  ;;  %v3551_v45 = vcombine.high %v1282_v40, %v1286_v41  ;;  %v1341_v33 = vld [vmem:[%s3925_s4 + $0x6e0] sm:$0xff]  ;;  %v1338_v34 = vld [vmem:[%s3925_s4 + $0x6c8] sm:$0xff] }
  0x8c   : > { %1132 = vmatpush1.bf16.msra.mxu0 %v3487_v49  ;;  %1173 = vmatpush1.bf16.msra.mxu1 %v3489_v50  ;;  %v1294_v49 = vld [vmem:[%s3925_s4 + $0x568] sm:$0xff]  ;;  %v3548_v50 = vcombine.low %v1281_v38, %v1285_v39  ;;  %v1345_v39 = vld [vmem:[%s3925_s4 + $0x700] sm:$0xff] }
  0x8d   : > { %1133 = vmatprep.subr.bf16.mxu0 %v3496_v51  ;;  %1174 = vmatprep.subr.bf16.mxu1 %v3498_v52  ;;  %v3550_v51 = vcombine.low %v1282_v40, %v1286_v41  ;;  %v3557_v52 = vcombine.high %v1289_v46, %v1293_v47  ;;  %v3559_v53 = vcombine.high %v1290_v48, %v1294_v49  ;;  %v1349_v40 = vld [vmem:[%s3925_s4 + $0x720] sm:$0xff]  ;;  %v1346_v41 = vld [vmem:[%s3925_s4 + $0x708] sm:$0xff] }
  0x90   : > { %1134 = vmatpush1.bf16.msra.mxu0 %v3495_v59  ;;  %1175 = vmatpush1.bf16.msra.mxu1 %v3497_v60  ;;  %v1302_v59 = vld [vmem:[%s3925_s4 + $0x5a8] sm:$0xff]  ;;  %v3556_v60 = vcombine.low %v1289_v46, %v1293_v47  ;;  %v1353_v47 = vld [vmem:[%s3925_s4 + $0x740] sm:$0xff] }
  0x91   : > { %1135 = vmatprep.subr.bf16.mxu0 %v3504_v61  ;;  %1176 = vmatprep.subr.bf16.mxu1 %v3506_v62  ;;  %v3558_v61 = vcombine.low %v1290_v48, %v1294_v49  ;;  %v3565_v62 = vcombine.high %v1297_v55, %v1301_v56  ;;  %v3567_v63 = vcombine.high %v1298_v57, %v1302_v59  ;;  %v1357_v48 = vld [vmem:[%s3925_s4 + $0x760] sm:$0xff]  ;;  %v1354_v49 = vld [vmem:[%s3925_s4 + $0x748] sm:$0xff] }
  0x94   : > { %1136 = vmatpush1.bf16.msra.mxu0 %v3503_v3  ;;  %1177 = vmatpush1.bf16.msra.mxu1 %v3505_v4  ;;  %v1310_v3 = vld [vmem:[%s3925_s4 + $0x5e8] sm:$0xff]  ;;  %v3564_v4 = vcombine.low %v1297_v55, %v1301_v56  ;;  %v1361_v56 = vld [vmem:[%s3925_s4 + $0x780] sm:$0xff] }
  0x95   : > { %1137 = vmatprep.subr.bf16.mxu0 %v3512_v5  ;;  %1178 = vmatprep.subr.bf16.mxu1 %v3514_v6  ;;  %v3566_v5 = vcombine.low %v1298_v57, %v1302_v59  ;;  %v3573_v6 = vcombine.high %v1305_v0, %v1309_v1  ;;  %v3575_v7 = vcombine.high %v1306_v2, %v1310_v3  ;;  %v1365_v57 = vld [vmem:[%s3925_s4 + $0x7a0] sm:$0xff]  ;;  %v1362_v59 = vld [vmem:[%s3925_s4 + $0x788] sm:$0xff] }
  0x98   : > { %1138 = vmatpush1.bf16.msra.mxu0 %v3511_v11  ;;  %1179 = vmatpush1.bf16.msra.mxu1 %v3513_v12  ;;  %v1318_v11 = vld [vmem:[%s3925_s4 + $0x628] sm:$0xff]  ;;  %v3572_v12 = vcombine.low %v1305_v0, %v1309_v1  ;;  %v1369_v1 = vld [vmem:[%s3925_s4 + $0x7c0] sm:$0xff] }
  0x99   : > { %2034 = vmatprep.subr.bf16.mxu0 %v3517_v13  ;;  %2075 = vmatprep.subr.bf16.mxu1 %v3519_v14  ;;  %v3574_v13 = vcombine.low %v1306_v2, %v1310_v3  ;;  %v3581_v14 = vcombine.high %v1313_v8, %v1317_v9  ;;  %v3583_v15 = vcombine.high %v1314_v10, %v1318_v11  ;;  %v1373_v2 = vld [vmem:[%s3925_s4 + $0x7e0] sm:$0xff]  ;;  %v1370_v3 = vld [vmem:[%s3925_s4 + $0x7c8] sm:$0xff] }
  0x9b   : > { %1140 = vmatmul.mubr.bf16.vlgmr.msra.gmra.mrb[4].mxu0 %v3962_v54  ;;  %1181 = vmatmul.mubr.bf16.vlgmr.msra.gmra.mrb[4].mxu1 %v3962_v54  ;;  %v3532_v54 = vcombine.low %v1265_v23, %v1269_v24  ;;  %v1329_v24 = vld [vmem:[%s3925_s4 + $0x680] sm:$0xff] }
  0x9c   : > { %2035 = vmatpush1.bf16.msra.mxu0 %v3516_v19  ;;  %2076 = vmatpush1.bf16.msra.mxu1 %v3518_v20  ;;  %v1326_v19 = vld [vmem:[%s3925_s4 + $0x668] sm:$0xff]  ;;  %v3580_v20 = vcombine.low %v1313_v8, %v1317_v9  ;;  %v1251_v9 = vld [vmem:[%s3925_s4 + $0x410] sm:$0xff] }
  0x9d   : > { %2036 = vmatprep.subr.bf16.mxu0 %v3525_v21  ;;  %2077 = vmatprep.subr.bf16.mxu1 %v3527_v22  ;;  %v3582_v21 = vcombine.low %v1314_v10, %v1318_v11  ;;  %v3589_v22 = vcombine.high %v1321_v16, %v1325_v17  ;;  %v3591_v23 = vcombine.high %v1322_v18, %v1326_v19  ;;  %v1255_v10 = vld [vmem:[%s3925_s4 + $0x430] sm:$0xff]  ;;  %v1252_v11 = vld [vmem:[%s3925_s4 + $0x418] sm:$0xff] }
  0x9e   : > { %2066 = vmatprep.mubr.bf16.mxu0 %v4085_v25  ;;  %2107 = vmatprep.mubr.bf16.mxu1 %v4085_v25 }
  0xa0   : > { %2037 = vmatpush1.bf16.msra.mxu0 %v3524_v28  ;;  %2078 = vmatpush1.bf16.msra.mxu1 %v3526_v29  ;;  %v1334_v28 = vld [vmem:[%s3925_s4 + $0x6a8] sm:$0xff]  ;;  %v3588_v29 = vcombine.low %v1321_v16, %v1325_v17  ;;  %v1259_v17 = vld [vmem:[%s3925_s4 + $0x450] sm:$0xff] }
  0xa1   : > { %2038 = vmatprep.subr.bf16.mxu0 %v3533_v30  ;;  %2079 = vmatprep.subr.bf16.mxu1 %v3535_v31  ;;  %v3590_v30 = vcombine.low %v1322_v18, %v1326_v19  ;;  %v3597_v31 = vcombine.high %v1329_v24, %v1333_v26  ;;  %v3599_v58 = vcombine.high %v1330_v27, %v1334_v28  ;;  %v1263_v18 = vld [vmem:[%s3925_s4 + $0x470] sm:$0xff]  ;;  %v3820_v19 = vld.sshfl [vmem:[%s3930_s7] sm:$0x11 pattern:$0x76325410] }
  0xa4   : > { %2039 = vmatpush1.bf16.msra.mxu0 %v3532_v54  ;;  %2080 = vmatpush1.bf16.msra.mxu1 %v3534_v35  ;;  %v1342_v54 = vld [vmem:[%s3925_s4 + $0x6e8] sm:$0xff]  ;;  %v3596_v35 = vcombine.low %v1329_v24, %v1333_v26  ;;  %v3529_v26 = vcombine.high %v1259_v17, %v1263_v18 }
  0xa5   : > { %2040 = vmatprep.subr.bf16.mxu0 %v3541_v36  ;;  %2081 = vmatprep.subr.bf16.mxu1 %v3543_v37  ;;  %v3598_v36 = vcombine.low %v1330_v27, %v1334_v28  ;;  %v3605_v37 = vcombine.high %v1337_v32, %v1341_v33  ;;  %v3607_v38 = vcombine.high %v1338_v34, %v1342_v54  ;;  %v1267_v28 = vld [vmem:[%s3925_s4 + $0x490] sm:$0xff] }
  0xa8   : > { %2041 = vmatpush1.bf16.msra.mxu0 %v3540_v42  ;;  %2082 = vmatpush1.bf16.msra.mxu1 %v3542_v43  ;;  %v1350_v42 = vld [vmem:[%s3925_s4 + $0x728] sm:$0xff]  ;;  %v3604_v43 = vcombine.low %v1337_v32, %v1341_v33 }
  0xa9   : > { %2042 = vmatprep.subr.bf16.mxu0 %v3549_v44  ;;  %2083 = vmatprep.subr.bf16.mxu1 %v3551_v45  ;;  %v3606_v44 = vcombine.low %v1338_v34, %v1342_v54  ;;  %v3613_v45 = vcombine.high %v1345_v39, %v1349_v40  ;;  %v3615_v46 = vcombine.high %v1346_v41, %v1350_v42  ;;  %v1275_v54 = vld [vmem:[%s3925_s4 + $0x4d0] sm:$0xff] }
  0xac   : > { %2043 = vmatpush1.bf16.msra.mxu0 %v3548_v50  ;;  %2084 = vmatpush1.bf16.msra.mxu1 %v3550_v51  ;;  %v1358_v50 = vld [vmem:[%s3925_s4 + $0x768] sm:$0xff]  ;;  %v3612_v51 = vcombine.low %v1345_v39, %v1349_v40 }
  0xad   : > { %2044 = vmatprep.subr.bf16.mxu0 %v3557_v52  ;;  %2085 = vmatprep.subr.bf16.mxu1 %v3559_v53  ;;  %v3614_v52 = vcombine.low %v1346_v41, %v1350_v42  ;;  %v3621_v53 = vcombine.high %v1353_v47, %v1357_v48  ;;  %v3623_v55 = vcombine.high %v1354_v49, %v1358_v50  ;;  %v1283_v42 = vld [vmem:[%s3925_s4 + $0x510] sm:$0xff] }
  0xb0   : > { %2045 = vmatpush1.bf16.msra.mxu0 %v3556_v60  ;;  %2086 = vmatpush1.bf16.msra.mxu1 %v3558_v61  ;;  %v1366_v60 = vld [vmem:[%s3925_s4 + $0x7a8] sm:$0xff]  ;;  %v3620_v61 = vcombine.low %v1353_v47, %v1357_v48 }
  0xb1   : > { %2046 = vmatprep.subr.bf16.mxu0 %v3565_v62  ;;  %2087 = vmatprep.subr.bf16.mxu1 %v3567_v63  ;;  %v3622_v62 = vcombine.low %v1354_v49, %v1358_v50  ;;  %v3629_v63 = vcombine.high %v1361_v56, %v1365_v57  ;;  %v3631_v0 = vcombine.high %v1362_v59, %v1366_v60  ;;  %v1291_v49 = vld [vmem:[%s3925_s4 + $0x550] sm:$0xff] }
  0xb2   : > { %v1295_v50 = vld [vmem:[%s3925_s4 + $0x570] sm:$0xff] }
  0xb4   : > { %2047 = vmatpush1.bf16.msra.mxu0 %v3564_v4  ;;  %2088 = vmatpush1.bf16.msra.mxu1 %v3566_v5  ;;  %v1374_v4 = vld [vmem:[%s3925_s4 + $0x7e8] sm:$0xff]  ;;  %v3628_v5 = vcombine.low %v1361_v56, %v1365_v57  ;;  %v3561_v56 = vcombine.high %v1291_v49, %v1295_v50 }
  0xb5   : > { %2048 = vmatprep.subr.bf16.mxu0 %v3573_v6  ;;  %2089 = vmatprep.subr.bf16.mxu1 %v3575_v7  ;;  %v3630_v6 = vcombine.low %v1362_v59, %v1366_v60  ;;  %v3637_v7 = vcombine.high %v1369_v1, %v1373_v2  ;;  %v3639_v8 = vcombine.high %v1370_v3, %v1374_v4  ;;  %v1299_v59 = vld [vmem:[%s3925_s4 + $0x590] sm:$0xff] }
  0xb6   : > { %v1303_v60 = vld [vmem:[%s3925_s4 + $0x5b0] sm:$0xff] }
  0xb8   : > { %2049 = vmatpush1.bf16.msra.mxu0 %v3572_v12  ;;  %2090 = vmatpush1.bf16.msra.mxu1 %v3574_v13  ;;  %v1256_v12 = vld [vmem:[%s3925_s4 + $0x438] sm:$0xff]  ;;  %v3636_v13 = vcombine.low %v1369_v1, %v1373_v2  ;;  %v3569_v1 = vcombine.high %v1299_v59, %v1303_v60 }
  0xb9   : > { %2050 = vmatprep.subr.bf16.mxu0 %v3581_v14  ;;  %2091 = vmatprep.subr.bf16.mxu1 %v3583_v15  ;;  %v3638_v14 = vcombine.low %v1370_v3, %v1374_v4  ;;  %v3521_v15 = vcombine.high %v1251_v9, %v1255_v10  ;;  %v3523_v16 = vcombine.high %v1252_v11, %v1256_v12  ;;  %v1307_v3 = vld [vmem:[%s3925_s4 + $0x5d0] sm:$0xff] }
  0xba   : > { %v3522_v24 = vcombine.low %v1252_v11, %v1256_v12  ;;  %v1311_v4 = vld [vmem:[%s3925_s4 + $0x5f0] sm:$0xff] }
  0xbb   : > { %v1315_v11 = vld [vmem:[%s3925_s4 + $0x610] sm:$0xff] }
  0xbc   : > { %2051 = vmatpush1.bf16.msra.mxu0 %v3580_v20  ;;  %2092 = vmatpush1.bf16.msra.mxu1 %v3582_v21  ;;  %v4152_v20 = vshrl.u32 %v3820_v19, 16  ;;  %v1260_v21 = vld [vmem:[%s3925_s4 + $0x458] sm:$0xff]  ;;  %v1319_v12 = vld [vmem:[%s3925_s4 + $0x630] sm:$0xff] }
  0xbd   : > { %2052 = vmatprep.subr.bf16.mxu0 %v3589_v22  ;;  %2093 = vmatprep.subr.bf16.mxu1 %v3591_v23  ;;  %v1264_v22 = vld [vmem:[%s3925_s4 + $0x478] sm:$0xff]  ;;  %v3520_v23 = vcombine.low %v1251_v9, %v1255_v10  ;;  %v3577_v9 = vcombine.high %v1307_v3, %v1311_v4  ;;  %v1323_v19 = vld [vmem:[%s3925_s4 + $0x650] sm:$0xff] }
  0xbe   : > { %v3531_v27 = vcombine.high %v1260_v21, %v1264_v22  ;;  %v3530_v32 = vcombine.low %v1260_v21, %v1264_v22  ;;  %v1327_v21 = vld [vmem:[%s3925_s4 + $0x670] sm:$0xff]  ;;  %v1324_v22 = vld [vmem:[%s3925_s4 + $0x658] sm:$0xff] }
  0xc0   : > { %2053 = vmatpush1.bf16.msra.mxu0 %v3588_v29  ;;  %2094 = vmatpush1.bf16.msra.mxu1 %v3590_v30  ;;  %v1271_v29 = vld [vmem:[%s3925_s4 + $0x4b0] sm:$0xff]  ;;  %v1268_v30 = vld [vmem:[%s3925_s4 + $0x498] sm:$0xff] }
  0xc1   : > { %2054 = vmatprep.subr.bf16.mxu0 %v3597_v31  ;;  %2095 = vmatprep.subr.bf16.mxu1 %v3599_v58  ;;  %v1272_v31 = vld [vmem:[%s3925_s4 + $0x4b8] sm:$0xff]  ;;  %v3528_v58 = vcombine.low %v1259_v17, %v1263_v18  ;;  %v3537_v33 = vcombine.high %v1267_v28, %v1271_v29  ;;  %v3585_v17 = vcombine.high %v1315_v11, %v1319_v12 }
  0xc2   : > { %v3539_v34 = vcombine.high %v1268_v30, %v1272_v31  ;;  %v3538_v39 = vcombine.low %v1268_v30, %v1272_v31  ;;  %v1335_v30 = vld [vmem:[%s3925_s4 + $0x6b0] sm:$0xff]  ;;  %v1332_v31 = vld [vmem:[%s3925_s4 + $0x698] sm:$0xff] }
  0xc4   : > { %2055 = vmatpush1.bf16.msra.mxu0 %v3596_v35  ;;  %2096 = vmatpush1.bf16.msra.mxu1 %v3598_v36  ;;  %v1279_v35 = vld [vmem:[%s3925_s4 + $0x4f0] sm:$0xff]  ;;  %v1276_v36 = vld [vmem:[%s3925_s4 + $0x4d8] sm:$0xff] }
  0xc5   : > { %2056 = vmatprep.subr.bf16.mxu0 %v3605_v37  ;;  %2097 = vmatprep.subr.bf16.mxu1 %v3607_v38  ;;  %v1280_v37 = vld [vmem:[%s3925_s4 + $0x4f8] sm:$0xff]  ;;  %v3536_v38 = vcombine.low %v1267_v28, %v1271_v29  ;;  %v3545_v40 = vcombine.high %v1275_v54, %v1279_v35  ;;  %v1331_v29 = vld [vmem:[%s3925_s4 + $0x690] sm:$0xff] }
  0xc6   : > { %v3547_v41 = vcombine.high %v1276_v36, %v1280_v37 }
  0xc8   : > { %2057 = vmatpush1.bf16.msra.mxu0 %v3604_v43  ;;  %2098 = vmatpush1.bf16.msra.mxu1 %v3606_v44  ;;  %v1287_v43 = vld [vmem:[%s3925_s4 + $0x530] sm:$0xff]  ;;  %v1284_v44 = vld [vmem:[%s3925_s4 + $0x518] sm:$0xff] }
  0xc9   : > { %2058 = vmatprep.subr.bf16.mxu0 %v3613_v45  ;;  %2099 = vmatprep.subr.bf16.mxu1 %v3615_v46  ;;  %v1288_v45 = vld [vmem:[%s3925_s4 + $0x538] sm:$0xff]  ;;  %v3544_v46 = vcombine.low %v1275_v54, %v1279_v35  ;;  %v3553_v47 = vcombine.high %v1283_v42, %v1287_v43  ;;  %v1339_v35 = vld [vmem:[%s3925_s4 + $0x6d0] sm:$0xff] }
  0xca   : > { %v3555_v48 = vcombine.high %v1284_v44, %v1288_v45 }
  0xcc   : > { %2059 = vmatpush1.bf16.msra.mxu0 %v3612_v51  ;;  %2100 = vmatpush1.bf16.msra.mxu1 %v3614_v52  ;;  %v1292_v51 = vld [vmem:[%s3925_s4 + $0x558] sm:$0xff] }
  0xcd   : > { %2060 = vmatprep.subr.bf16.mxu0 %v3621_v53  ;;  %2101 = vmatprep.subr.bf16.mxu1 %v3623_v55  ;;  %v1296_v52 = vld [vmem:[%s3925_s4 + $0x578] sm:$0xff]  ;;  %v3552_v53 = vcombine.low %v1283_v42, %v1287_v43  ;;  %v3554_v55 = vcombine.low %v1284_v44, %v1288_v45  ;;  %v1347_v43 = vld [vmem:[%s3925_s4 + $0x710] sm:$0xff] }
  0xce   : > { %v3563_v57 = vcombine.high %v1292_v51, %v1296_v52  ;;  %v1351_v44 = vld [vmem:[%s3925_s4 + $0x730] sm:$0xff]  ;;  %v1348_v45 = vld [vmem:[%s3925_s4 + $0x718] sm:$0xff] }
  0xd0   : > { %2061 = vmatpush1.bf16.msra.mxu0 %v3620_v61  ;;  %2102 = vmatpush1.bf16.msra.mxu1 %v3622_v62  ;;  %v1300_v61 = vld [vmem:[%s3925_s4 + $0x598] sm:$0xff] }
  0xd1   : > { %2062 = vmatprep.subr.bf16.mxu0 %v3629_v63  ;;  %2103 = vmatprep.subr.bf16.mxu1 %v3631_v0  ;;  %v1304_v62 = vld [vmem:[%s3925_s4 + $0x5b8] sm:$0xff]  ;;  %v3560_v63 = vcombine.low %v1291_v49, %v1295_v50  ;;  %v3562_v0 = vcombine.low %v1292_v51, %v1296_v52  ;;  %v1355_v50 = vld [vmem:[%s3925_s4 + $0x750] sm:$0xff] }
  0xd2   : > { %v3571_v2 = vcombine.high %v1300_v61, %v1304_v62  ;;  %v1359_v51 = vld [vmem:[%s3925_s4 + $0x770] sm:$0xff]  ;;  %v1356_v52 = vld [vmem:[%s3925_s4 + $0x758] sm:$0xff] }
  0xd4   : > { %2063 = vmatpush1.bf16.msra.mxu0 %v3628_v5  ;;  %2104 = vmatpush1.bf16.msra.mxu1 %v3630_v6  ;;  %v1308_v5 = vld [vmem:[%s3925_s4 + $0x5d8] sm:$0xff] }
  0xd5   : > { %2064 = vmatprep.subr.bf16.mxu0 %v3637_v7  ;;  %2105 = vmatprep.subr.bf16.mxu1 %v3639_v8  ;;  %v1312_v6 = vld [vmem:[%s3925_s4 + $0x5f8] sm:$0xff]  ;;  %v3568_v7 = vcombine.low %v1299_v59, %v1303_v60  ;;  %v3570_v8 = vcombine.low %v1300_v61, %v1304_v62  ;;  %v1363_v60 = vld [vmem:[%s3925_s4 + $0x790] sm:$0xff] }
  0xd6   : > { %v3579_v10 = vcombine.high %v1308_v5, %v1312_v6  ;;  %v1367_v61 = vld [vmem:[%s3925_s4 + $0x7b0] sm:$0xff]  ;;  %v1364_v62 = vld [vmem:[%s3925_s4 + $0x798] sm:$0xff] }
  0xd8   : > { %2065 = vmatpush1.bf16.msra.mxu0 %v3636_v13  ;;  %2106 = vmatpush1.bf16.msra.mxu1 %v3638_v14  ;;  %v1316_v13 = vld [vmem:[%s3925_s4 + $0x618] sm:$0xff] }
  0xd9   : > { %2116 = vmatprep.subr.bf16.mxu0 %v3521_v15  ;;  %2157 = vmatprep.subr.bf16.mxu1 %v3523_v16  ;;  %v1320_v14 = vld [vmem:[%s3925_s4 + $0x638] sm:$0xff]  ;;  %v3576_v15 = vcombine.low %v1307_v3, %v1311_v4  ;;  %v3578_v16 = vcombine.low %v1308_v5, %v1312_v6  ;;  %v1371_v4 = vld [vmem:[%s3925_s4 + $0x7d0] sm:$0xff] }
  0xda   : > { %v3587_v18 = vcombine.high %v1316_v13, %v1320_v14  ;;  %v1375_v5 = vld [vmem:[%s3925_s4 + $0x7f0] sm:$0xff]  ;;  %v1372_v6 = vld [vmem:[%s3925_s4 + $0x7d8] sm:$0xff] }
  0xdb   : > { %2067 = vmatmul.mubr.bf16.vlgmr.msra.gmra.mrb[8].mxu0 %v4152_v20  ;;  %2108 = vmatmul.mubr.bf16.vlgmr.msra.gmra.mrb[8].mxu1 %v4152_v20 }
  0xdc   : > { %2117 = vmatpush1.bf16.msra.mxu0 %v3520_v23  ;;  %2158 = vmatpush1.bf16.msra.mxu1 %v3522_v24  ;;  %v1328_v23 = vld [vmem:[%s3925_s4 + $0x678] sm:$0xff]  ;;  %v3584_v24 = vcombine.low %v1315_v11, %v1319_v12  ;;  %v2258_v12 = vld [vmem:[%s3925_s4 + $0x800] sm:$0xff] }
  0xdd   : > { %2118 = vmatprep.subr.bf16.mxu0 %v3529_v26  ;;  %2159 = vmatprep.subr.bf16.mxu1 %v3531_v27  ;;  %v3586_v26 = vcombine.low %v1316_v13, %v1320_v14  ;;  %v3593_v27 = vcombine.high %v1323_v19, %v1327_v21  ;;  %v3595_v28 = vcombine.high %v1324_v22, %v1328_v23  ;;  %v2262_v13 = vld [vmem:[%s3925_s4 + $0x820] sm:$0xff]  ;;  %v2259_v14 = vld [vmem:[%s3925_s4 + $0x808] sm:$0xff] }
  0xde   : > { %2148 = vmatprep.mubr.bf16.mxu0 %v4085_v25  ;;  %2189 = vmatprep.mubr.bf16.mxu1 %v4085_v25  ;;  %v3546_v25 = vcombine.low %v1276_v36, %v1280_v37  ;;  %v1343_v36 = vld [vmem:[%s3925_s4 + $0x6f0] sm:$0xff]  ;;  %v1340_v37 = vld [vmem:[%s3925_s4 + $0x6d8] sm:$0xff] }
  0xe0   : > { %2119 = vmatpush1.bf16.msra.mxu0 %v3528_v58  ;;  %2160 = vmatpush1.bf16.msra.mxu1 %v3530_v32  ;;  %v1336_v58 = vld [vmem:[%s3925_s4 + $0x6b8] sm:$0xff]  ;;  %v3592_v32 = vcombine.low %v1323_v19, %v1327_v21  ;;  %v3646_v19 = vcombine.high %v2258_v12, %v2262_v13 }
  0xe1   : > { %2120 = vmatprep.subr.bf16.mxu0 %v3537_v33  ;;  %2161 = vmatprep.subr.bf16.mxu1 %v3539_v34  ;;  %v3594_v33 = vcombine.low %v1324_v22, %v1328_v23  ;;  %v3601_v34 = vcombine.high %v1331_v29, %v1335_v30  ;;  %v3603_v54 = vcombine.high %v1332_v31, %v1336_v58  ;;  %v2266_v22 = vld [vmem:[%s3925_s4 + $0x840] sm:$0xff] }
  0xe2   : > { %v2270_v23 = vld [vmem:[%s3925_s4 + $0x860] sm:$0xff] }
  0xe4   : > { %2121 = vmatpush1.bf16.msra.mxu0 %v3536_v38  ;;  %2162 = vmatpush1.bf16.msra.mxu1 %v3538_v39  ;;  %v1344_v38 = vld [vmem:[%s3925_s4 + $0x6f8] sm:$0xff]  ;;  %v3600_v39 = vcombine.low %v1331_v29, %v1335_v30  ;;  %v3654_v30 = vcombine.high %v2266_v22, %v2270_v23 }
  0xe5   : > { %2122 = vmatprep.subr.bf16.mxu0 %v3545_v40  ;;  %2163 = vmatprep.subr.bf16.mxu1 %v3547_v41  ;;  %v3602_v40 = vcombine.low %v1332_v31, %v1336_v58  ;;  %v3609_v41 = vcombine.high %v1339_v35, %v1343_v36  ;;  %v3611_v42 = vcombine.high %v1340_v37, %v1344_v38  ;;  %v2274_v58 = vld [vmem:[%s3925_s4 + $0x880] sm:$0xff] }
  0xe8   : > { %2123 = vmatpush1.bf16.msra.mxu0 %v3544_v46  ;;  %2164 = vmatpush1.bf16.msra.mxu1 %v3546_v25  ;;  %v1352_v46 = vld [vmem:[%s3925_s4 + $0x738] sm:$0xff]  ;;  %v3608_v25 = vcombine.low %v1339_v35, %v1343_v36  ;;  %v3653_v35 = vcombine.low %v2266_v22, %v2270_v23 }
  0xe9   : > { %2124 = vmatprep.subr.bf16.mxu0 %v3553_v47  ;;  %2165 = vmatprep.subr.bf16.mxu1 %v3555_v48  ;;  %v3610_v47 = vcombine.low %v1340_v37, %v1344_v38  ;;  %v3617_v48 = vcombine.high %v1347_v43, %v1351_v44  ;;  %v3619_v49 = vcombine.high %v1348_v45, %v1352_v46 }
  0xec   : > { %2125 = vmatpush1.bf16.msra.mxu0 %v3552_v53  ;;  %2166 = vmatpush1.bf16.msra.mxu1 %v3554_v55  ;;  %v1360_v53 = vld [vmem:[%s3925_s4 + $0x778] sm:$0xff]  ;;  %v3616_v55 = vcombine.low %v1347_v43, %v1351_v44 }
  0xed   : > { %2126 = vmatprep.subr.bf16.mxu0 %v3561_v56  ;;  %2167 = vmatprep.subr.bf16.mxu1 %v3563_v57  ;;  %v3618_v56 = vcombine.low %v1348_v45, %v1352_v46  ;;  %v3625_v57 = vcombine.high %v1355_v50, %v1359_v51  ;;  %v3627_v59 = vcombine.high %v1356_v52, %v1360_v53  ;;  %v2290_v46 = vld [vmem:[%s3925_s4 + $0x900] sm:$0xff] }
  0xf0   : > { %2127 = vmatpush1.bf16.msra.mxu0 %v3560_v63  ;;  %2168 = vmatpush1.bf16.msra.mxu1 %v3562_v0  ;;  %v1368_v63 = vld [vmem:[%s3925_s4 + $0x7b8] sm:$0xff]  ;;  %v3624_v0 = vcombine.low %v1355_v50, %v1359_v51 }
  0xf1   : > { %2128 = vmatprep.subr.bf16.mxu0 %v3569_v1  ;;  %2169 = vmatprep.subr.bf16.mxu1 %v3571_v2  ;;  %v3626_v1 = vcombine.low %v1356_v52, %v1360_v53  ;;  %v3633_v2 = vcombine.high %v1363_v60, %v1367_v61  ;;  %v3635_v3 = vcombine.high %v1364_v62, %v1368_v63  ;;  %v3862_v53 = vmov 1966171168  }
  0xf4   : > { %2129 = vmatpush1.bf16.msra.mxu0 %v3568_v7  ;;  %2170 = vmatpush1.bf16.msra.mxu1 %v3570_v8  ;;  %v1376_v7 = vld [vmem:[%s3925_s4 + $0x7f8] sm:$0xff]  ;;  %v3632_v8 = vcombine.low %v1363_v60, %v1367_v61  ;;  %v2299_v60 = vld [vmem:[%s3925_s4 + $0x948] sm:$0xff] }
  0xf5   : > { %2130 = vmatprep.subr.bf16.mxu0 %v3577_v9  ;;  %2171 = vmatprep.subr.bf16.mxu1 %v3579_v10  ;;  %v3634_v9 = vcombine.low %v1364_v62, %v1368_v63  ;;  %v3641_v10 = vcombine.high %v1371_v4, %v1375_v5  ;;  %v3643_v11 = vcombine.high %v1372_v6, %v1376_v7  ;;  %v2303_v61 = vld [vmem:[%s3925_s4 + $0x968] sm:$0xff] }
  0xf8   : > { %2131 = vmatpush1.bf16.msra.mxu0 %v3576_v15  ;;  %2172 = vmatpush1.bf16.msra.mxu1 %v3578_v16  ;;  %v2263_v15 = vld [vmem:[%s3925_s4 + $0x828] sm:$0xff]  ;;  %v4221_v16 = vld.sshfl [vmem:[%s3930_s7] sm:$0x22 pattern:$0x76325410] }
  0xf9   : > { %2132 = vmatprep.subr.bf16.mxu0 %v3585_v17  ;;  %2173 = vmatprep.subr.bf16.mxu1 %v3587_v18  ;;  %v3640_v17 = vcombine.low %v1371_v4, %v1375_v5  ;;  %v3642_v18 = vcombine.low %v1372_v6, %v1376_v7  ;;  %v3648_v21 = vcombine.high %v2259_v14, %v2263_v15  ;;  %v2306_v4 = vld [vmem:[%s3925_s4 + $0x980] sm:$0xff]  ;;  %v2307_v6 = vld [vmem:[%s3925_s4 + $0x988] sm:$0xff] }
  0xfa   : > { %v3647_v29 = vcombine.low %v2259_v14, %v2263_v15  ;;  %v2310_v5 = vld [vmem:[%s3925_s4 + $0x9a0] sm:$0xff]  ;;  %v2311_v7 = vld [vmem:[%s3925_s4 + $0x9a8] sm:$0xff] }
  0xfb   : > { %v2314_v14 = vld [vmem:[%s3925_s4 + $0x9c0] sm:$0xff] }
  0xfc   : > { %2133 = vmatpush1.bf16.msra.mxu0 %v3584_v24  ;;  %2174 = vmatpush1.bf16.msra.mxu1 %v3586_v26  ;;  %v2394_v24 = vcombine.high %v4221_v16, %v4221_v16  ;;  %v2267_v26 = vld [vmem:[%s3925_s4 + $0x848] sm:$0xff]  ;;  %v2318_v15 = vld [vmem:[%s3925_s4 + $0x9e0] sm:$0xff] }
  0xfd   : > { %2134 = vmatprep.subr.bf16.mxu0 %v3593_v27  ;;  %2175 = vmatprep.subr.bf16.mxu1 %v3595_v28  ;;  %v2271_v27 = vld [vmem:[%s3925_s4 + $0x868] sm:$0xff]  ;;  %v3645_v28 = vcombine.low %v2258_v12, %v2262_v13  ;;  %v3696_v13 = vcombine.high %v2307_v6, %v2311_v7 }
  0xfe   : > { %v3656_v31 = vcombine.high %v2267_v26, %v2271_v27  ;;  %v3655_v36 = vcombine.low %v2267_v26, %v2271_v27  ;;  %v3693_v26 = vcombine.low %v2306_v4, %v2310_v5 }
 0x100   : > { %2135 = vmatpush1.bf16.msra.mxu0 %v3592_v32  ;;  %2176 = vmatpush1.bf16.msra.mxu1 %v3594_v33  ;;  %v2278_v32 = vld [vmem:[%s3925_s4 + $0x8a0] sm:$0xff]  ;;  %v4231_v33 = vrot.slane %v2394_v24, 1 }
 0x101   : > { %2136 = vmatprep.subr.bf16.mxu0 %v3601_v34  ;;  %2177 = vmatprep.subr.bf16.mxu1 %v3603_v54  ;;  %v2275_v34 = vld [vmem:[%s3925_s4 + $0x888] sm:$0xff]  ;;  %v3662_v37 = vcombine.high %v2274_v58, %v2278_v32 }
 0x102   : > { %v2279_v54 = vld [vmem:[%s3925_s4 + $0x8a8] sm:$0xff] }
 0x103   : > { %v3664_v38 = vcombine.high %v2275_v34, %v2279_v54  ;;  %v3663_v43 = vcombine.low %v2275_v34, %v2279_v54  ;;  %v2322_v54 = vld [vmem:[%s3925_s4 + $0xa00] sm:$0xff] }
 0x104   : > { %2137 = vmatpush1.bf16.msra.mxu0 %v3600_v39  ;;  %2178 = vmatpush1.bf16.msra.mxu1 %v3602_v40  ;;  %v2282_v39 = vld [vmem:[%s3925_s4 + $0x8c0] sm:$0xff] }
 0x105   : > { %2138 = vmatprep.subr.bf16.mxu0 %v3609_v41  ;;  %2179 = vmatprep.subr.bf16.mxu1 %v3611_v42  ;;  %v2286_v40 = vld [vmem:[%s3925_s4 + $0x8e0] sm:$0xff]  ;;  %v2283_v41 = vld [vmem:[%s3925_s4 + $0x8c8] sm:$0xff] }
 0x106   : > { %v2287_v42 = vld [vmem:[%s3925_s4 + $0x8e8] sm:$0xff]  ;;  %v3670_v44 = vcombine.high %v2282_v39, %v2286_v40 }
 0x107   : > { %v3672_v45 = vcombine.high %v2283_v41, %v2287_v42  ;;  %v3671_v50 = vcombine.low %v2283_v41, %v2287_v42 }
 0x108   : > { %2139 = vmatpush1.bf16.msra.mxu0 %v3608_v25  ;;  %2180 = vmatpush1.bf16.msra.mxu1 %v3610_v47  ;;  %v2294_v25 = vld [vmem:[%s3925_s4 + $0x920] sm:$0xff]  ;;  %v2291_v47 = vld [vmem:[%s3925_s4 + $0x908] sm:$0xff] }
 0x109   : > { %2140 = vmatprep.subr.bf16.mxu0 %v3617_v48  ;;  %2181 = vmatprep.subr.bf16.mxu1 %v3619_v49  ;;  %v2295_v48 = vld [vmem:[%s3925_s4 + $0x928] sm:$0xff]  ;;  %v3669_v49 = vcombine.low %v2282_v39, %v2286_v40  ;;  %v3678_v51 = vcombine.high %v2290_v46, %v2294_v25  ;;  %v3677_v62 = vcombine.low %v2290_v46, %v2294_v25 }
 0x10a   : > { %v3680_v52 = vcombine.high %v2291_v47, %v2295_v48  ;;  %v3679_v63 = vcombine.low %v2291_v47, %v2295_v48  ;;  %v3701_v39 = vcombine.low %v2314_v14, %v2318_v15  ;;  %v2335_v46 = vld [vmem:[%s3925_s4 + $0xa68] sm:$0xff] }
 0x10c   : > { %2141 = vmatpush1.bf16.msra.mxu0 %v3616_v55  ;;  %2182 = vmatpush1.bf16.msra.mxu1 %v3618_v56  ;;  %v1202_v55 = vunpack.c.l.s4 %v3862_v53  ;;  %v1204_v56 = vlaneseq  ;;  %v2343_v53 = vld [vmem:[%s3925_s4 + $0xaa8] sm:$0xff] }
 0x10d   : > { %2142 = vmatprep.subr.bf16.mxu0 %v3625_v57  ;;  %2183 = vmatprep.subr.bf16.mxu1 %v3627_v59  ;;  %v2298_v57 = vld [vmem:[%s3925_s4 + $0x940] sm:$0xff] }
 0x10e   : > { %v2302_v59 = vld [vmem:[%s3925_s4 + $0x960] sm:$0xff] }
 0x110   : > { %2143 = vmatpush1.bf16.msra.mxu0 %v3624_v0  ;;  %2184 = vmatpush1.bf16.msra.mxu1 %v3626_v1  ;;  %v3686_v0 = vcombine.high %v2298_v57, %v2302_v59  ;;  %v1203_v1 = vunpack.c.0.s8 %v1202_v55 }
 0x111   : > { %2144 = vmatprep.subr.bf16.mxu0 %v3633_v2  ;;  %2185 = vmatprep.subr.bf16.mxu1 %v3635_v3  ;;  %v1205_v2 = vshrl.u32 %v1204_v56, 7  ;;  %v3688_v3 = vcombine.high %v2299_v60, %v2303_v61 }
 0x113   : > { %v4255_v12 = vsub.s32 %v1203_v1, %v1205_v2 }
 0x114   : > { %2145 = vmatpush1.bf16.msra.mxu0 %v3632_v8  ;;  %2186 = vmatpush1.bf16.msra.mxu1 %v3634_v9  ;;  %v3685_v8 = vcombine.low %v2298_v57, %v2302_v59  ;;  %v3687_v9 = vcombine.low %v2299_v60, %v2303_v61  ;;  %v2346_v60 = vld [vmem:[%s3925_s4 + $0xac0] sm:$0xff] }
 0x115   : > { %2146 = vmatprep.subr.bf16.mxu0 %v3641_v10  ;;  %2187 = vmatprep.subr.bf16.mxu1 %v3643_v11  ;;  %v3694_v10 = vcombine.high %v2306_v4, %v2310_v5  ;;  %v2350_v61 = vld [vmem:[%s3925_s4 + $0xae0] sm:$0xff] }
 0x116   : > { %v3734_v2 = vcombine.high %v2346_v60, %v2350_v61  ;;  %v2354_v4 = vld [vmem:[%s3925_s4 + $0xb00] sm:$0xff] }
 0x117   : > { %v2358_v5 = vld [vmem:[%s3925_s4 + $0xb20] sm:$0xff] }
 0x118   : > { %2147 = vmatpush1.bf16.msra.mxu0 %v3640_v17  ;;  %2188 = vmatpush1.bf16.msra.mxu1 %v3642_v18 }
 0x119   : > { %3039 = vmatprep.subr.bf16.mxu0 %v3646_v19  ;;  %3080 = vmatprep.subr.bf16.mxu1 %v3648_v21  ;;  %v2315_v19 = vld [vmem:[%s3925_s4 + $0x9c8] sm:$0xff] }
 0x11a   : > { %v2319_v21 = vld [vmem:[%s3925_s4 + $0x9e8] sm:$0xff] }
 0x11b   : > { %2149 = vmatmul.mubr.bf16.vlgmr.msra.gmra.mrb[12].mxu0 %v4152_v20  ;;  %2190 = vmatmul.mubr.bf16.vlgmr.msra.gmra.mrb[12].mxu1 %v4152_v20  ;;  %v3661_v20 = vcombine.low %v2274_v58, %v2278_v32  ;;  %v3704_v34 = vcombine.high %v2315_v19, %v2319_v21  ;;  %v3703_v41 = vcombine.low %v2315_v19, %v2319_v21 }
 0x11c   : > { %3040 = vmatpush1.bf16.msra.mxu0 %v3645_v28  ;;  %3081 = vmatpush1.bf16.msra.mxu1 %v3647_v29 }
 0x11d   : > { %3041 = vmatprep.subr.bf16.mxu0 %v3654_v30  ;;  %3082 = vmatprep.subr.bf16.mxu1 %v3656_v31  ;;  %v3695_v30 = vcombine.low %v2307_v6, %v2311_v7  ;;  %v3702_v31 = vcombine.high %v2314_v14, %v2318_v15  ;;  %v2355_v6 = vld [vmem:[%s3925_s4 + $0xb08] sm:$0xff]  ;;  %v2366_v14 = vld [vmem:[%s3925_s4 + $0xb60] sm:$0xff] }
 0x11e   : > { %3071 = vmatprep.mubr.bf16.mxu0 %v4231_v33  ;;  %3112 = vmatprep.mubr.bf16.mxu1 %v4231_v33  ;;  %v2359_v7 = vld [vmem:[%s3925_s4 + $0xb28] sm:$0xff] }
 0x11f   : > { %v2363_v15 = vld [vmem:[%s3925_s4 + $0xb48] sm:$0xff]  ;;  %v3743_v19 = vcombine.low %v2355_v6, %v2359_v7 }
 0x120   : > { %3042 = vmatpush1.bf16.msra.mxu0 %v3653_v35  ;;  %3083 = vmatpush1.bf16.msra.mxu1 %v3655_v36  ;;  %v2326_v35 = vld [vmem:[%s3925_s4 + $0xa20] sm:$0xff] }
 0x121   : > { %3043 = vmatprep.subr.bf16.mxu0 %v3662_v37  ;;  %3084 = vmatprep.subr.bf16.mxu1 %v3664_v38  ;;  %v2323_v37 = vld [vmem:[%s3925_s4 + $0xa08] sm:$0xff]  ;;  %v3710_v42 = vcombine.high %v2322_v54, %v2326_v35  ;;  %v3709_v25 = vcombine.low %v2322_v54, %v2326_v35 }
 0x122   : > { %v2327_v38 = vld [vmem:[%s3925_s4 + $0xa28] sm:$0xff] }
 0x123   : > { %v3711_v47 = vcombine.low %v2323_v37, %v2327_v38  ;;  %v2379_v54 = vld [vmem:[%s3925_s4 + $0xbc8] sm:$0xff] }
 0x124   : > { %3044 = vmatpush1.bf16.msra.mxu0 %v3661_v20  ;;  %3085 = vmatpush1.bf16.msra.mxu1 %v3663_v43  ;;  %v3712_v20 = vcombine.high %v2323_v37, %v2327_v38  ;;  %v2330_v43 = vld [vmem:[%s3925_s4 + $0xa40] sm:$0xff]  ;;  %v2383_v35 = vld [vmem:[%s3925_s4 + $0xbe8] sm:$0xff] }
 0x125   : > { %3045 = vmatprep.subr.bf16.mxu0 %v3670_v44  ;;  %3086 = vmatprep.subr.bf16.mxu1 %v3672_v45  ;;  %v2334_v44 = vld [vmem:[%s3925_s4 + $0xa60] sm:$0xff]  ;;  %v2331_v45 = vld [vmem:[%s3925_s4 + $0xa48] sm:$0xff] }
 0x126   : > { %v3718_v48 = vcombine.high %v2330_v43, %v2334_v44  ;;  %v3717_v55 = vcombine.low %v2330_v43, %v2334_v44  ;;  %v3719_v56 = vcombine.low %v2331_v45, %v2335_v46  ;;  %v2261_v43 = vld [vmem:[%s3925_s4 + $0x818] sm:$0xff] }
 0x127   : > { %v2265_v44 = vld [vmem:[%s3925_s4 + $0x838] sm:$0xff] }
 0x128   : > { %3046 = vmatpush1.bf16.msra.mxu0 %v3669_v49  ;;  %3087 = vmatpush1.bf16.msra.mxu1 %v3671_v50  ;;  %v3720_v49 = vcombine.high %v2331_v45, %v2335_v46  ;;  %v2338_v50 = vld [vmem:[%s3925_s4 + $0xa80] sm:$0xff]  ;;  %v3767_v46 = vcombine.low %v2379_v54, %v2383_v35 }
 0x129   : > { %3047 = vmatprep.subr.bf16.mxu0 %v3678_v51  ;;  %3088 = vmatprep.subr.bf16.mxu1 %v3680_v52  ;;  %v2342_v51 = vld [vmem:[%s3925_s4 + $0xaa0] sm:$0xff]  ;;  %v2339_v52 = vld [vmem:[%s3925_s4 + $0xa88] sm:$0xff] }
 0x12a   : > { %v3726_v57 = vcombine.high %v2338_v50, %v2342_v51  ;;  %v3728_v59 = vcombine.high %v2339_v52, %v2343_v53  ;;  %v3727_v1 = vcombine.low %v2339_v52, %v2343_v53  ;;  %v2273_v52 = vld [vmem:[%s3925_s4 + $0x878] sm:$0xff] }
 0x12c   : > { %3048 = vmatpush1.bf16.msra.mxu0 %v3677_v62  ;;  %3089 = vmatpush1.bf16.msra.mxu1 %v3679_v63  ;;  %v2347_v62 = vld [vmem:[%s3925_s4 + $0xac8] sm:$0xff] }
 0x12d   : > { %3049 = vmatprep.subr.bf16.mxu0 %v3686_v0  ;;  %3090 = vmatprep.subr.bf16.mxu1 %v3688_v3  ;;  %v2351_v63 = vld [vmem:[%s3925_s4 + $0xae8] sm:$0xff]  ;;  %v3725_v0 = vcombine.low %v2338_v50, %v2342_v51  ;;  %v4308_v50 = vrot.slane %v4221_v16, 1  ;;  %v2269_v51 = vld [vmem:[%s3925_s4 + $0x858] sm:$0xff] }
 0x12e   : > { %v1059_v11 = vpop.f32.mrb[0].mxu0  ;;  %v1100_v17 = vpop.f32.mrb[0].mxu1  ;;  %v3736_v3 = vcombine.high %v2347_v62, %v2351_v63  ;;  %v2277_v16 = vld [vmem:[%s3925_s4 + $0x898] sm:$0xff] }
 0x12f   : > { %v1061_v18 = vpop.f32.mrb[1].mxu0  ;;  %v1102_v23 = vpop.f32.mrb[1].mxu1 }
 0x130   : > { %v1197_v22 = vcombine.low %v1059_v11, %v1061_v18  ;;  %v1063_v24 = vpop.f32.mrb[2].mxu0  ;;  %3050 = vmatpush1.bf16.msra.mxu0 %v3685_v8  ;;  %v1198_v27 = vcombine.low %v1100_v17, %v1102_v23  ;;  %v1104_v28 = vpop.f32.mrb[2].mxu1  ;;  %3091 = vmatpush1.bf16.msra.mxu1 %v3687_v9  ;;  %v3733_v8 = vcombine.low %v2346_v60, %v2350_v61  ;;  %v2367_v17 = vld [vmem:[%s3925_s4 + $0xb68] sm:$0xff]  ;;  %v2370_v23 = vld [vmem:[%s3925_s4 + $0xb80] sm:$0xff]  ;;  %v2280_v60 = vld [vmem:[%s3925_s4 + $0x8b0] sm:$0xff] }
 0x131   : > { %v1064_v29 = vpop.f32.mrb[3].mxu0  ;;  %3051 = vmatprep.subr.bf16.mxu0 %v3694_v10  ;;  %v1105_v32 = vpop.f32.mrb[3].mxu1  ;;  %3092 = vmatprep.subr.bf16.mxu1 %v3696_v13  ;;  %v3735_v9 = vcombine.low %v2347_v62, %v2351_v63  ;;  %v3742_v10 = vcombine.high %v2354_v4, %v2358_v5  ;;  %v3744_v11 = vcombine.high %v2355_v6, %v2359_v7  ;;  %v2362_v13 = vld [vmem:[%s3925_s4 + $0xb40] sm:$0xff]  ;;  %v2281_v61 = vld [vmem:[%s3925_s4 + $0x8b8] sm:$0xff] }
 0x132   : > { %v4262_v58 = vrot.slane %v1197_v22, %v4255_v12  ;;  %v4267_v36 = vrot.slane %v1198_v27, %v4255_v12  ;;  %v3741_v18 = vcombine.low %v2354_v4, %v2358_v5  ;;  %v3750_v21 = vcombine.high %v2362_v13, %v2366_v14  ;;  %v2374_v24 = vld [vmem:[%s3925_s4 + $0xba0] sm:$0xff]  ;;  %v2375_v27 = vld [vmem:[%s3925_s4 + $0xba8] sm:$0xff]  ;;  %v2285_v4 = vld [vmem:[%s3925_s4 + $0x8d8] sm:$0xff] }
 0x133   : > { %v3752_v22 = vcombine.high %v2363_v15, %v2367_v17  ;;  %v3749_v28 = vcombine.low %v2362_v13, %v2366_v14  ;;  %v3751_v29 = vcombine.low %v2363_v15, %v2367_v17  ;;  %v2378_v32 = vld [vmem:[%s3925_s4 + $0xbc0] sm:$0xff]  ;;  %v3757_v37 = vcombine.low %v2370_v23, %v2374_v24  ;;  %v2289_v5 = vld [vmem:[%s3925_s4 + $0x8f8] sm:$0xff] }
 0x134   : > { %3052 = vmatpush1.bf16.msra.mxu0 %v3693_v26  ;;  %v1229_v40 = vcombine.low %v4262_v58, %v4267_v36  ;;  %3093 = vmatpush1.bf16.msra.mxu1 %v3695_v30  ;;  %v2371_v26 = vld [vmem:[%s3925_s4 + $0xb88] sm:$0xff]  ;;  %v3758_v30 = vcombine.high %v2370_v23, %v2374_v24  ;;  %v3659_v63 = vcombine.low %v2269_v51, %v2273_v52  ;;  %v2293_v13 = vld [vmem:[%s3925_s4 + $0x918] sm:$0xff]  ;;  %v2340_v36 = vld [vmem:[%s3925_s4 + $0xa90] sm:$0xff] }
 0x135   : > { %3053 = vmatprep.subr.bf16.mxu0 %v3702_v31  ;;  %3094 = vmatprep.subr.bf16.mxu1 %v3704_v34  ;;  %v3760_v31 = vcombine.high %v2371_v26, %v2375_v27  ;;  %v2382_v34 = vld [vmem:[%s3925_s4 + $0xbe0] sm:$0xff]  ;;  %v3759_v38 = vcombine.low %v2371_v26, %v2375_v27  ;;  %v3667_v7 = vcombine.low %v2277_v16, %v2281_v61  ;;  %v2297_v14 = vld [vmem:[%s3925_s4 + $0x938] sm:$0xff] }
 0x136   : > { %v3765_v45 = vcombine.low %v2378_v32, %v2382_v34  ;;  %v2305_v23 = vld [vmem:[%s3925_s4 + $0x978] sm:$0xff]  ;;  %v3683_v26 = vcombine.low %v2293_v13, %v2297_v14 }
 0x138   : > { %3054 = vmatpush1.bf16.msra.mxu0 %v3701_v39  ;;  %3095 = vmatpush1.bf16.msra.mxu1 %v3703_v41  ;;  %v3766_v39 = vcombine.high %v2378_v32, %v2382_v34  ;;  %v3768_v41 = vcombine.high %v2379_v54, %v2383_v35  ;;  %v2313_v32 = vld [vmem:[%s3925_s4 + $0x9b8] sm:$0xff] }
 0x139   : > { %3055 = vmatprep.subr.bf16.mxu0 %v3710_v42  ;;  %3096 = vmatprep.subr.bf16.mxu1 %v3712_v20  ;;  %v2260_v42 = vld [vmem:[%s3925_s4 + $0x810] sm:$0xff] }
 0x13a   : > { %v2264_v20 = vld [vmem:[%s3925_s4 + $0x830] sm:$0xff] }
 0x13b   : > { %v3649_v53 = vcombine.low %v2260_v42, %v2264_v20 }
 0x13c   : > { %3056 = vmatpush1.bf16.msra.mxu0 %v3709_v25  ;;  %3097 = vmatpush1.bf16.msra.mxu1 %v3711_v47  ;;  %v3650_v25 = vcombine.high %v2260_v42, %v2264_v20  ;;  %v3652_v47 = vcombine.high %v2261_v43, %v2265_v44 }
 0x13d   : > { %3057 = vmatprep.subr.bf16.mxu0 %v3718_v48  ;;  %3098 = vmatprep.subr.bf16.mxu1 %v3720_v49  ;;  %v2268_v48 = vld [vmem:[%s3925_s4 + $0x850] sm:$0xff] }
 0x13e   : > { %v2272_v49 = vld [vmem:[%s3925_s4 + $0x870] sm:$0xff] }
 0x13f   : > { %v3657_v62 = vcombine.low %v2268_v48, %v2272_v49 }
 0x140   : > { %3058 = vmatpush1.bf16.msra.mxu0 %v3717_v55  ;;  %3099 = vmatpush1.bf16.msra.mxu1 %v3719_v56  ;;  %v3651_v55 = vcombine.low %v2261_v43, %v2265_v44  ;;  %v3658_v56 = vcombine.high %v2268_v48, %v2272_v49  ;;  %v2317_v43 = vld [vmem:[%s3925_s4 + $0x9d8] sm:$0xff] }
 0x141   : > { %3059 = vmatprep.subr.bf16.mxu0 %v3726_v57  ;;  %3100 = vmatprep.subr.bf16.mxu1 %v3728_v59  ;;  %v3660_v57 = vcombine.high %v2269_v51, %v2273_v52  ;;  %v2276_v59 = vld [vmem:[%s3925_s4 + $0x890] sm:$0xff]  ;;  %v2321_v44 = vld [vmem:[%s3925_s4 + $0x9f8] sm:$0xff] }
 0x142   : > { %v3665_v6 = vcombine.low %v2276_v59, %v2280_v60 }
 0x144   : > { %3060 = vmatpush1.bf16.msra.mxu0 %v3725_v0  ;;  %3101 = vmatpush1.bf16.msra.mxu1 %v3727_v1  ;;  %v3666_v0 = vcombine.high %v2276_v59, %v2280_v60  ;;  %v3668_v1 = vcombine.high %v2277_v16, %v2281_v61  ;;  %v2324_v59 = vld [vmem:[%s3925_s4 + $0xa10] sm:$0xff]  ;;  %v2325_v61 = vld [vmem:[%s3925_s4 + $0xa18] sm:$0xff] }
 0x145   : > { %3061 = vmatprep.subr.bf16.mxu0 %v3734_v2  ;;  %3102 = vmatprep.subr.bf16.mxu1 %v3736_v3  ;;  %v2284_v2 = vld [vmem:[%s3925_s4 + $0x8d0] sm:$0xff] }
 0x146   : > { %v2288_v3 = vld [vmem:[%s3925_s4 + $0x8f0] sm:$0xff] }
 0x147   : > { %v3673_v15 = vcombine.low %v2284_v2, %v2288_v3  ;;  %v2328_v60 = vld [vmem:[%s3925_s4 + $0xa30] sm:$0xff] }
 0x148   : > { %3062 = vmatpush1.bf16.msra.mxu0 %v3733_v8  ;;  %3103 = vmatpush1.bf16.msra.mxu1 %v3735_v9  ;;  %v3674_v8 = vcombine.high %v2284_v2, %v2288_v3  ;;  %v3676_v9 = vcombine.high %v2285_v4, %v2289_v5  ;;  %v3714_v2 = vcombine.high %v2324_v59, %v2328_v60 }
 0x149   : > { %3063 = vmatprep.subr.bf16.mxu0 %v3742_v10  ;;  %3104 = vmatprep.subr.bf16.mxu1 %v3744_v11  ;;  %v2292_v10 = vld [vmem:[%s3925_s4 + $0x910] sm:$0xff] }
 0x14a   : > { %v2296_v11 = vld [vmem:[%s3925_s4 + $0x930] sm:$0xff] }
 0x14b   : > { %v3682_v17 = vcombine.high %v2292_v10, %v2296_v11  ;;  %v3681_v24 = vcombine.low %v2292_v10, %v2296_v11  ;;  %v3713_v10 = vcombine.low %v2324_v59, %v2328_v60  ;;  %v2384_v59 = vld [vmem:[%s3925_s4 + $0xbf0] sm:$0xff]  ;;  %v2381_v60 = vld [vmem:[%s3925_s4 + $0xbd8] sm:$0xff] }
 0x14c   : > { %3064 = vmatpush1.bf16.msra.mxu0 %v3741_v18  ;;  %3105 = vmatpush1.bf16.msra.mxu1 %v3743_v19  ;;  %v3684_v18 = vcombine.high %v2293_v13, %v2297_v14  ;;  %v2300_v19 = vld [vmem:[%s3925_s4 + $0x950] sm:$0xff] }
 0x14d   : > { %3065 = vmatprep.subr.bf16.mxu0 %v3750_v21  ;;  %3106 = vmatprep.subr.bf16.mxu1 %v3752_v22  ;;  %v2304_v21 = vld [vmem:[%s3925_s4 + $0x970] sm:$0xff]  ;;  %v2301_v22 = vld [vmem:[%s3925_s4 + $0x958] sm:$0xff] }
 0x14e   : > { %v3690_v27 = vcombine.high %v2300_v19, %v2304_v21  ;;  %v3689_v34 = vcombine.low %v2300_v19, %v2304_v21  ;;  %v3691_v54 = vcombine.low %v2301_v22, %v2305_v23 }
 0x150   : > { %3066 = vmatpush1.bf16.msra.mxu0 %v3749_v28  ;;  %3107 = vmatpush1.bf16.msra.mxu1 %v3751_v29  ;;  %v3692_v28 = vcombine.high %v2301_v22, %v2305_v23  ;;  %v2308_v29 = vld [vmem:[%s3925_s4 + $0x990] sm:$0xff] }
 0x151   : > { %3067 = vmatprep.subr.bf16.mxu0 %v3758_v30  ;;  %3108 = vmatprep.subr.bf16.mxu1 %v3760_v31  ;;  %v2312_v30 = vld [vmem:[%s3925_s4 + $0x9b0] sm:$0xff]  ;;  %v2309_v31 = vld [vmem:[%s3925_s4 + $0x998] sm:$0xff] }
 0x152   : > { %v3698_v35 = vcombine.high %v2308_v29, %v2312_v30  ;;  %v3699_v52 = vcombine.low %v2309_v31, %v2313_v32  ;;  %v2348_v22 = vld [vmem:[%s3925_s4 + $0xad0] sm:$0xff] }
 0x153   : > { %v2352_v23 = vld [vmem:[%s3925_s4 + $0xaf0] sm:$0xff] }
 0x154   : > { %3068 = vmatpush1.bf16.msra.mxu0 %v3757_v37  ;;  %3109 = vmatpush1.bf16.msra.mxu1 %v3759_v38  ;;  %v3700_v38 = vcombine.high %v2309_v31, %v2313_v32  ;;  %v2356_v31 = vld [vmem:[%s3925_s4 + $0xb10] sm:$0xff] }
 0x155   : > { %3069 = vmatprep.subr.bf16.mxu0 %v3766_v39  ;;  %3110 = vmatprep.subr.bf16.mxu1 %v3768_v41  ;;  %v2316_v39 = vld [vmem:[%s3925_s4 + $0x9d0] sm:$0xff] }
 0x156   : > { %v2320_v41 = vld [vmem:[%s3925_s4 + $0x9f0] sm:$0xff] }
 0x157   : > { %v2360_v32 = vld [vmem:[%s3925_s4 + $0xb30] sm:$0xff] }
 0x158   : > { %3070 = vmatpush1.bf16.msra.mxu0 %v3765_v45  ;;  %3111 = vmatpush1.bf16.msra.mxu1 %v3767_v46 }
 0x159   : > { %3121 = vmatprep.subr.bf16.mxu0 %v3650_v25  ;;  %3162 = vmatprep.subr.bf16.mxu1 %v3652_v47  ;;  %v3697_v47 = vcombine.low %v2308_v29, %v2312_v30  ;;  %v3738_v29 = vcombine.high %v2348_v22, %v2352_v23 }
 0x15b   : > { %3072 = vmatmul.mubr.bf16.vlgmr.msra.gmra.mrb[16].mxu0 %v4308_v50  ;;  %3113 = vmatmul.mubr.bf16.vlgmr.msra.gmra.mrb[16].mxu1 %v4308_v50 }
 0x15c   : > { %3122 = vmatpush1.bf16.msra.mxu0 %v3649_v53  ;;  %3163 = vmatpush1.bf16.msra.mxu1 %v3651_v55  ;;  %v3706_v53 = vcombine.high %v2316_v39, %v2320_v41 }
 0x15d   : > { %3123 = vmatprep.subr.bf16.mxu0 %v3658_v56  ;;  %3164 = vmatprep.subr.bf16.mxu1 %v3660_v57  ;;  %v3708_v57 = vcombine.high %v2317_v43, %v2321_v44 }
 0x15e   : > { %3153 = vmatprep.mubr.bf16.mxu0 %v4231_v33  ;;  %3194 = vmatprep.mubr.bf16.mxu1 %v4231_v33  ;;  %v3675_v33 = vcombine.low %v2285_v4, %v2289_v5  ;;  %v2332_v4 = vld [vmem:[%s3925_s4 + $0xa50] sm:$0xff] }
 0x15f   : > { %v2336_v5 = vld [vmem:[%s3925_s4 + $0xa70] sm:$0xff] }
 0x160   : > { %3124 = vmatpush1.bf16.msra.mxu0 %v3657_v62  ;;  %3165 = vmatpush1.bf16.msra.mxu1 %v3659_v63  ;;  %v2329_v62 = vld [vmem:[%s3925_s4 + $0xa38] sm:$0xff]  ;;  %v3705_v63 = vcombine.low %v2316_v39, %v2320_v41  ;;  %v3722_v14 = vcombine.high %v2332_v4, %v2336_v5  ;;  %v2364_v41 = vld [vmem:[%s3925_s4 + $0xb50] sm:$0xff] }
 0x161   : > { %3125 = vmatprep.subr.bf16.mxu0 %v3666_v0  ;;  %3166 = vmatprep.subr.bf16.mxu1 %v3668_v1  ;;  %v3707_v1 = vcombine.low %v2317_v43, %v2321_v44  ;;  %v3716_v3 = vcombine.high %v2325_v61, %v2329_v62  ;;  %v3715_v13 = vcombine.low %v2325_v61, %v2329_v62  ;;  %v2369_v43 = vld [vmem:[%s3925_s4 + $0xb78] sm:$0xff] }
 0x162   : > { %v3745_v44 = vcombine.low %v2356_v31, %v2360_v32 }
 0x164   : > { %3126 = vmatpush1.bf16.msra.mxu0 %v3665_v6  ;;  %3167 = vmatpush1.bf16.msra.mxu1 %v3667_v7  ;;  %v4352_v6 = vrot.slane %v1229_v40, %v4255_v12  ;;  %v2344_v40 = vld [vmem:[%s3925_s4 + $0xab0] sm:$0xff] }
 0x165   : > { %3127 = vmatprep.subr.bf16.mxu0 %v3674_v8  ;;  %3168 = vmatprep.subr.bf16.mxu1 %v3676_v9  ;;  %v2333_v8 = vld [vmem:[%s3925_s4 + $0xa58] sm:$0xff]  ;;  %v3730_v19 = vcombine.high %v2340_v36, %v2344_v40 }
 0x166   : > { %v2337_v9 = vld [vmem:[%s3925_s4 + $0xa78] sm:$0xff] }
 0x167   : > { %v3724_v58 = vcombine.high %v2333_v8, %v2337_v9 }
 0x168   : > { %3128 = vmatpush1.bf16.msra.mxu0 %v3673_v15  ;;  %3169 = vmatpush1.bf16.msra.mxu1 %v3675_v33  ;;  %v2341_v15 = vld [vmem:[%s3925_s4 + $0xa98] sm:$0xff] }
 0x169   : > { %3129 = vmatprep.subr.bf16.mxu0 %v3682_v17  ;;  %3170 = vmatprep.subr.bf16.mxu1 %v3684_v18  ;;  %v2345_v33 = vld [vmem:[%s3925_s4 + $0xab8] sm:$0xff]  ;;  %v3721_v17 = vcombine.low %v2332_v4, %v2336_v5  ;;  %v3723_v18 = vcombine.low %v2333_v8, %v2337_v9 }
 0x16a   : > { %v3732_v21 = vcombine.high %v2341_v15, %v2345_v33 }
 0x16c   : > { %3130 = vmatpush1.bf16.msra.mxu0 %v3681_v24  ;;  %3171 = vmatpush1.bf16.msra.mxu1 %v3683_v26  ;;  %v2349_v24 = vld [vmem:[%s3925_s4 + $0xad8] sm:$0xff] }
 0x16d   : > { %3131 = vmatprep.subr.bf16.mxu0 %v3690_v27  ;;  %3172 = vmatprep.subr.bf16.mxu1 %v3692_v28  ;;  %v2353_v26 = vld [vmem:[%s3925_s4 + $0xaf8] sm:$0xff]  ;;  %v3729_v27 = vcombine.low %v2340_v36, %v2344_v40  ;;  %v3731_v28 = vcombine.low %v2341_v15, %v2345_v33 }
 0x16e   : > { %v1141_v37 = vpop.f32.mrb[4].mxu0  ;;  %v1182_v42 = vpop.f32.mrb[4].mxu1  ;;  %v3740_v30 = vcombine.high %v2349_v24, %v2353_v26 }
 0x16f   : > { %v1143_v20 = vpop.f32.mrb[5].mxu0  ;;  %v1184_v46 = vpop.f32.mrb[5].mxu1 }
 0x170   : > { %v1199_v45 = vcombine.low %v1141_v37, %v1143_v20  ;;  %v1145_v25 = vpop.f32.mrb[6].mxu0  ;;  %3132 = vmatpush1.bf16.msra.mxu0 %v3689_v34  ;;  %v1200_v48 = vcombine.low %v1182_v42, %v1184_v46  ;;  %v1186_v49 = vpop.f32.mrb[6].mxu1  ;;  %3173 = vmatpush1.bf16.msra.mxu1 %v3691_v54  ;;  %v2357_v34 = vld [vmem:[%s3925_s4 + $0xb18] sm:$0xff]  ;;  %v3739_v37 = vcombine.low %v2349_v24, %v2353_v26  ;;  %v2368_v42 = vld [vmem:[%s3925_s4 + $0xb70] sm:$0xff] }
 0x171   : > { %v1146_v51 = vpop.f32.mrb[7].mxu0  ;;  %3133 = vmatprep.subr.bf16.mxu0 %v3698_v35  ;;  %v1187_v56 = vpop.f32.mrb[7].mxu1  ;;  %3174 = vmatprep.subr.bf16.mxu1 %v3700_v38  ;;  %v2361_v54 = vld [vmem:[%s3925_s4 + $0xb38] sm:$0xff]  ;;  %v3737_v35 = vcombine.low %v2348_v22, %v2352_v23  ;;  %v3746_v38 = vcombine.high %v2356_v31, %v2360_v32  ;;  %v3754_v46 = vcombine.high %v2364_v41, %v2368_v42  ;;  %v244_v31 = vld [vmem:[#allocation2] sm:$0xff] }
 0x172   : > { %v1221_v55 = vrot.slane %v1199_v45, %v4255_v12  ;;  %v1228_v16 = vrot.slane %v1200_v48, %v4255_v12  ;;  %v3748_v39 = vcombine.high %v2357_v34, %v2361_v54  ;;  %v2365_v20 = vld [vmem:[%s3925_s4 + $0xb58] sm:$0xff]  ;;  %v3747_v45 = vcombine.low %v2357_v34, %v2361_v54  ;;  %v2376_v48 = vld [vmem:[%s3925_s4 + $0xbb0] sm:$0xff] }
 0x173   : > { %v3756_v25 = vcombine.high %v2365_v20, %v2369_v43  ;;  %v2373_v49 = vld [vmem:[%s3925_s4 + $0xb98] sm:$0xff] }
 0x174   : > { %3134 = vmatpush1.bf16.msra.mxu0 %v3697_v47  ;;  %v1230_v0 = vcombine.low %v1221_v55, %v1228_v16  ;;  %3175 = vmatpush1.bf16.msra.mxu1 %v3699_v52  ;;  %v2372_v47 = vld [vmem:[%s3925_s4 + $0xb90] sm:$0xff]  ;;  %v2377_v51 = vld [vmem:[%s3925_s4 + $0xbb8] sm:$0xff]  ;;  %v3753_v52 = vcombine.low %v2364_v41, %v2368_v42 }
 0x175   : > { %3135 = vmatprep.subr.bf16.mxu0 %v3706_v53  ;;  %3176 = vmatprep.subr.bf16.mxu1 %v3708_v57  ;;  %v3755_v53 = vcombine.low %v2365_v20, %v2369_v43  ;;  %v3762_v55 = vcombine.high %v2372_v47, %v2376_v48  ;;  %v3764_v56 = vcombine.high %v2373_v49, %v2377_v51  ;;  %v2380_v57 = vld [vmem:[%s3925_s4 + $0xbd0] sm:$0xff]  ;;  %v2385_v16 = vld [vmem:[%s3925_s4 + $0xbf8] sm:$0xff] }
 0x176   : > { %v4355_v7 = vrot.slane %v1230_v0, %v4255_v12  ;;  %v3761_v61 = vcombine.low %v2372_v47, %v2376_v48  ;;  %v3763_v62 = vcombine.low %v2373_v49, %v2377_v51  ;;  %v3772_v0 = vcombine.high %v2381_v60, %v2385_v16 }
 0x178   : > { %3136 = vmatpush1.bf16.msra.mxu0 %v3705_v63  ;;  %v1245_v11 = vcombine.low %v4352_v6, %v4355_v7  ;;  %3177 = vmatpush1.bf16.msra.mxu1 %v3707_v1  ;;  %v3770_v63 = vcombine.high %v2380_v57, %v2384_v59  ;;  %v3769_v1 = vcombine.low %v2380_v57, %v2384_v59 }
 0x179   : > { %3137 = vmatprep.subr.bf16.mxu0 %v3714_v2  ;;  %3178 = vmatprep.subr.bf16.mxu1 %v3716_v3  ;;  %v3771_v2 = vcombine.low %v2381_v60, %v2385_v16 }
 0x17a   : > { %v1247_v54 = vadd.f32 %v1245_v11, %v244_v31 }
 0x17c   : > { %3138 = vmatpush1.bf16.msra.mxu0 %v3713_v10  ;;  %3179 = vmatpush1.bf16.msra.mxu1 %v3715_v13 }
 0x17d   : > { %3139 = vmatprep.subr.bf16.mxu0 %v3722_v14  ;;  %3180 = vmatprep.subr.bf16.mxu1 %v3724_v58 }
 0x180   : > { %3140 = vmatpush1.bf16.msra.mxu0 %v3721_v17  ;;  %3181 = vmatpush1.bf16.msra.mxu1 %v3723_v18 }
 0x181   : > { %3141 = vmatprep.subr.bf16.mxu0 %v3730_v19  ;;  %3182 = vmatprep.subr.bf16.mxu1 %v3732_v21 }
 0x184   : > { %3142 = vmatpush1.bf16.msra.mxu0 %v3729_v27  ;;  %3183 = vmatpush1.bf16.msra.mxu1 %v3731_v28 }
 0x185   : > { %3143 = vmatprep.subr.bf16.mxu0 %v3738_v29  ;;  %3184 = vmatprep.subr.bf16.mxu1 %v3740_v30 }
 0x188   : > { %3144 = vmatpush1.bf16.msra.mxu0 %v3737_v35  ;;  %3185 = vmatpush1.bf16.msra.mxu1 %v3739_v37 }
 0x189   : > { %3145 = vmatprep.subr.bf16.mxu0 %v3746_v38  ;;  %3186 = vmatprep.subr.bf16.mxu1 %v3748_v39 }
 0x18c   : > { %3146 = vmatpush1.bf16.msra.mxu0 %v3745_v44  ;;  %3187 = vmatpush1.bf16.msra.mxu1 %v3747_v45 }
 0x18d   : > { %3147 = vmatprep.subr.bf16.mxu0 %v3754_v46  ;;  %3188 = vmatprep.subr.bf16.mxu1 %v3756_v25 }
 0x190   : > { %3148 = vmatpush1.bf16.msra.mxu0 %v3753_v52  ;;  %3189 = vmatpush1.bf16.msra.mxu1 %v3755_v53 }
 0x191   : > { %3149 = vmatprep.subr.bf16.mxu0 %v3762_v55  ;;  %3190 = vmatprep.subr.bf16.mxu1 %v3764_v56 }
 0x194   : > { %3150 = vmatpush1.bf16.msra.mxu0 %v3761_v61  ;;  %3191 = vmatpush1.bf16.msra.mxu1 %v3763_v62 }
 0x195   : > { %3151 = vmatprep.subr.bf16.mxu0 %v3770_v63  ;;  %3192 = vmatprep.subr.bf16.mxu1 %v3772_v0 }
 0x198   : > { %3152 = vmatpush1.bf16.msra.mxu0 %v3769_v1  ;;  %3193 = vmatpush1.bf16.msra.mxu1 %v3771_v2 }
 0x19b   : > { %3154 = vmatmul.mubr.bf16.vlgmr.msra.gmra.mrb[20].mxu0 %v4308_v50  ;;  %3195 = vmatmul.mubr.bf16.vlgmr.msra.gmra.mrb[20].mxu1 %v4308_v50 }
 0x1ae   : > { %v2068_v3 = vpop.f32.mrb[8].mxu0  ;;  %v2109_v4 = vpop.f32.mrb[8].mxu1 }
 0x1af   : > { %v2070_v5 = vpop.f32.mrb[9].mxu0  ;;  %v2111_v9 = vpop.f32.mrb[9].mxu1 }
 0x1b0   : > { %v2206_v8 = vcombine.low %v2068_v3, %v2070_v5  ;;  %v2072_v10 = vpop.f32.mrb[10].mxu0  ;;  %v2207_v13 = vcombine.low %v2109_v4, %v2111_v9  ;;  %v2113_v14 = vpop.f32.mrb[10].mxu1  ;;  %v3268_v3 = vld [vmem:[%s4424_s2] sm:$0xff] (!%p3773_p8) }
 0x1b1   : > { %v2073_v58 = vpop.f32.mrb[11].mxu0  ;;  %v2114_v40 = vpop.f32.mrb[11].mxu1 }
 0x1b2   : > { %v2216_v36 = vrot.slane %v2206_v8, %v4255_v12  ;;  %v2223_v15 = vrot.slane %v2207_v13, %v4255_v12 }
 0x1b4   : > { %v2238_v33 = vcombine.low %v2216_v36, %v2223_v15 }
 0x1b6   : > { %v2246_v32 = vrot.slane %v2238_v33, %v4255_v12 }
 0x1ee   : > { %v2150_v17 = vpop.f32.mrb[12].mxu0  ;;  %v2191_v18 = vpop.f32.mrb[12].mxu1 }
 0x1ef   : > { %v2152_v19 = vpop.f32.mrb[13].mxu0  ;;  %v2193_v50 = vpop.f32.mrb[13].mxu1 }
 0x1f0   : > { %v2208_v21 = vcombine.low %v2150_v17, %v2152_v19  ;;  %v2154_v22 = vpop.f32.mrb[14].mxu0  ;;  %v2209_v23 = vcombine.low %v2191_v18, %v2193_v50  ;;  %v2195_v24 = vpop.f32.mrb[14].mxu1 }
 0x1f1   : > { %v2155_v26 = vpop.f32.mrb[15].mxu0  ;;  %v2196_v28 = vpop.f32.mrb[15].mxu1 }
 0x1f2   : > { %v2230_v27 = vrot.slane %v2208_v21, %v4255_v12  ;;  %v2237_v29 = vrot.slane %v2209_v23, %v4255_v12 }
 0x1f4   : > { %v2239_v30 = vcombine.low %v2230_v27, %v2237_v29 }
 0x1f6   : > { %v2253_v34 = vrot.slane %v2239_v30, %v4255_v12 }
 0x1f8   : > { %v2254_v35 = vcombine.low %v2246_v32, %v2253_v34 }
 0x1fa   : > { %v2256_v37 = vadd.f32 %v2254_v35, %v1247_v54 }
 0x22e   : > { %v3073_v38 = vpop.f32.mrb[16].mxu0  ;;  %v3114_v39 = vpop.f32.mrb[16].mxu1 }
 0x22f   : > { %v3075_v41 = vpop.f32.mrb[17].mxu0  ;;  %v3116_v20 = vpop.f32.mrb[17].mxu1 }
 0x230   : > { %v3211_v42 = vcombine.low %v3073_v38, %v3075_v41  ;;  %v3077_v43 = vpop.f32.mrb[18].mxu0  ;;  %v3212_v44 = vcombine.low %v3114_v39, %v3116_v20  ;;  %v3118_v45 = vpop.f32.mrb[18].mxu1 }
 0x231   : > { %v3078_v46 = vpop.f32.mrb[19].mxu0  ;;  %v3119_v47 = vpop.f32.mrb[19].mxu1 }
 0x232   : > { %v3221_v25 = vrot.slane %v3211_v42, %v4255_v12  ;;  %v3228_v48 = vrot.slane %v3212_v44, %v4255_v12 }
 0x234   : > { %v3243_v49 = vcombine.low %v3221_v25, %v3228_v48 }
 0x236   : > { %v3251_v62 = vrot.slane %v3243_v49, %v4255_v12 }
 0x26e   : > { %v3155_v51 = vpop.f32.mrb[20].mxu0  ;;  %v3196_v6 = vpop.f32.mrb[20].mxu1 }
 0x26f   : > { %v3157_v7 = vpop.f32.mrb[21].mxu0  ;;  %v3198_v52 = vpop.f32.mrb[21].mxu1 }
 0x270   : > { %v3213_v11 = vcombine.low %v3155_v51, %v3157_v7  ;;  %v3159_v53 = vpop.f32.mrb[22].mxu0  ;;  %v3214_v55 = vcombine.low %v3196_v6, %v3198_v52  ;;  %v3200_v56 = vpop.f32.mrb[22].mxu1 }
 0x271   : > { %v3160_v57 = vpop.f32.mrb[23].mxu0  ;;  %v3201_v60 = vpop.f32.mrb[23].mxu1 }
 0x272   : > { %v3235_v59 = vrot.slane %v3213_v11, %v4255_v12  ;;  %v3242_v16 = vrot.slane %v3214_v55, %v4255_v12 }
 0x274   : > { %v3244_v61 = vcombine.low %v3235_v59, %v3242_v16 }
 0x276   : > { %v3258_v63 = vrot.slane %v3244_v61, %v4255_v12  ;;  %3266 = sbr.rel (%p3773_p8) target bundleno = 649 (0x289), region = 40 }
 0x278   : > { %v3259_v0 = vcombine.low %v3251_v62, %v3258_v63 }
 0x27a   : > { %v3261_v1 = vadd.f32 %v3259_v0, %v2256_v37 }
 0x27c   : > { %3262 = vst [vmem:[#allocation2] sm:$0xff] %v3261_v1 }
 0x283   : > { %v3267_v2 = vld [vmem:[#allocation2] sm:$0xff] }
 0x284   : > { %v3269_v4 = vadd.f32 %v3268_v3, %v3267_v2 }
 0x286   : > { %v3270_v5 = vmax.f32 %v3269_v4, 0.0 }
 0x288   : > { %3271 = vst [vmem:[%s3920_s27] sm:$0xff] %v3270_v5 }
 0x289 PF: > { %s13_s16 = sadd.s32 1, %s3859_s16   ;;  %s4426_s12 = smov %s3851_s14 }
 0x28a   : > { %p10_p9 = scmp.ge.s32.totalorder %s13_s16, 8   ;;  %s4427_s13 = smov %s3855_s15 }
 0x28b   : > { %s4428_s14 = smov %s4431_s17  ;;  %s4429_s15 = smov %s4435_s18 }
 0x28c   :  { %12 = sbr.rel (!%p10_p9) target bundleno = 3 (0x3), region = 73 }

</bundles_post_ra>
